<compile_context>
chip_gen: v5e
topology: v5e:2x2
jax: 0.10.0
libtpu: 0.0.40
codegen_flags: <defaults>
</compile_context>

<pallas_src>
import jax
import jax.numpy as jnp
from jax.experimental import pallas as pl
from jax.experimental.pallas import tpu as pltpu

IMG_H = IMG_W = 28
IMG = IMG_H * IMG_W        # 784 flattened input pixels
KCONV = 9                  # conv kernel size
OH = OW = 20               # conv output spatial (28 - 9 + 1)
PH = PW = 5                # pooled spatial (20 / 4)
NPOOL = PH * PW            # 25 pooled cells
KPOOL = 16                 # 4*4 positions inside one pooling window
COUT = 10                  # conv channels / fc outputs
LANES = NPOOL * COUT       # 250 = pooled feature width (ph*50 + pw*10 + c)
CONV_N = KPOOL * LANES     # 4000 = conv matmul output lanes (all 20*20*10 outputs)
OUT_PAD = 128              # lane-dense (unmasked-store) output width

TILE_B_MAX = 128           # batch tile per grid step


def _round_up(v, m):
    return (v + m - 1) // m * m


def cnn_kernel(img_ref, wconv_ref, bc_ref, wfc_ref, bfc_ref, out_ref):
    # img_ref:   (TB, 784)   f32   raw flattened 28x28 images
    # wconv_ref: (784, 4000) bf16  conv-as-dense weight, lane = (dh*4+dw)*250 + ph*50 + pw*10 + c
    # bc_ref:    (1, 250)    f32   conv bias broadcast over (ph, pw)
    # wfc_ref:   (250, 128)  f32   fc weight (PyTorch flatten order folded in), lanes 10..127 zero
    # bfc_ref:   (1, 128)    f32
    # out_ref:   (TB, 128)   f32   lanes 10..127 carry zeros, sliced off in the wrapper
    x = img_ref[...].astype(jnp.bfloat16)                                    # (TB, 784)

    # Conv2d(1, 10, 9): one MXU matmul produces every conv output exactly once.
    conv = jnp.dot(x, wconv_ref[...], preferred_element_type=jnp.float32)   # (TB, 4000)

    # MaxPool2d(4): max over the 16 (dh, dw) window positions = 16 contiguous
    # 250-lane groups (static lane slices + elementwise max only).
    pooled = conv[:, 0:LANES]
    for g in range(1, KPOOL):
        pooled = jnp.maximum(pooled, conv[:, g * LANES:(g + 1) * LANES])    # (TB, 250)

    # Bias + ReLU after the pool (exact: per-lane-constant bias, monotone ReLU).
    act = jnp.maximum(pooled + bc_ref[...], 0.0)                            # (TB, 250)

    # Linear(250, 10), output zero-padded to 128 lanes for unmasked stores.
    out_ref[...] = jnp.dot(act, wfc_ref[...],
                           preferred_element_type=jnp.float32) + bfc_ref[...]


def _conv_as_dense(wc):
    """(10,1,9,9) -> (784, 4000) bf16 with
    W[r*28+iw, (dh*4+dw)*250 + (ph*5+pw)*10 + c] = wc[c, 0, r-(4ph+dh), iw-(4pw+dw)]
    (zero when the tap offsets fall outside [0, 9))."""
    r = jnp.arange(IMG_H).reshape(IMG_H, 1, 1, 1, 1, 1)
    iw = jnp.arange(IMG_W).reshape(1, IMG_W, 1, 1, 1, 1)
    dh = jnp.arange(4).reshape(1, 1, 4, 1, 1, 1)
    dw = jnp.arange(4).reshape(1, 1, 1, 4, 1, 1)
    ph = jnp.arange(PH).reshape(1, 1, 1, 1, PH, 1)
    pw = jnp.arange(PW).reshape(1, 1, 1, 1, 1, PW)

    jh = r - 4 * ph - dh                                   # (28,1,4,1,5,1)
    jw = iw - 4 * pw - dw                                  # (1,28,1,4,1,5)
    valid = (jh >= 0) & (jh < KCONV) & (jw >= 0) & (jw < KCONV)   # (28,28,4,4,5,5)

    w = wc[:, 0].astype(jnp.float32)                       # (10, 9, 9)
    taps = w[:, jnp.clip(jh, 0, KCONV - 1), jnp.clip(jw, 0, KCONV - 1)]
    taps = jnp.where(valid[None], taps, 0.0)               # (10,28,28,4,4,5,5)
    wbig = taps.transpose(1, 2, 3, 4, 5, 6, 0).reshape(IMG, CONV_N)
    return wbig.astype(jnp.bfloat16)


@jax.jit
def cnn_forward(x, wc, bc, wf, bf):
    n = x.shape[0]
    tile_b = min(TILE_B_MAX, _round_up(n, 8))
    n_pad = _round_up(n, tile_b)
    # (On v7x, batches >= 2*TILE_B give grid >= 2 so the "parallel" axis feeds both cores.)

    img = x.reshape(n, IMG).astype(jnp.float32)            # (N, 784) -- no im2col at all
    if n_pad != n:
        img = jnp.pad(img, ((0, n_pad - n), (0, 0)))

    wconv = _conv_as_dense(wc)                             # (784, 4000) bf16
    bc250 = jnp.tile(bc.astype(jnp.float32), NPOOL).reshape(1, LANES)

    # FC weight in (ph*50 + pw*10 + c) lane order; PyTorch flatten index = c*25 + ph*5 + pw.
    wfc = wf.reshape(COUT, COUT, PH, PW).transpose(2, 3, 1, 0).reshape(LANES, COUT)
    wfc = jnp.pad(wfc.astype(jnp.float32), ((0, 0), (0, OUT_PAD - COUT)))
    bfc = jnp.pad(bf.astype(jnp.float32).reshape(1, COUT), ((0, 0), (0, OUT_PAD - COUT)))

    flops = 2 * n_pad * (IMG * CONV_N + LANES * OUT_PAD)
    bytes_accessed = (n_pad * IMG * 4 + IMG * CONV_N * 2
                      + LANES * OUT_PAD * 4 + n_pad * OUT_PAD * 4)

    out = pl.pallas_call(
        cnn_kernel,
        out_shape=jax.ShapeDtypeStruct((n_pad, OUT_PAD), jnp.float32),
        grid=(n_pad // tile_b,),
        in_specs=[
            pl.BlockSpec((tile_b, IMG), lambda b: (b, 0)),
            pl.BlockSpec((IMG, CONV_N), lambda b: (0, 0)),
            pl.BlockSpec((1, LANES), lambda b: (0, 0)),
            pl.BlockSpec((LANES, OUT_PAD), lambda b: (0, 0)),
            pl.BlockSpec((1, OUT_PAD), lambda b: (0, 0)),
        ],
        out_specs=pl.BlockSpec((tile_b, OUT_PAD), lambda b: (b, 0)),
        compiler_params=pltpu.CompilerParams(
            dimension_semantics=("parallel",),
            vmem_limit_bytes=48 * 1024 * 1024),
        cost_estimate=pl.CostEstimate(
            flops=flops, transcendentals=0, bytes_accessed=bytes_accessed),
    )(img, wconv, bc250, wfc, bfc)
    return out[:n, :COUT]


def cnn_reference(x, wc, bc, wf, bf):
    conv = jax.lax.conv_general_dilated(
        x, wc, window_strides=(1, 1), padding="VALID",
        dimension_numbers=("NCHW", "OIHW", "NCHW"))                  # (N,10,20,20)
    conv = jnp.maximum(conv + bc[None, :, None, None], 0.0)
    pooled = jax.lax.reduce_window(
        conv, -jnp.inf, jax.lax.max,
        window_dimensions=(1, 1, 4, 4), window_strides=(1, 1, 4, 4),
        padding="VALID")                                             # (N,10,5,5)
    flat = pooled.reshape(x.shape[0], COUT * PH * PW)
    return flat @ wf.T + bf


if __name__ == "__main__":
    key = jax.random.PRNGKey(0)
    kx, kwc, kbc, kwf, kbf = jax.random.split(key, 5)
    # MNIST-shaped input is forced by the module (fc expects 250 = 10*5*5).
    x = jax.random.normal(kx, (2, 1, 28, 28), dtype=jnp.float32)
    wc = jax.random.normal(kwc, (10, 1, 9, 9), dtype=jnp.float32) * 0.1
    bc = jax.random.normal(kbc, (10,), dtype=jnp.float32) * 0.1
    wf = jax.random.normal(kwf, (10, 250), dtype=jnp.float32) * 0.05
    bf = jax.random.normal(kbf, (10,), dtype=jnp.float32) * 0.05

    out = cnn_forward(x, wc, bc, wf, bf)
    out = jax.block_until_ready(out)

    ref = cnn_reference(x, wc, bc, wf, bf)
    assert out.shape == (2, 10)
    err = float(jnp.max(jnp.abs(out - ref)))
    assert jnp.allclose(out, ref, atol=5e-2, rtol=5e-2), err
    print("KERNEL_OK")
</pallas_src>

<mosaic_0001>
module attributes {stable_mosaic.version = 11 : i64} {
  func.func @cnn_kernel(%arg0: i32, %arg1: memref<8x784xf32, #tpu.memory_space<vmem>>, %arg2: memref<784x4000xbf16, #tpu.memory_space<vmem>>, %arg3: memref<1x250xf32, #tpu.memory_space<vmem>>, %arg4: memref<250x128xf32, #tpu.memory_space<vmem>>, %arg5: memref<1x128xf32, #tpu.memory_space<vmem>>, %arg6: memref<8x128xf32, #tpu.memory_space<vmem>>) attributes {dimension_semantics = [#tpu.dimension_semantics<parallel>], iteration_bounds = array<i64: 1>, scalar_prefetch = 0 : i64, scratch_operands = 0 : i64, tpu.core_type = #tpu.core_type<tc>, window_params = [{transform_indices = @transform_0, window_bounds = array<i64: 8, 784>}, {pipeline_mode = #tpu.pipeline_mode<synchronous>, transform_indices = @transform_1, window_bounds = array<i64: 784, 4000>}, {pipeline_mode = #tpu.pipeline_mode<synchronous>, transform_indices = @transform_2, window_bounds = array<i64: 1, 250>}, {pipeline_mode = #tpu.pipeline_mode<synchronous>, transform_indices = @transform_3, window_bounds = array<i64: 250, 128>}, {pipeline_mode = #tpu.pipeline_mode<synchronous>, transform_indices = @transform_4, window_bounds = array<i64: 1, 128>}, {transform_indices = @transform_5, window_bounds = array<i64: 8, 128>}]} {
    %c0 = arith.constant 0 : index
    %c0_0 = arith.constant 0 : index
    %0 = vector.load %arg1[%c0, %c0_0] : memref<8x784xf32, #tpu.memory_space<vmem>>, vector<8x784xf32>
    %1 = arith.truncf %0 : vector<8x784xf32> to vector<8x784xbf16>
    %c0_1 = arith.constant 0 : index
    %c0_2 = arith.constant 0 : index
    %2 = vector.load %arg2[%c0_1, %c0_2] : memref<784x4000xbf16, #tpu.memory_space<vmem>>, vector<784x4000xbf16>
    %cst = arith.constant dense<0.000000e+00> : vector<8x4000xf32>
    %3 = tpu.matmul %1, %2, %cst {dimension_numbers = #tpu.dot_dimension_numbers<[1], [0], [0], [1], [0, 0, 1, 1], [], []>} : vector<8x784xbf16>, vector<784x4000xbf16>, vector<8x4000xf32> -> vector<8x4000xf32>
    %4 = vector.extract_strided_slice %3 {offsets = [0, 0], sizes = [8, 250], strides = [1, 1]} : vector<8x4000xf32> to vector<8x250xf32>
    %5 = vector.extract_strided_slice %3 {offsets = [0, 250], sizes = [8, 250], strides = [1, 1]} : vector<8x4000xf32> to vector<8x250xf32>
    %6 = arith.maximumf %4, %5 : vector<8x250xf32>
    %7 = vector.extract_strided_slice %3 {offsets = [0, 500], sizes = [8, 250], strides = [1, 1]} : vector<8x4000xf32> to vector<8x250xf32>
    %8 = arith.maximumf %6, %7 : vector<8x250xf32>
    %9 = vector.extract_strided_slice %3 {offsets = [0, 750], sizes = [8, 250], strides = [1, 1]} : vector<8x4000xf32> to vector<8x250xf32>
    %10 = arith.maximumf %8, %9 : vector<8x250xf32>
    %11 = vector.extract_strided_slice %3 {offsets = [0, 1000], sizes = [8, 250], strides = [1, 1]} : vector<8x4000xf32> to vector<8x250xf32>
    %12 = arith.maximumf %10, %11 : vector<8x250xf32>
    %13 = vector.extract_strided_slice %3 {offsets = [0, 1250], sizes = [8, 250], strides = [1, 1]} : vector<8x4000xf32> to vector<8x250xf32>
    %14 = arith.maximumf %12, %13 : vector<8x250xf32>
    %15 = vector.extract_strided_slice %3 {offsets = [0, 1500], sizes = [8, 250], strides = [1, 1]} : vector<8x4000xf32> to vector<8x250xf32>
    %16 = arith.maximumf %14, %15 : vector<8x250xf32>
    %17 = vector.extract_strided_slice %3 {offsets = [0, 1750], sizes = [8, 250], strides = [1, 1]} : vector<8x4000xf32> to vector<8x250xf32>
    %18 = arith.maximumf %16, %17 : vector<8x250xf32>
    %19 = vector.extract_strided_slice %3 {offsets = [0, 2000], sizes = [8, 250], strides = [1, 1]} : vector<8x4000xf32> to vector<8x250xf32>
    %20 = arith.maximumf %18, %19 : vector<8x250xf32>
    %21 = vector.extract_strided_slice %3 {offsets = [0, 2250], sizes = [8, 250], strides = [1, 1]} : vector<8x4000xf32> to vector<8x250xf32>
    %22 = arith.maximumf %20, %21 : vector<8x250xf32>
    %23 = vector.extract_strided_slice %3 {offsets = [0, 2500], sizes = [8, 250], strides = [1, 1]} : vector<8x4000xf32> to vector<8x250xf32>
    %24 = arith.maximumf %22, %23 : vector<8x250xf32>
    %25 = vector.extract_strided_slice %3 {offsets = [0, 2750], sizes = [8, 250], strides = [1, 1]} : vector<8x4000xf32> to vector<8x250xf32>
    %26 = arith.maximumf %24, %25 : vector<8x250xf32>
    %27 = vector.extract_strided_slice %3 {offsets = [0, 3000], sizes = [8, 250], strides = [1, 1]} : vector<8x4000xf32> to vector<8x250xf32>
    %28 = arith.maximumf %26, %27 : vector<8x250xf32>
    %29 = vector.extract_strided_slice %3 {offsets = [0, 3250], sizes = [8, 250], strides = [1, 1]} : vector<8x4000xf32> to vector<8x250xf32>
    %30 = arith.maximumf %28, %29 : vector<8x250xf32>
    %31 = vector.extract_strided_slice %3 {offsets = [0, 3500], sizes = [8, 250], strides = [1, 1]} : vector<8x4000xf32> to vector<8x250xf32>
    %32 = arith.maximumf %30, %31 : vector<8x250xf32>
    %33 = vector.extract_strided_slice %3 {offsets = [0, 3750], sizes = [8, 250], strides = [1, 1]} : vector<8x4000xf32> to vector<8x250xf32>
    %34 = arith.maximumf %32, %33 : vector<8x250xf32>
    %c0_3 = arith.constant 0 : index
    %c0_4 = arith.constant 0 : index
    %35 = vector.load %arg3[%c0_3, %c0_4] : memref<1x250xf32, #tpu.memory_space<vmem>>, vector<1x250xf32>
    %36 = vector.broadcast %35 : vector<1x250xf32> to vector<8x250xf32>
    %37 = arith.addf %34, %36 : vector<8x250xf32>
    %cst_5 = arith.constant 0.000000e+00 : f32
    %38 = vector.broadcast %cst_5 : f32 to vector<8x250xf32>
    %39 = arith.maximumf %37, %38 : vector<8x250xf32>
    %c0_6 = arith.constant 0 : index
    %c0_7 = arith.constant 0 : index
    %40 = vector.load %arg4[%c0_6, %c0_7] : memref<250x128xf32, #tpu.memory_space<vmem>>, vector<250x128xf32>
    %cst_8 = arith.constant dense<0.000000e+00> : vector<8x128xf32>
    %41 = tpu.matmul %39, %40, %cst_8 {dimension_numbers = #tpu.dot_dimension_numbers<[1], [0], [0], [1], [0, 0, 1, 1], [], []>} : vector<8x250xf32>, vector<250x128xf32>, vector<8x128xf32> -> vector<8x128xf32>
    %c0_9 = arith.constant 0 : index
    %c0_10 = arith.constant 0 : index
    %42 = vector.load %arg5[%c0_9, %c0_10] : memref<1x128xf32, #tpu.memory_space<vmem>>, vector<1x128xf32>
    %43 = vector.broadcast %42 : vector<1x128xf32> to vector<8x128xf32>
    %44 = arith.addf %41, %43 : vector<8x128xf32>
    %c0_11 = arith.constant 0 : index
    %c0_12 = arith.constant 0 : index
    %45 = vector.load %arg6[%c0_11, %c0_12] : memref<8x128xf32, #tpu.memory_space<vmem>>, vector<8x128xf32>
    tpu.vector_store %arg6[%c0_11, %c0_12], %44 {strides = array<i32>} : memref<8x128xf32, #tpu.memory_space<vmem>>, vector<8x128xf32>,
    return
  }
  func.func @transform_0(%arg0: i32) -> (i32, i32) {
    %c0_i32 = arith.constant 0 : i32
    %c0_i32_0 = arith.constant 0 : i32
    return %arg0, %c0_i32 : i32, i32
  }
  func.func @transform_1(%arg0: i32) -> (i32, i32) {
    %c0_i32 = arith.constant 0 : i32
    %c0_i32_0 = arith.constant 0 : i32
    %c0_i32_1 = arith.constant 0 : i32
    return %c0_i32, %c0_i32_0 : i32, i32
  }
  func.func @transform_2(%arg0: i32) -> (i32, i32) {
    %c0_i32 = arith.constant 0 : i32
    %c0_i32_0 = arith.constant 0 : i32
    %c0_i32_1 = arith.constant 0 : i32
    return %c0_i32, %c0_i32_0 : i32, i32
  }
  func.func @transform_3(%arg0: i32) -> (i32, i32) {
    %c0_i32 = arith.constant 0 : i32
    %c0_i32_0 = arith.constant 0 : i32
    %c0_i32_1 = arith.constant 0 : i32
    return %c0_i32, %c0_i32_0 : i32, i32
  }
  func.func @transform_4(%arg0: i32) -> (i32, i32) {
    %c0_i32 = arith.constant 0 : i32
    %c0_i32_0 = arith.constant 0 : i32
    %c0_i32_1 = arith.constant 0 : i32
    return %c0_i32, %c0_i32_0 : i32, i32
  }
  func.func @transform_5(%arg0: i32) -> (i32, i32) {
    %c0_i32 = arith.constant 0 : i32
    %c0_i32_0 = arith.constant 0 : i32
    return %arg0, %c0_i32 : i32, i32
  }
}

</mosaic_0001>

<bundles_post_ra>
// kernel: tile.8
= control target key start
LH: loop header
LB: loop body
LE: loop exit
PB: predicated region body
PF: predicated region fallthrough
CT: control target
= control target key end

     0   :  { %s40_s0 = inlined_call_operand.vmem [shape: f32[10], index: 0, kind: input, shape index: {}]   ;;  %s41_s1 = inlined_call_operand.vmem [shape: f32[25,10], index: 1, kind: output, shape index: {}]  }
   0x1   :  { %v4_v0 = vld [vmem:[%s40_s0] ss:$0 sm:$0xff] }
   0x2   :  { %5 = vst [vmem:[%s41_s1] sm:$0xff] %v4_v0 }
   0x3   :  { %12 = vst [vmem:[%s41_s1 + $0x8] sm:$0xff] %v4_v0 }
   0x4   :  { %13 = vst [vmem:[%s41_s1 + $0x10] sm:$0xff] %v4_v0 }
   0x5   :  { %14 = vst [vmem:[%s41_s1 + $0x18] sm:$0xff] %v4_v0 }

// kernel: tile.9
= control target key start
LH: loop header
LB: loop body
LE: loop exit
PB: predicated region body
PF: predicated region fallthrough
CT: control target
= control target key end

     0   :  { %vm9_vm0 = vcmask 64512   ;;  %s230_s12 = smov 120   ;;  %s231_s13 = smov 110   ;;  %vm3_vm1 = vcmask 80896   ;;  %vm13_vm2 = vcmask 15360   ;;  %vm16_vm3 = vcmask 1048512   ;;  %s348_s0 = inlined_call_operand.vmem [shape: f32[25,10], index: 0, kind: input, shape index: {}]   ;;  %s349_s1 = inlined_call_operand.vmem [shape: f32[1,250], index: 1, kind: output, shape index: {}]  }
   0x1   :  { %v180_v0 = vld [vmem:[%s348_s0 + $0xc] sm:$0x1]   ;;  %v183_v3 = vld [vmem:[%s348_s0 + $0xb] sm:$0x1]   ;;  %v185_v4 = vld [vmem:[%s348_s0 + $0xa] sm:$0x1]  }
   0x2   :  { %v181_v1 = vld [vmem:[%s348_s0 + $0xc] sm:$0x1]   ;;  %27 = vrot.lane.b32.xlu1 %v183_v3, %s231_s13  ;;  %s232_s16 = smov 100   ;;  %v182_v5 = vld [vmem:[%s348_s0 + $0x18] sm:$0x1]   ;;  %s233_s21 = smov 112  }
   0x3   :  { %v10_v2 = vsel %vm9_vm0, %v181_v1, %v180_v0  ;;  %40 = vrot.lane.b32.xlu2 %v185_v4, %s232_s16  ;;  %v184_v6 = vld [vmem:[%s348_s0 + $0x17] sm:$0x1]   ;;  %s234_s22 = smov 102   ;;  %v186_v7 = vld [vmem:[%s348_s0 + $0x16] sm:$0x1]   ;;  %s235_s25 = smov 92  }
   0x4   :  { %11 = vrot.lane.b32.xlu0 %v10_v2, %s230_s12  ;;  %v187_v8 = vld [vmem:[%s348_s0 + $0x9] sm:$0x1]   ;;  %v188_v9 = vld [vmem:[%s348_s0 + $0x15] sm:$0x1]   ;;  %s236_s30 = smov 90   ;;  %s237_s2 = smov 82  }
   0x5   :  { %v189_v10 = vld [vmem:[%s348_s0 + $0x8] sm:$0x1]   ;;  %s238_s5 = smov 80   ;;  %v190_v11 = vld [vmem:[%s348_s0 + $0x14] sm:$0x1]   ;;  %s239_s10 = smov 72  }
   0x6   :  { %v191_v12 = vld [vmem:[%s348_s0 + $0x7] sm:$0x1]   ;;  %s240_s11 = smov 70   ;;  %v192_v13 = vld [vmem:[%s348_s0 + $0x13] sm:$0x1]   ;;  %s241_s14 = smov 62  }
   0x7   :  { %v193_v14 = vld [vmem:[%s348_s0 + $0x6] sm:$0x1]   ;;  %v194_v15 = vld [vmem:[%s348_s0 + $0x12] sm:$0x1]   ;;  %s242_s19 = smov 60   ;;  %s243_s20 = smov 52  }
   0x8   :  { %v195_v16 = vld [vmem:[%s348_s0 + $0x5] sm:$0x1]   ;;  %s244_s23 = smov 50   ;;  %v196_v17 = vld [vmem:[%s348_s0 + $0x11] sm:$0x1]   ;;  %s245_s28 = smov 42  }
   0x9   :  { %v197_v18 = vld [vmem:[%s348_s0 + $0x4] sm:$0x1]   ;;  %s246_s29 = smov 40   ;;  %v198_v19 = vld [vmem:[%s348_s0 + $0x10] sm:$0x1]   ;;  %s247_s3 = smov 32  }
   0xa   :  { %33 = vrot.lane.b32.xlu1 %v184_v6, %s234_s22  ;;  %v199_v20 = vld [vmem:[%s348_s0 + $0x3] sm:$0x1]   ;;  %v200_v21 = vld [vmem:[%s348_s0 + $0xf] sm:$0x1]   ;;  %s248_s8 = smov 30   ;;  %s249_s9 = smov 22  }
   0xb   :  { %46 = vrot.lane.b32.xlu2 %v186_v7, %s235_s25  ;;  %v201_v22 = vld [vmem:[%s348_s0 + $0x2] sm:$0x1]   ;;  %s250_s12 = smov 20   ;;  %v202_v23 = vld [vmem:[%s348_s0 + $0xe] sm:$0x1]   ;;  %s251_s17 = smov 12  }
   0xc   :  { %20 = vrot.lane.b32.xlu0 %v182_v5, %s233_s21  ;;  %v203_v24 = vld [vmem:[%s348_s0 + $0x1] sm:$0x1]   ;;  %s252_s18 = smov 10   ;;  %v204_v25 = vld [vmem:[%s348_s0 + $0xd] sm:$0x1]   ;;  %s253_s21 = smov 2  }
   0xd   :  { %v2_v26 = vld [vmem:[%s348_s0] sm:$0x1]   ;;  %vm29_vm4 = vcmask 982896   ;;  %vm42_vm5 = vcmask 900896   ;;  %vm22_vm6 = vcmask 999296   ;;  %vm35_vm7 = vcmask 917296  }
   0xe   :  { %4 = vst.msk [vmem:[#allocation0] sm:$0x1] %vm3_vm1, %v2_v26   ;;  %vm48_vm8 = vcmask 835296   ;;  %vm55_vm9 = vcmask 818896   ;;  %vm68_vm10 = vcmask 736896   ;;  %vm61_vm11 = vcmask 753296  }
   0xf   :  { %vm74_vm12 = vcmask 671296   ;;  %vm87_vm13 = vcmask 589296   ;;  %vm81_vm14 = vcmask 654896   ;;  %vm94_vm15 = vcmask 572896  }
  0x10   :  { %vm107_vm0 = vcmask 490896   ;;  %vm100_vm1 = vcmask 507296  }
  0x12   :  { %59 = vrot.lane.b32.xlu1 %v188_v9, %s237_s2 }
  0x13   :  { %66 = vrot.lane.b32.xlu2 %v189_v10, %s238_s5 }
  0x14   :  { %53 = vrot.lane.b32.xlu0 %v187_v8, %s236_s30 }
  0x1a   :  { %79 = vrot.lane.b32.xlu1 %v191_v12, %s240_s11 }
  0x1b   :  { %85 = vrot.lane.b32.xlu2 %v192_v13, %s241_s14 }
  0x1c   :  { %72 = vrot.lane.b32.xlu0 %v190_v11, %s239_s10 }
  0x22   :  { %98 = vrot.lane.b32.xlu1 %v194_v15, %s243_s20 }
  0x23   :  { %105 = vrot.lane.b32.xlu2 %v195_v16, %s244_s23 }
  0x24   :  { %92 = vrot.lane.b32.xlu0 %v193_v14, %s242_s19 }
  0x2a   :  { %118 = vrot.lane.b32.xlu1 %v197_v18, %s246_s29 }
  0x2b   :  { %124 = vrot.lane.b32.xlu2 %v198_v19, %s247_s3 }
  0x2c   :  { %111 = vrot.lane.b32.xlu0 %v196_v17, %s245_s28 }
  0x32   :  { %137 = vrot.lane.b32.xlu1 %v200_v21, %s249_s9 }
  0x33   :  { %144 = vrot.lane.b32.xlu2 %v201_v22, %s250_s12 }
  0x34   :  { %131 = vrot.lane.b32.xlu0 %v199_v20, %s248_s8 }
  0x3a   :  { %157 = vrot.lane.b32.xlu1 %v203_v24, %s252_s18 }
  0x3b   :  { %163 = vrot.lane.b32.xlu2 %v204_v25, %s253_s21 }
  0x3c   :  { %150 = vrot.lane.b32.xlu0 %v202_v23, %s251_s17 }
  0x5d   :  { %v41_v27 = vpop.permute.xlu2 %40  }
  0x65   :  { %v47_v28 = vpop.permute.xlu2 %46  }
  0x6d   :  { %v67_v29 = vpop.permute.xlu2 %66  }
  0x74   :  { %v28_v31 = vpop.permute.xlu1 %27  }
  0x75   :  { %v86_v32 = vpop.permute.xlu2 %85  }
  0x76   :  { %v12_v30 = vpop.permute.xlu0 %11  }
  0x77   :  { %15 = vst.msk [vmem:[#allocation0 + $0x8] sm:$0x1] %vm13_vm2, %v12_v30   ;;  %vm113_vm2 = vcmask 425296  }
  0x78   :  { %17 = vst.msk [vmem:[#allocation0] sm:$0x1] %vm16_vm3, %v12_v30   ;;  %vm126_vm3 = vcmask 343296  }
  0x79   :  { %30 = vst.msk [vmem:[#allocation0] sm:$0x1] %vm29_vm4, %v28_v31   ;;  %vm120_vm4 = vcmask 408896  }
  0x7a   :  { %43 = vst.msk [vmem:[#allocation0] sm:$0x1] %vm42_vm5, %v41_v27   ;;  %vm133_vm5 = vcmask 326896  }
  0x7c   :  { %v34_v34 = vpop.permute.xlu1 %33  }
  0x7d   :  { %v106_v35 = vpop.permute.xlu2 %105  }
  0x7e   :  { %v21_v33 = vpop.permute.xlu0 %20  }
  0x7f   :  { %24 = vst.msk [vmem:[#allocation0 + $0x8] sm:$0x1] %vm22_vm6, %v21_v33   ;;  %vm146_vm6 = vcmask 244896  }
  0x80   :  { %37 = vst.msk [vmem:[#allocation0 + $0x8] sm:$0x1] %vm35_vm7, %v34_v34   ;;  %vm139_vm7 = vcmask 261296  }
  0x81   :  { %50 = vst.msk [vmem:[#allocation0 + $0x8] sm:$0x1] %vm48_vm8, %v47_v28   ;;  %vm152_vm8 = vcmask 179296  }
  0x84   :  { %v60_v37 = vpop.permute.xlu1 %59  }
  0x85   :  { %63 = vst.msk [vmem:[#allocation0 + $0x8] sm:$0x1] %vm61_vm11, %v60_v37   ;;  %v125_v38 = vpop.permute.xlu2 %124  }
  0x86   :  { %v54_v36 = vpop.permute.xlu0 %53  }
  0x87   :  { %56 = vst.msk [vmem:[#allocation0] sm:$0x1] %vm55_vm9, %v54_v36   ;;  %vm165_vm9 = vcmask 97296  }
  0x88   :  { %69 = vst.msk [vmem:[#allocation0] sm:$0x1] %vm68_vm10, %v67_v29   ;;  %vm159_vm10 = vcmask 162896  }
  0x8c   :  { %v80_v40 = vpop.permute.xlu1 %79  }
  0x8d   :  { %82 = vst.msk [vmem:[#allocation0] sm:$0x1] %vm81_vm14, %v80_v40   ;;  %v145_v41 = vpop.permute.xlu2 %144  }
  0x8e   :  { %v73_v39 = vpop.permute.xlu0 %72  }
  0x8f   :  { %76 = vst.msk [vmem:[#allocation0 + $0x8] sm:$0x1] %vm74_vm12, %v73_v39  }
  0x90   :  { %89 = vst.msk [vmem:[#allocation0 + $0x8] sm:$0x1] %vm87_vm13, %v86_v32  }
  0x94   :  { %v99_v43 = vpop.permute.xlu1 %98  }
  0x95   :  { %102 = vst.msk [vmem:[#allocation0 + $0x8] sm:$0x1] %vm100_vm1, %v99_v43   ;;  %v164_v44 = vpop.permute.xlu2 %163  }
  0x96   :  { %v93_v42 = vpop.permute.xlu0 %92  }
  0x97   :  { %95 = vst.msk [vmem:[#allocation0] sm:$0x1] %vm94_vm15, %v93_v42  }
  0x98   :  { %108 = vst.msk [vmem:[#allocation0] sm:$0x1] %vm107_vm0, %v106_v35  }
  0x9c   :  { %v119_v46 = vpop.permute.xlu1 %118  }
  0x9d   :  { %121 = vst.msk [vmem:[#allocation0] sm:$0x1] %vm120_vm4, %v119_v46  }
  0x9e   :  { %v112_v45 = vpop.permute.xlu0 %111  }
  0x9f   :  { %115 = vst.msk [vmem:[#allocation0 + $0x8] sm:$0x1] %vm113_vm2, %v112_v45  }
  0xa0   :  { %128 = vst.msk [vmem:[#allocation0 + $0x8] sm:$0x1] %vm126_vm3, %v125_v38  }
  0xa4   :  { %v138_v48 = vpop.permute.xlu1 %137  }
  0xa5   :  { %141 = vst.msk [vmem:[#allocation0 + $0x8] sm:$0x1] %vm139_vm7, %v138_v48  }
  0xa6   :  { %v132_v47 = vpop.permute.xlu0 %131  }
  0xa7   :  { %134 = vst.msk [vmem:[#allocation0] sm:$0x1] %vm133_vm5, %v132_v47  }
  0xa8   :  { %147 = vst.msk [vmem:[#allocation0] sm:$0x1] %vm146_vm6, %v145_v41  }
  0xac   :  { %v158_v50 = vpop.permute.xlu1 %157  }
  0xad   :  { %160 = vst.msk [vmem:[#allocation0] sm:$0x1] %vm159_vm10, %v158_v50  }
  0xae   :  { %v151_v49 = vpop.permute.xlu0 %150  }
  0xaf   :  { %154 = vst.msk [vmem:[#allocation0 + $0x8] sm:$0x1] %vm152_vm8, %v151_v49  }
  0xb0   :  { %167 = vst.msk [vmem:[#allocation0 + $0x8] sm:$0x1] %vm165_vm9, %v164_v44  }
  0xb4   :  { %v170_v52 = vld [vmem:[#allocation0] sm:$0x1] }
  0xb5   :  { %173 = vst [vmem:[%s349_s1] sm:$0x1] %v170_v52 }
  0xb7   :  { %v175_v51 = vld [vmem:[#allocation0 + $0x8] sm:$0x1] }
  0xb8   :  { %205 = vst [vmem:[%s349_s1 + $0x1] sm:$0x1] %v175_v51 }

// kernel: cnn_forward.1
= control target key start
LH: loop header
LB: loop body
LE: loop exit
PB: predicated region body
PF: predicated region fallthrough
CT: control target
= control target key end

     0   :  { %vm9443_vm0 = vcmask 130048   ;;  %s20574_s17 = smov 6   ;;  %s20575_s19 = smov 12   ;;  %vm12368_vm1 = vcmask 48128   ;;  %vm12383_vm2 = vcmask 97280   ;;  %vm12398_vm3 = vcmask 146432   ;;  %s30893_s1 = inlined_call_operand.vmem [shape: bf16[784,4000], index: 1, kind: input, shape index: {}]   ;;  %s30894_s0 = inlined_call_operand.vmem [shape: f32[8,784], index: 0, kind: input, shape index: {}]   ;;  %s30895_s4 = inlined_call_operand.vmem [shape: f32[1,128], index: 4, kind: input, shape index: {}]   ;;  %s30896_s3 = inlined_call_operand.vmem [shape: f32[250,128], index: 3, kind: input, shape index: {}]   ;;  %s30897_s2 = inlined_call_operand.vmem [shape: f32[1,250], index: 2, kind: input, shape index: {}]   ;;  %s30898_s5 = inlined_call_operand.vmem [shape: f32[8,128], index: 5, kind: output, shape index: {}]  }
   0x1   :  { %v13582_v0 = vld [vmem:[%s30893_s1 + $0x700] sm:$0xf]  ;;  %s20577_s14 = smov 24   ;;  %s20578_s20 = smov 30   ;;  %vm12413_vm4 = vcmask 195584   ;;  %vm12428_vm5 = vcmask 244736  }
   0x2   :  { %v19230_v1 = vld [vmem:[%s30893_s1 + $0x77c] sm:$0xf0]  ;;  %s20579_s25 = smov 36   ;;  %s20581_s8 = smov 48   ;;  %vm12443_vm6 = vcmask 293888   ;;  %vm12635_vm7 = vcmask 1041408  }
   0x3   :  { %v14606_v2 = vld [vmem:[%s30893_s1 + $0xf00] sm:$0xf]  ;;  %v13583_v3 = vor.u32 %v19230_v1, %v13582_v0  ;;  %s20582_s11 = smov 54   ;;  %s20583_s18 = smov 60   ;;  %vm12458_vm8 = vcmask 343040   ;;  %vm12473_vm9 = vcmask 392192  }
   0x4   :  { %v19486_v4 = vld [vmem:[%s30893_s1 + $0xf7c] sm:$0xf0]  ;;  %s20584_s22 = smov 66   ;;  %s20585_s27 = smov 72   ;;  %vm12488_vm10 = vcmask 441344   ;;  %vm12503_vm11 = vcmask 490496  }
   0x5   :  { %v15630_v5 = vld [vmem:[%s30893_s1 + $0x1700] sm:$0xf]  ;;  %v14607_v7 = vor.u32 %v19486_v4, %v14606_v2  ;;  %9447 = vmatpush.bf16.msra.mxu0 %v13583_v3  ;;  %s20586_s30 = smov 78   ;;  %s20587_s7 = smov 84   ;;  %vm12518_vm12 = vcmask 539648   ;;  %vm12533_vm13 = vcmask 588800  }
   0x6   :  { %v19742_v6 = vld [vmem:[%s30893_s1 + $0x177c] sm:$0xf0]  ;;  %vm12548_vm14 = vcmask 637952   ;;  %vm12563_vm15 = vcmask 687104  }
   0x7   :  { %v15631_v8 = vor.u32 %v19742_v6, %v15630_v5  ;;  %v16654_v9 = vld [vmem:[%s30893_s1 + $0x1f00] sm:$0xf]  ;;  %9460 = vmatpush.bf16.msra.mxu1 %v14607_v7 }
   0x8   :  { %v19998_v10 = vld [vmem:[%s30893_s1 + $0x1f7c] sm:$0xf0] }
   0x9   :  { %v13454_v11 = vld [vmem:[%s30893_s1 + $0x600] sm:$0xf]  ;;  %v16655_v12 = vor.u32 %v19998_v10, %v16654_v9  ;;  %9473 = vmatpush.bf16.msra.mxu2 %v15631_v8 }
   0xa   :  { %v19198_v13 = vld [vmem:[%s30893_s1 + $0x67c] sm:$0xf0] }
   0xb   :  { %v14478_v14 = vld [vmem:[%s30893_s1 + $0xe00] sm:$0xf]  ;;  %v13455_v16 = vor.u32 %v19198_v13, %v13454_v11  ;;  %9486 = vmatpush.bf16.msra.mxu3 %v16655_v12 }
   0xc   :  { %v19454_v15 = vld [vmem:[%s30893_s1 + $0xe7c] sm:$0xf0] }
   0xd   :  { %v14479_v17 = vor.u32 %v19454_v15, %v14478_v14  ;;  %v15502_v18 = vld [vmem:[%s30893_s1 + $0x1600] sm:$0xf]  ;;  %9448 = vmatpush.bf16.msra.mxu0 %v13455_v16 }
   0xe   :  { %v19710_v19 = vld [vmem:[%s30893_s1 + $0x167c] sm:$0xf0] }
   0xf   :  { %v16526_v20 = vld [vmem:[%s30893_s1 + $0x1e00] sm:$0xf]  ;;  %v15503_v21 = vor.u32 %v19710_v19, %v15502_v18  ;;  %9461 = vmatpush.bf16.msra.mxu1 %v14479_v17 }
  0x10   :  { %v19966_v22 = vld [vmem:[%s30893_s1 + $0x1e7c] sm:$0xf0] }
  0x11   :  { %v13326_v23 = vld [vmem:[%s30893_s1 + $0x500] sm:$0xf]  ;;  %v16527_v25 = vor.u32 %v19966_v22, %v16526_v20  ;;  %9474 = vmatpush.bf16.msra.mxu2 %v15503_v21 }
  0x12   :  { %v19166_v24 = vld [vmem:[%s30893_s1 + $0x57c] sm:$0xf0] }
  0x13   :  { %v14350_v26 = vld [vmem:[%s30893_s1 + $0xd00] sm:$0xf]  ;;  %v13327_v29 = vor.u32 %v19166_v24, %v13326_v23  ;;  %9487 = vmatpush.bf16.msra.mxu3 %v16527_v25 }
  0x14   :  { %v19422_v27 = vld [vmem:[%s30893_s1 + $0xd7c] sm:$0xf0] }
  0x15   :  { %v15374_v28 = vld [vmem:[%s30893_s1 + $0x1500] sm:$0xf]  ;;  %v14351_v33 = vor.u32 %v19422_v27, %v14350_v26  ;;  %9449 = vmatpush.bf16.msra.mxu0 %v13327_v29 }
  0x16   :  { %v19678_v30 = vld [vmem:[%s30893_s1 + $0x157c] sm:$0xf0] }
  0x17   :  { %v16398_v31 = vld [vmem:[%s30893_s1 + $0x1d00] sm:$0xf]  ;;  %v15375_v34 = vor.u32 %v19678_v30, %v15374_v28  ;;  %9462 = vmatpush.bf16.msra.mxu1 %v14351_v33  ;;  %v19214_v33 = vld [vmem:[%s30893_s1 + $0x704] sm:$0xf] }
  0x18   :  { %v19934_v32 = vld [vmem:[%s30893_s1 + $0x1d7c] sm:$0xf0] }
  0x19   :  { %v13198_v35 = vld [vmem:[%s30893_s1 + $0x400] sm:$0xf]  ;;  %v16399_v38 = vor.u32 %v19934_v32, %v16398_v31  ;;  %9475 = vmatpush.bf16.msra.mxu2 %v15375_v34  ;;  %v13584_v34 = vld [vmem:[%s30893_s1 + $0x780] sm:$0xf0] }
  0x1a   :  { %v19134_v36 = vld [vmem:[%s30893_s1 + $0x47c] sm:$0xf0] }
  0x1b   :  { %v14222_v37 = vld [vmem:[%s30893_s1 + $0xc00] sm:$0xf]  ;;  %v13199_v44 = vor.u32 %v19134_v36, %v13198_v35  ;;  %9488 = vmatpush.bf16.msra.mxu3 %v16399_v38  ;;  %v23_v35 = vld [vmem:[%s30894_s0 + $0x10] sm:$0xff] }
  0x1c   :  { %v19390_v39 = vld [vmem:[%s30893_s1 + $0xc7c] sm:$0xf0] }
  0x1d   :  { %v15246_v40 = vld [vmem:[%s30893_s1 + $0x1400] sm:$0xf]  ;;  %v14223_v45 = vor.u32 %v19390_v39, %v14222_v37  ;;  %9450 = vmatpush.bf16.msra.mxu0 %v13199_v44  ;;  %v14608_v44 = vld [vmem:[%s30893_s1 + $0xf80] sm:$0xf0] }
  0x1e   :  { %v19646_v41 = vld [vmem:[%s30893_s1 + $0x147c] sm:$0xf0] }
  0x1f   :  { %v16270_v42 = vld [vmem:[%s30893_s1 + $0x1c00] sm:$0xf]  ;;  %v15247_v46 = vor.u32 %v19646_v41, %v15246_v40  ;;  %9463 = vmatpush.bf16.msra.mxu1 %v14223_v45  ;;  %v24_v45 = vld [vmem:[%s30894_s0 + $0x18] sm:$0xff] }
  0x20   :  { %v19902_v43 = vld [vmem:[%s30893_s1 + $0x1c7c] sm:$0xf0] }
  0x21   :  { %v13070_v47 = vld [vmem:[%s30893_s1 + $0x300] sm:$0xf]  ;;  %v16271_v50 = vor.u32 %v19902_v43, %v16270_v42  ;;  %9476 = vmatpush.bf16.msra.mxu2 %v15247_v46  ;;  %v19470_v43 = vld [vmem:[%s30893_s1 + $0xf04] sm:$0xf] }
  0x22   :  { %v19102_v48 = vld [vmem:[%s30893_s1 + $0x37c] sm:$0xf0] }
  0x23   :  { %v14094_v49 = vld [vmem:[%s30893_s1 + $0xb00] sm:$0xf]  ;;  %v13071_v56 = vor.u32 %v19102_v48, %v13070_v47  ;;  %9489 = vmatpush.bf16.msra.mxu3 %v16271_v50  ;;  %v13587_v47 = vor.u32 %v19214_v33, %v13584_v34 }
  0x24   :  { %v19358_v51 = vld [vmem:[%s30893_s1 + $0xb7c] sm:$0xf0] }
  0x25   :  { %v15118_v52 = vld [vmem:[%s30893_s1 + $0x1300] sm:$0xf]  ;;  %v14095_v57 = vor.u32 %v19358_v51, %v14094_v49  ;;  %9451 = vmatpush.bf16.msra.mxu0 %v13071_v56  ;;  %v20859_v51 = vpack.c.bf16 %v23_v35, %v23_v35  ;;  %v19342_v35 = vld [vmem:[%s30893_s1 + $0xb04] sm:$0xf] }
  0x26   :  { %v19614_v53 = vld [vmem:[%s30893_s1 + $0x137c] sm:$0xf0] }
  0x27   :  { %v16142_v54 = vld [vmem:[%s30893_s1 + $0x1b00] sm:$0xf]  ;;  %v15119_v58 = vor.u32 %v19614_v53, %v15118_v52  ;;  %9464 = vmatpush.bf16.msra.mxu1 %v14095_v57  ;;  %v19182_v53 = vld [vmem:[%s30893_s1 + $0x604] sm:$0xf]  ;;  %v20872_v57 = vpack.c.bf16 %v24_v45, %v24_v45 }
  0x28   :  { %v19870_v55 = vld [vmem:[%s30893_s1 + $0x1b7c] sm:$0xf0] }
  0x29   :  { %v12942_v59 = vld [vmem:[%s30893_s1 + $0x200] sm:$0xf]  ;;  %v16143_v62 = vor.u32 %v19870_v55, %v16142_v54  ;;  %9477 = vmatpush.bf16.msra.mxu2 %v15119_v58  ;;  %v13456_v54 = vld [vmem:[%s30893_s1 + $0x680] sm:$0xf0]  ;;  %v22_v58 = vld [vmem:[%s30894_s0 + $0x8] sm:$0xff] }
  0x2a   :  { %v19070_v60 = vld [vmem:[%s30893_s1 + $0x27c] sm:$0xf0] }
  0x2b   :  { %v13966_v61 = vld [vmem:[%s30893_s1 + $0xa00] sm:$0xf]  ;;  %v12943_v4 = vor.u32 %v19070_v60, %v12942_v59  ;;  %9490 = vmatpush.bf16.msra.mxu3 %v16143_v62  ;;  %v14611_v59 = vor.u32 %v19470_v43, %v14608_v44  ;;  %v14480_v62 = vld [vmem:[%s30893_s1 + $0xe80] sm:$0xf0] }
  0x2c   :  { %v19326_v63 = vld [vmem:[%s30893_s1 + $0xa7c] sm:$0xf0]  ;;  %v19054_v43 = vld [vmem:[%s30893_s1 + $0x204] sm:$0xf] }
  0x2d   :  { %v14990_v0 = vld [vmem:[%s30893_s1 + $0x1200] sm:$0xf]  ;;  %v13967_v5 = vor.u32 %v19326_v63, %v13966_v61  ;;  %9452 = vmatpush.bf16.msra.mxu0 %v12943_v4  ;;  %v19438_v61 = vld [vmem:[%s30893_s1 + $0xe04] sm:$0xf]  ;;  %v20894_v4 = vpack.c.bf16 %v22_v58, %v22_v58 }
  0x2e   :  { %v19582_v1 = vld [vmem:[%s30893_s1 + $0x127c] sm:$0xf0]  ;;  %v12944_v44 = vld [vmem:[%s30893_s1 + $0x280] sm:$0xf0] }
  0x2f   :  { %v16014_v2 = vld [vmem:[%s30893_s1 + $0x1a00] sm:$0xf]  ;;  %v14991_v6 = vor.u32 %v19582_v1, %v14990_v0  ;;  %9465 = vmatpush.bf16.msra.mxu1 %v13967_v5  ;;  %v13459_v0 = vor.u32 %v19182_v53, %v13456_v54 }
  0x30   :  { %v19838_v3 = vld [vmem:[%s30893_s1 + $0x1a7c] sm:$0xf0] }
  0x31   :  { %v12814_v7 = vld [vmem:[%s30893_s1 + $0x100] sm:$0xf]  ;;  %v16015_v10 = vor.u32 %v19838_v3, %v16014_v2  ;;  %9478 = vmatpush.bf16.msra.mxu2 %v14991_v6  ;;  %v19150_v6 = vld [vmem:[%s30893_s1 + $0x504] sm:$0xf] }
  0x32   :  { %v19038_v8 = vld [vmem:[%s30893_s1 + $0x17c] sm:$0xf0] }
  0x33   :  { %v13838_v9 = vld [vmem:[%s30893_s1 + $0x900] sm:$0xf]  ;;  %v12815_v16 = vor.u32 %v19038_v8, %v12814_v7  ;;  %9491 = vmatpush.bf16.msra.mxu3 %v16015_v10  ;;  %v13328_v7 = vld [vmem:[%s30893_s1 + $0x580] sm:$0xf0]  ;;  %v14483_v8 = vor.u32 %v19438_v61, %v14480_v62 }
  0x34   :  { %v19294_v11 = vld [vmem:[%s30893_s1 + $0x97c] sm:$0xf0]  ;;  %v19406_v10 = vld [vmem:[%s30893_s1 + $0xd04] sm:$0xf] }
  0x35   :  { %v14862_v12 = vld [vmem:[%s30893_s1 + $0x1100] sm:$0xf]  ;;  %v13839_v20 = vor.u32 %v19294_v11, %v13838_v9  ;;  %9453 = vmatpush.bf16.msra.mxu0 %v12815_v16  ;;  %v14352_v11 = vld [vmem:[%s30893_s1 + $0xd80] sm:$0xf0] }
  0x36   :  { %v19550_v13 = vld [vmem:[%s30893_s1 + $0x117c] sm:$0xf0] }
  0x37   :  { %v15886_v14 = vld [vmem:[%s30893_s1 + $0x1900] sm:$0xf]  ;;  %v14863_v21 = vor.u32 %v19550_v13, %v14862_v12  ;;  %9466 = vmatpush.bf16.msra.mxu1 %v13839_v20  ;;  %v13331_v13 = vor.u32 %v19150_v6, %v13328_v7  ;;  %v14355_v20 = vor.u32 %v19406_v10, %v14352_v11  ;;  %v19726_v10 = vld [vmem:[%s30893_s1 + $0x1704] sm:$0xf] }
  0x38   :  { %v19806_v15 = vld [vmem:[%s30893_s1 + $0x197c] sm:$0xf0]  ;;  %v15632_v11 = vld [vmem:[%s30893_s1 + $0x1780] sm:$0xf0] }
  0x39   :  { %v12686_v17 = vld [vmem:[%s30893_s1] sm:$0xf]  ;;  %v15887_v25 = vor.u32 %v19806_v15, %v15886_v14  ;;  %9479 = vmatpush.bf16.msra.mxu2 %v14863_v21 }
  0x3a   :  { %v19006_v18 = vld [vmem:[%s30893_s1 + $0x7c] sm:$0xf0] }
  0x3b   :  { %v13710_v19 = vld [vmem:[%s30893_s1 + $0x800] sm:$0xf]  ;;  %v12687_v32 = vor.u32 %v19006_v18, %v12686_v17  ;;  %9492 = vmatpush.bf16.msra.mxu3 %v15887_v25  ;;  %v19118_v18 = vld [vmem:[%s30893_s1 + $0x404] sm:$0xf] }
  0x3c   :  { %v19262_v22 = vld [vmem:[%s30893_s1 + $0x87c] sm:$0xf0] }
  0x3d   :  { %v14734_v23 = vld [vmem:[%s30893_s1 + $0x1000] sm:$0xf]  ;;  %v13711_v36 = vor.u32 %v19262_v22, %v13710_v19  ;;  %9454 = vmatpush.bf16.msra.mxu0 %v12687_v32  ;;  %v13200_v19 = vld [vmem:[%s30893_s1 + $0x480] sm:$0xf0]  ;;  %v27_v32 = vld [vmem:[%s30894_s0 + $0x30] sm:$0xff] }
  0x3e   :  { %v19518_v24 = vld [vmem:[%s30893_s1 + $0x107c] sm:$0xf0]  ;;  %v19374_v22 = vld [vmem:[%s30893_s1 + $0xc04] sm:$0xf]  ;;  %v13203_v25 = vor.u32 %v19118_v18, %v13200_v19  ;;  %v20982_v45 = vpack.c.bf16 %v27_v32, %v27_v32 }
  0x3f   :  { %v15758_v26 = vld [vmem:[%s30893_s1 + $0x1800] sm:$0xf]  ;;  %v14735_v37 = vor.u32 %v19518_v24, %v14734_v23  ;;  %9467 = vmatpush.bf16.msra.mxu1 %v13711_v36  ;;  %v14224_v23 = vld [vmem:[%s30893_s1 + $0xc80] sm:$0xf0] }
  0x40   :  { %v19774_v27 = vld [vmem:[%s30893_s1 + $0x187c] sm:$0xf0]  ;;  %v14227_v33 = vor.u32 %v19374_v22, %v14224_v23  ;;  %v14096_v36 = vld [vmem:[%s30893_s1 + $0xb80] sm:$0xf0]  ;;  %v26_v23 = vld [vmem:[%s30894_s0 + $0x28] sm:$0xff] }
  0x41   :  { %v17678_v28 = vld [vmem:[%s30893_s1 + $0x2700] sm:$0xf]  ;;  %v15759_v41 = vor.u32 %v19774_v27, %v15758_v26  ;;  %9480 = vmatpush.bf16.msra.mxu2 %v14735_v37  ;;  %v13712_v22 = vld [vmem:[%s30893_s1 + $0x880] sm:$0xf0] }
  0x42   :  { %v20254_v29 = vld [vmem:[%s30893_s1 + $0x277c] sm:$0xf0]  ;;  %9468 = vmatmul.bf16.vlgmr.msra.gmra.mxu1 %v20894_v4  ;;  %v19950_v32 = vld [vmem:[%s30893_s1 + $0x1e04] sm:$0xf] }
  0x43   :  { %v18702_v30 = vld [vmem:[%s30893_s1 + $0x2f00] sm:$0xf]  ;;  %v17679_v42 = vor.u32 %v20254_v29, %v17678_v28  ;;  %9493 = vmatpush.bf16.msra.mxu3 %v15759_v41 }
  0x44   :  { %v20510_v31 = vld [vmem:[%s30893_s1 + $0x2f7c] sm:$0xf0]  ;;  %9481 = vmatmul.bf16.vlgmr.msra.gmra.mxu2 %v20859_v51 }
  0x45   :  { %v18830_v38 = vld [vmem:[%s30893_s1 + $0x3000] sm:$0xf]  ;;  %v18703_v46 = vor.u32 %v20510_v31, %v18702_v30  ;;  %9499 = vmatpush.bf16.msrb.mxu0 %v17679_v42  ;;  %v19086_v30 = vld [vmem:[%s30893_s1 + $0x304] sm:$0xf] }
  0x46   :  { %v20542_v39 = vld [vmem:[%s30893_s1 + $0x307c] sm:$0xf0]  ;;  %9494 = vmatmul.bf16.vlgmr.msra.gmra.mxu3 %v20872_v57  ;;  %v13072_v31 = vld [vmem:[%s30893_s1 + $0x380] sm:$0xf0] }
  0x47   :  { %v21_v40 = vld [vmem:[%s30894_s0] sm:$0xff]  ;;  %v18831_v56 = vor.u32 %v20542_v39, %v18830_v38  ;;  %9512 = vmatpush.bf16.msrb.mxu1 %v18703_v46  ;;  %9538 = vmatpush.bf16.msrb.mxu3 %v13587_v47  ;;  %v13075_v38 = vor.u32 %v19086_v30, %v13072_v31  ;;  %v14099_v46 = vor.u32 %v19342_v35, %v14096_v36 }
  0x48   :  { %v17550_v48 = vld [vmem:[%s30893_s1 + $0x2600] sm:$0xf]  ;;  %v20870_v55 = vpack.c.bf16 %v21_v40, %v21_v40  ;;  %v15504_v31 = vld [vmem:[%s30893_s1 + $0x1680] sm:$0xf0]  ;;  %v21084_v35 = vpack.c.bf16 %v26_v23, %v26_v23 }
  0x49   :  { %v20222_v49 = vld [vmem:[%s30893_s1 + $0x267c] sm:$0xf0]  ;;  %9532 = vmatpush.bf16.msrb.mxu2 %v18831_v56  ;;  %v20206_v36 = vld [vmem:[%s30893_s1 + $0x2604] sm:$0xf] }
  0x4a   :  { %v18574_v50 = vld [vmem:[%s30893_s1 + $0x2e00] sm:$0xf]  ;;  %v17551_v60 = vor.u32 %v20222_v49, %v17550_v48  ;;  %9455 = vmatmul.bf16.vlgmr.msra.gmra.mxu0 %v20870_v55  ;;  %v19310_v48 = vld [vmem:[%s30893_s1 + $0xa04] sm:$0xf] }
  0x4b   :  { %v20478_v52 = vld [vmem:[%s30893_s1 + $0x2e7c] sm:$0xf0]  ;;  %9539 = vmatpush.bf16.msrb.mxu3 %v13459_v0  ;;  %v13968_v49 = vld [vmem:[%s30893_s1 + $0xa80] sm:$0xf0] }
  0x4c   :  { %v18575_v63 = vor.u32 %v20478_v52, %v18574_v50  ;;  %v17422_v1 = vld [vmem:[%s30893_s1 + $0x2500] sm:$0xf]  ;;  %9500 = vmatpush.bf16.msrb.mxu0 %v17551_v60  ;;  %v12947_v52 = vor.u32 %v19054_v43, %v12944_v44  ;;  %v12816_v60 = vld [vmem:[%s30893_s1 + $0x180] sm:$0xf0]  ;;  %v13971_v61 = vor.u32 %v19310_v48, %v13968_v49 }
  0x4d   :  { %v20190_v2 = vld [vmem:[%s30893_s1 + $0x257c] sm:$0xf0]  ;;  %9551 = vmatpush.bf16.msra.mxu2 %v14611_v59  ;;  %v19022_v59 = vld [vmem:[%s30893_s1 + $0x104] sm:$0xf] }
  0x4e   :  { %v18446_v3 = vld [vmem:[%s30893_s1 + $0x2d00] sm:$0xf]  ;;  %v17423_v9 = vor.u32 %v20190_v2, %v17422_v1  ;;  %9513 = vmatpush.bf16.msrb.mxu1 %v18575_v63  ;;  %v19278_v63 = vld [vmem:[%s30893_s1 + $0x904] sm:$0xf] }
  0x4f   :  { %v20446_v5 = vld [vmem:[%s30893_s1 + $0x2d7c] sm:$0xf0]  ;;  %9540 = vmatpush.bf16.msrb.mxu3 %v13331_v13  ;;  %v13840_v0 = vld [vmem:[%s30893_s1 + $0x980] sm:$0xf0] }
  0x50   :  { %v18447_v12 = vor.u32 %v20446_v5, %v18446_v3  ;;  %v17294_v14 = vld [vmem:[%s30893_s1 + $0x2400] sm:$0xf]  ;;  %9501 = vmatpush.bf16.msrb.mxu0 %v17423_v9  ;;  %v12819_v3 = vor.u32 %v19022_v59, %v12816_v60  ;;  %v12688_v9 = vld [vmem:[%s30893_s1 + $0x80] sm:$0xf0] }
  0x51   :  { %v20158_v15 = vld [vmem:[%s30893_s1 + $0x247c] sm:$0xf0]  ;;  %9552 = vmatpush.bf16.msra.mxu2 %v14483_v8  ;;  %v18990_v8 = vld [vmem:[%s30893_s1 + $0x4] sm:$0xf] }
  0x52   :  { %v18318_v16 = vld [vmem:[%s30893_s1 + $0x2c00] sm:$0xf]  ;;  %v17295_v21 = vor.u32 %v20158_v15, %v17294_v14  ;;  %9514 = vmatpush.bf16.msrb.mxu1 %v18447_v12  ;;  %v19982_v12 = vld [vmem:[%s30893_s1 + $0x1f04] sm:$0xf]  ;;  %v13843_v14 = vor.u32 %v19278_v63, %v13840_v0 }
  0x53   :  { %v20414_v17 = vld [vmem:[%s30893_s1 + $0x2c7c] sm:$0xf0]  ;;  %9541 = vmatpush.bf16.msrb.mxu3 %v13203_v25  ;;  %v16656_v13 = vld [vmem:[%s30893_s1 + $0x1f80] sm:$0xf0] }
  0x54   :  { %v18319_v24 = vor.u32 %v20414_v17, %v18318_v16  ;;  %v17166_v26 = vld [vmem:[%s30893_s1 + $0x2300] sm:$0xf]  ;;  %9502 = vmatpush.bf16.msrb.mxu0 %v17295_v21  ;;  %18956 = vmatmul.msk.bf16.vlgmr.msrb.gmra.mxu2 %vm9443_vm0, %v20982_v45  ;;  %v20238_v16 = vld [vmem:[%s30893_s1 + $0x2704] sm:$0xf]  ;;  %v16659_v25 = vor.u32 %v19982_v12, %v16656_v13 }
  0x55   :  { %v20126_v27 = vld [vmem:[%s30893_s1 + $0x237c] sm:$0xf0]  ;;  %9553 = vmatpush.bf16.msra.mxu2 %v14355_v20  ;;  %v17680_v17 = vld [vmem:[%s30893_s1 + $0x2780] sm:$0xf0]  ;;  %v12691_v20 = vor.u32 %v18990_v8, %v12688_v9 }
  0x56   :  { %v18190_v28 = vld [vmem:[%s30893_s1 + $0x2b00] sm:$0xf]  ;;  %v17167_v34 = vor.u32 %v20126_v27, %v17166_v26  ;;  %9515 = vmatpush.bf16.msrb.mxu1 %v18319_v24  ;;  %v19246_v21 = vld [vmem:[%s30893_s1 + $0x804] sm:$0xf]  ;;  %v15635_v24 = vor.u32 %v19726_v10, %v15632_v11 }
  0x57   :  { %v20382_v29 = vld [vmem:[%s30893_s1 + $0x2b7c] sm:$0xf0]  ;;  %9542 = vmatpush.bf16.msrb.mxu3 %v13075_v38  ;;  %v20494_v26 = vld [vmem:[%s30893_s1 + $0x2f04] sm:$0xf] }
  0x58   :  { %v18191_v37 = vor.u32 %v20382_v29, %v18190_v28  ;;  %v17038_v39 = vld [vmem:[%s30893_s1 + $0x2200] sm:$0xf]  ;;  %9503 = vmatpush.bf16.msrb.mxu0 %v17167_v34  ;;  %v18704_v27 = vld [vmem:[%s30893_s1 + $0x2f80] sm:$0xf0]  ;;  %v17683_v29 = vor.u32 %v20238_v16, %v17680_v17  ;;  %v13715_v34 = vor.u32 %v19246_v21, %v13712_v22 }
  0x59   :  { %v20094_v40 = vld [vmem:[%s30893_s1 + $0x227c] sm:$0xf0]  ;;  %9554 = vmatpush.bf16.msra.mxu2 %v14227_v33  ;;  %v19694_v28 = vld [vmem:[%s30893_s1 + $0x1604] sm:$0xf]  ;;  %v18707_v38 = vor.u32 %v20494_v26, %v18704_v27 }
  0x5a   :  { %v18062_v41 = vld [vmem:[%s30893_s1 + $0x2a00] sm:$0xf]  ;;  %v17039_v47 = vor.u32 %v20094_v40, %v17038_v39  ;;  %9516 = vmatpush.bf16.msrb.mxu1 %v18191_v37  ;;  %v16528_v33 = vld [vmem:[%s30893_s1 + $0x1e80] sm:$0xf0]  ;;  %v15507_v39 = vor.u32 %v19694_v28, %v15504_v31 }
  0x5b   :  { %v20350_v42 = vld [vmem:[%s30893_s1 + $0x2a7c] sm:$0xf0]  ;;  %9543 = vmatpush.bf16.msrb.mxu3 %v12947_v52  ;;  %v17552_v37 = vld [vmem:[%s30893_s1 + $0x2680] sm:$0xf0]  ;;  %v16531_v40 = vor.u32 %v19950_v32, %v16528_v33 }
  0x5c   :  { %v18063_v50 = vor.u32 %v20350_v42, %v18062_v41  ;;  %v16910_v53 = vld [vmem:[%s30893_s1 + $0x2100] sm:$0xf]  ;;  %9504 = vmatpush.bf16.msrb.mxu0 %v17039_v47  ;;  %v20462_v41 = vld [vmem:[%s30893_s1 + $0x2e04] sm:$0xf]  ;;  %v17555_v44 = vor.u32 %v20206_v36, %v17552_v37 }
  0x5d   :  { %v20062_v54 = vld [vmem:[%s30893_s1 + $0x217c] sm:$0xf0]  ;;  %9555 = vmatpush.bf16.msra.mxu2 %v14099_v46  ;;  %v18576_v42 = vld [vmem:[%s30893_s1 + $0x2e80] sm:$0xf0] }
  0x5e   :  { %v17934_v56 = vld [vmem:[%s30893_s1 + $0x2900] sm:$0xf]  ;;  %v16911_v62 = vor.u32 %v20062_v54, %v16910_v53  ;;  %9517 = vmatpush.bf16.msrb.mxu1 %v18063_v50  ;;  %v19662_v43 = vld [vmem:[%s30893_s1 + $0x1504] sm:$0xf]  ;;  %v18579_v52 = vor.u32 %v20462_v41, %v18576_v42 }
  0x5f   :  { %v20318_v58 = vld [vmem:[%s30893_s1 + $0x297c] sm:$0xf0]  ;;  %9544 = vmatpush.bf16.msrb.mxu3 %v12819_v3  ;;  %v15376_v46 = vld [vmem:[%s30893_s1 + $0x1580] sm:$0xf0] }
  0x60   :  { %v16782_v1 = vld [vmem:[%s30893_s1 + $0x2000] sm:$0xf]  ;;  %v17935_v2 = vor.u32 %v20318_v58, %v17934_v56  ;;  %9505 = vmatpush.bf16.msrb.mxu0 %v16911_v62  ;;  %v19918_v47 = vld [vmem:[%s30893_s1 + $0x1d04] sm:$0xf]  ;;  %v15379_v53 = vor.u32 %v19662_v43, %v15376_v46 }
  0x61   :  { %v20030_v5 = vld [vmem:[%s30893_s1 + $0x207c] sm:$0xf0]  ;;  %9556 = vmatpush.bf16.msra.mxu2 %v13971_v61  ;;  %v16400_v48 = vld [vmem:[%s30893_s1 + $0x1d80] sm:$0xf0] }
  0x62   :  { %v17806_v6 = vld [vmem:[%s30893_s1 + $0x2800] sm:$0xf]  ;;  %v16783_v15 = vor.u32 %v20030_v5, %v16782_v1  ;;  %9518 = vmatpush.bf16.msrb.mxu1 %v17935_v2  ;;  %v20174_v49 = vld [vmem:[%s30893_s1 + $0x2504] sm:$0xf]  ;;  %v16403_v54 = vor.u32 %v19918_v47, %v16400_v48 }
  0x63   :  { %v20286_v7 = vld [vmem:[%s30893_s1 + $0x287c] sm:$0xf0]  ;;  %9545 = vmatpush.bf16.msrb.mxu3 %v12691_v20  ;;  %v17424_v50 = vld [vmem:[%s30893_s1 + $0x2580] sm:$0xf0] }
  0x64   :  { %v25_v18 = vld [vmem:[%s30894_s0 + $0x20] sm:$0xff]  ;;  %v17807_v19 = vor.u32 %v20286_v7, %v17806_v6  ;;  %9506 = vmatpush.bf16.msrb.mxu0 %v16783_v15  ;;  %v17427_v60 = vor.u32 %v20174_v49, %v17424_v50  ;;  %s20576_s0 = smov 18  }
  0x65   :  { %v21073_v30 = vpack.c.bf16 %v25_v18, %v25_v18  ;;  %9557 = vmatpush.bf16.msra.mxu2 %v13843_v14  ;;  %v20430_v56 = vld [vmem:[%s30893_s1 + $0x2d04] sm:$0xf] }
  0x66   :  { %9519 = vmatpush.bf16.msrb.mxu1 %v17807_v19  ;;  %9546 = vmatmul.bf16.vlgmr.msrb.gmra.mxu3 %v20870_v55  ;;  %v18448_v58 = vld [vmem:[%s30893_s1 + $0x2d80] sm:$0xf0] }
  0x67   :  { %9590 = vmatpush.bf16.msra.mxu3 %v17683_v29  ;;  %9507 = vmatmul.bf16.vlgmr.msrb.gmra.mxu0 %v21073_v30  ;;  %v19630_v59 = vld [vmem:[%s30893_s1 + $0x1404] sm:$0xf]  ;;  %v18451_v2 = vor.u32 %v20430_v56, %v18448_v58  ;;  %v13590_v56 = vld [vmem:[%s30893_s1 + $0x708] sm:$0xf] }
  0x68   :  { %9564 = vmatpush.bf16.msra.mxu0 %v15635_v24  ;;  %v15248_v61 = vld [vmem:[%s30893_s1 + $0x1480] sm:$0xf0]  ;;  %v19231_v58 = vld [vmem:[%s30893_s1 + $0x784] sm:$0xf0] }
  0x69   :  { %9558 = vmatpush.bf16.msra.mxu2 %v13715_v34  ;;  %9520 = vmatmul.bf16.vlgmr.msrb.gmra.mxu1 %v21084_v35  ;;  %v19886_v62 = vld [vmem:[%s30893_s1 + $0x1c04] sm:$0xf]  ;;  %v15251_v3 = vor.u32 %v19630_v59, %v15248_v61  ;;  %v14614_v59 = vld [vmem:[%s30893_s1 + $0xf08] sm:$0xf] }
  0x6a   :  { %9577 = vmatpush.bf16.msra.mxu1 %v16659_v25  ;;  %v16272_v63 = vld [vmem:[%s30893_s1 + $0x1c80] sm:$0xf0]  ;;  %v19487_v61 = vld [vmem:[%s30893_s1 + $0xf84] sm:$0xf0] }
  0x6b   :  { %9591 = vmatpush.bf16.msra.mxu3 %v17555_v44  ;;  %v20142_v0 = vld [vmem:[%s30893_s1 + $0x2404] sm:$0xf]  ;;  %v16275_v5 = vor.u32 %v19886_v62, %v16272_v63 }
  0x6c   :  { %9565 = vmatpush.bf16.msra.mxu0 %v15507_v39  ;;  %9559 = vmatmul.bf16.vlgmr.msra.gmra.mxu2 %v20894_v4  ;;  %v17296_v1 = vld [vmem:[%s30893_s1 + $0x2480] sm:$0xf0] }
  0x6d   :  { %9603 = vmatpush.bf16.msrb.mxu2 %v18707_v38  ;;  %v20398_v6 = vld [vmem:[%s30893_s1 + $0x2c04] sm:$0xf]  ;;  %v17299_v9 = vor.u32 %v20142_v0, %v17296_v1 }
  0x6e   :  { %9578 = vmatpush.bf16.msra.mxu1 %v16531_v40  ;;  %v18320_v7 = vld [vmem:[%s30893_s1 + $0x2c80] sm:$0xf0] }
  0x6f   :  { %v19598_v8 = vld [vmem:[%s30893_s1 + $0x1304] sm:$0xf]  ;;  %9592 = vmatpush.bf16.msra.mxu3 %v17427_v60  ;;  %v18323_v15 = vor.u32 %v20398_v6, %v18320_v7  ;;  %v13591_v7 = vor.u32 %v19231_v58, %v13590_v56  ;;  %v19103_v56 = vld [vmem:[%s30893_s1 + $0x384] sm:$0xf0] }
  0x70   :  { %9566 = vmatpush.bf16.msra.mxu0 %v15379_v53  ;;  %v15120_v10 = vld [vmem:[%s30893_s1 + $0x1380] sm:$0xf0]  ;;  %v14102_v58 = vld [vmem:[%s30893_s1 + $0xb08] sm:$0xf] }
  0x71   :  { %9604 = vmatpush.bf16.msrb.mxu2 %v18579_v52  ;;  %v19854_v11 = vld [vmem:[%s30893_s1 + $0x1b04] sm:$0xf]  ;;  %v15123_v16 = vor.u32 %v19598_v8, %v15120_v10  ;;  %v19743_v8 = vld [vmem:[%s30893_s1 + $0x1784] sm:$0xf0] }
  0x72   :  { %9579 = vmatpush.bf16.msra.mxu1 %v16403_v54  ;;  %v16144_v12 = vld [vmem:[%s30893_s1 + $0x1b80] sm:$0xf0]  ;;  %v19999_v10 = vld [vmem:[%s30893_s1 + $0x1f84] sm:$0xf0] }
  0x73   :  { %v20110_v13 = vld [vmem:[%s30893_s1 + $0x2304] sm:$0xf]  ;;  %v16147_v17 = vor.u32 %v19854_v11, %v16144_v12  ;;  %9593 = vmatpush.bf16.msra.mxu3 %v17299_v9  ;;  %v16662_v9 = vld [vmem:[%s30893_s1 + $0x1f08] sm:$0xf]  ;;  %v14615_v11 = vor.u32 %v19487_v61, %v14614_v59 }
  0x74   :  { %v17168_v14 = vld [vmem:[%s30893_s1 + $0x2380] sm:$0xf0]  ;;  %9567 = vmatpush.bf16.msra.mxu0 %v15251_v3  ;;  %v19359_v59 = vld [vmem:[%s30893_s1 + $0xb84] sm:$0xf0] }
  0x75   :  { %9605 = vmatpush.bf16.msrb.mxu2 %v18451_v2  ;;  %v20366_v18 = vld [vmem:[%s30893_s1 + $0x2b04] sm:$0xf]  ;;  %v17171_v21 = vor.u32 %v20110_v13, %v17168_v14  ;;  %v13462_v13 = vld [vmem:[%s30893_s1 + $0x608] sm:$0xf] }
  0x76   :  { %9580 = vmatpush.bf16.msra.mxu1 %v16275_v5  ;;  %v18192_v19 = vld [vmem:[%s30893_s1 + $0x2b80] sm:$0xf0]  ;;  %v15638_v5 = vld [vmem:[%s30893_s1 + $0x1708] sm:$0xf] }
  0x77   :  { %v19566_v20 = vld [vmem:[%s30893_s1 + $0x1204] sm:$0xf]  ;;  %v18195_v27 = vor.u32 %v20366_v18, %v18192_v19  ;;  %9594 = vmatpush.bf16.msra.mxu3 %v17171_v21  ;;  %v19199_v14 = vld [vmem:[%s30893_s1 + $0x684] sm:$0xf0]  ;;  %v15639_v18 = vor.u32 %v19743_v8, %v15638_v5  ;;  %v16663_v19 = vor.u32 %v19999_v10, %v16662_v9 }
  0x78   :  { %v14992_v22 = vld [vmem:[%s30893_s1 + $0x1280] sm:$0xf0]  ;;  %9568 = vmatpush.bf16.msra.mxu0 %v15123_v16  ;;  %v14486_v16 = vld [vmem:[%s30893_s1 + $0xe08] sm:$0xf]  ;;  %v13463_v21 = vor.u32 %v19199_v14, %v13462_v13 }
  0x79   :  { %v19822_v23 = vld [vmem:[%s30893_s1 + $0x1a04] sm:$0xf]  ;;  %9606 = vmatpush.bf16.msrb.mxu2 %v18323_v15  ;;  %v14995_v28 = vor.u32 %v19566_v20, %v14992_v22  ;;  %v15510_v20 = vld [vmem:[%s30893_s1 + $0x1608] sm:$0xf] }
  0x7a   :  { %v16016_v24 = vld [vmem:[%s30893_s1 + $0x1a80] sm:$0xf0]  ;;  %9581 = vmatpush.bf16.msra.mxu1 %v16147_v17  ;;  %v19455_v17 = vld [vmem:[%s30893_s1 + $0xe84] sm:$0xf0] }
  0x7b   :  { %v20078_v25 = vld [vmem:[%s30893_s1 + $0x2204] sm:$0xf]  ;;  %v16019_v29 = vor.u32 %v19822_v23, %v16016_v24  ;;  %v19711_v22 = vld [vmem:[%s30893_s1 + $0x1684] sm:$0xf0] }
  0x7c   :  { %v17040_v26 = vld [vmem:[%s30893_s1 + $0x2280] sm:$0xf0]  ;;  %9569 = vmatpush.bf16.msra.mxu0 %v14995_v28  ;;  %v16534_v23 = vld [vmem:[%s30893_s1 + $0x1e08] sm:$0xf] }
  0x7d   :  { %v20334_v31 = vld [vmem:[%s30893_s1 + $0x2a04] sm:$0xf]  ;;  %v17043_v34 = vor.u32 %v20078_v25, %v17040_v26  ;;  %9607 = vmatpush.bf16.msrb.mxu2 %v18195_v27  ;;  %v19967_v24 = vld [vmem:[%s30893_s1 + $0x1e84] sm:$0xf0]  ;;  %v14487_v25 = vor.u32 %v19455_v17, %v14486_v16 }
  0x7e   :  { %v18064_v32 = vld [vmem:[%s30893_s1 + $0x2a80] sm:$0xf0]  ;;  %9582 = vmatpush.bf16.msra.mxu1 %v16019_v29  ;;  %v13334_v26 = vld [vmem:[%s30893_s1 + $0x508] sm:$0xf] }
  0x7f   :  { %v19534_v33 = vld [vmem:[%s30893_s1 + $0x1104] sm:$0xf]  ;;  %v18067_v41 = vor.u32 %v20334_v31, %v18064_v32  ;;  %9595 = vmatpush.bf16.msra.mxu3 %v17043_v34  ;;  %v19167_v27 = vld [vmem:[%s30893_s1 + $0x584] sm:$0xf0]  ;;  %v15511_v31 = vor.u32 %v19711_v22, %v15510_v20  ;;  %v16535_v32 = vor.u32 %v19967_v24, %v16534_v23 }
  0x80   :  { %v14864_v36 = vld [vmem:[%s30893_s1 + $0x1180] sm:$0xf0]  ;;  %v14358_v28 = vld [vmem:[%s30893_s1 + $0xd08] sm:$0xf]  ;;  %v13335_v34 = vor.u32 %v19167_v27, %v13334_v26 }
  0x81   :  { %v19790_v37 = vld [vmem:[%s30893_s1 + $0x1904] sm:$0xf]  ;;  %v14867_v44 = vor.u32 %v19534_v33, %v14864_v36  ;;  %9608 = vmatpush.bf16.msrb.mxu2 %v18067_v41  ;;  %v19423_v29 = vld [vmem:[%s30893_s1 + $0xd84] sm:$0xf0] }
  0x82   :  { %v15888_v38 = vld [vmem:[%s30893_s1 + $0x1980] sm:$0xf0]  ;;  %v15382_v33 = vld [vmem:[%s30893_s1 + $0x1508] sm:$0xf] }
  0x83   :  { %v20046_v39 = vld [vmem:[%s30893_s1 + $0x2104] sm:$0xf]  ;;  %v15891_v46 = vor.u32 %v19790_v37, %v15888_v38  ;;  %9570 = vmatpush.bf16.msra.mxu0 %v14867_v44  ;;  %v19679_v36 = vld [vmem:[%s30893_s1 + $0x1584] sm:$0xf0] }
  0x84   :  { %v16912_v40 = vld [vmem:[%s30893_s1 + $0x2180] sm:$0xf0]  ;;  %v16406_v37 = vld [vmem:[%s30893_s1 + $0x1d08] sm:$0xf]  ;;  %v15383_v44 = vor.u32 %v19679_v36, %v15382_v33 }
  0x85   :  { %v20302_v42 = vld [vmem:[%s30893_s1 + $0x2904] sm:$0xf]  ;;  %v16915_v50 = vor.u32 %v20046_v39, %v16912_v40  ;;  %9583 = vmatpush.bf16.msra.mxu1 %v15891_v46  ;;  %v19935_v38 = vld [vmem:[%s30893_s1 + $0x1d84] sm:$0xf0]  ;;  %v14359_v39 = vor.u32 %v19423_v29, %v14358_v28 }
  0x86   :  { %v17936_v43 = vld [vmem:[%s30893_s1 + $0x2980] sm:$0xf0]  ;;  %v13206_v40 = vld [vmem:[%s30893_s1 + $0x408] sm:$0xf]  ;;  %v16407_v46 = vor.u32 %v19935_v38, %v16406_v37 }
  0x87   :  { %v19502_v47 = vld [vmem:[%s30893_s1 + $0x1004] sm:$0xf]  ;;  %v17939_v60 = vor.u32 %v20302_v42, %v17936_v43  ;;  %9596 = vmatpush.bf16.msra.mxu3 %v16915_v50  ;;  %v19135_v41 = vld [vmem:[%s30893_s1 + $0x484] sm:$0xf0] }
  0x88   :  { %v14736_v48 = vld [vmem:[%s30893_s1 + $0x1080] sm:$0xf0]  ;;  %v14230_v42 = vld [vmem:[%s30893_s1 + $0xc08] sm:$0xf] }
  0x89   :  { %v19758_v49 = vld [vmem:[%s30893_s1 + $0x1804] sm:$0xf]  ;;  %v14739_v0 = vor.u32 %v19502_v47, %v14736_v48  ;;  %9609 = vmatpush.bf16.msrb.mxu2 %v17939_v60  ;;  %v19391_v43 = vld [vmem:[%s30893_s1 + $0xc84] sm:$0xf0]  ;;  %v13207_v48 = vor.u32 %v19135_v41, %v13206_v40 }
  0x8a   :  { %v15760_v52 = vld [vmem:[%s30893_s1 + $0x1880] sm:$0xf0]  ;;  %v15254_v47 = vld [vmem:[%s30893_s1 + $0x1408] sm:$0xf] }
  0x8b   :  { %v20014_v53 = vld [vmem:[%s30893_s1 + $0x2004] sm:$0xf]  ;;  %v15763_v1 = vor.u32 %v19758_v49, %v15760_v52  ;;  %9571 = vmatpush.bf16.msra.mxu0 %v14739_v0  ;;  %v19647_v49 = vld [vmem:[%s30893_s1 + $0x1484] sm:$0xf0] }
  0x8c   :  { %v16784_v54 = vld [vmem:[%s30893_s1 + $0x2080] sm:$0xf0]  ;;  %v16278_v50 = vld [vmem:[%s30893_s1 + $0x1c08] sm:$0xf]  ;;  %v15255_v60 = vor.u32 %v19647_v49, %v15254_v47  ;;  %v19215_v47 = vld [vmem:[%s30893_s1 + $0x70c] sm:$0xf] }
  0x8d   :  { %v20526_v62 = vld [vmem:[%s30893_s1 + $0x3004] sm:$0xf]  ;;  %v16787_v6 = vor.u32 %v20014_v53, %v16784_v54  ;;  %9584 = vmatpush.bf16.msra.mxu1 %v15763_v1  ;;  %v19903_v52 = vld [vmem:[%s30893_s1 + $0x1c84] sm:$0xf0]  ;;  %v14231_v53 = vor.u32 %v19391_v43, %v14230_v42 }
  0x8e   :  { %v18832_v63 = vld [vmem:[%s30893_s1 + $0x3080] sm:$0xf0]  ;;  %9572 = vmatmul.bf16.vlgmr.msra.gmra.mxu0 %v20859_v51  ;;  %v13078_v54 = vld [vmem:[%s30893_s1 + $0x308] sm:$0xf]  ;;  %v16279_v61 = vor.u32 %v19903_v52, %v16278_v50  ;;  %v13592_v50 = vld [vmem:[%s30893_s1 + $0x788] sm:$0xf0] }
  0x8f   :  { %v20270_v2 = vld [vmem:[%s30893_s1 + $0x2804] sm:$0xf]  ;;  %v18835_v12 = vor.u32 %v20526_v62, %v18832_v63  ;;  %9597 = vmatpush.bf16.msra.mxu3 %v16787_v6  ;;  %v15126_v62 = vld [vmem:[%s30893_s1 + $0x1308] sm:$0xf]  ;;  %v13079_v63 = vor.u32 %v19103_v56, %v13078_v54 }
  0x90   :  { %v17808_v3 = vld [vmem:[%s30893_s1 + $0x2880] sm:$0xf0]  ;;  %9585 = vmatmul.bf16.vlgmr.msra.gmra.mxu1 %v20872_v57  ;;  %v19615_v0 = vld [vmem:[%s30893_s1 + $0x1384] sm:$0xf0] }
  0x91   :  { %v17811_v15 = vor.u32 %v20270_v2, %v17808_v3  ;;  %9629 = vmatpush.bf16.msrb.mxu1 %v13591_v7  ;;  %9623 = vmatpush.bf16.msrb.mxu0 %v18835_v12  ;;  %v16150_v1 = vld [vmem:[%s30893_s1 + $0x1b08] sm:$0xf]  ;;  %v14103_v3 = vor.u32 %v19359_v59, %v14102_v58  ;;  %v15127_v9 = vor.u32 %v19615_v0, %v15126_v62 }
  0x92   :  { %9598 = vmatmul.bf16.vlgmr.msra.gmra.mxu3 %v21073_v30  ;;  %v19871_v2 = vld [vmem:[%s30893_s1 + $0x1b84] sm:$0xf0] }
  0x93   :  { %9642 = vmatpush.bf16.msrb.mxu3 %v14615_v11  ;;  %9610 = vmatpush.bf16.msrb.mxu2 %v17811_v15  ;;  %v12950_v5 = vld [vmem:[%s30893_s1 + $0x208] sm:$0xf]  ;;  %v16151_v10 = vor.u32 %v19871_v2, %v16150_v1  ;;  %v19471_v1 = vld [vmem:[%s30893_s1 + $0xf0c] sm:$0xf] }
  0x94   :  { %v19071_v6 = vld [vmem:[%s30893_s1 + $0x284] sm:$0xf0]  ;;  %v14616_v2 = vld [vmem:[%s30893_s1 + $0xf88] sm:$0xf0] }
  0x95   :  { %9655 = vmatpush.bf16.msra.mxu0 %v15639_v18  ;;  %9630 = vmatpush.bf16.msrb.mxu1 %v13463_v21  ;;  %v13974_v7 = vld [vmem:[%s30893_s1 + $0xa08] sm:$0xf]  ;;  %v12951_v12 = vor.u32 %v19071_v6, %v12950_v5  ;;  %v19183_v5 = vld [vmem:[%s30893_s1 + $0x60c] sm:$0xf] }
  0x96   :  { %9611 = vmatmul.bf16.vlgmr.msrb.gmra.mxu2 %v21084_v35  ;;  %v19327_v8 = vld [vmem:[%s30893_s1 + $0xa84] sm:$0xf0]  ;;  %v13464_v6 = vld [vmem:[%s30893_s1 + $0x688] sm:$0xf0] }
  0x97   :  { %9668 = vmatpush.bf16.msra.mxu2 %v16663_v19  ;;  %9643 = vmatpush.bf16.msrb.mxu3 %v14487_v25  ;;  %v14998_v11 = vld [vmem:[%s30893_s1 + $0x1208] sm:$0xf]  ;;  %v13975_v16 = vor.u32 %v19327_v8, %v13974_v7 }
  0x98   :  { %v19583_v13 = vld [vmem:[%s30893_s1 + $0x1284] sm:$0xf0] }
  0x99   :  { %9656 = vmatpush.bf16.msra.mxu0 %v15511_v31  ;;  %9631 = vmatpush.bf16.msrb.mxu1 %v13335_v34  ;;  %v16022_v14 = vld [vmem:[%s30893_s1 + $0x1a08] sm:$0xf]  ;;  %v14999_v21 = vor.u32 %v19583_v13, %v14998_v11  ;;  %v13467_v13 = vor.u32 %v19183_v5, %v13464_v6  ;;  %v19311_v5 = vld [vmem:[%s30893_s1 + $0xa0c] sm:$0xf] }
  0x9a   :  { %v19839_v15 = vld [vmem:[%s30893_s1 + $0x1a84] sm:$0xf0]  ;;  %v13976_v6 = vld [vmem:[%s30893_s1 + $0xa88] sm:$0xf0] }
  0x9b   :  { %9669 = vmatpush.bf16.msra.mxu2 %v16535_v32  ;;  %9644 = vmatpush.bf16.msrb.mxu3 %v14359_v39  ;;  %v12822_v17 = vld [vmem:[%s30893_s1 + $0x108] sm:$0xf]  ;;  %v16023_v22 = vor.u32 %v19839_v15, %v16022_v14  ;;  %v19439_v14 = vld [vmem:[%s30893_s1 + $0xe0c] sm:$0xf] }
  0x9c   :  { %v19039_v18 = vld [vmem:[%s30893_s1 + $0x184] sm:$0xf0]  ;;  %v14488_v15 = vld [vmem:[%s30893_s1 + $0xe88] sm:$0xf0] }
  0x9d   :  { %9657 = vmatpush.bf16.msra.mxu0 %v15383_v44  ;;  %9632 = vmatpush.bf16.msrb.mxu1 %v13207_v48  ;;  %v13846_v19 = vld [vmem:[%s30893_s1 + $0x908] sm:$0xf]  ;;  %v12823_v25 = vor.u32 %v19039_v18, %v12822_v17  ;;  %v19151_v17 = vld [vmem:[%s30893_s1 + $0x50c] sm:$0xf] }
  0x9e   :  { %18957 = vmatmul.msk.bf16.vlgmr.msrb.gmra.mxu0 %vm9443_vm0, %v20982_v45  ;;  %v19295_v20 = vld [vmem:[%s30893_s1 + $0x984] sm:$0xf0]  ;;  %v13336_v18 = vld [vmem:[%s30893_s1 + $0x588] sm:$0xf0] }
  0x9f   :  { %9670 = vmatpush.bf16.msra.mxu2 %v16407_v46  ;;  %9645 = vmatpush.bf16.msrb.mxu3 %v14231_v53  ;;  %v14870_v23 = vld [vmem:[%s30893_s1 + $0x1108] sm:$0xf]  ;;  %v13847_v29 = vor.u32 %v19295_v20, %v13846_v19 }
  0xa0   :  { %v19551_v24 = vld [vmem:[%s30893_s1 + $0x1184] sm:$0xf0] }
  0xa1   :  { %9658 = vmatpush.bf16.msra.mxu0 %v15255_v60  ;;  %9633 = vmatpush.bf16.msrb.mxu1 %v13079_v63  ;;  %v15894_v26 = vld [vmem:[%s30893_s1 + $0x1908] sm:$0xf]  ;;  %v14871_v38 = vor.u32 %v19551_v24, %v14870_v23  ;;  %v13595_v63 = vor.u32 %v19215_v47, %v13592_v50 }
  0xa2   :  { %v19807_v27 = vld [vmem:[%s30893_s1 + $0x1984] sm:$0xf0] }
  0xa3   :  { %9671 = vmatpush.bf16.msra.mxu2 %v16279_v61  ;;  %9646 = vmatpush.bf16.msrb.mxu3 %v14103_v3  ;;  %v12694_v28 = vld [vmem:[%s30893_s1 + $0x8] sm:$0xf]  ;;  %v15895_v39 = vor.u32 %v19807_v27, %v15894_v26  ;;  %v19407_v26 = vld [vmem:[%s30893_s1 + $0xd0c] sm:$0xf] }
  0xa4   :  { %v19007_v31 = vld [vmem:[%s30893_s1 + $0x84] sm:$0xf0]  ;;  %v14360_v27 = vld [vmem:[%s30893_s1 + $0xd88] sm:$0xf0] }
  0xa5   :  { %9659 = vmatpush.bf16.msra.mxu0 %v15127_v9  ;;  %9634 = vmatpush.bf16.msrb.mxu1 %v12951_v12  ;;  %v13718_v32 = vld [vmem:[%s30893_s1 + $0x808] sm:$0xf]  ;;  %v12695_v43 = vor.u32 %v19007_v31, %v12694_v28  ;;  %v13208_v31 = vld [vmem:[%s30893_s1 + $0x488] sm:$0xf0] }
  0xa6   :  { %v19263_v33 = vld [vmem:[%s30893_s1 + $0x884] sm:$0xf0] }
  0xa7   :  { %9672 = vmatpush.bf16.msra.mxu2 %v16151_v10  ;;  %9647 = vmatpush.bf16.msrb.mxu3 %v13975_v16  ;;  %v17686_v34 = vld [vmem:[%s30893_s1 + $0x2708] sm:$0xf]  ;;  %v13719_v48 = vor.u32 %v19263_v33, %v13718_v32  ;;  %v14619_v10 = vor.u32 %v19471_v1, %v14616_v2 }
  0xa8   :  { %v20255_v36 = vld [vmem:[%s30893_s1 + $0x2784] sm:$0xf0] }
  0xa9   :  { %v18710_v37 = vld [vmem:[%s30893_s1 + $0x2f08] sm:$0xf]  ;;  %9660 = vmatpush.bf16.msra.mxu0 %v14999_v21  ;;  %9635 = vmatpush.bf16.msrb.mxu1 %v12823_v25  ;;  %v17687_v49 = vor.u32 %v20255_v36, %v17686_v34  ;;  %v13339_v25 = vor.u32 %v19151_v17, %v13336_v18  ;;  %v14363_v36 = vor.u32 %v19407_v26, %v14360_v27  ;;  %v15640_v17 = vld [vmem:[%s30893_s1 + $0x1788] sm:$0xf0] }
  0xaa   :  { %v20511_v40 = vld [vmem:[%s30893_s1 + $0x2f84] sm:$0xf0]  ;;  %v19983_v18 = vld [vmem:[%s30893_s1 + $0x1f0c] sm:$0xf] }
  0xab   :  { %9673 = vmatpush.bf16.msra.mxu2 %v16023_v22  ;;  %v14742_v41 = vld [vmem:[%s30893_s1 + $0x1008] sm:$0xf]  ;;  %9648 = vmatpush.bf16.msrb.mxu3 %v13847_v29  ;;  %v18711_v54 = vor.u32 %v20511_v40, %v18710_v37  ;;  %v14491_v22 = vor.u32 %v19439_v14, %v14488_v15  ;;  %v19119_v29 = vld [vmem:[%s30893_s1 + $0x40c] sm:$0xf]  ;;  %v13979_v15 = vor.u32 %v19311_v5, %v13976_v6 }
  0xac   :  { %v19519_v42 = vld [vmem:[%s30893_s1 + $0x1084] sm:$0xf0]  ;;  %v19375_v40 = vld [vmem:[%s30893_s1 + $0xc0c] sm:$0xf] }
  0xad   :  { %v15766_v44 = vld [vmem:[%s30893_s1 + $0x1808] sm:$0xf]  ;;  %9661 = vmatpush.bf16.msra.mxu0 %v14871_v38  ;;  %v14743_v59 = vor.u32 %v19519_v42, %v14742_v41  ;;  %9636 = vmatpush.bf16.msrb.mxu1 %v12695_v43  ;;  %v14232_v41 = vld [vmem:[%s30893_s1 + $0xc88] sm:$0xf0] }
  0xae   :  { %v19775_v46 = vld [vmem:[%s30893_s1 + $0x1884] sm:$0xf0]  ;;  %v19087_v43 = vld [vmem:[%s30893_s1 + $0x30c] sm:$0xf] }
  0xaf   :  { %v18838_v52 = vld [vmem:[%s30893_s1 + $0x3008] sm:$0xf]  ;;  %9674 = vmatpush.bf16.msra.mxu2 %v15895_v39  ;;  %v15767_v60 = vor.u32 %v19775_v46, %v15766_v44  ;;  %9649 = vmatpush.bf16.msrb.mxu3 %v13719_v48  ;;  %v13211_v39 = vor.u32 %v19119_v29, %v13208_v31  ;;  %v13080_v44 = vld [vmem:[%s30893_s1 + $0x388] sm:$0xf0] }
  0xb0   :  { %v20543_v53 = vld [vmem:[%s30893_s1 + $0x3084] sm:$0xf0]  ;;  %9637 = vmatmul.bf16.vlgmr.msrb.gmra.mxu1 %v20870_v55  ;;  %v17688_v29 = vld [vmem:[%s30893_s1 + $0x2788] sm:$0xf0] }
  0xb1   :  { %v17558_v56 = vld [vmem:[%s30893_s1 + $0x2608] sm:$0xf]  ;;  %v18839_v0 = vor.u32 %v20543_v53, %v18838_v52  ;;  %9681 = vmatpush.bf16.msra.mxu1 %v17687_v49  ;;  %9662 = vmatpush.bf16.msra.mxu0 %v14743_v59  ;;  %v14235_v49 = vor.u32 %v19375_v40, %v14232_v41  ;;  %v13083_v53 = vor.u32 %v19087_v43, %v13080_v44  ;;  %v19055_v59 = vld [vmem:[%s30893_s1 + $0x20c] sm:$0xf] }
  0xb2   :  { %v20223_v58 = vld [vmem:[%s30893_s1 + $0x2684] sm:$0xf0]  ;;  %9650 = vmatmul.bf16.vlgmr.msrb.gmra.mxu3 %v20894_v4  ;;  %v13720_v40 = vld [vmem:[%s30893_s1 + $0x888] sm:$0xf0] }
  0xb3   :  { %v18582_v61 = vld [vmem:[%s30893_s1 + $0x2e08] sm:$0xf]  ;;  %v17559_v3 = vor.u32 %v20223_v58, %v17558_v56  ;;  %9694 = vmatpush.bf16.msra.mxu3 %v18711_v54  ;;  %9675 = vmatpush.bf16.msra.mxu2 %v15767_v60  ;;  %v19343_v54 = vld [vmem:[%s30893_s1 + $0xb0c] sm:$0xf] }
  0xb4   :  { %v20479_v62 = vld [vmem:[%s30893_s1 + $0x2e84] sm:$0xf0]  ;;  %9663 = vmatmul.bf16.vlgmr.msra.gmra.mxu0 %v20859_v51  ;;  %v14104_v56 = vld [vmem:[%s30893_s1 + $0xb88] sm:$0xf0] }
  0xb5   :  { %v18583_v7 = vor.u32 %v20479_v62, %v18582_v61  ;;  %v17430_v8 = vld [vmem:[%s30893_s1 + $0x2508] sm:$0xf]  ;;  %9714 = vmatpush.bf16.msrb.mxu0 %v18839_v0  ;;  %9682 = vmatpush.bf16.msra.mxu1 %v17559_v3  ;;  %v12952_v60 = vld [vmem:[%s30893_s1 + $0x288] sm:$0xf0]  ;;  %v14107_v0 = vor.u32 %v19343_v54, %v14104_v56 }
  0xb6   :  { %v20191_v9 = vld [vmem:[%s30893_s1 + $0x2584] sm:$0xf0]  ;;  %9676 = vmatmul.bf16.vlgmr.msra.gmra.mxu2 %v20872_v57  ;;  %v12955_v3 = vor.u32 %v19055_v59, %v12952_v60  ;;  %v18712_v43 = vld [vmem:[%s30893_s1 + $0x2f88] sm:$0xf0] }
  0xb7   :  { %v18454_v11 = vld [vmem:[%s30893_s1 + $0x2d08] sm:$0xf]  ;;  %9720 = vmatpush.bf16.msrb.mxu2 %v13595_v63  ;;  %v17431_v16 = vor.u32 %v20191_v9, %v17430_v8  ;;  %9695 = vmatpush.bf16.msra.mxu3 %v18583_v7  ;;  %v19023_v8 = vld [vmem:[%s30893_s1 + $0x10c] sm:$0xf] }
  0xb8   :  { %v20447_v12 = vld [vmem:[%s30893_s1 + $0x2d84] sm:$0xf0]  ;;  %v12824_v9 = vld [vmem:[%s30893_s1 + $0x188] sm:$0xf0] }
  0xb9   :  { %v18455_v19 = vor.u32 %v20447_v12, %v18454_v11  ;;  %v17302_v20 = vld [vmem:[%s30893_s1 + $0x2408] sm:$0xf]  ;;  %9733 = vmatpush.bf16.msra.mxu0 %v14619_v10  ;;  %9683 = vmatpush.bf16.msra.mxu1 %v17431_v16  ;;  %v19727_v16 = vld [vmem:[%s30893_s1 + $0x170c] sm:$0xf] }
  0xba   :  { %v20159_v21 = vld [vmem:[%s30893_s1 + $0x2484] sm:$0xf0]  ;;  %v15643_v27 = vor.u32 %v19727_v16, %v15640_v17  ;;  %v19919_v54 = vld [vmem:[%s30893_s1 + $0x1d0c] sm:$0xf] }
  0xbb   :  { %v18326_v23 = vld [vmem:[%s30893_s1 + $0x2c08] sm:$0xf]  ;;  %9721 = vmatpush.bf16.msrb.mxu2 %v13467_v13  ;;  %v17303_v28 = vor.u32 %v20159_v21, %v17302_v20  ;;  %9696 = vmatpush.bf16.msra.mxu3 %v18455_v19  ;;  %v12827_v19 = vor.u32 %v19023_v8, %v12824_v9  ;;  %v16664_v20 = vld [vmem:[%s30893_s1 + $0x1f88] sm:$0xf0] }
  0xbc   :  { %v20415_v24 = vld [vmem:[%s30893_s1 + $0x2c84] sm:$0xf0]  ;;  %v19279_v21 = vld [vmem:[%s30893_s1 + $0x90c] sm:$0xf]  ;;  %v16667_v31 = vor.u32 %v19983_v18, %v16664_v20 }
  0xbd   :  { %v18327_v32 = vor.u32 %v20415_v24, %v18326_v23  ;;  %v17174_v33 = vld [vmem:[%s30893_s1 + $0x2308] sm:$0xf]  ;;  %9734 = vmatpush.bf16.msra.mxu0 %v14491_v22  ;;  %9684 = vmatpush.bf16.msra.mxu1 %v17303_v28  ;;  %v13848_v22 = vld [vmem:[%s30893_s1 + $0x988] sm:$0xf0] }
  0xbe   :  { %v20127_v34 = vld [vmem:[%s30893_s1 + $0x2384] sm:$0xf0]  ;;  %v18991_v24 = vld [vmem:[%s30893_s1 + $0xc] sm:$0xf] }
  0xbf   :  { %v18198_v37 = vld [vmem:[%s30893_s1 + $0x2b08] sm:$0xf]  ;;  %9722 = vmatpush.bf16.msrb.mxu2 %v13339_v25  ;;  %v17175_v42 = vor.u32 %v20127_v34, %v17174_v33  ;;  %9697 = vmatpush.bf16.msra.mxu3 %v18327_v32  ;;  %v12696_v25 = vld [vmem:[%s30893_s1 + $0x88] sm:$0xf0]  ;;  %v13851_v32 = vor.u32 %v19279_v21, %v13848_v22 }
  0xc0   :  { %v20383_v38 = vld [vmem:[%s30893_s1 + $0x2b84] sm:$0xf0]  ;;  %v20239_v28 = vld [vmem:[%s30893_s1 + $0x270c] sm:$0xf] }
  0xc1   :  { %v18199_v46 = vor.u32 %v20383_v38, %v18198_v37  ;;  %v17046_v47 = vld [vmem:[%s30893_s1 + $0x2208] sm:$0xf]  ;;  %9735 = vmatpush.bf16.msra.mxu0 %v14363_v36  ;;  %9685 = vmatpush.bf16.msra.mxu1 %v17175_v42  ;;  %v19695_v33 = vld [vmem:[%s30893_s1 + $0x160c] sm:$0xf]  ;;  %v12699_v37 = vor.u32 %v18991_v24, %v12696_v25  ;;  %v17691_v41 = vor.u32 %v20239_v28, %v17688_v29  ;;  %v9469_v29 = vpop.f32.mrf.mxu1 }
  0xc2   :  { %v20095_v48 = vld [vmem:[%s30893_s1 + $0x2284] sm:$0xf0]  ;;  %v15512_v34 = vld [vmem:[%s30893_s1 + $0x1688] sm:$0xf0] }
  0xc3   :  { %v18070_v50 = vld [vmem:[%s30893_s1 + $0x2a08] sm:$0xf]  ;;  %9723 = vmatpush.bf16.msrb.mxu2 %v13211_v39  ;;  %v17047_v58 = vor.u32 %v20095_v48, %v17046_v47  ;;  %9698 = vmatpush.bf16.msra.mxu3 %v18199_v46  ;;  %v19951_v36 = vld [vmem:[%s30893_s1 + $0x1e0c] sm:$0xf]  ;;  %v15515_v44 = vor.u32 %v19695_v33, %v15512_v34 }
  0xc4   :  { %v20351_v52 = vld [vmem:[%s30893_s1 + $0x2a84] sm:$0xf0]  ;;  %18958 = vmatmul.msk.bf16.vlgmr.msrb.gmra.mxu0 %vm9443_vm0, %v20982_v45  ;;  %v16536_v38 = vld [vmem:[%s30893_s1 + $0x1e88] sm:$0xf0] }
  0xc5   :  { %v18071_v61 = vor.u32 %v20351_v52, %v18070_v50  ;;  %v16918_v62 = vld [vmem:[%s30893_s1 + $0x2108] sm:$0xf]  ;;  %9736 = vmatpush.bf16.msra.mxu0 %v14235_v49  ;;  %9686 = vmatpush.bf16.msra.mxu1 %v17047_v58  ;;  %v19247_v39 = vld [vmem:[%s30893_s1 + $0x80c] sm:$0xf]  ;;  %v16539_v48 = vor.u32 %v19951_v36, %v16536_v38 }
  0xc6   :  { %v20063_v63 = vld [vmem:[%s30893_s1 + $0x2184] sm:$0xf0]  ;;  %v20495_v42 = vld [vmem:[%s30893_s1 + $0x2f0c] sm:$0xf]  ;;  %v13723_v49 = vor.u32 %v19247_v39, %v13720_v40 }
  0xc7   :  { %v17942_v1 = vld [vmem:[%s30893_s1 + $0x2908] sm:$0xf]  ;;  %9724 = vmatpush.bf16.msrb.mxu2 %v13083_v53  ;;  %v16919_v7 = vor.u32 %v20063_v63, %v16918_v62  ;;  %9699 = vmatpush.bf16.msra.mxu3 %v18071_v61  ;;  %v20207_v46 = vld [vmem:[%s30893_s1 + $0x260c] sm:$0xf]  ;;  %v18715_v53 = vor.u32 %v20495_v42, %v18712_v43  ;;  %v9456_v17 = vpop.f32.mrf.mxu0  ;;  %v9482_v39 = vpop.f32.mrf.mxu2 }
  0xc8   :  { %v20319_v2 = vld [vmem:[%s30893_s1 + $0x2984] sm:$0xf0]  ;;  %v17560_v47 = vld [vmem:[%s30893_s1 + $0x2688] sm:$0xf0]  ;;  %v9470_v34 = vadd.f32 %v9469_v29, %v9456_v17  ;;  %v19200_v29 = vld [vmem:[%s30893_s1 + $0x68c] sm:$0xf0] }
  0xc9   :  { %v16790_v10 = vld [vmem:[%s30893_s1 + $0x2008] sm:$0xf]  ;;  %v17943_v11 = vor.u32 %v20319_v2, %v17942_v1  ;;  %9737 = vmatpush.bf16.msra.mxu0 %v14107_v0  ;;  %9687 = vmatpush.bf16.msra.mxu1 %v16919_v7  ;;  %v19663_v50 = vld [vmem:[%s30893_s1 + $0x150c] sm:$0xf]  ;;  %v17563_v58 = vor.u32 %v20207_v46, %v17560_v47 }
  0xca   :  { %v20031_v12 = vld [vmem:[%s30893_s1 + $0x2084] sm:$0xf0]  ;;  %v15384_v52 = vld [vmem:[%s30893_s1 + $0x1588] sm:$0xf0]  ;;  %v9483_v43 = vadd.f32 %v9482_v39, %v9470_v34  ;;  %v15646_v34 = vld [vmem:[%s30893_s1 + $0x1710] sm:$0xf] }
  0xcb   :  { %v17814_v13 = vld [vmem:[%s30893_s1 + $0x2808] sm:$0xf]  ;;  %9725 = vmatpush.bf16.msrb.mxu2 %v12955_v3  ;;  %v16791_v23 = vor.u32 %v20031_v12, %v16790_v10  ;;  %9700 = vmatpush.bf16.msra.mxu3 %v17943_v11  ;;  %v16408_v56 = vld [vmem:[%s30893_s1 + $0x1d88] sm:$0xf0]  ;;  %v15387_v61 = vor.u32 %v19663_v50, %v15384_v52  ;;  %v20000_v39 = vld [vmem:[%s30893_s1 + $0x1f8c] sm:$0xf0] }
  0xcc   :  { %v20287_v14 = vld [vmem:[%s30893_s1 + $0x2884] sm:$0xf0]  ;;  %v20463_v59 = vld [vmem:[%s30893_s1 + $0x2e0c] sm:$0xf]  ;;  %v16411_v0 = vor.u32 %v19919_v54, %v16408_v56 }
  0xcd   :  { %v17815_v26 = vor.u32 %v20287_v14, %v17814_v13  ;;  %9738 = vmatpush.bf16.msra.mxu0 %v13979_v15  ;;  %9688 = vmatpush.bf16.msra.mxu1 %v16791_v23  ;;  %v18584_v60 = vld [vmem:[%s30893_s1 + $0x2e88] sm:$0xf0] }
  0xce   :  { %v20175_v62 = vld [vmem:[%s30893_s1 + $0x250c] sm:$0xf]  ;;  %v18587_v3 = vor.u32 %v20463_v59, %v18584_v60 }
  0xcf   :  { %9726 = vmatpush.bf16.msrb.mxu2 %v12827_v19  ;;  %9701 = vmatpush.bf16.msra.mxu3 %v17815_v26  ;;  %v17432_v63 = vld [vmem:[%s30893_s1 + $0x2588] sm:$0xf0] }
  0xd0   :  { %9689 = vmatmul.bf16.vlgmr.msra.gmra.mxu1 %v21073_v30  ;;  %v19631_v1 = vld [vmem:[%s30893_s1 + $0x140c] sm:$0xf]  ;;  %v17435_v7 = vor.u32 %v20175_v62, %v17432_v63 }
  0xd1   :  { %9746 = vmatpush.bf16.msrb.mxu1 %v15643_v27  ;;  %9739 = vmatpush.bf16.msra.mxu0 %v13851_v32  ;;  %v15256_v2 = vld [vmem:[%s30893_s1 + $0x1488] sm:$0xf0] }
  0xd2   :  { %9702 = vmatmul.bf16.vlgmr.msra.gmra.mxu3 %v21084_v35  ;;  %v19887_v5 = vld [vmem:[%s30893_s1 + $0x1c0c] sm:$0xf]  ;;  %v15259_v10 = vor.u32 %v19631_v1, %v15256_v2 }
  0xd3   :  { %9759 = vmatpush.bf16.msrb.mxu3 %v16667_v31  ;;  %9727 = vmatpush.bf16.msrb.mxu2 %v12699_v37  ;;  %v16280_v6 = vld [vmem:[%s30893_s1 + $0x1c88] sm:$0xf0] }
  0xd4   :  { %v20431_v8 = vld [vmem:[%s30893_s1 + $0x2d0c] sm:$0xf]  ;;  %v16283_v13 = vor.u32 %v19887_v5, %v16280_v6  ;;  %v13598_v6 = vld [vmem:[%s30893_s1 + $0x710] sm:$0xf] }
  0xd5   :  { %9747 = vmatpush.bf16.msrb.mxu1 %v15515_v44  ;;  %9740 = vmatpush.bf16.msra.mxu0 %v13723_v49  ;;  %v18456_v9 = vld [vmem:[%s30893_s1 + $0x2d88] sm:$0xf0]  ;;  %v9495_v44 = vpop.f32.mrf.mxu3 }
  0xd6   :  { %9728 = vmatmul.bf16.vlgmr.msrb.gmra.mxu2 %v20870_v55  ;;  %v20143_v11 = vld [vmem:[%s30893_s1 + $0x240c] sm:$0xf]  ;;  %v18459_v16 = vor.u32 %v20431_v8, %v18456_v9  ;;  %v21808_v54 = vadd.f32 %v9495_v44, %v9483_v43  ;;  %v19488_v8 = vld [vmem:[%s30893_s1 + $0xf8c] sm:$0xf0]  ;;  %v9471_v9 = vpop.f32.mrf.mxu1 }
  0xd7   :  { %9772 = vmatpush.bf16.msra.mxu2 %v17691_v41  ;;  %9760 = vmatpush.bf16.msrb.mxu3 %v16539_v48  ;;  %v17304_v12 = vld [vmem:[%s30893_s1 + $0x2488] sm:$0xf0]  ;;  %v14110_v9 = vld [vmem:[%s30893_s1 + $0xb10] sm:$0xf] }
  0xd8   :  { %9741 = vmatmul.bf16.vlgmr.msra.gmra.mxu0 %v20894_v4  ;;  %v19599_v14 = vld [vmem:[%s30893_s1 + $0x130c] sm:$0xf]  ;;  %v17307_v20 = vor.u32 %v20143_v11, %v17304_v12  ;;  %v19232_v11 = vld [vmem:[%s30893_s1 + $0x78c] sm:$0xf0] }
  0xd9   :  { %9785 = vmatpush.bf16.msrb.mxu0 %v18715_v53  ;;  %9748 = vmatpush.bf16.msrb.mxu1 %v15387_v61  ;;  %v15128_v15 = vld [vmem:[%s30893_s1 + $0x1388] sm:$0xf0]  ;;  %v9458_v53 = vpop.f32.mrf.mxu0 }
  0xda   :  { %v19855_v18 = vld [vmem:[%s30893_s1 + $0x1b0c] sm:$0xf]  ;;  %v15131_v23 = vor.u32 %v19599_v14, %v15128_v15  ;;  %v9484_v14 = vpop.f32.mrf.mxu2 }
  0xdb   :  { %9773 = vmatpush.bf16.msra.mxu2 %v17563_v58  ;;  %9761 = vmatpush.bf16.msrb.mxu3 %v16411_v0  ;;  %v16152_v19 = vld [vmem:[%s30893_s1 + $0x1b88] sm:$0xf0]  ;;  %v19104_v14 = vld [vmem:[%s30893_s1 + $0x38c] sm:$0xf0] }
  0xdc   :  { %v20399_v21 = vld [vmem:[%s30893_s1 + $0x2c0c] sm:$0xf]  ;;  %v16155_v26 = vor.u32 %v19855_v18, %v16152_v19 }
  0xdd   :  { %9786 = vmatpush.bf16.msrb.mxu0 %v18587_v3  ;;  %v18328_v22 = vld [vmem:[%s30893_s1 + $0x2c88] sm:$0xf0]  ;;  %9749 = vmatpush.bf16.msrb.mxu1 %v15259_v10 }
  0xde   :  { %v20111_v24 = vld [vmem:[%s30893_s1 + $0x230c] sm:$0xf]  ;;  %v18331_v31 = vor.u32 %v20399_v21, %v18328_v22  ;;  %v9497_v22 = vpop.f32.mrf.mxu3 }
  0xdf   :  { %9774 = vmatpush.bf16.msra.mxu2 %v17435_v7  ;;  %v17176_v25 = vld [vmem:[%s30893_s1 + $0x2388] sm:$0xf0]  ;;  %9762 = vmatpush.bf16.msrb.mxu3 %v16283_v13  ;;  %v14622_v7 = vld [vmem:[%s30893_s1 + $0xf10] sm:$0xf] }
  0xe0   :  { %v19567_v27 = vld [vmem:[%s30893_s1 + $0x120c] sm:$0xf]  ;;  %v17179_v36 = vor.u32 %v20111_v24, %v17176_v25  ;;  %v14623_v19 = vor.u32 %v19488_v8, %v14622_v7  ;;  %v14494_v25 = vld [vmem:[%s30893_s1 + $0xe10] sm:$0xf] }
  0xe1   :  { %v15000_v28 = vld [vmem:[%s30893_s1 + $0x1288] sm:$0xf0]  ;;  %9787 = vmatpush.bf16.msrb.mxu0 %v18459_v16  ;;  %9750 = vmatpush.bf16.msrb.mxu1 %v15131_v23  ;;  %v13599_v23 = vor.u32 %v19232_v11, %v13598_v6  ;;  %v16414_v6 = vld [vmem:[%s30893_s1 + $0x1d10] sm:$0xf] }
  0xe2   :  { %v19823_v32 = vld [vmem:[%s30893_s1 + $0x1a0c] sm:$0xf]  ;;  %v15003_v40 = vor.u32 %v19567_v27, %v15000_v28  ;;  %v13470_v28 = vld [vmem:[%s30893_s1 + $0x610] sm:$0xf] }
  0xe3   :  { %v16024_v33 = vld [vmem:[%s30893_s1 + $0x1a88] sm:$0xf0]  ;;  %9775 = vmatpush.bf16.msra.mxu2 %v17307_v20  ;;  %9763 = vmatpush.bf16.msrb.mxu3 %v16155_v26  ;;  %v19456_v26 = vld [vmem:[%s30893_s1 + $0xe8c] sm:$0xf0] }
  0xe4   :  { %v20367_v37 = vld [vmem:[%s30893_s1 + $0x2b0c] sm:$0xf]  ;;  %v16027_v46 = vor.u32 %v19823_v32, %v16024_v33  ;;  %v19936_v7 = vld [vmem:[%s30893_s1 + $0x1d8c] sm:$0xf0]  ;;  %v9508_v11 = vpop.f32.mrf.mxu0 }
  0xe5   :  { %v18200_v38 = vld [vmem:[%s30893_s1 + $0x2b88] sm:$0xf0]  ;;  %9788 = vmatpush.bf16.msrb.mxu0 %v18331_v31  ;;  %9751 = vmatpush.bf16.msrb.mxu1 %v15003_v40  ;;  %v13471_v40 = vor.u32 %v19200_v29, %v13470_v28  ;;  %v16286_v22 = vld [vmem:[%s30893_s1 + $0x1c10] sm:$0xf] }
  0xe6   :  { %v20079_v41 = vld [vmem:[%s30893_s1 + $0x220c] sm:$0xf]  ;;  %v18203_v49 = vor.u32 %v20367_v37, %v18200_v38  ;;  %v14495_v37 = vor.u32 %v19456_v26, %v14494_v25  ;;  %v16670_v38 = vld [vmem:[%s30893_s1 + $0x1f10] sm:$0xf] }
  0xe7   :  { %v17048_v42 = vld [vmem:[%s30893_s1 + $0x2288] sm:$0xf0]  ;;  %9776 = vmatpush.bf16.msra.mxu2 %v17179_v36  ;;  %9764 = vmatpush.bf16.msrb.mxu3 %v16027_v46  ;;  %v19744_v36 = vld [vmem:[%s30893_s1 + $0x178c] sm:$0xf0] }
  0xe8   :  { %v19535_v47 = vld [vmem:[%s30893_s1 + $0x110c] sm:$0xf]  ;;  %v17051_v56 = vor.u32 %v20079_v41, %v17048_v42  ;;  %v14366_v41 = vld [vmem:[%s30893_s1 + $0xd10] sm:$0xf]  ;;  %v15647_v44 = vor.u32 %v19744_v36, %v15646_v34 }
  0xe9   :  { %v14872_v48 = vld [vmem:[%s30893_s1 + $0x1188] sm:$0xf0]  ;;  %9789 = vmatpush.bf16.msrb.mxu0 %v18203_v49  ;;  %v19424_v42 = vld [vmem:[%s30893_s1 + $0xd8c] sm:$0xf0]  ;;  %v9534_v49 = vpop.f32.mrf.mxu2 }
  0xea   :  { %v19791_v50 = vld [vmem:[%s30893_s1 + $0x190c] sm:$0xf]  ;;  %v14875_v60 = vor.u32 %v19535_v47, %v14872_v48  ;;  %v13342_v46 = vld [vmem:[%s30893_s1 + $0x510] sm:$0xf]  ;;  %v16671_v48 = vor.u32 %v20000_v39, %v16670_v38  ;;  %v14367_v53 = vor.u32 %v19424_v42, %v14366_v41 }
  0xeb   :  { %v15896_v52 = vld [vmem:[%s30893_s1 + $0x1988] sm:$0xf0]  ;;  %9777 = vmatpush.bf16.msra.mxu2 %v17051_v56  ;;  %v19168_v47 = vld [vmem:[%s30893_s1 + $0x58c] sm:$0xf0] }
  0xec   :  { %v20335_v58 = vld [vmem:[%s30893_s1 + $0x2a0c] sm:$0xf]  ;;  %v15899_v0 = vor.u32 %v19791_v50, %v15896_v52  ;;  %9752 = vmatpush.bf16.msrb.mxu1 %v14875_v60  ;;  %v15518_v50 = vld [vmem:[%s30893_s1 + $0x1610] sm:$0xf] }
  0xed   :  { %v18072_v59 = vld [vmem:[%s30893_s1 + $0x2a88] sm:$0xf0]  ;;  %v19712_v52 = vld [vmem:[%s30893_s1 + $0x168c] sm:$0xf0] }
  0xee   :  { %v20047_v61 = vld [vmem:[%s30893_s1 + $0x210c] sm:$0xf]  ;;  %v18075_v5 = vor.u32 %v20335_v58, %v18072_v59  ;;  %9765 = vmatpush.bf16.msrb.mxu3 %v15899_v0  ;;  %v16542_v56 = vld [vmem:[%s30893_s1 + $0x1e10] sm:$0xf]  ;;  %v13343_v59 = vor.u32 %v19168_v47, %v13342_v46  ;;  %v9510_v46 = vpop.f32.mrf.mxu0  ;;  %v22009_v47 = vpop.f32.mrf.mxu3 }
  0xef   :  { %v16920_v62 = vld [vmem:[%s30893_s1 + $0x2188] sm:$0xf0]  ;;  %v19968_v58 = vld [vmem:[%s30893_s1 + $0x1e8c] sm:$0xf0] }
  0xf0   :  { %v19503_v63 = vld [vmem:[%s30893_s1 + $0x100c] sm:$0xf]  ;;  %v16923_v10 = vor.u32 %v20047_v61, %v16920_v62  ;;  %9790 = vmatpush.bf16.msrb.mxu0 %v18075_v5  ;;  %v14238_v60 = vld [vmem:[%s30893_s1 + $0xc10] sm:$0xf]  ;;  %v15519_v62 = vor.u32 %v19712_v52, %v15518_v50 }
  0xf1   :  { %v14744_v1 = vld [vmem:[%s30893_s1 + $0x1088] sm:$0xf0]  ;;  %v19392_v61 = vld [vmem:[%s30893_s1 + $0xc8c] sm:$0xf0] }
  0xf2   :  { %v19759_v2 = vld [vmem:[%s30893_s1 + $0x180c] sm:$0xf]  ;;  %v14747_v15 = vor.u32 %v19503_v63, %v14744_v1  ;;  %9778 = vmatpush.bf16.msra.mxu2 %v16923_v10  ;;  %v13214_v63 = vld [vmem:[%s30893_s1 + $0x410] sm:$0xf]  ;;  %v16543_v1 = vor.u32 %v19968_v58, %v16542_v56  ;;  %v14239_v5 = vor.u32 %v19392_v61, %v14238_v60 }
  0xf3   :  { %v15768_v3 = vld [vmem:[%s30893_s1 + $0x1888] sm:$0xf0]  ;;  %v19136_v0 = vld [vmem:[%s30893_s1 + $0x48c] sm:$0xf0] }
  0xf4   :  { %v20303_v12 = vld [vmem:[%s30893_s1 + $0x290c] sm:$0xf]  ;;  %v15771_v18 = vor.u32 %v19759_v2, %v15768_v3  ;;  %9753 = vmatpush.bf16.msrb.mxu1 %v14747_v15  ;;  %v15390_v2 = vld [vmem:[%s30893_s1 + $0x1510] sm:$0xf]  ;;  %v13215_v8 = vor.u32 %v19136_v0, %v13214_v63  ;;  %v9509_v15 = vadd.f32 %v9508_v11, %v21808_v54 }
  0xf5   :  { %v17944_v13 = vld [vmem:[%s30893_s1 + $0x2988] sm:$0xf0]  ;;  %v19680_v3 = vld [vmem:[%s30893_s1 + $0x158c] sm:$0xf0] }
  0xf6   :  { %v20015_v16 = vld [vmem:[%s30893_s1 + $0x200c] sm:$0xf]  ;;  %v17947_v24 = vor.u32 %v20303_v12, %v17944_v13  ;;  %9766 = vmatpush.bf16.msrb.mxu3 %v15771_v18  ;;  %v19360_v10 = vld [vmem:[%s30893_s1 + $0xb8c] sm:$0xf0]  ;;  %v15391_v12 = vor.u32 %v19680_v3, %v15390_v2  ;;  %v9536_v18 = vpop.f32.mrf.mxu2 }
  0xf7   :  { %v16792_v17 = vld [vmem:[%s30893_s1 + $0x2088] sm:$0xf0]  ;;  %9754 = vmatmul.bf16.vlgmr.msrb.gmra.mxu1 %v20859_v51  ;;  %v13086_v13 = vld [vmem:[%s30893_s1 + $0x310] sm:$0xf] }
  0xf8   :  { %v20527_v20 = vld [vmem:[%s30893_s1 + $0x300c] sm:$0xf]  ;;  %v16795_v27 = vor.u32 %v20015_v16, %v16792_v17  ;;  %9824 = vmatpush.bf16.msra.mxu1 %v14623_v19  ;;  %9791 = vmatpush.bf16.msrb.mxu0 %v17947_v24  ;;  %v9521_v16 = vpop.f32.mrf.mxu1  ;;  %v16415_v17 = vor.u32 %v19936_v7, %v16414_v6  ;;  %v15262_v19 = vld [vmem:[%s30893_s1 + $0x1410] sm:$0xf]  ;;  %v13087_v24 = vor.u32 %v19104_v14, %v13086_v13 }
  0xf9   :  { %v18840_v21 = vld [vmem:[%s30893_s1 + $0x3088] sm:$0xf0]  ;;  %9767 = vmatmul.bf16.vlgmr.msrb.gmra.mxu3 %v20872_v57  ;;  %v19904_v54 = vld [vmem:[%s30893_s1 + $0x1c8c] sm:$0xf0] }
  0xfa   :  { %v20271_v31 = vld [vmem:[%s30893_s1 + $0x280c] sm:$0xf]  ;;  %v18843_v33 = vor.u32 %v20527_v20, %v18840_v21  ;;  %9811 = vmatpush.bf16.msra.mxu3 %v13599_v23  ;;  %9779 = vmatpush.bf16.msra.mxu2 %v16795_v27  ;;  %v19648_v20 = vld [vmem:[%s30893_s1 + $0x148c] sm:$0xf0]  ;;  %v14111_v21 = vor.u32 %v19360_v10, %v14110_v9  ;;  %v9522_v23 = vadd.f32 %v9521_v16, %v9509_v15 }
  0xfb   :  { %v17816_v32 = vld [vmem:[%s30893_s1 + $0x2888] sm:$0xf0]  ;;  %v13982_v25 = vld [vmem:[%s30893_s1 + $0xa10] sm:$0xf]  ;;  %v15263_v27 = vor.u32 %v19648_v20, %v15262_v19 }
  0xfc   :  { %v17819_v43 = vor.u32 %v20271_v31, %v17816_v32  ;;  %9825 = vmatpush.bf16.msra.mxu1 %v14495_v37  ;;  %v19328_v26 = vld [vmem:[%s30893_s1 + $0xa8c] sm:$0xf0]  ;;  %v21983_v31 = vadd.f32 %v9534_v49, %v9522_v23  ;;  %v16287_v32 = vor.u32 %v19904_v54, %v16286_v22 }
  0xfd   :  { %9780 = vmatmul.bf16.vlgmr.msra.gmra.mxu2 %v21073_v30  ;;  %v12958_v28 = vld [vmem:[%s30893_s1 + $0x210] sm:$0xf]  ;;  %v13983_v36 = vor.u32 %v19328_v26, %v13982_v25 }
  0xfe   :  { %9805 = vmatpush.bf16.msrb.mxu2 %v18843_v33  ;;  %9812 = vmatpush.bf16.msra.mxu3 %v13471_v40  ;;  %v19072_v29 = vld [vmem:[%s30893_s1 + $0x28c] sm:$0xf0]  ;;  %v22026_v60 = vpop.f32.mrf.mxu2 }
  0xff   :  { %9792 = vmatpush.bf16.msrb.mxu0 %v17819_v43  ;;  %v15134_v33 = vld [vmem:[%s30893_s1 + $0x1310] sm:$0xf]  ;;  %v12959_v39 = vor.u32 %v19072_v29, %v12958_v28 }
 0x100   :  { %9826 = vmatpush.bf16.msra.mxu1 %v14367_v53  ;;  %v19616_v34 = vld [vmem:[%s30893_s1 + $0x138c] sm:$0xf0]  ;;  %v9523_v52 = vpop.f32.mrf.mxu1 }
 0x101   :  { %v16158_v37 = vld [vmem:[%s30893_s1 + $0x1b10] sm:$0xf]  ;;  %v15135_v42 = vor.u32 %v19616_v34, %v15134_v33  ;;  %v13600_v33 = vld [vmem:[%s30893_s1 + $0x790] sm:$0xf0] }
 0x102   :  { %9837 = vmatpush.bf16.msra.mxu2 %v15647_v44  ;;  %9813 = vmatpush.bf16.msra.mxu3 %v13343_v59  ;;  %v19872_v38 = vld [vmem:[%s30893_s1 + $0x1b8c] sm:$0xf0] }
 0x103   :  { %9850 = vmatpush.bf16.msra.mxu0 %v16671_v48  ;;  %v13854_v40 = vld [vmem:[%s30893_s1 + $0x910] sm:$0xf]  ;;  %v16159_v48 = vor.u32 %v19872_v38, %v16158_v37 }
 0x104   :  { %9793 = vmatmul.bf16.vlgmr.msrb.gmra.mxu0 %v21084_v35  ;;  %9827 = vmatpush.bf16.msra.mxu1 %v14239_v5  ;;  %v19296_v41 = vld [vmem:[%s30893_s1 + $0x98c] sm:$0xf0] }
 0x105   :  { %v12830_v43 = vld [vmem:[%s30893_s1 + $0x110] sm:$0xf]  ;;  %v13855_v53 = vor.u32 %v19296_v41, %v13854_v40 }
 0x106   :  { %9838 = vmatpush.bf16.msra.mxu2 %v15519_v62  ;;  %9814 = vmatpush.bf16.msra.mxu3 %v13215_v8  ;;  %v19040_v44 = vld [vmem:[%s30893_s1 + $0x18c] sm:$0xf0]  ;;  %v9562_v28 = vpop.f32.mrf.mxu2 }
 0x107   :  { %9851 = vmatpush.bf16.msra.mxu0 %v16543_v1  ;;  %v15006_v49 = vld [vmem:[%s30893_s1 + $0x1210] sm:$0xf]  ;;  %v12831_v61 = vor.u32 %v19040_v44, %v12830_v43  ;;  %v19472_v43 = vld [vmem:[%s30893_s1 + $0xf14] sm:$0xf] }
 0x108   :  { %9828 = vmatpush.bf16.msra.mxu1 %v14111_v21  ;;  %v19584_v50 = vld [vmem:[%s30893_s1 + $0x128c] sm:$0xf0]  ;;  %v9549_v21 = vpop.f32.mrf.mxu3  ;;  %v14624_v44 = vld [vmem:[%s30893_s1 + $0xf90] sm:$0xf0] }
 0x109   :  { %v16030_v56 = vld [vmem:[%s30893_s1 + $0x1a10] sm:$0xf]  ;;  %v15007_v1 = vor.u32 %v19584_v50, %v15006_v49  ;;  %v19184_v49 = vld [vmem:[%s30893_s1 + $0x614] sm:$0xf] }
 0x10a   :  { %9839 = vmatpush.bf16.msra.mxu2 %v15391_v12  ;;  %9815 = vmatpush.bf16.msra.mxu3 %v13087_v24  ;;  %v19840_v58 = vld [vmem:[%s30893_s1 + $0x1a8c] sm:$0xf0]  ;;  %v13472_v50 = vld [vmem:[%s30893_s1 + $0x690] sm:$0xf0] }
 0x10b   :  { %9852 = vmatpush.bf16.msra.mxu0 %v16415_v17  ;;  %v12702_v59 = vld [vmem:[%s30893_s1 + $0x10] sm:$0xf]  ;;  %v16031_v6 = vor.u32 %v19840_v58, %v16030_v56 }
 0x10c   :  { %9829 = vmatpush.bf16.msra.mxu1 %v13983_v36  ;;  %v19008_v62 = vld [vmem:[%s30893_s1 + $0x8c] sm:$0xf0] }
 0x10d   :  { %18959 = vmatmul.msk.bf16.vlgmr.msrb.gmra.mxu2 %vm9443_vm0, %v20982_v45  ;;  %v13726_v63 = vld [vmem:[%s30893_s1 + $0x810] sm:$0xf]  ;;  %v12703_v13 = vor.u32 %v19008_v62, %v12702_v59  ;;  %v19440_v62 = vld [vmem:[%s30893_s1 + $0xe14] sm:$0xf] }
 0x10e   :  { %9840 = vmatpush.bf16.msra.mxu2 %v15263_v27  ;;  %9816 = vmatpush.bf16.msra.mxu3 %v12959_v39  ;;  %v19264_v0 = vld [vmem:[%s30893_s1 + $0x88c] sm:$0xf0] }
 0x10f   :  { %9853 = vmatpush.bf16.msra.mxu0 %v16287_v32  ;;  %v17694_v2 = vld [vmem:[%s30893_s1 + $0x2710] sm:$0xf]  ;;  %v13727_v10 = vor.u32 %v19264_v0, %v13726_v63  ;;  %v19216_v32 = vld [vmem:[%s30893_s1 + $0x714] sm:$0xf]  ;;  %v13475_v0 = vor.u32 %v19184_v49, %v13472_v50 }
 0x110   :  { %v18718_v3 = vld [vmem:[%s30893_s1 + $0x2f10] sm:$0xf]  ;;  %9830 = vmatpush.bf16.msra.mxu1 %v13855_v53  ;;  %v13603_v46 = vor.u32 %v19216_v32, %v13600_v33  ;;  %v14627_v53 = vor.u32 %v19472_v43, %v14624_v44  ;;  %v14496_v63 = vld [vmem:[%s30893_s1 + $0xe90] sm:$0xf0] }
 0x111   :  { %v20512_v5 = vld [vmem:[%s30893_s1 + $0x2f8c] sm:$0xf0]  ;;  %v13088_v32 = vld [vmem:[%s30893_s1 + $0x390] sm:$0xf0] }
 0x112   :  { %9841 = vmatpush.bf16.msra.mxu2 %v15135_v42  ;;  %v20256_v7 = vld [vmem:[%s30893_s1 + $0x278c] sm:$0xf0]  ;;  %9817 = vmatpush.bf16.msra.mxu3 %v12831_v61  ;;  %v18719_v14 = vor.u32 %v20512_v5, %v18718_v3  ;;  %v19152_v3 = vld [vmem:[%s30893_s1 + $0x514] sm:$0xf] }
 0x113   :  { %9854 = vmatpush.bf16.msra.mxu0 %v16159_v48  ;;  %v14878_v8 = vld [vmem:[%s30893_s1 + $0x1110] sm:$0xf]  ;;  %v17695_v16 = vor.u32 %v20256_v7, %v17694_v2  ;;  %v13344_v5 = vld [vmem:[%s30893_s1 + $0x590] sm:$0xf0]  ;;  %v14499_v7 = vor.u32 %v19440_v62, %v14496_v63 }
 0x114   :  { %v19552_v9 = vld [vmem:[%s30893_s1 + $0x118c] sm:$0xf0]  ;;  %9831 = vmatpush.bf16.msra.mxu1 %v13727_v10  ;;  %v19408_v10 = vld [vmem:[%s30893_s1 + $0xd14] sm:$0xf] }
 0x115   :  { %v15902_v11 = vld [vmem:[%s30893_s1 + $0x1910] sm:$0xf]  ;;  %v14879_v17 = vor.u32 %v19552_v9, %v14878_v8  ;;  %v9599_v44 = vpop.f32.mrf.mxu3  ;;  %v19056_v50 = vld [vmem:[%s30893_s1 + $0x214] sm:$0xf] }
 0x116   :  { %v19808_v12 = vld [vmem:[%s30893_s1 + $0x198c] sm:$0xf0]  ;;  %9842 = vmatpush.bf16.msra.mxu2 %v15007_v1  ;;  %9818 = vmatpush.bf16.msra.mxu3 %v12703_v13  ;;  %v9561_v1 = vadd.f32 %v22026_v60, %v22009_v47  ;;  %v13347_v13 = vor.u32 %v19152_v3, %v13344_v5  ;;  %v19312_v63 = vld [vmem:[%s30893_s1 + $0xa14] sm:$0xf] }
 0x117   :  { %v17566_v15 = vld [vmem:[%s30893_s1 + $0x2610] sm:$0xf]  ;;  %9855 = vmatpush.bf16.msra.mxu0 %v16031_v6  ;;  %v15903_v22 = vor.u32 %v19808_v12, %v15902_v11  ;;  %9832 = vmatmul.bf16.vlgmr.msra.gmra.mxu1 %v20894_v4  ;;  %v14368_v11 = vld [vmem:[%s30893_s1 + $0xd90] sm:$0xf0]  ;;  %v9573_v12 = vpop.f32.mrf.mxu0 }
 0x118   :  { %v20224_v18 = vld [vmem:[%s30893_s1 + $0x268c] sm:$0xf0]  ;;  %9876 = vmatpush.bf16.msrb.mxu1 %v18719_v14  ;;  %v9574_v14 = vadd.f32 %v9573_v12, %v9561_v1  ;;  %v19728_v1 = vld [vmem:[%s30893_s1 + $0x1714] sm:$0xf] }
 0x119   :  { %v18590_v19 = vld [vmem:[%s30893_s1 + $0x2e10] sm:$0xf]  ;;  %v17567_v34 = vor.u32 %v20224_v18, %v17566_v15  ;;  %9819 = vmatmul.bf16.vlgmr.msra.gmra.mxu3 %v20870_v55  ;;  %v9612_v49 = vpop.f32.mrf.mxu2  ;;  %v15648_v3 = vld [vmem:[%s30893_s1 + $0x1790] sm:$0xf0] }
 0x11a   :  { %v20480_v20 = vld [vmem:[%s30893_s1 + $0x2e8c] sm:$0xf0]  ;;  %9863 = vmatpush.bf16.msrb.mxu3 %v17695_v16  ;;  %9843 = vmatpush.bf16.msra.mxu2 %v14879_v17  ;;  %v19120_v16 = vld [vmem:[%s30893_s1 + $0x414] sm:$0xf]  ;;  %v15651_v12 = vor.u32 %v19728_v1, %v15648_v3 }
 0x11b   :  { %v14750_v54 = vld [vmem:[%s30893_s1 + $0x1010] sm:$0xf]  ;;  %v18591_v29 = vor.u32 %v20480_v20, %v18590_v19  ;;  %9856 = vmatpush.bf16.msra.mxu0 %v15903_v22  ;;  %v13216_v17 = vld [vmem:[%s30893_s1 + $0x490] sm:$0xf0]  ;;  %v14371_v19 = vor.u32 %v19408_v10, %v14368_v11 }
 0x11c   :  { %v19520_v23 = vld [vmem:[%s30893_s1 + $0x108c] sm:$0xf0]  ;;  %v19984_v5 = vld [vmem:[%s30893_s1 + $0x1f14] sm:$0xf] }
 0x11d   :  { %v15774_v24 = vld [vmem:[%s30893_s1 + $0x1810] sm:$0xf]  ;;  %v14751_v36 = vor.u32 %v19520_v23, %v14750_v54  ;;  %9877 = vmatpush.bf16.msrb.mxu1 %v18591_v29  ;;  %v19376_v23 = vld [vmem:[%s30893_s1 + $0xc14] sm:$0xf] }
 0x11e   :  { %v19776_v25 = vld [vmem:[%s30893_s1 + $0x188c] sm:$0xf0]  ;;  %9864 = vmatpush.bf16.msrb.mxu3 %v17567_v34  ;;  %v19088_v29 = vld [vmem:[%s30893_s1 + $0x314] sm:$0xf] }
 0x11f   :  { %v18846_v26 = vld [vmem:[%s30893_s1 + $0x3010] sm:$0xf]  ;;  %v15775_v40 = vor.u32 %v19776_v25, %v15774_v24  ;;  %9844 = vmatpush.bf16.msra.mxu2 %v14751_v36  ;;  %v14240_v24 = vld [vmem:[%s30893_s1 + $0xc90] sm:$0xf0]  ;;  %v13219_v25 = vor.u32 %v19120_v16, %v13216_v17  ;;  %v13091_v43 = vor.u32 %v19088_v29, %v13088_v32 }
 0x120   :  { %v20544_v27 = vld [vmem:[%s30893_s1 + $0x308c] sm:$0xf0]  ;;  %v14243_v34 = vor.u32 %v19376_v23, %v14240_v24  ;;  %v19696_v16 = vld [vmem:[%s30893_s1 + $0x1614] sm:$0xf] }
 0x121   :  { %v17438_v37 = vld [vmem:[%s30893_s1 + $0x2510] sm:$0xf]  ;;  %v18847_v42 = vor.u32 %v20544_v27, %v18846_v26  ;;  %9857 = vmatpush.bf16.msra.mxu0 %v15775_v40  ;;  %v9586_v26 = vpop.f32.mrf.mxu1  ;;  %v19344_v40 = vld [vmem:[%s30893_s1 + $0xb14] sm:$0xf] }
 0x122   :  { %v18462_v38 = vld [vmem:[%s30893_s1 + $0x2d10] sm:$0xf]  ;;  %9845 = vmatmul.bf16.vlgmr.msra.gmra.mxu2 %v20859_v51  ;;  %v9587_v28 = vadd.f32 %v9586_v26, %v9574_v14  ;;  %v19280_v14 = vld [vmem:[%s30893_s1 + $0x914] sm:$0xf] }
 0x123   :  { %v20448_v39 = vld [vmem:[%s30893_s1 + $0x2d8c] sm:$0xf0]  ;;  %9896 = vmatpush.bf16.msrb.mxu2 %v18847_v42  ;;  %v9575_v42 = vpop.f32.mrf.mxu0  ;;  %v18992_v23 = vld [vmem:[%s30893_s1 + $0x14] sm:$0xf] }
 0x124   :  { %v20192_v41 = vld [vmem:[%s30893_s1 + $0x258c] sm:$0xf0]  ;;  %v18463_v48 = vor.u32 %v20448_v39, %v18462_v38  ;;  %9858 = vmatmul.bf16.vlgmr.msra.gmra.mxu0 %v20872_v57  ;;  %v12704_v24 = vld [vmem:[%s30893_s1 + $0x90] sm:$0xf0] }
 0x125   :  { %v17439_v52 = vor.u32 %v20192_v41, %v17438_v37  ;;  %v17310_v56 = vld [vmem:[%s30893_s1 + $0x2410] sm:$0xf]  ;;  %9902 = vmatpush.bf16.msrb.mxu0 %v13603_v46  ;;  %v14112_v41 = vld [vmem:[%s30893_s1 + $0xb90] sm:$0xf0]  ;;  %v9600_v46 = vadd.f32 %v9599_v44, %v9587_v28 }
 0x126   :  { %v18334_v58 = vld [vmem:[%s30893_s1 + $0x2c10] sm:$0xf]  ;;  %9878 = vmatpush.bf16.msrb.mxu1 %v18463_v48  ;;  %v17696_v28 = vld [vmem:[%s30893_s1 + $0x2790] sm:$0xf0] }
 0x127   :  { %v20416_v59 = vld [vmem:[%s30893_s1 + $0x2c8c] sm:$0xf0]  ;;  %9865 = vmatpush.bf16.msrb.mxu3 %v17439_v52  ;;  %9915 = vmatpush.bf16.msra.mxu2 %v14627_v53  ;;  %v12960_v52 = vld [vmem:[%s30893_s1 + $0x290] sm:$0xf0] }
 0x128   :  { %v20160_v61 = vld [vmem:[%s30893_s1 + $0x248c] sm:$0xf0]  ;;  %v18335_v2 = vor.u32 %v20416_v59, %v18334_v58  ;;  %v14115_v58 = vor.u32 %v19344_v40, %v14112_v41  ;;  %v16416_v40 = vld [vmem:[%s30893_s1 + $0x1d90] sm:$0xf0] }
 0x129   :  { %v17311_v6 = vor.u32 %v20160_v61, %v17310_v56  ;;  %v17182_v8 = vld [vmem:[%s30893_s1 + $0x2310] sm:$0xf]  ;;  %9903 = vmatpush.bf16.msrb.mxu0 %v13475_v0  ;;  %v13984_v0 = vld [vmem:[%s30893_s1 + $0xa90] sm:$0xf0] }
 0x12a   :  { %v18206_v47 = vld [vmem:[%s30893_s1 + $0x2b10] sm:$0xf]  ;;  %9879 = vmatpush.bf16.msrb.mxu1 %v18335_v2  ;;  %v12963_v2 = vor.u32 %v19056_v50, %v12960_v52  ;;  %v13987_v11 = vor.u32 %v19312_v63, %v13984_v0  ;;  %v20496_v42 = vld [vmem:[%s30893_s1 + $0x2f14] sm:$0xf] }
 0x12b   :  { %v20384_v60 = vld [vmem:[%s30893_s1 + $0x2b8c] sm:$0xf0]  ;;  %9866 = vmatpush.bf16.msrb.mxu3 %v17311_v6  ;;  %9916 = vmatpush.bf16.msra.mxu2 %v14499_v7  ;;  %v16672_v6 = vld [vmem:[%s30893_s1 + $0x1f90] sm:$0xf0]  ;;  %v9588_v7 = vpop.f32.mrf.mxu1  ;;  %v9625_v17 = vpop.f32.mrf.mxu0 }
 0x12c   :  { %v20128_v9 = vld [vmem:[%s30893_s1 + $0x238c] sm:$0xf0]  ;;  %v18207_v15 = vor.u32 %v20384_v60, %v18206_v47  ;;  %v19024_v60 = vld [vmem:[%s30893_s1 + $0x114] sm:$0xf] }
 0x12d   :  { %v17183_v18 = vor.u32 %v20128_v9, %v17182_v8  ;;  %v17054_v20 = vld [vmem:[%s30893_s1 + $0x2210] sm:$0xf]  ;;  %9904 = vmatpush.bf16.msrb.mxu0 %v13347_v13  ;;  %v9613_v8 = vadd.f32 %v9612_v49, %v9600_v46  ;;  %v12832_v9 = vld [vmem:[%s30893_s1 + $0x190] sm:$0xf0]  ;;  %v16675_v13 = vor.u32 %v19984_v5, %v16672_v6 }
 0x12e   :  { %v18078_v21 = vld [vmem:[%s30893_s1 + $0x2a10] sm:$0xf]  ;;  %9880 = vmatpush.bf16.msrb.mxu1 %v18207_v15  ;;  %v13856_v15 = vld [vmem:[%s30893_s1 + $0x990] sm:$0xf0] }
 0x12f   :  { %v20352_v22 = vld [vmem:[%s30893_s1 + $0x2a8c] sm:$0xf0]  ;;  %9867 = vmatpush.bf16.msrb.mxu3 %v17183_v18  ;;  %9917 = vmatpush.bf16.msra.mxu2 %v14371_v19  ;;  %v12835_v18 = vor.u32 %v19024_v60, %v12832_v9  ;;  %v15520_v19 = vld [vmem:[%s30893_s1 + $0x1690] sm:$0xf0]  ;;  %v13859_v26 = vor.u32 %v19280_v14, %v13856_v15 }
 0x130   :  { %v20096_v54 = vld [vmem:[%s30893_s1 + $0x228c] sm:$0xf0]  ;;  %v18079_v27 = vor.u32 %v20352_v22, %v18078_v21  ;;  %v16544_v21 = vld [vmem:[%s30893_s1 + $0x1e90] sm:$0xf0]  ;;  %v9601_v22 = vpop.f32.mrf.mxu3  ;;  %v15523_v29 = vor.u32 %v19696_v16, %v15520_v19 }
 0x131   :  { %v17055_v33 = vor.u32 %v20096_v54, %v17054_v20  ;;  %v16926_v36 = vld [vmem:[%s30893_s1 + $0x2110] sm:$0xf]  ;;  %9905 = vmatpush.bf16.msrb.mxu0 %v13219_v25  ;;  %v19952_v20 = vld [vmem:[%s30893_s1 + $0x1e14] sm:$0xf]  ;;  %v22281_v54 = vadd.f32 %v9625_v17, %v9613_v8  ;;  %v9614_v25 = vpop.f32.mrf.mxu2 }
 0x132   :  { %v17950_v37 = vld [vmem:[%s30893_s1 + $0x2910] sm:$0xf]  ;;  %9881 = vmatpush.bf16.msrb.mxu1 %v18079_v27  ;;  %18960 = vmatmul.msk.bf16.vlgmr.msrb.gmra.mxu2 %vm9443_vm0, %v20982_v45  ;;  %v20240_v27 = vld [vmem:[%s30893_s1 + $0x2714] sm:$0xf]  ;;  %v16547_v32 = vor.u32 %v19952_v20, %v16544_v21 }
 0x133   :  { %v20320_v38 = vld [vmem:[%s30893_s1 + $0x298c] sm:$0xf0]  ;;  %9868 = vmatpush.bf16.msrb.mxu3 %v17055_v33  ;;  %9918 = vmatpush.bf16.msra.mxu2 %v14243_v34  ;;  %v19248_v33 = vld [vmem:[%s30893_s1 + $0x814] sm:$0xf]  ;;  %v17699_v41 = vor.u32 %v20240_v27, %v17696_v28  ;;  %v22399_v25 = vpop.f32.mrf.mxu1 }
 0x134   :  { %v20064_v39 = vld [vmem:[%s30893_s1 + $0x218c] sm:$0xf0]  ;;  %v17951_v48 = vor.u32 %v20320_v38, %v17950_v37  ;;  %v13728_v34 = vld [vmem:[%s30893_s1 + $0x890] sm:$0xf0]  ;;  %12362 = vrot.lane.b32.xlu0 %v22281_v54, %s20574_s17  ;;  %v12707_v37 = vor.u32 %v18992_v23, %v12704_v24 }
 0x135   :  { %v16798_v53 = vld [vmem:[%s30893_s1 + $0x2010] sm:$0xf]  ;;  %v16927_v56 = vor.u32 %v20064_v39, %v16926_v36  ;;  %9906 = vmatpush.bf16.msrb.mxu0 %v13091_v43  ;;  %v19664_v36 = vld [vmem:[%s30893_s1 + $0x1514] sm:$0xf]  ;;  %v13731_v44 = vor.u32 %v19248_v33, %v13728_v34 }
 0x136   :  { %v20032_v59 = vld [vmem:[%s30893_s1 + $0x208c] sm:$0xf0]  ;;  %9882 = vmatpush.bf16.msrb.mxu1 %v17951_v48  ;;  %v15392_v38 = vld [vmem:[%s30893_s1 + $0x1590] sm:$0xf0] }
 0x137   :  { %v17822_v61 = vld [vmem:[%s30893_s1 + $0x2810] sm:$0xf]  ;;  %9869 = vmatpush.bf16.msrb.mxu3 %v16927_v56  ;;  %9919 = vmatpush.bf16.msra.mxu2 %v14115_v58  ;;  %v16799_v10 = vor.u32 %v20032_v59, %v16798_v53  ;;  %v19920_v39 = vld [vmem:[%s30893_s1 + $0x1d14] sm:$0xf]  ;;  %v15395_v49 = vor.u32 %v19664_v36, %v15392_v38  ;;  %v9627_v53 = vpop.f32.mrf.mxu0 }
 0x138   :  { %v20288_v62 = vld [vmem:[%s30893_s1 + $0x288c] sm:$0xf0]  ;;  %v18720_v43 = vld [vmem:[%s30893_s1 + $0x2f90] sm:$0xf0]  ;;  %v16419_v50 = vor.u32 %v19920_v39, %v16416_v40  ;;  %v22419_v38 = vpop.f32.mrf.mxu3 }
 0x139   :  { %v17823_v47 = vor.u32 %v20288_v62, %v17822_v61  ;;  %9907 = vmatpush.bf16.msrb.mxu0 %v12963_v2  ;;  %v20208_v46 = vld [vmem:[%s30893_s1 + $0x2614] sm:$0xf]  ;;  %v18723_v56 = vor.u32 %v20496_v42, %v18720_v43 }
 0x13a   :  { %v17568_v48 = vld [vmem:[%s30893_s1 + $0x2690] sm:$0xf0] }
 0x13b   :  { %9883 = vmatpush.bf16.msrb.mxu1 %v17823_v47  ;;  %9870 = vmatpush.bf16.msrb.mxu3 %v16799_v10  ;;  %v19632_v52 = vld [vmem:[%s30893_s1 + $0x1414] sm:$0xf]  ;;  %v17571_v62 = vor.u32 %v20208_v46, %v17568_v48  ;;  %v22433_v48 = vpop.f32.mrf.mxu2 }
 0x13c   :  { %9920 = vmatpush.bf16.msra.mxu2 %v13987_v11  ;;  %v15264_v58 = vld [vmem:[%s30893_s1 + $0x1490] sm:$0xf0] }
 0x13d   :  { %9908 = vmatpush.bf16.msrb.mxu0 %v12835_v18  ;;  %v19888_v59 = vld [vmem:[%s30893_s1 + $0x1c14] sm:$0xf]  ;;  %v15267_v3 = vor.u32 %v19632_v52, %v15264_v58 }
 0x13e   :  { %9871 = vmatmul.bf16.vlgmr.msrb.gmra.mxu3 %v21073_v30  ;;  %9884 = vmatmul.bf16.vlgmr.msrb.gmra.mxu1 %v21084_v35  ;;  %v16288_v61 = vld [vmem:[%s30893_s1 + $0x1c90] sm:$0xf0] }
 0x13f   :  { %9928 = vmatpush.bf16.msra.mxu3 %v15651_v12  ;;  %9941 = vmatpush.bf16.msra.mxu1 %v16675_v13  ;;  %v20464_v63 = vld [vmem:[%s30893_s1 + $0x2e14] sm:$0xf]  ;;  %v16291_v5 = vor.u32 %v19888_v59, %v16288_v61  ;;  %v22382_v17 = vpop.f32.mrf.mxu0 }
 0x140   :  { %9921 = vmatpush.bf16.msra.mxu2 %v13859_v26  ;;  %v18592_v0 = vld [vmem:[%s30893_s1 + $0x2e90] sm:$0xf0] }
 0x141   :  { %9909 = vmatpush.bf16.msrb.mxu0 %v12707_v37  ;;  %v20176_v1 = vld [vmem:[%s30893_s1 + $0x2514] sm:$0xf]  ;;  %v18595_v7 = vor.u32 %v20464_v63, %v18592_v0  ;;  %v13606_v63 = vld [vmem:[%s30893_s1 + $0x718] sm:$0xf] }
 0x142   :  { %v17440_v2 = vld [vmem:[%s30893_s1 + $0x2590] sm:$0xf0]  ;;  %v19233_v0 = vld [vmem:[%s30893_s1 + $0x794] sm:$0xf0] }
 0x143   :  { %9929 = vmatpush.bf16.msra.mxu3 %v15523_v29  ;;  %9942 = vmatpush.bf16.msra.mxu1 %v16547_v32  ;;  %v19600_v6 = vld [vmem:[%s30893_s1 + $0x1314] sm:$0xf]  ;;  %v17443_v9 = vor.u32 %v20176_v1, %v17440_v2 }
 0x144   :  { %9922 = vmatpush.bf16.msra.mxu2 %v13731_v44  ;;  %v15136_v8 = vld [vmem:[%s30893_s1 + $0x1390] sm:$0xf0]  ;;  %9910 = vmatmul.bf16.vlgmr.msrb.gmra.mxu0 %v20870_v55 }
 0x145   :  { %9954 = vmatpush.bf16.msra.mxu0 %v17699_v41  ;;  %v19856_v47 = vld [vmem:[%s30893_s1 + $0x1b14] sm:$0xf]  ;;  %v15139_v14 = vor.u32 %v19600_v6, %v15136_v8  ;;  %v9640_v6 = vpop.f32.mrf.mxu1 }
 0x146   :  { %v16160_v60 = vld [vmem:[%s30893_s1 + $0x1b90] sm:$0xf0] }
 0x147   :  { %9930 = vmatpush.bf16.msra.mxu3 %v15395_v49  ;;  %9943 = vmatpush.bf16.msra.mxu1 %v16419_v50  ;;  %v20432_v10 = vld [vmem:[%s30893_s1 + $0x2d14] sm:$0xf]  ;;  %v16163_v15 = vor.u32 %v19856_v47, %v16160_v60  ;;  %v9666_v53 = vpop.f32.mrf.mxu0  ;;  %v13607_v60 = vor.u32 %v19233_v0, %v13606_v63  ;;  %v16550_v63 = vld [vmem:[%s30893_s1 + $0x1e18] sm:$0xf] }
 0x148   :  { %9967 = vmatpush.bf16.msrb.mxu2 %v18723_v56  ;;  %v18464_v11 = vld [vmem:[%s30893_s1 + $0x2d90] sm:$0xf0]  ;;  %v19425_v53 = vld [vmem:[%s30893_s1 + $0xd94] sm:$0xf0] }
 0x149   :  { %9955 = vmatpush.bf16.msra.mxu0 %v17571_v62  ;;  %9923 = vmatmul.bf16.vlgmr.msra.gmra.mxu2 %v20894_v4  ;;  %v20144_v12 = vld [vmem:[%s30893_s1 + $0x2414] sm:$0xf]  ;;  %v18467_v18 = vor.u32 %v20432_v10, %v18464_v11  ;;  %v19489_v10 = vld [vmem:[%s30893_s1 + $0xf94] sm:$0xf0] }
 0x14a   :  { %v17312_v13 = vld [vmem:[%s30893_s1 + $0x2490] sm:$0xf0]  ;;  %v19969_v0 = vld [vmem:[%s30893_s1 + $0x1e94] sm:$0xf0] }
 0x14b   :  { %9931 = vmatpush.bf16.msra.mxu3 %v15267_v3  ;;  %9944 = vmatpush.bf16.msra.mxu1 %v16291_v5  ;;  %v19568_v16 = vld [vmem:[%s30893_s1 + $0x1214] sm:$0xf]  ;;  %v17315_v22 = vor.u32 %v20144_v12, %v17312_v13 }
 0x14c   :  { %9968 = vmatpush.bf16.msrb.mxu2 %v18595_v7  ;;  %v15008_v19 = vld [vmem:[%s30893_s1 + $0x1290] sm:$0xf0] }
 0x14d   :  { %v19824_v20 = vld [vmem:[%s30893_s1 + $0x1a14] sm:$0xf]  ;;  %9956 = vmatpush.bf16.msra.mxu0 %v17443_v9  ;;  %v15011_v28 = vor.u32 %v19568_v16, %v15008_v19  ;;  %v14630_v9 = vld [vmem:[%s30893_s1 + $0xf18] sm:$0xf] }
 0x14e   :  { %v16032_v21 = vld [vmem:[%s30893_s1 + $0x1a90] sm:$0xf0]  ;;  %v19201_v16 = vld [vmem:[%s30893_s1 + $0x694] sm:$0xf0] }
 0x14f   :  { %v20400_v23 = vld [vmem:[%s30893_s1 + $0x2c14] sm:$0xf]  ;;  %9932 = vmatpush.bf16.msra.mxu3 %v15139_v14  ;;  %9945 = vmatpush.bf16.msra.mxu1 %v16163_v15  ;;  %v16035_v29 = vor.u32 %v19824_v20, %v16032_v21  ;;  %v13478_v15 = vld [vmem:[%s30893_s1 + $0x618] sm:$0xf]  ;;  %v14631_v21 = vor.u32 %v19489_v10, %v14630_v9  ;;  %v9690_v9 = vpop.f32.mrf.mxu1 }
 0x150   :  { %v18336_v24 = vld [vmem:[%s30893_s1 + $0x2c90] sm:$0xf0]  ;;  %9969 = vmatpush.bf16.msrb.mxu2 %v18467_v18  ;;  %v9653_v18 = vpop.f32.mrf.mxu3 }
 0x151   :  { %v20112_v26 = vld [vmem:[%s30893_s1 + $0x2314] sm:$0xf]  ;;  %v18339_v33 = vor.u32 %v20400_v23, %v18336_v24  ;;  %9957 = vmatpush.bf16.msra.mxu0 %v17315_v22  ;;  %v15654_v22 = vld [vmem:[%s30893_s1 + $0x1718] sm:$0xf]  ;;  %v9679_v24 = vpop.f32.mrf.mxu2 }
 0x152   :  { %v17184_v27 = vld [vmem:[%s30893_s1 + $0x2390] sm:$0xf0]  ;;  %v19745_v23 = vld [vmem:[%s30893_s1 + $0x1794] sm:$0xf0] }
 0x153   :  { %v19536_v32 = vld [vmem:[%s30893_s1 + $0x1114] sm:$0xf]  ;;  %v17187_v39 = vor.u32 %v20112_v26, %v17184_v27  ;;  %9933 = vmatpush.bf16.msra.mxu3 %v15011_v28  ;;  %9946 = vmatpush.bf16.msra.mxu1 %v16035_v29  ;;  %v13479_v27 = vor.u32 %v19201_v16, %v13478_v15  ;;  %v14502_v28 = vld [vmem:[%s30893_s1 + $0xe18] sm:$0xf] }
 0x154   :  { %v14880_v34 = vld [vmem:[%s30893_s1 + $0x1190] sm:$0xf0]  ;;  %9970 = vmatpush.bf16.msrb.mxu2 %v18339_v33  ;;  %v19457_v29 = vld [vmem:[%s30893_s1 + $0xe94] sm:$0xf0]  ;;  %v22510_v33 = vpop.f32.mrf.mxu0 }
 0x155   :  { %v19792_v36 = vld [vmem:[%s30893_s1 + $0x1914] sm:$0xf]  ;;  %v14883_v44 = vor.u32 %v19536_v32, %v14880_v34  ;;  %9958 = vmatpush.bf16.msra.mxu0 %v17187_v39  ;;  %v19169_v39 = vld [vmem:[%s30893_s1 + $0x594] sm:$0xf0] }
 0x156   :  { %v15904_v37 = vld [vmem:[%s30893_s1 + $0x1990] sm:$0xf0]  ;;  %v14118_v16 = vld [vmem:[%s30893_s1 + $0xb18] sm:$0xf] }
 0x157   :  { %v20368_v40 = vld [vmem:[%s30893_s1 + $0x2b14] sm:$0xf]  ;;  %v15907_v46 = vor.u32 %v19792_v36, %v15904_v37  ;;  %9934 = vmatpush.bf16.msra.mxu3 %v14883_v44  ;;  %v13350_v37 = vld [vmem:[%s30893_s1 + $0x518] sm:$0xf] }
 0x158   :  { %v18208_v41 = vld [vmem:[%s30893_s1 + $0x2b90] sm:$0xf0]  ;;  %v15526_v44 = vld [vmem:[%s30893_s1 + $0x1618] sm:$0xf] }
 0x159   :  { %v20080_v42 = vld [vmem:[%s30893_s1 + $0x2214] sm:$0xf]  ;;  %v18211_v56 = vor.u32 %v20368_v40, %v18208_v41  ;;  %9947 = vmatpush.bf16.msra.mxu1 %v15907_v46  ;;  %v15655_v40 = vor.u32 %v19745_v23, %v15654_v22  ;;  %v16678_v41 = vld [vmem:[%s30893_s1 + $0x1f18] sm:$0xf] }
 0x15a   :  { %v17056_v43 = vld [vmem:[%s30893_s1 + $0x2290] sm:$0xf0]  ;;  %v19713_v46 = vld [vmem:[%s30893_s1 + $0x1694] sm:$0xf0] }
 0x15b   :  { %v19504_v49 = vld [vmem:[%s30893_s1 + $0x1014] sm:$0xf]  ;;  %v17059_v62 = vor.u32 %v20080_v42, %v17056_v43  ;;  %9971 = vmatpush.bf16.msrb.mxu2 %v18211_v56  ;;  %v20001_v42 = vld [vmem:[%s30893_s1 + $0x1f94] sm:$0xf0]  ;;  %v14503_v43 = vor.u32 %v19457_v29, %v14502_v28 }
 0x15c   :  { %v14752_v50 = vld [vmem:[%s30893_s1 + $0x1090] sm:$0xf0]  ;;  %v16679_v56 = vor.u32 %v20001_v42, %v16678_v41  ;;  %v9718_v6 = vpop.f32.mrf.mxu0  ;;  %v19361_v18 = vld [vmem:[%s30893_s1 + $0xb94] sm:$0xf0] }
 0x15d   :  { %v19760_v52 = vld [vmem:[%s30893_s1 + $0x1814] sm:$0xf]  ;;  %v14755_v7 = vor.u32 %v19504_v49, %v14752_v50  ;;  %9959 = vmatpush.bf16.msra.mxu0 %v17059_v62  ;;  %v13351_v50 = vor.u32 %v19169_v39, %v13350_v37  ;;  %v15527_v62 = vor.u32 %v19713_v46, %v15526_v44  ;;  %v16294_v24 = vld [vmem:[%s30893_s1 + $0x1c18] sm:$0xf]  ;;  %v9703_v39 = vpop.f32.mrf.mxu3 }
 0x15e   :  { %v15776_v58 = vld [vmem:[%s30893_s1 + $0x1890] sm:$0xf0]  ;;  %v15142_v28 = vld [vmem:[%s30893_s1 + $0x1318] sm:$0xf] }
 0x15f   :  { %v20336_v59 = vld [vmem:[%s30893_s1 + $0x2a14] sm:$0xf]  ;;  %v15779_v8 = vor.u32 %v19760_v52, %v15776_v58  ;;  %9935 = vmatpush.bf16.msra.mxu3 %v14755_v7  ;;  %v14374_v52 = vld [vmem:[%s30893_s1 + $0xd18] sm:$0xf]  ;;  %v16551_v7 = vor.u32 %v19969_v0, %v16550_v63 }
 0x160   :  { %v18080_v61 = vld [vmem:[%s30893_s1 + $0x2a90] sm:$0xf0]  ;;  %v13222_v58 = vld [vmem:[%s30893_s1 + $0x418] sm:$0xf] }
 0x161   :  { %v20048_v1 = vld [vmem:[%s30893_s1 + $0x2114] sm:$0xf]  ;;  %v18083_v47 = vor.u32 %v20336_v59, %v18080_v61  ;;  %9948 = vmatpush.bf16.msra.mxu1 %v15779_v8  ;;  %v19137_v59 = vld [vmem:[%s30893_s1 + $0x494] sm:$0xf0]  ;;  %v9652_v61 = vadd.f32 %v22419_v38, %v22399_v25 }
 0x162   :  { %v16928_v2 = vld [vmem:[%s30893_s1 + $0x2190] sm:$0xf0]  ;;  %9936 = vmatmul.bf16.vlgmr.msra.gmra.mxu3 %v20859_v51  ;;  %v19681_v25 = vld [vmem:[%s30893_s1 + $0x1594] sm:$0xf0]  ;;  %v13223_v38 = vor.u32 %v19137_v59, %v13222_v58 }
 0x163   :  { %v20528_v3 = vld [vmem:[%s30893_s1 + $0x3014] sm:$0xf]  ;;  %v16931_v12 = vor.u32 %v20048_v1, %v16928_v2  ;;  %9972 = vmatpush.bf16.msrb.mxu2 %v18083_v47  ;;  %v14375_v1 = vor.u32 %v19425_v53, %v14374_v52  ;;  %v15398_v2 = vld [vmem:[%s30893_s1 + $0x1518] sm:$0xf] }
 0x164   :  { %v18848_v5 = vld [vmem:[%s30893_s1 + $0x3090] sm:$0xf0]  ;;  %9949 = vmatmul.bf16.vlgmr.msra.gmra.mxu1 %v20872_v57  ;;  %v13094_v8 = vld [vmem:[%s30893_s1 + $0x318] sm:$0xf]  ;;  %v15399_v10 = vor.u32 %v19681_v25, %v15398_v2  ;;  %v22619_v37 = vpop.f32.mrf.mxu0 }
 0x165   :  { %v20304_v11 = vld [vmem:[%s30893_s1 + $0x2914] sm:$0xf]  ;;  %v18851_v13 = vor.u32 %v20528_v3, %v18848_v5  ;;  %9993 = vmatpush.bf16.msrb.mxu1 %v13607_v60  ;;  %9960 = vmatpush.bf16.msra.mxu0 %v16931_v12  ;;  %v14246_v3 = vld [vmem:[%s30893_s1 + $0xc18] sm:$0xf]  ;;  %v9665_v60 = vadd.f32 %v22382_v17, %v9652_v61  ;;  %v22642_v61 = vpop.f32.mrf.mxu2 }
 0x166   :  { %v17952_v14 = vld [vmem:[%s30893_s1 + $0x2990] sm:$0xf0]  ;;  %v19393_v5 = vld [vmem:[%s30893_s1 + $0xc94] sm:$0xf0] }
 0x167   :  { %v20016_v19 = vld [vmem:[%s30893_s1 + $0x2014] sm:$0xf]  ;;  %v17955_v26 = vor.u32 %v20304_v11, %v17952_v14  ;;  %9987 = vmatpush.bf16.msrb.mxu3 %v18851_v13  ;;  %v19105_v47 = vld [vmem:[%s30893_s1 + $0x394] sm:$0xf0]  ;;  %v14247_v13 = vor.u32 %v19393_v5, %v14246_v3  ;;  %v9678_v22 = vadd.f32 %v22433_v48, %v9665_v60 }
 0x168   :  { %v16800_v20 = vld [vmem:[%s30893_s1 + $0x2090] sm:$0xf0]  ;;  %v16422_v11 = vld [vmem:[%s30893_s1 + $0x1d18] sm:$0xf]  ;;  %v13095_v15 = vor.u32 %v19105_v47, %v13094_v8 }
 0x169   :  { %v20272_v32 = vld [vmem:[%s30893_s1 + $0x2814] sm:$0xf]  ;;  %v16803_v34 = vor.u32 %v20016_v19, %v16800_v20  ;;  %9973 = vmatpush.bf16.msrb.mxu2 %v17955_v26  ;;  %9994 = vmatpush.bf16.msrb.mxu1 %v13479_v27  ;;  %v19937_v12 = vld [vmem:[%s30893_s1 + $0x1d94] sm:$0xf0]  ;;  %v14119_v27 = vor.u32 %v19361_v18, %v14118_v16  ;;  %v9691_v29 = vadd.f32 %v9690_v9, %v9678_v22 }
 0x16a   :  { %v17824_v36 = vld [vmem:[%s30893_s1 + $0x2890] sm:$0xf0]  ;;  %v15270_v14 = vld [vmem:[%s30893_s1 + $0x1418] sm:$0xf]  ;;  %v16423_v19 = vor.u32 %v19937_v12, %v16422_v11 }
 0x16b   :  { %10006 = vmatpush.bf16.msra.mxu3 %v14631_v21  ;;  %v17827_v49 = vor.u32 %v20272_v32, %v17824_v36  ;;  %9961 = vmatpush.bf16.msra.mxu0 %v16803_v34  ;;  %v19649_v17 = vld [vmem:[%s30893_s1 + $0x1494] sm:$0xf0] }
 0x16c   :  { %v12966_v20 = vld [vmem:[%s30893_s1 + $0x218] sm:$0xf]  ;;  %v15271_v23 = vor.u32 %v19649_v17, %v15270_v14 }
 0x16d   :  { %9974 = vmatpush.bf16.msrb.mxu2 %v17827_v49  ;;  %9995 = vmatpush.bf16.msrb.mxu1 %v13351_v50  ;;  %v19073_v21 = vld [vmem:[%s30893_s1 + $0x294] sm:$0xf0]  ;;  %v9692_v50 = vpop.f32.mrf.mxu1 }
 0x16e   :  { %9962 = vmatmul.bf16.vlgmr.msra.gmra.mxu0 %v21073_v30  ;;  %v19905_v26 = vld [vmem:[%s30893_s1 + $0x1c94] sm:$0xf0]  ;;  %v12967_v32 = vor.u32 %v19073_v21, %v12966_v20  ;;  %v19473_v50 = vld [vmem:[%s30893_s1 + $0xf1c] sm:$0xf] }
 0x16f   :  { %10019 = vmatpush.bf16.msrb.mxu0 %v15655_v40  ;;  %10007 = vmatpush.bf16.msra.mxu3 %v14503_v43  ;;  %v19617_v48 = vld [vmem:[%s30893_s1 + $0x1394] sm:$0xf0]  ;;  %v16295_v40 = vor.u32 %v19905_v26, %v16294_v24  ;;  %v9704_v43 = vadd.f32 %v9703_v39, %v9691_v29  ;;  %v9731_v26 = vpop.f32.mrf.mxu2 }
 0x170   :  { %9975 = vmatmul.bf16.vlgmr.msrb.gmra.mxu2 %v21084_v35  ;;  %v13990_v34 = vld [vmem:[%s30893_s1 + $0xa18] sm:$0xf]  ;;  %v15143_v44 = vor.u32 %v19617_v48, %v15142_v28 }
 0x171   :  { %10032 = vmatpush.bf16.msra.mxu2 %v16679_v56  ;;  %9996 = vmatpush.bf16.msrb.mxu1 %v13223_v38  ;;  %v19329_v36 = vld [vmem:[%s30893_s1 + $0xa94] sm:$0xf0]  ;;  %v9717_v58 = vadd.f32 %v22510_v33, %v9704_v43 }
 0x172   :  { %v12838_v41 = vld [vmem:[%s30893_s1 + $0x118] sm:$0xf]  ;;  %18961 = vmatmul.msk.bf16.vlgmr.msrb.gmra.mxu3 %vm9443_vm0, %v20982_v45  ;;  %v13991_v52 = vor.u32 %v19329_v36, %v13990_v34 }
 0x173   :  { %10020 = vmatpush.bf16.msrb.mxu0 %v15527_v62  ;;  %10008 = vmatpush.bf16.msra.mxu3 %v14375_v1  ;;  %v19041_v42 = vld [vmem:[%s30893_s1 + $0x194] sm:$0xf0] }
 0x174   :  { %v16166_v46 = vld [vmem:[%s30893_s1 + $0x1b18] sm:$0xf]  ;;  %v12839_v59 = vor.u32 %v19041_v42, %v12838_v41  ;;  %12364 = vrot.lane.b32.xlu0 %v9717_v58, %s20574_s17 }
 0x175   :  { %10033 = vmatpush.bf16.msra.mxu2 %v16551_v7  ;;  %9997 = vmatpush.bf16.msrb.mxu1 %v13095_v15  ;;  %v19873_v49 = vld [vmem:[%s30893_s1 + $0x1b94] sm:$0xf0]  ;;  %v9705_v15 = vpop.f32.mrf.mxu3 }
 0x176   :  { %v15014_v53 = vld [vmem:[%s30893_s1 + $0x1218] sm:$0xf]  ;;  %v16167_v0 = vor.u32 %v19873_v49, %v16166_v46  ;;  %v13608_v46 = vld [vmem:[%s30893_s1 + $0x798] sm:$0xf0] }
 0x177   :  { %10021 = vmatpush.bf16.msrb.mxu0 %v15399_v10  ;;  %10009 = vmatpush.bf16.msra.mxu3 %v14247_v13  ;;  %v19585_v56 = vld [vmem:[%s30893_s1 + $0x1294] sm:$0xf0]  ;;  %v9744_v10 = vpop.f32.mrf.mxu0 }
 0x178   :  { %v13862_v62 = vld [vmem:[%s30893_s1 + $0x918] sm:$0xf]  ;;  %v15015_v25 = vor.u32 %v19585_v56, %v15014_v53 }
 0x179   :  { %10034 = vmatpush.bf16.msra.mxu2 %v16423_v19  ;;  %9998 = vmatpush.bf16.msrb.mxu1 %v12967_v32  ;;  %v19297_v63 = vld [vmem:[%s30893_s1 + $0x994] sm:$0xf0] }
 0x17a   :  { %v12710_v1 = vld [vmem:[%s30893_s1 + $0x18] sm:$0xf]  ;;  %v13863_v6 = vor.u32 %v19297_v63, %v13862_v62 }
 0x17b   :  { %10022 = vmatpush.bf16.msrb.mxu0 %v15271_v23  ;;  %10010 = vmatpush.bf16.msra.mxu3 %v14119_v27  ;;  %v19009_v33 = vld [vmem:[%s30893_s1 + $0x94] sm:$0xf0] }
 0x17c   :  { %v16038_v2 = vld [vmem:[%s30893_s1 + $0x1a18] sm:$0xf]  ;;  %v12711_v47 = vor.u32 %v19009_v33, %v12710_v1  ;;  %v19185_v33 = vld [vmem:[%s30893_s1 + $0x61c] sm:$0xf] }
 0x17d   :  { %10035 = vmatpush.bf16.msra.mxu2 %v16295_v40  ;;  %v19841_v38 = vld [vmem:[%s30893_s1 + $0x1a94] sm:$0xf0]  ;;  %9999 = vmatpush.bf16.msrb.mxu1 %v12839_v59 }
 0x17e   :  { %v17702_v3 = vld [vmem:[%s30893_s1 + $0x2718] sm:$0xf]  ;;  %v16039_v11 = vor.u32 %v19841_v38, %v16038_v2  ;;  %v13480_v2 = vld [vmem:[%s30893_s1 + $0x698] sm:$0xf0] }
 0x17f   :  { %10023 = vmatpush.bf16.msrb.mxu0 %v15143_v44  ;;  %v20257_v5 = vld [vmem:[%s30893_s1 + $0x2794] sm:$0xf0]  ;;  %10011 = vmatpush.bf16.msra.mxu3 %v13991_v52  ;;  %v19217_v44 = vld [vmem:[%s30893_s1 + $0x71c] sm:$0xf] }
 0x180   :  { %v14886_v7 = vld [vmem:[%s30893_s1 + $0x1118] sm:$0xf]  ;;  %v17703_v12 = vor.u32 %v20257_v5, %v17702_v3  ;;  %v14632_v52 = vld [vmem:[%s30893_s1 + $0xf98] sm:$0xf0]  ;;  %v13611_v62 = vor.u32 %v19217_v44, %v13608_v46 }
 0x181   :  { %v19553_v8 = vld [vmem:[%s30893_s1 + $0x1194] sm:$0xf0]  ;;  %10036 = vmatpush.bf16.msra.mxu2 %v16167_v0  ;;  %10000 = vmatpush.bf16.msrb.mxu1 %v12711_v47  ;;  %v14635_v1 = vor.u32 %v19473_v50, %v14632_v52  ;;  %v19441_v38 = vld [vmem:[%s30893_s1 + $0xe1c] sm:$0xf] }
 0x182   :  { %v13734_v60 = vld [vmem:[%s30893_s1 + $0x818] sm:$0xf]  ;;  %v14887_v16 = vor.u32 %v19553_v8, %v14886_v7  ;;  %v14504_v3 = vld [vmem:[%s30893_s1 + $0xe98] sm:$0xf0]  ;;  %v13483_v8 = vor.u32 %v19185_v33, %v13480_v2  ;;  %v9743_v33 = vadd.f32 %v22619_v37, %v22642_v61 }
 0x183   :  { %v19265_v9 = vld [vmem:[%s30893_s1 + $0x894] sm:$0xf0]  ;;  %10024 = vmatpush.bf16.msrb.mxu0 %v15015_v25  ;;  %10012 = vmatpush.bf16.msra.mxu3 %v13863_v6  ;;  %v14507_v10 = vor.u32 %v19441_v38, %v14504_v3  ;;  %v13096_v44 = vld [vmem:[%s30893_s1 + $0x398] sm:$0xf0] }
 0x184   :  { %v18726_v13 = vld [vmem:[%s30893_s1 + $0x2f18] sm:$0xf]  ;;  %v13735_v21 = vor.u32 %v19265_v9, %v13734_v60  ;;  %10001 = vmatmul.bf16.vlgmr.msrb.gmra.mxu1 %v20870_v55  ;;  %v22780_v9 = vpop.f32.mrf.mxu1  ;;  %v19345_v52 = vld [vmem:[%s30893_s1 + $0xb1c] sm:$0xf] }
 0x185   :  { %v20513_v14 = vld [vmem:[%s30893_s1 + $0x2f94] sm:$0xf0]  ;;  %10037 = vmatpush.bf16.msra.mxu2 %v16039_v11  ;;  %10045 = vmatpush.bf16.msra.mxu1 %v17703_v12  ;;  %v19153_v11 = vld [vmem:[%s30893_s1 + $0x51c] sm:$0xf] }
 0x186   :  { %v15910_v17 = vld [vmem:[%s30893_s1 + $0x1918] sm:$0xf]  ;;  %v18727_v24 = vor.u32 %v20513_v14, %v18726_v13  ;;  %v13352_v12 = vld [vmem:[%s30893_s1 + $0x598] sm:$0xf0] }
 0x187   :  { %v19809_v18 = vld [vmem:[%s30893_s1 + $0x1994] sm:$0xf0]  ;;  %10025 = vmatpush.bf16.msrb.mxu0 %v14887_v16  ;;  %10013 = vmatpush.bf16.msra.mxu3 %v13735_v21  ;;  %v19409_v14 = vld [vmem:[%s30893_s1 + $0xd1c] sm:$0xf] }
 0x188   :  { %v17574_v19 = vld [vmem:[%s30893_s1 + $0x2618] sm:$0xf]  ;;  %v15911_v48 = vor.u32 %v19809_v18, %v15910_v17  ;;  %v14376_v17 = vld [vmem:[%s30893_s1 + $0xd98] sm:$0xf0] }
 0x189   :  { %v20225_v20 = vld [vmem:[%s30893_s1 + $0x2694] sm:$0xf0]  ;;  %v19729_v38 = vld [vmem:[%s30893_s1 + $0x171c] sm:$0xf] }
 0x18a   :  { %v14758_v22 = vld [vmem:[%s30893_s1 + $0x1018] sm:$0xf]  ;;  %v17575_v29 = vor.u32 %v20225_v20, %v17574_v19  ;;  %10038 = vmatpush.bf16.msra.mxu2 %v15911_v48  ;;  %10014 = vmatmul.bf16.vlgmr.msra.gmra.mxu3 %v20894_v4  ;;  %v13355_v19 = vor.u32 %v19153_v11, %v13352_v12  ;;  %v15656_v3 = vld [vmem:[%s30893_s1 + $0x1798] sm:$0xf0] }
 0x18b   :  { %v19521_v23 = vld [vmem:[%s30893_s1 + $0x1094] sm:$0xf0]  ;;  %10058 = vmatpush.bf16.msrb.mxu3 %v18727_v24  ;;  %v13224_v24 = vld [vmem:[%s30893_s1 + $0x498] sm:$0xf0] }
 0x18c   :  { %v18854_v27 = vld [vmem:[%s30893_s1 + $0x3018] sm:$0xf]  ;;  %v14759_v39 = vor.u32 %v19521_v23, %v14758_v22  ;;  %10046 = vmatpush.bf16.msra.mxu1 %v17575_v29  ;;  %v14379_v22 = vor.u32 %v19409_v14, %v14376_v17  ;;  %v19121_v23 = vld [vmem:[%s30893_s1 + $0x41c] sm:$0xf]  ;;  %v9757_v46 = vpop.f32.mrf.mxu1 }
 0x18d   :  { %v20545_v28 = vld [vmem:[%s30893_s1 + $0x3094] sm:$0xf0]  ;;  %v19313_v37 = vld [vmem:[%s30893_s1 + $0xa1c] sm:$0xf] }
 0x18e   :  { %v18598_v32 = vld [vmem:[%s30893_s1 + $0x2e18] sm:$0xf]  ;;  %v18855_v43 = vor.u32 %v20545_v28, %v18854_v27  ;;  %10026 = vmatpush.bf16.msrb.mxu0 %v14759_v39  ;;  %v19377_v27 = vld [vmem:[%s30893_s1 + $0xc1c] sm:$0xf]  ;;  %v22825_v39 = vpop.f32.mrf.mxu0 }
 0x18f   :  { %v20481_v34 = vld [vmem:[%s30893_s1 + $0x2e94] sm:$0xf0]  ;;  %v14248_v28 = vld [vmem:[%s30893_s1 + $0xc98] sm:$0xf0] }
 0x190   :  { %v15782_v36 = vld [vmem:[%s30893_s1 + $0x1818] sm:$0xf]  ;;  %v18599_v49 = vor.u32 %v20481_v34, %v18598_v32  ;;  %v9768_v34 = vpop.f32.mrf.mxu3  ;;  %v13992_v61 = vld [vmem:[%s30893_s1 + $0xa98] sm:$0xf0] }
 0x191   :  { %v19777_v40 = vld [vmem:[%s30893_s1 + $0x1894] sm:$0xf0]  ;;  %10027 = vmatmul.bf16.vlgmr.msrb.gmra.mxu0 %v20859_v51  ;;  %v19985_v11 = vld [vmem:[%s30893_s1 + $0x1f1c] sm:$0xf] }
 0x192   :  { %v17446_v41 = vld [vmem:[%s30893_s1 + $0x2518] sm:$0xf]  ;;  %v15783_v53 = vor.u32 %v19777_v40, %v15782_v36  ;;  %10078 = vmatpush.bf16.msra.mxu0 %v18855_v43  ;;  %10059 = vmatpush.bf16.msrb.mxu3 %v18599_v49  ;;  %v13227_v36 = vor.u32 %v19121_v23, %v13224_v24  ;;  %v19089_v43 = vld [vmem:[%s30893_s1 + $0x31c] sm:$0xf]  ;;  %v9781_v49 = vpop.f32.mrf.mxu2 }
 0x193   :  { %v20193_v42 = vld [vmem:[%s30893_s1 + $0x2594] sm:$0xf0]  ;;  %v19025_v12 = vld [vmem:[%s30893_s1 + $0x11c] sm:$0xf] }
 0x194   :  { %v17447_v56 = vor.u32 %v20193_v42, %v17446_v41  ;;  %v18470_v58 = vld [vmem:[%s30893_s1 + $0x2d18] sm:$0xf]  ;;  %10039 = vmatpush.bf16.msra.mxu2 %v15783_v53  ;;  %v14251_v42 = vor.u32 %v19377_v27, %v14248_v28  ;;  %v14120_v53 = vld [vmem:[%s30893_s1 + $0xb98] sm:$0xf0] }
 0x195   :  { %v20449_v59 = vld [vmem:[%s30893_s1 + $0x2d94] sm:$0xf0]  ;;  %v14123_v2 = vor.u32 %v19345_v52, %v14120_v53  ;;  %v13864_v23 = vld [vmem:[%s30893_s1 + $0x998] sm:$0xf0] }
 0x196   :  { %v17318_v63 = vld [vmem:[%s30893_s1 + $0x2418] sm:$0xf]  ;;  %v18471_v25 = vor.u32 %v20449_v59, %v18470_v58  ;;  %10047 = vmatpush.bf16.msra.mxu1 %v17447_v56  ;;  %10097 = vmatpush.bf16.msrb.mxu0 %v14635_v1  ;;  %v19057_v1 = vld [vmem:[%s30893_s1 + $0x21c] sm:$0xf]  ;;  %v9796_v14 = vpop.f32.mrf.mxu0 }
 0x197   :  { %v20161_v0 = vld [vmem:[%s30893_s1 + $0x2494] sm:$0xf0]  ;;  %10040 = vmatmul.bf16.vlgmr.msra.gmra.mxu2 %v20872_v57  ;;  %v17704_v46 = vld [vmem:[%s30893_s1 + $0x2798] sm:$0xf0] }
 0x198   :  { %v17319_v5 = vor.u32 %v20161_v0, %v17318_v63  ;;  %v18342_v6 = vld [vmem:[%s30893_s1 + $0x2c18] sm:$0xf]  ;;  %10084 = vmatpush.bf16.msrb.mxu2 %v13611_v62  ;;  %10060 = vmatpush.bf16.msrb.mxu3 %v18471_v25  ;;  %v13099_v62 = vor.u32 %v19089_v43, %v13096_v44  ;;  %v12968_v25 = vld [vmem:[%s30893_s1 + $0x298] sm:$0xf0] }
 0x199   :  { %v20417_v7 = vld [vmem:[%s30893_s1 + $0x2c94] sm:$0xf0]  ;;  %v13736_v43 = vld [vmem:[%s30893_s1 + $0x898] sm:$0xf0] }
 0x19a   :  { %v17190_v47 = vld [vmem:[%s30893_s1 + $0x2318] sm:$0xf]  ;;  %v18343_v13 = vor.u32 %v20417_v7, %v18342_v6  ;;  %10048 = vmatpush.bf16.msra.mxu1 %v17319_v5  ;;  %10098 = vmatpush.bf16.msrb.mxu0 %v14507_v10  ;;  %v9756_v6 = vadd.f32 %v22780_v9, %v9743_v33  ;;  %v15659_v10 = vor.u32 %v19729_v38, %v15656_v3  ;;  %v16680_v9 = vld [vmem:[%s30893_s1 + $0x1f98] sm:$0xf0] }
 0x19b   :  { %v20129_v60 = vld [vmem:[%s30893_s1 + $0x2394] sm:$0xf0]  ;;  %v16683_v24 = vor.u32 %v19985_v11, %v16680_v9  ;;  %v20241_v44 = vld [vmem:[%s30893_s1 + $0x271c] sm:$0xf] }
 0x19c   :  { %v17191_v15 = vor.u32 %v20129_v60, %v17190_v47  ;;  %v18214_v16 = vld [vmem:[%s30893_s1 + $0x2b18] sm:$0xf]  ;;  %10085 = vmatpush.bf16.msrb.mxu2 %v13483_v8  ;;  %10061 = vmatpush.bf16.msrb.mxu3 %v18343_v13  ;;  %v12971_v60 = vor.u32 %v19057_v1, %v12968_v25  ;;  %v9770_v13 = vpop.f32.mrf.mxu3  ;;  %v9769_v17 = vadd.f32 %v9768_v34, %v9756_v6  ;;  %v18728_v52 = vld [vmem:[%s30893_s1 + $0x2f98] sm:$0xf0] }
 0x19d   :  { %v20385_v18 = vld [vmem:[%s30893_s1 + $0x2b94] sm:$0xf0]  ;;  %v19633_v1 = vld [vmem:[%s30893_s1 + $0x141c] sm:$0xf]  ;;  %v22992_v13 = vpop.f32.mrf.mxu1 }
 0x19e   :  { %v17062_v20 = vld [vmem:[%s30893_s1 + $0x2218] sm:$0xf]  ;;  %v18215_v26 = vor.u32 %v20385_v18, %v18214_v16  ;;  %10049 = vmatpush.bf16.msra.mxu1 %v17191_v15  ;;  %10099 = vmatpush.bf16.msrb.mxu0 %v14379_v22  ;;  %v13995_v15 = vor.u32 %v19313_v37, %v13992_v61  ;;  %v12840_v16 = vld [vmem:[%s30893_s1 + $0x198] sm:$0xf0]  ;;  %v9782_v34 = vadd.f32 %v9781_v49, %v9769_v17 }
 0x19f   :  { %v20097_v21 = vld [vmem:[%s30893_s1 + $0x2294] sm:$0xf0]  ;;  %v19697_v18 = vld [vmem:[%s30893_s1 + $0x161c] sm:$0xf]  ;;  %v12843_v27 = vor.u32 %v19025_v12, %v12840_v16 }
 0x1a0   :  { %v17063_v48 = vor.u32 %v20097_v21, %v17062_v20  ;;  %v18086_v29 = vld [vmem:[%s30893_s1 + $0x2a18] sm:$0xf]  ;;  %10086 = vmatpush.bf16.msrb.mxu2 %v13355_v19  ;;  %10062 = vmatpush.bf16.msrb.mxu3 %v18215_v26  ;;  %v15528_v19 = vld [vmem:[%s30893_s1 + $0x1698] sm:$0xf0]  ;;  %v9783_v20 = vpop.f32.mrf.mxu2 }
 0x1a1   :  { %v20353_v32 = vld [vmem:[%s30893_s1 + $0x2a94] sm:$0xf0]  ;;  %18962 = vmatmul.msk.bf16.vlgmr.msra.gmra.mxu0 %vm9443_vm0, %v20982_v45  ;;  %v19281_v22 = vld [vmem:[%s30893_s1 + $0x91c] sm:$0xf]  ;;  %v15531_v28 = vor.u32 %v19697_v18, %v15528_v19 }
 0x1a2   :  { %v16934_v40 = vld [vmem:[%s30893_s1 + $0x2118] sm:$0xf]  ;;  %v18087_v50 = vor.u32 %v20353_v32, %v18086_v29  ;;  %10050 = vmatpush.bf16.msra.mxu1 %v17063_v48  ;;  %10100 = vmatpush.bf16.msrb.mxu0 %v14251_v42  ;;  %v19953_v26 = vld [vmem:[%s30893_s1 + $0x1e1c] sm:$0xf] }
 0x1a3   :  { %v20065_v41 = vld [vmem:[%s30893_s1 + $0x2194] sm:$0xf0]  ;;  %v16552_v48 = vld [vmem:[%s30893_s1 + $0x1e98] sm:$0xf0] }
 0x1a4   :  { %v16935_v56 = vor.u32 %v20065_v41, %v16934_v40  ;;  %v17958_v58 = vld [vmem:[%s30893_s1 + $0x2918] sm:$0xf]  ;;  %10087 = vmatpush.bf16.msrb.mxu2 %v13227_v36  ;;  %10063 = vmatpush.bf16.msrb.mxu3 %v18087_v50  ;;  %v18993_v29 = vld [vmem:[%s30893_s1 + $0x1c] sm:$0xf]  ;;  %v13867_v36 = vor.u32 %v19281_v22, %v13864_v23  ;;  %v16555_v49 = vor.u32 %v19953_v26, %v16552_v48 }
 0x1a5   :  { %v20321_v59 = vld [vmem:[%s30893_s1 + $0x2994] sm:$0xf0]  ;;  %v12712_v32 = vld [vmem:[%s30893_s1 + $0x98] sm:$0xf0] }
 0x1a6   :  { %v16806_v63 = vld [vmem:[%s30893_s1 + $0x2018] sm:$0xf]  ;;  %v17959_v5 = vor.u32 %v20321_v59, %v17958_v58  ;;  %10051 = vmatpush.bf16.msra.mxu1 %v16935_v56  ;;  %10101 = vmatpush.bf16.msrb.mxu0 %v14123_v2  ;;  %v19249_v40 = vld [vmem:[%s30893_s1 + $0x81c] sm:$0xf]  ;;  %v12715_v53 = vor.u32 %v18993_v29, %v12712_v32 }
 0x1a7   :  { %v20033_v0 = vld [vmem:[%s30893_s1 + $0x2094] sm:$0xf0]  ;;  %v19665_v41 = vld [vmem:[%s30893_s1 + $0x151c] sm:$0xf] }
 0x1a8   :  { %v16807_v7 = vor.u32 %v20033_v0, %v16806_v63  ;;  %v17830_v8 = vld [vmem:[%s30893_s1 + $0x2818] sm:$0xf]  ;;  %10088 = vmatpush.bf16.msrb.mxu2 %v13099_v62  ;;  %10064 = vmatpush.bf16.msrb.mxu3 %v17959_v5  ;;  %v15400_v42 = vld [vmem:[%s30893_s1 + $0x1598] sm:$0xf0]  ;;  %v9795_v62 = vadd.f32 %v22825_v39, %v9782_v34  ;;  %v13739_v63 = vor.u32 %v19249_v40, %v13736_v43  ;;  %v9807_v2 = vpop.f32.mrf.mxu2 }
 0x1a9   :  { %v20289_v47 = vld [vmem:[%s30893_s1 + $0x2894] sm:$0xf0]  ;;  %v20497_v50 = vld [vmem:[%s30893_s1 + $0x2f1c] sm:$0xf]  ;;  %v15403_v56 = vor.u32 %v19665_v41, %v15400_v42  ;;  %v17707_v0 = vor.u32 %v20241_v44, %v17704_v46  ;;  %v23033_v41 = vpop.f32.mrf.mxu3 }
 0x1aa   :  { %v17831_v21 = vor.u32 %v20289_v47, %v17830_v8  ;;  %10052 = vmatpush.bf16.msra.mxu1 %v16807_v7  ;;  %10102 = vmatpush.bf16.msrb.mxu0 %v13995_v15  ;;  %v19921_v58 = vld [vmem:[%s30893_s1 + $0x1d1c] sm:$0xf]  ;;  %v18731_v25 = vor.u32 %v20497_v50, %v18728_v52  ;;  %v9808_v3 = vadd.f32 %v9807_v2, %v9795_v62  ;;  %v23047_v50 = vpop.f32.mrf.mxu0  ;;  %v9835_v52 = vpop.f32.mrf.mxu1 }
 0x1ab   :  { %v16424_v59 = vld [vmem:[%s30893_s1 + $0x1d98] sm:$0xf0] }
 0x1ac   :  { %10089 = vmatpush.bf16.msrb.mxu2 %v12971_v60  ;;  %10065 = vmatpush.bf16.msrb.mxu3 %v17831_v21  ;;  %v15272_v33 = vld [vmem:[%s30893_s1 + $0x1498] sm:$0xf0]  ;;  %v16427_v5 = vor.u32 %v19921_v58, %v16424_v59 }
 0x1ad   :  { %10053 = vmatmul.bf16.vlgmr.msra.gmra.mxu1 %v21073_v30  ;;  %v20209_v38 = vld [vmem:[%s30893_s1 + $0x261c] sm:$0xf]  ;;  %v15275_v6 = vor.u32 %v19633_v1, %v15272_v33  ;;  %12366 = vrot.lane.b32.xlu2 %v9808_v3, %s20574_s17 }
 0x1ae   :  { %10110 = vmatpush.bf16.msrb.mxu1 %v15659_v10  ;;  %10103 = vmatpush.bf16.msrb.mxu0 %v13867_v36  ;;  %v17576_v39 = vld [vmem:[%s30893_s1 + $0x2698] sm:$0xf0] }
 0x1af   :  { %10066 = vmatmul.bf16.vlgmr.msrb.gmra.mxu3 %v21084_v35  ;;  %v20465_v37 = vld [vmem:[%s30893_s1 + $0x2e1c] sm:$0xf]  ;;  %v17579_v47 = vor.u32 %v20209_v38, %v17576_v39  ;;  %12377 = vrot.lane.b32.xlu1 %v9808_v3, %s20575_s19 }
 0x1b0   :  { %10123 = vmatpush.bf16.msra.mxu3 %v16683_v24  ;;  %10090 = vmatpush.bf16.msrb.mxu2 %v12843_v27  ;;  %v18600_v61 = vld [vmem:[%s30893_s1 + $0x2e98] sm:$0xf0]  ;;  %v9809_v23 = vpop.f32.mrf.mxu2 }
 0x1b1   :  { %v19889_v7 = vld [vmem:[%s30893_s1 + $0x1c1c] sm:$0xf]  ;;  %v18603_v11 = vor.u32 %v20465_v37, %v18600_v61 }
 0x1b2   :  { %10111 = vmatpush.bf16.msrb.mxu1 %v15531_v28  ;;  %v16296_v8 = vld [vmem:[%s30893_s1 + $0x1c98] sm:$0xf0]  ;;  %10104 = vmatpush.bf16.msrb.mxu0 %v13739_v63 }
 0x1b3   :  { %v19601_v60 = vld [vmem:[%s30893_s1 + $0x131c] sm:$0xf]  ;;  %v16299_v14 = vor.u32 %v19889_v7, %v16296_v8 }
 0x1b4   :  { %10124 = vmatpush.bf16.msra.mxu3 %v16555_v49  ;;  %10091 = vmatpush.bf16.msrb.mxu2 %v12715_v53  ;;  %v15144_v10 = vld [vmem:[%s30893_s1 + $0x1398] sm:$0xf0] }
 0x1b5   :  { %v20177_v9 = vld [vmem:[%s30893_s1 + $0x251c] sm:$0xf]  ;;  %v15147_v16 = vor.u32 %v19601_v60, %v15144_v10  ;;  %10105 = vmatmul.bf16.vlgmr.msrb.gmra.mxu0 %v20894_v4  ;;  %v13614_v60 = vld [vmem:[%s30893_s1 + $0x720] sm:$0xf] }
 0x1b6   :  { %10112 = vmatpush.bf16.msrb.mxu1 %v15403_v56  ;;  %10149 = vmatpush.bf16.msra.mxu0 %v18731_v25  ;;  %v17448_v12 = vld [vmem:[%s30893_s1 + $0x2598] sm:$0xf0] }
 0x1b7   :  { %v20433_v17 = vld [vmem:[%s30893_s1 + $0x2d1c] sm:$0xf]  ;;  %10092 = vmatmul.bf16.vlgmr.msrb.gmra.mxu2 %v20870_v55  ;;  %v17451_v20 = vor.u32 %v20177_v9, %v17448_v12  ;;  %v19234_v9 = vld [vmem:[%s30893_s1 + $0x79c] sm:$0xf0] }
 0x1b8   :  { %10136 = vmatpush.bf16.msra.mxu2 %v17707_v0  ;;  %10125 = vmatpush.bf16.msra.mxu3 %v16427_v5  ;;  %v18472_v15 = vld [vmem:[%s30893_s1 + $0x2d98] sm:$0xf0]  ;;  %v23070_v25 = vpop.f32.mrf.mxu2  ;;  %v14638_v12 = vld [vmem:[%s30893_s1 + $0xf20] sm:$0xf]  ;;  %v13615_v23 = vor.u32 %v19234_v9, %v13614_v60 }
 0x1b9   :  { %v19857_v18 = vld [vmem:[%s30893_s1 + $0x1b1c] sm:$0xf]  ;;  %v18475_v24 = vor.u32 %v20433_v17, %v18472_v15  ;;  %v9822_v17 = vpop.f32.mrf.mxu3  ;;  %v14254_v60 = vld [vmem:[%s30893_s1 + $0xc20] sm:$0xf] }
 0x1ba   :  { %10113 = vmatpush.bf16.msrb.mxu1 %v15275_v6  ;;  %v16168_v19 = vld [vmem:[%s30893_s1 + $0x1b98] sm:$0xf0]  ;;  %10150 = vmatpush.bf16.msra.mxu0 %v18603_v11  ;;  %v19682_v9 = vld [vmem:[%s30893_s1 + $0x159c] sm:$0xf0] }
 0x1bb   :  { %v19569_v21 = vld [vmem:[%s30893_s1 + $0x121c] sm:$0xf]  ;;  %v16171_v28 = vor.u32 %v19857_v18, %v16168_v19  ;;  %v9861_v19 = vpop.f32.mrf.mxu0  ;;  %v19938_v17 = vld [vmem:[%s30893_s1 + $0x1d9c] sm:$0xf0] }
 0x1bc   :  { %10137 = vmatpush.bf16.msra.mxu2 %v17579_v47  ;;  %v15016_v22 = vld [vmem:[%s30893_s1 + $0x1298] sm:$0xf0]  ;;  %10126 = vmatpush.bf16.msra.mxu3 %v16299_v14  ;;  %v19490_v14 = vld [vmem:[%s30893_s1 + $0xf9c] sm:$0xf0] }
 0x1bd   :  { %v20145_v26 = vld [vmem:[%s30893_s1 + $0x241c] sm:$0xf]  ;;  %v15019_v32 = vor.u32 %v19569_v21, %v15016_v22  ;;  %v13102_v19 = vld [vmem:[%s30893_s1 + $0x320] sm:$0xf] }
 0x1be   :  { %v17320_v27 = vld [vmem:[%s30893_s1 + $0x2498] sm:$0xf0]  ;;  %10114 = vmatpush.bf16.msrb.mxu1 %v15147_v16  ;;  %10151 = vmatpush.bf16.msra.mxu0 %v18475_v24  ;;  %v14639_v24 = vor.u32 %v19490_v14, %v14638_v12  ;;  %v16430_v14 = vld [vmem:[%s30893_s1 + $0x1d20] sm:$0xf] }
 0x1bf   :  { %v20401_v48 = vld [vmem:[%s30893_s1 + $0x2c1c] sm:$0xf]  ;;  %v17323_v40 = vor.u32 %v20145_v26, %v17320_v27  ;;  %v13486_v26 = vld [vmem:[%s30893_s1 + $0x620] sm:$0xf] }
 0x1c0   :  { %v18344_v29 = vld [vmem:[%s30893_s1 + $0x2c98] sm:$0xf0]  ;;  %10138 = vmatpush.bf16.msra.mxu2 %v17451_v20  ;;  %10127 = vmatpush.bf16.msra.mxu3 %v16171_v28  ;;  %v19202_v28 = vld [vmem:[%s30893_s1 + $0x69c] sm:$0xf0] }
 0x1c1   :  { %v19825_v34 = vld [vmem:[%s30893_s1 + $0x1a1c] sm:$0xf]  ;;  %v18347_v44 = vor.u32 %v20401_v48, %v18344_v29  ;;  %v14510_v48 = vld [vmem:[%s30893_s1 + $0xe20] sm:$0xf] }
 0x1c2   :  { %v16040_v36 = vld [vmem:[%s30893_s1 + $0x1a98] sm:$0xf0]  ;;  %10115 = vmatpush.bf16.msrb.mxu1 %v15019_v32  ;;  %v19458_v29 = vld [vmem:[%s30893_s1 + $0xe9c] sm:$0xf0]  ;;  %v9848_v32 = vpop.f32.mrf.mxu2 }
 0x1c3   :  { %v19537_v42 = vld [vmem:[%s30893_s1 + $0x111c] sm:$0xf]  ;;  %v16043_v53 = vor.u32 %v19825_v34, %v16040_v36  ;;  %10152 = vmatpush.bf16.msra.mxu0 %v18347_v44  ;;  %v15662_v44 = vld [vmem:[%s30893_s1 + $0x1720] sm:$0xf]  ;;  %v14511_v52 = vor.u32 %v19458_v29, %v14510_v48 }
 0x1c4   :  { %v14888_v43 = vld [vmem:[%s30893_s1 + $0x1198] sm:$0xf0]  ;;  %10139 = vmatpush.bf16.msra.mxu2 %v17323_v40  ;;  %v19906_v48 = vld [vmem:[%s30893_s1 + $0x1c9c] sm:$0xf0] }
 0x1c5   :  { %v20113_v46 = vld [vmem:[%s30893_s1 + $0x231c] sm:$0xf]  ;;  %v14891_v59 = vor.u32 %v19537_v42, %v14888_v43  ;;  %10128 = vmatpush.bf16.msra.mxu3 %v16043_v53  ;;  %v16686_v53 = vld [vmem:[%s30893_s1 + $0x1f20] sm:$0xf] }
 0x1c6   :  { %v17192_v49 = vld [vmem:[%s30893_s1 + $0x2398] sm:$0xf0] }
 0x1c7   :  { %v20369_v56 = vld [vmem:[%s30893_s1 + $0x2b1c] sm:$0xf]  ;;  %v17195_v0 = vor.u32 %v20113_v46, %v17192_v49  ;;  %10116 = vmatpush.bf16.msrb.mxu1 %v14891_v59  ;;  %v19746_v46 = vld [vmem:[%s30893_s1 + $0x179c] sm:$0xf0]  ;;  %v13487_v49 = vor.u32 %v19202_v28, %v13486_v26 }
 0x1c8   :  { %v18216_v58 = vld [vmem:[%s30893_s1 + $0x2b98] sm:$0xf0]  ;;  %v13358_v59 = vld [vmem:[%s30893_s1 + $0x520] sm:$0xf] }
 0x1c9   :  { %v19793_v62 = vld [vmem:[%s30893_s1 + $0x191c] sm:$0xf]  ;;  %v18219_v38 = vor.u32 %v20369_v56, %v18216_v58  ;;  %10140 = vmatpush.bf16.msra.mxu2 %v17195_v0  ;;  %v20002_v56 = vld [vmem:[%s30893_s1 + $0x1f9c] sm:$0xf0]  ;;  %v15663_v0 = vor.u32 %v19746_v46, %v15662_v44 }
 0x1ca   :  { %v15912_v63 = vld [vmem:[%s30893_s1 + $0x1998] sm:$0xf0]  ;;  %v19650_v26 = vld [vmem:[%s30893_s1 + $0x149c] sm:$0xf0] }
 0x1cb   :  { %v19505_v1 = vld [vmem:[%s30893_s1 + $0x101c] sm:$0xf]  ;;  %v15915_v37 = vor.u32 %v19793_v62, %v15912_v63  ;;  %10153 = vmatpush.bf16.msra.mxu0 %v18219_v38  ;;  %v19170_v62 = vld [vmem:[%s30893_s1 + $0x59c] sm:$0xf0] }
 0x1cc   :  { %v14760_v33 = vld [vmem:[%s30893_s1 + $0x1098] sm:$0xf0]  ;;  %v15534_v38 = vld [vmem:[%s30893_s1 + $0x1620] sm:$0xf] }
 0x1cd   :  { %v20081_v2 = vld [vmem:[%s30893_s1 + $0x221c] sm:$0xf]  ;;  %v14763_v7 = vor.u32 %v19505_v1, %v14760_v33  ;;  %10129 = vmatpush.bf16.msra.mxu3 %v15915_v37  ;;  %v14382_v1 = vld [vmem:[%s30893_s1 + $0xd20] sm:$0xf] }
 0x1ce   :  { %v17064_v39 = vld [vmem:[%s30893_s1 + $0x2298] sm:$0xf0]  ;;  %v19426_v33 = vld [vmem:[%s30893_s1 + $0xd9c] sm:$0xf0] }
 0x1cf   :  { %v20529_v3 = vld [vmem:[%s30893_s1 + $0x301c] sm:$0xf]  ;;  %v17067_v10 = vor.u32 %v20081_v2, %v17064_v39  ;;  %10117 = vmatpush.bf16.msrb.mxu1 %v14763_v7  ;;  %v16687_v2 = vor.u32 %v20002_v56, %v16686_v53  ;;  %v19714_v39 = vld [vmem:[%s30893_s1 + $0x169c] sm:$0xf0]  ;;  %v23253_v56 = vpop.f32.mrf.mxu0 }
 0x1d0   :  { %v18856_v5 = vld [vmem:[%s30893_s1 + $0x3098] sm:$0xf0]  ;;  %v19970_v37 = vld [vmem:[%s30893_s1 + $0x1e9c] sm:$0xf0] }
 0x1d1   :  { %v20337_v61 = vld [vmem:[%s30893_s1 + $0x2a1c] sm:$0xf]  ;;  %v18859_v11 = vor.u32 %v20529_v3, %v18856_v5  ;;  %10141 = vmatpush.bf16.msra.mxu2 %v17067_v10  ;;  %v13359_v3 = vor.u32 %v19170_v62, %v13358_v59  ;;  %v16558_v5 = vld [vmem:[%s30893_s1 + $0x1e20] sm:$0xf] }
 0x1d2   :  { %v18088_v6 = vld [vmem:[%s30893_s1 + $0x2a98] sm:$0xf0]  ;;  %10118 = vmatmul.bf16.vlgmr.msrb.gmra.mxu1 %v20859_v51  ;;  %v13230_v7 = vld [vmem:[%s30893_s1 + $0x420] sm:$0xf]  ;;  %v16559_v10 = vor.u32 %v19970_v37, %v16558_v5 }
 0x1d3   :  { %v19761_v8 = vld [vmem:[%s30893_s1 + $0x181c] sm:$0xf]  ;;  %v18091_v15 = vor.u32 %v20337_v61, %v18088_v6  ;;  %10169 = vmatpush.bf16.msra.mxu1 %v18859_v11  ;;  %v9834_v61 = vadd.f32 %v22992_v13, %v23033_v41  ;;  %v14383_v6 = vor.u32 %v19426_v33, %v14382_v1  ;;  %v19394_v13 = vld [vmem:[%s30893_s1 + $0xc9c] sm:$0xf0]  ;;  %v9898_v41 = vpop.f32.mrf.mxu2 }
 0x1d4   :  { %v15784_v47 = vld [vmem:[%s30893_s1 + $0x1898] sm:$0xf0]  ;;  %v15406_v11 = vld [vmem:[%s30893_s1 + $0x1520] sm:$0xf] }
 0x1d5   :  { %v20049_v16 = vld [vmem:[%s30893_s1 + $0x211c] sm:$0xf]  ;;  %v15787_v20 = vor.u32 %v19761_v8, %v15784_v47  ;;  %10154 = vmatpush.bf16.msra.mxu0 %v18091_v15  ;;  %v19138_v8 = vld [vmem:[%s30893_s1 + $0x49c] sm:$0xf0]  ;;  %v15535_v47 = vor.u32 %v19714_v39, %v15534_v38  ;;  %v9885_v15 = vpop.f32.mrf.mxu1 }
 0x1d6   :  { %v16936_v18 = vld [vmem:[%s30893_s1 + $0x2198] sm:$0xf0]  ;;  %v13231_v12 = vor.u32 %v19138_v8, %v13230_v7  ;;  %v16302_v28 = vld [vmem:[%s30893_s1 + $0x1c20] sm:$0xf] }
 0x1d7   :  { %v20305_v21 = vld [vmem:[%s30893_s1 + $0x291c] sm:$0xf]  ;;  %v16939_v27 = vor.u32 %v20049_v16, %v16936_v18  ;;  %10130 = vmatpush.bf16.msra.mxu3 %v15787_v20  ;;  %10188 = vmatpush.bf16.msrb.mxu1 %v14639_v24  ;;  %v9847_v16 = vadd.f32 %v23070_v25, %v9834_v61  ;;  %v14255_v18 = vor.u32 %v19394_v13, %v14254_v60  ;;  %v19106_v20 = vld [vmem:[%s30893_s1 + $0x39c] sm:$0xf0] }
 0x1d8   :  { %v17960_v22 = vld [vmem:[%s30893_s1 + $0x2998] sm:$0xf0]  ;;  %v19362_v25 = vld [vmem:[%s30893_s1 + $0xb9c] sm:$0xf0] }
 0x1d9   :  { %v17963_v34 = vor.u32 %v20305_v21, %v17960_v22  ;;  %v20017_v36 = vld [vmem:[%s30893_s1 + $0x201c] sm:$0xf]  ;;  %10142 = vmatpush.bf16.msra.mxu2 %v16939_v27  ;;  %v15407_v21 = vor.u32 %v19682_v9, %v15406_v11  ;;  %v14126_v22 = vld [vmem:[%s30893_s1 + $0xb20] sm:$0xf]  ;;  %v13103_v27 = vor.u32 %v19106_v20, %v13102_v19  ;;  %v9860_v29 = vadd.f32 %v23047_v50, %v9847_v16 }
 0x1da   :  { %v16808_v40 = vld [vmem:[%s30893_s1 + $0x2098] sm:$0xf0]  ;;  %10131 = vmatmul.bf16.vlgmr.msra.gmra.mxu3 %v20872_v57  ;;  %v15278_v24 = vld [vmem:[%s30893_s1 + $0x1420] sm:$0xf]  ;;  %v14127_v32 = vor.u32 %v19362_v25, %v14126_v22  ;;  %v9913_v22 = vpop.f32.mrf.mxu0 }
 0x1db   :  { %v20273_v42 = vld [vmem:[%s30893_s1 + $0x281c] sm:$0xf]  ;;  %10175 = vmatpush.bf16.msrb.mxu3 %v13615_v23  ;;  %v16811_v58 = vor.u32 %v20017_v36, %v16808_v40  ;;  %10155 = vmatpush.bf16.msra.mxu0 %v17963_v34  ;;  %v16431_v23 = vor.u32 %v19938_v17, %v16430_v14  ;;  %v12974_v34 = vld [vmem:[%s30893_s1 + $0x220] sm:$0xf]  ;;  %v9872_v40 = vpop.f32.mrf.mxu3  ;;  %v9900_v44 = vpop.f32.mrf.mxu2 }
 0x1dc   :  { %v17832_v43 = vld [vmem:[%s30893_s1 + $0x2898] sm:$0xf0]  ;;  %10189 = vmatpush.bf16.msrb.mxu1 %v14511_v52  ;;  %v19074_v36 = vld [vmem:[%s30893_s1 + $0x29c] sm:$0xf0]  ;;  %v9873_v46 = vadd.f32 %v9872_v40, %v9860_v29 }
 0x1dd   :  { %v17835_v63 = vor.u32 %v20273_v42, %v17832_v43  ;;  %10143 = vmatpush.bf16.msra.mxu2 %v16811_v58  ;;  %v15279_v42 = vor.u32 %v19650_v26, %v15278_v24  ;;  %v13998_v43 = vld [vmem:[%s30893_s1 + $0xa20] sm:$0xf]  ;;  %v12975_v58 = vor.u32 %v19074_v36, %v12974_v34 }
 0x1de   :  { %v19330_v50 = vld [vmem:[%s30893_s1 + $0xa9c] sm:$0xf0] }
 0x1df   :  { %10176 = vmatpush.bf16.msrb.mxu3 %v13487_v49  ;;  %10156 = vmatpush.bf16.msra.mxu0 %v17835_v63  ;;  %v16303_v49 = vor.u32 %v19906_v48, %v16302_v28  ;;  %v15150_v52 = vld [vmem:[%s30893_s1 + $0x1320] sm:$0xf]  ;;  %v9887_v63 = vpop.f32.mrf.mxu1  ;;  %v13999_v1 = vor.u32 %v19330_v50, %v13998_v43 }
 0x1e0   :  { %10144 = vmatmul.bf16.vlgmr.msra.gmra.mxu2 %v21073_v30  ;;  %10190 = vmatpush.bf16.msrb.mxu1 %v14383_v6  ;;  %v19618_v53 = vld [vmem:[%s30893_s1 + $0x139c] sm:$0xf0] }
 0x1e1   :  { %10201 = vmatpush.bf16.msrb.mxu2 %v15663_v0  ;;  %v16174_v59 = vld [vmem:[%s30893_s1 + $0x1b20] sm:$0xf]  ;;  %v9886_v0 = vadd.f32 %v9885_v15, %v9873_v46  ;;  %v15151_v38 = vor.u32 %v19618_v53, %v15150_v52  ;;  %v19218_v53 = vld [vmem:[%s30893_s1 + $0x724] sm:$0xf] }
 0x1e2   :  { %10157 = vmatmul.bf16.vlgmr.msra.gmra.mxu0 %v21084_v35  ;;  %18963 = vmatmul.msk.bf16.vlgmr.msra.gmra.mxu1 %vm9443_vm0, %v20982_v45  ;;  %v19874_v62 = vld [vmem:[%s30893_s1 + $0x1b9c] sm:$0xf0] }
 0x1e3   :  { %10214 = vmatpush.bf16.msrb.mxu0 %v16687_v2  ;;  %10177 = vmatpush.bf16.msrb.mxu3 %v13359_v3  ;;  %v12846_v33 = vld [vmem:[%s30893_s1 + $0x120] sm:$0xf]  ;;  %v9899_v5 = vadd.f32 %v9898_v41, %v9886_v0  ;;  %v16175_v37 = vor.u32 %v19874_v62, %v16174_v59  ;;  %v9874_v15 = vpop.f32.mrf.mxu3  ;;  %v23307_v16 = vpop.f32.mrf.mxu2 }
 0x1e4   :  { %10191 = vmatpush.bf16.msrb.mxu1 %v14255_v18  ;;  %v19042_v2 = vld [vmem:[%s30893_s1 + $0x19c] sm:$0xf0]  ;;  %v13360_v15 = vld [vmem:[%s30893_s1 + $0x5a0] sm:$0xf0] }
 0x1e5   :  { %10202 = vmatpush.bf16.msrb.mxu2 %v15535_v47  ;;  %v13870_v39 = vld [vmem:[%s30893_s1 + $0x920] sm:$0xf]  ;;  %v12847_v7 = vor.u32 %v19042_v2, %v12846_v33  ;;  %12379 = vrot.lane.b32.xlu1 %v9899_v5, %s20575_s19  ;;  %v14640_v5 = vld [vmem:[%s30893_s1 + $0xfa0] sm:$0xf0] }
 0x1e6   :  { %v19298_v3 = vld [vmem:[%s30893_s1 + $0x99c] sm:$0xf0] }
 0x1e7   :  { %10215 = vmatpush.bf16.msrb.mxu0 %v16559_v10  ;;  %10178 = vmatpush.bf16.msrb.mxu3 %v13231_v12  ;;  %v15022_v61 = vld [vmem:[%s30893_s1 + $0x1220] sm:$0xf]  ;;  %v13871_v13 = vor.u32 %v19298_v3, %v13870_v39  ;;  %v19474_v3 = vld [vmem:[%s30893_s1 + $0xf24] sm:$0xf] }
 0x1e8   :  { %10192 = vmatpush.bf16.msrb.mxu1 %v14127_v32  ;;  %v19586_v6 = vld [vmem:[%s30893_s1 + $0x129c] sm:$0xf0] }
 0x1e9   :  { %10203 = vmatpush.bf16.msrb.mxu2 %v15407_v21  ;;  %v16046_v8 = vld [vmem:[%s30893_s1 + $0x1a20] sm:$0xf]  ;;  %v15023_v9 = vor.u32 %v19586_v6, %v15022_v61  ;;  %v19186_v6 = vld [vmem:[%s30893_s1 + $0x624] sm:$0xf] }
 0x1ea   :  { %v19842_v47 = vld [vmem:[%s30893_s1 + $0x1a9c] sm:$0xf0] }
 0x1eb   :  { %10216 = vmatpush.bf16.msrb.mxu0 %v16431_v23  ;;  %10179 = vmatpush.bf16.msrb.mxu3 %v13103_v27  ;;  %v12718_v60 = vld [vmem:[%s30893_s1 + $0x20] sm:$0xf]  ;;  %v16047_v18 = vor.u32 %v19842_v47, %v16046_v8  ;;  %v9926_v33 = vpop.f32.mrf.mxu2  ;;  %v14643_v47 = vor.u32 %v19474_v3, %v14640_v5 }
 0x1ec   :  { %10193 = vmatpush.bf16.msrb.mxu1 %v13999_v1  ;;  %v19010_v41 = vld [vmem:[%s30893_s1 + $0x9c] sm:$0xf0] }
 0x1ed   :  { %10204 = vmatpush.bf16.msrb.mxu2 %v15279_v42  ;;  %v13742_v10 = vld [vmem:[%s30893_s1 + $0x820] sm:$0xf]  ;;  %v12719_v25 = vor.u32 %v19010_v41, %v12718_v60 }
 0x1ee   :  { %v19266_v11 = vld [vmem:[%s30893_s1 + $0x89c] sm:$0xf0] }
 0x1ef   :  { %10217 = vmatpush.bf16.msrb.mxu0 %v16303_v49  ;;  %10180 = vmatpush.bf16.msrb.mxu3 %v12975_v58  ;;  %v17710_v12 = vld [vmem:[%s30893_s1 + $0x2720] sm:$0xf]  ;;  %v13743_v26 = vor.u32 %v19266_v11, %v13742_v10  ;;  %v13616_v58 = vld [vmem:[%s30893_s1 + $0x7a0] sm:$0xf0] }
 0x1f0   :  { %v20258_v14 = vld [vmem:[%s30893_s1 + $0x279c] sm:$0xf0]  ;;  %10194 = vmatpush.bf16.msrb.mxu1 %v13871_v13  ;;  %v19442_v11 = vld [vmem:[%s30893_s1 + $0xe24] sm:$0xf] }
 0x1f1   :  { %10205 = vmatpush.bf16.msrb.mxu2 %v15151_v38  ;;  %v18734_v17 = vld [vmem:[%s30893_s1 + $0x2f20] sm:$0xf]  ;;  %v17711_v27 = vor.u32 %v20258_v14, %v17710_v12 }
 0x1f2   :  { %v20514_v19 = vld [vmem:[%s30893_s1 + $0x2f9c] sm:$0xf0] }
 0x1f3   :  { %10218 = vmatpush.bf16.msrb.mxu0 %v16175_v37  ;;  %v14894_v20 = vld [vmem:[%s30893_s1 + $0x1120] sm:$0xf]  ;;  %10181 = vmatpush.bf16.msrb.mxu3 %v12847_v7  ;;  %v18735_v48 = vor.u32 %v20514_v19, %v18734_v17  ;;  %v13619_v37 = vor.u32 %v19218_v53, %v13616_v58  ;;  %v13488_v7 = vld [vmem:[%s30893_s1 + $0x6a0] sm:$0xf0]  ;;  %v12363_v19 = vpop.permute.xlu0 %12362 }
 0x1f4   :  { %v19554_v21 = vld [vmem:[%s30893_s1 + $0x119c] sm:$0xf0]  ;;  %10195 = vmatpush.bf16.msrb.mxu1 %v13743_v26  ;;  %v13491_v12 = vor.u32 %v19186_v6, %v13488_v7  ;;  %v19154_v17 = vld [vmem:[%s30893_s1 + $0x524] sm:$0xf] }
 0x1f5   :  { %v15918_v23 = vld [vmem:[%s30893_s1 + $0x1920] sm:$0xf]  ;;  %10206 = vmatpush.bf16.msrb.mxu2 %v15023_v9  ;;  %v14895_v29 = vor.u32 %v19554_v21, %v14894_v20  ;;  %v14512_v9 = vld [vmem:[%s30893_s1 + $0xea0] sm:$0xf0] }
 0x1f6   :  { %v19810_v24 = vld [vmem:[%s30893_s1 + $0x199c] sm:$0xf0]  ;;  %v14515_v21 = vor.u32 %v19442_v11, %v14512_v9  ;;  %v19410_v26 = vld [vmem:[%s30893_s1 + $0xd24] sm:$0xf] }
 0x1f7   :  { %v17582_v28 = vld [vmem:[%s30893_s1 + $0x2620] sm:$0xf]  ;;  %10219 = vmatpush.bf16.msrb.mxu0 %v16047_v18  ;;  %v15919_v40 = vor.u32 %v19810_v24, %v15918_v23  ;;  %10182 = vmatpush.bf16.msrb.mxu3 %v12719_v25  ;;  %v9950_v18 = vpop.f32.mrf.mxu1  ;;  %v19090_v58 = vld [vmem:[%s30893_s1 + $0x324] sm:$0xf] }
 0x1f8   :  { %v20226_v32 = vld [vmem:[%s30893_s1 + $0x269c] sm:$0xf0]  ;;  %10240 = vmatpush.bf16.msra.mxu1 %v18735_v48 }
 0x1f9   :  { %v18606_v34 = vld [vmem:[%s30893_s1 + $0x2e20] sm:$0xf]  ;;  %v17583_v52 = vor.u32 %v20226_v32, %v17582_v28  ;;  %10207 = vmatpush.bf16.msrb.mxu2 %v14895_v29  ;;  %10196 = vmatmul.bf16.vlgmr.msrb.gmra.mxu1 %v20894_v4  ;;  %v13363_v28 = vor.u32 %v19154_v17, %v13360_v15  ;;  %v19122_v29 = vld [vmem:[%s30893_s1 + $0x424] sm:$0xf] }
 0x1fa   :  { %v20482_v36 = vld [vmem:[%s30893_s1 + $0x2e9c] sm:$0xf0]  ;;  %10183 = vmatmul.bf16.vlgmr.msrb.gmra.mxu3 %v20870_v55  ;;  %v13232_v32 = vld [vmem:[%s30893_s1 + $0x4a0] sm:$0xf0] }
 0x1fb   :  { %v14766_v42 = vld [vmem:[%s30893_s1 + $0x1020] sm:$0xf]  ;;  %10227 = vmatpush.bf16.msra.mxu3 %v17711_v27  ;;  %v18607_v59 = vor.u32 %v20482_v36, %v18606_v34  ;;  %10220 = vmatpush.bf16.msrb.mxu0 %v15919_v40  ;;  %v14384_v27 = vld [vmem:[%s30893_s1 + $0xda0] sm:$0xf0]  ;;  %v9925_v34 = vadd.f32 %v23307_v16, %v23253_v56 }
 0x1fc   :  { %v19522_v43 = vld [vmem:[%s30893_s1 + $0x109c] sm:$0xf0]  ;;  %v14387_v40 = vor.u32 %v19410_v26, %v14384_v27  ;;  %v19378_v16 = vld [vmem:[%s30893_s1 + $0xc24] sm:$0xf] }
 0x1fd   :  { %v15790_v50 = vld [vmem:[%s30893_s1 + $0x1820] sm:$0xf]  ;;  %v14767_v62 = vor.u32 %v19522_v43, %v14766_v42  ;;  %10241 = vmatpush.bf16.msra.mxu1 %v18607_v59  ;;  %v13104_v59 = vld [vmem:[%s30893_s1 + $0x3a0] sm:$0xf0] }
 0x1fe   :  { %v19778_v44 = vld [vmem:[%s30893_s1 + $0x189c] sm:$0xf0]  ;;  %v13107_v7 = vor.u32 %v19090_v58, %v13104_v59  ;;  %v19314_v15 = vld [vmem:[%s30893_s1 + $0xa24] sm:$0xf] }
 0x1ff   :  { %v18862_v46 = vld [vmem:[%s30893_s1 + $0x3020] sm:$0xf]  ;;  %v15791_v2 = vor.u32 %v19778_v44, %v15790_v50  ;;  %10228 = vmatpush.bf16.msra.mxu3 %v17583_v52  ;;  %10208 = vmatpush.bf16.msrb.mxu2 %v14767_v62  ;;  %v9937_v44 = vpop.f32.mrf.mxu3  ;;  %v9963_v52 = vpop.f32.mrf.mxu0  ;;  %v19026_v27 = vld [vmem:[%s30893_s1 + $0x124] sm:$0xf] }
 0x200   :  { %v20546_v49 = vld [vmem:[%s30893_s1 + $0x309c] sm:$0xf0]  ;;  %v9952_v62 = vpop.f32.mrf.mxu1  ;;  %v20242_v58 = vld [vmem:[%s30893_s1 + $0x2724] sm:$0xf] }
 0x201   :  { %v17454_v63 = vld [vmem:[%s30893_s1 + $0x2520] sm:$0xf]  ;;  %v18863_v39 = vor.u32 %v20546_v49, %v18862_v46  ;;  %10221 = vmatpush.bf16.msrb.mxu0 %v15791_v2  ;;  %v14256_v46 = vld [vmem:[%s30893_s1 + $0xca0] sm:$0xf0]  ;;  %v13235_v49 = vor.u32 %v19122_v29, %v13232_v32 }
 0x202   :  { %v20194_v0 = vld [vmem:[%s30893_s1 + $0x259c] sm:$0xf0]  ;;  %10209 = vmatmul.bf16.vlgmr.msrb.gmra.mxu2 %v20859_v51  ;;  %v14259_v33 = vor.u32 %v19378_v16, %v14256_v46  ;;  %v16560_v16 = vld [vmem:[%s30893_s1 + $0x1ea0] sm:$0xf0] }
 0x203   :  { %v18478_v1 = vld [vmem:[%s30893_s1 + $0x2d20] sm:$0xf]  ;;  %v17455_v61 = vor.u32 %v20194_v0, %v17454_v63  ;;  %10260 = vmatpush.bf16.msra.mxu2 %v18863_v39  ;;  %v9938_v63 = vadd.f32 %v9937_v44, %v9925_v34  ;;  %v23462_v0 = vpop.permute.xlu0 %12364  ;;  %v15536_v44 = vld [vmem:[%s30893_s1 + $0x16a0] sm:$0xf0] }
 0x204   :  { %v20450_v38 = vld [vmem:[%s30893_s1 + $0x2d9c] sm:$0xf0]  ;;  %10222 = vmatmul.bf16.vlgmr.msrb.gmra.mxu0 %v20872_v57  ;;  %v23475_v3 = vsel %vm12368_vm1, %v12363_v19, %v23462_v0  ;;  %v19730_v19 = vld [vmem:[%s30893_s1 + $0x1724] sm:$0xf] }
 0x205   :  { %v18479_v8 = vor.u32 %v20450_v38, %v18478_v1  ;;  %v17326_v60 = vld [vmem:[%s30893_s1 + $0x2420] sm:$0xf]  ;;  %10266 = vmatpush.bf16.msra.mxu0 %v13619_v37  ;;  %10229 = vmatpush.bf16.msra.mxu3 %v17455_v61  ;;  %v19346_v37 = vld [vmem:[%s30893_s1 + $0xb24] sm:$0xf]  ;;  %v12373_v6 = vmax.f32 %v21983_v31, %v23475_v3  ;;  %v20035_v31 = vld [vmem:[%s30893_s1 + $0x20a4] sm:$0xf0] }
 0x206   :  { %v20162_v13 = vld [vmem:[%s30893_s1 + $0x249c] sm:$0xf0]  ;;  %v14128_v61 = vld [vmem:[%s30893_s1 + $0xba0] sm:$0xf0]  ;;  %v19059_v3 = vld [vmem:[%s30893_s1 + $0x22c] sm:$0xf] }
 0x207   :  { %v18350_v41 = vld [vmem:[%s30893_s1 + $0x2c20] sm:$0xf]  ;;  %v17327_v14 = vor.u32 %v20162_v13, %v17326_v60  ;;  %10242 = vmatpush.bf16.msra.mxu1 %v18479_v8  ;;  %10279 = vmatpush.bf16.msrb.mxu2 %v14643_v47  ;;  %v19058_v47 = vld [vmem:[%s30893_s1 + $0x224] sm:$0xf]  ;;  %v14131_v11 = vor.u32 %v19346_v37, %v14128_v61  ;;  %v9939_v17 = vpop.f32.mrf.mxu3 }
 0x208   :  { %v20418_v10 = vld [vmem:[%s30893_s1 + $0x2c9c] sm:$0xf0]  ;;  %v12976_v60 = vld [vmem:[%s30893_s1 + $0x2a0] sm:$0xf0] }
 0x209   :  { %v18351_v20 = vor.u32 %v20418_v10, %v18350_v41  ;;  %v17198_v22 = vld [vmem:[%s30893_s1 + $0x2320] sm:$0xf]  ;;  %10267 = vmatpush.bf16.msra.mxu0 %v13491_v12  ;;  %10230 = vmatpush.bf16.msra.mxu3 %v17327_v14  ;;  %v9951_v41 = vadd.f32 %v9950_v18, %v9938_v63  ;;  %v14000_v18 = vld [vmem:[%s30893_s1 + $0xaa0] sm:$0xf0] }
 0x20a   :  { %v20130_v25 = vld [vmem:[%s30893_s1 + $0x239c] sm:$0xf0]  ;;  %v14003_v32 = vor.u32 %v19314_v15, %v14000_v18  ;;  %v18994_v46 = vld [vmem:[%s30893_s1 + $0x24] sm:$0xf] }
 0x20b   :  { %v18222_v23 = vld [vmem:[%s30893_s1 + $0x2b20] sm:$0xf]  ;;  %v17199_v48 = vor.u32 %v20130_v25, %v17198_v22  ;;  %10243 = vmatpush.bf16.msra.mxu1 %v18351_v20  ;;  %10280 = vmatpush.bf16.msrb.mxu2 %v14515_v21  ;;  %v9976_v20 = vpop.f32.mrf.mxu2  ;;  %v12979_v21 = vor.u32 %v19058_v47, %v12976_v60  ;;  %v15664_v22 = vld [vmem:[%s30893_s1 + $0x17a0] sm:$0xf0] }
 0x20c   :  { %v20386_v24 = vld [vmem:[%s30893_s1 + $0x2b9c] sm:$0xf0]  ;;  %v19986_v25 = vld [vmem:[%s30893_s1 + $0x1f24] sm:$0xf]  ;;  %v15667_v34 = vor.u32 %v19730_v19, %v15664_v22 }
 0x20d   :  { %v18223_v36 = vor.u32 %v20386_v24, %v18222_v23  ;;  %v17070_v42 = vld [vmem:[%s30893_s1 + $0x2220] sm:$0xf]  ;;  %10268 = vmatpush.bf16.msra.mxu0 %v13363_v28  ;;  %10231 = vmatpush.bf16.msra.mxu3 %v17199_v48  ;;  %v16688_v23 = vld [vmem:[%s30893_s1 + $0x1fa0] sm:$0xf0]  ;;  %v9965_v24 = vpop.f32.mrf.mxu0  ;;  %v9964_v48 = vadd.f32 %v9963_v52, %v9951_v41 }
 0x20e   :  { %v20098_v43 = vld [vmem:[%s30893_s1 + $0x229c] sm:$0xf0]  ;;  %v12848_v28 = vld [vmem:[%s30893_s1 + $0x1a0] sm:$0xf0]  ;;  %v23619_v24 = vpop.f32.mrf.mxu1 }
 0x20f   :  { %v18094_v50 = vld [vmem:[%s30893_s1 + $0x2a20] sm:$0xf]  ;;  %v17071_v53 = vor.u32 %v20098_v43, %v17070_v42  ;;  %10244 = vmatpush.bf16.msra.mxu1 %v18223_v36  ;;  %10281 = vmatpush.bf16.msrb.mxu2 %v14387_v40  ;;  %v16691_v36 = vor.u32 %v19986_v25, %v16688_v23  ;;  %v19282_v40 = vld [vmem:[%s30893_s1 + $0x924] sm:$0xf]  ;;  %v9977_v52 = vadd.f32 %v9976_v20, %v9964_v48  ;;  %v9989_v62 = vpop.f32.mrf.mxu3 }
 0x210   :  { %v20354_v56 = vld [vmem:[%s30893_s1 + $0x2a9c] sm:$0xf0]  ;;  %v13872_v42 = vld [vmem:[%s30893_s1 + $0x9a0] sm:$0xf0] }
 0x211   :  { %v18095_v1 = vor.u32 %v20354_v56, %v18094_v50  ;;  %v16942_v2 = vld [vmem:[%s30893_s1 + $0x2120] sm:$0xf]  ;;  %10269 = vmatpush.bf16.msra.mxu0 %v13235_v49  ;;  %10232 = vmatpush.bf16.msra.mxu3 %v17071_v53  ;;  %v19698_v43 = vld [vmem:[%s30893_s1 + $0x1624] sm:$0xf]  ;;  %v12851_v50 = vor.u32 %v19026_v27, %v12848_v28  ;;  %v13875_v53 = vor.u32 %v19282_v40, %v13872_v42 }
 0x212   :  { %v20066_v38 = vld [vmem:[%s30893_s1 + $0x219c] sm:$0xf0]  ;;  %18964 = vmatmul.msk.bf16.vlgmr.msra.gmra.mxu2 %vm9443_vm0, %v20982_v45  ;;  %v19954_v56 = vld [vmem:[%s30893_s1 + $0x1e24] sm:$0xf]  ;;  %v15539_v63 = vor.u32 %v19698_v43, %v15536_v44 }
 0x213   :  { %v17966_v39 = vld [vmem:[%s30893_s1 + $0x2920] sm:$0xf]  ;;  %v16943_v8 = vor.u32 %v20066_v38, %v16942_v2  ;;  %10245 = vmatpush.bf16.msra.mxu1 %v18095_v1  ;;  %10282 = vmatpush.bf16.msrb.mxu2 %v14259_v33  ;;  %v12720_v49 = vld [vmem:[%s30893_s1 + $0xa0] sm:$0xf0]  ;;  %v16563_v1 = vor.u32 %v19954_v56, %v16560_v16 }
 0x214   :  { %v20322_v5 = vld [vmem:[%s30893_s1 + $0x299c] sm:$0xf0]  ;;  %v17712_v59 = vld [vmem:[%s30893_s1 + $0x27a0] sm:$0xf0] }
 0x215   :  { %v16814_v13 = vld [vmem:[%s30893_s1 + $0x2020] sm:$0xf]  ;;  %v17967_v10 = vor.u32 %v20322_v5, %v17966_v39  ;;  %10270 = vmatpush.bf16.msra.mxu0 %v13107_v7  ;;  %10233 = vmatpush.bf16.msra.mxu3 %v16943_v8  ;;  %v19250_v33 = vld [vmem:[%s30893_s1 + $0x824] sm:$0xf]  ;;  %v9990_v39 = vadd.f32 %v9989_v62, %v9977_v52  ;;  %v12723_v5 = vor.u32 %v18994_v46, %v12720_v49  ;;  %v9978_v8 = vpop.f32.mrf.mxu2 }
 0x216   :  { %v20034_v9 = vld [vmem:[%s30893_s1 + $0x209c] sm:$0xf0]  ;;  %v13744_v2 = vld [vmem:[%s30893_s1 + $0x8a0] sm:$0xf0]  ;;  %v17715_v47 = vor.u32 %v20242_v58, %v17712_v59  ;;  %v23660_v59 = vpop.f32.mrf.mxu0 }
 0x217   :  { %v17838_v12 = vld [vmem:[%s30893_s1 + $0x2820] sm:$0xf]  ;;  %v16815_v26 = vor.u32 %v20034_v9, %v16814_v13  ;;  %10246 = vmatpush.bf16.msra.mxu1 %v17967_v10  ;;  %10283 = vmatpush.bf16.msrb.mxu2 %v14131_v11  ;;  %v19666_v38 = vld [vmem:[%s30893_s1 + $0x1524] sm:$0xf]  ;;  %v13747_v41 = vor.u32 %v19250_v33, %v13744_v2  ;;  %v9991_v28 = vpop.f32.mrf.mxu3 }
 0x218   :  { %v20290_v14 = vld [vmem:[%s30893_s1 + $0x289c] sm:$0xf0]  ;;  %v15408_v37 = vld [vmem:[%s30893_s1 + $0x15a0] sm:$0xf0]  ;;  %12392 = vrot.lane.b32.xlu2 %v9990_v39, %s20576_s0  ;;  %v19235_v28 = vld [vmem:[%s30893_s1 + $0x7a4] sm:$0xf0] }
 0x219   :  { %v17839_v29 = vor.u32 %v20290_v14, %v17838_v12  ;;  %10271 = vmatpush.bf16.msra.mxu0 %v12979_v21  ;;  %10234 = vmatpush.bf16.msra.mxu3 %v16815_v26  ;;  %v19922_v61 = vld [vmem:[%s30893_s1 + $0x1d24] sm:$0xf]  ;;  %v15411_v9 = vor.u32 %v19666_v38, %v15408_v37  ;;  %v10004_v38 = vpop.f32.mrf.mxu1 }
 0x21a   :  { %v16432_v7 = vld [vmem:[%s30893_s1 + $0x1da0] sm:$0xf0] }
 0x21b   :  { %10247 = vmatpush.bf16.msra.mxu1 %v17839_v29  ;;  %10284 = vmatpush.bf16.msrb.mxu2 %v14003_v32  ;;  %v20498_v60 = vld [vmem:[%s30893_s1 + $0x2f24] sm:$0xf]  ;;  %v16435_v12 = vor.u32 %v19922_v61, %v16432_v7 }
 0x21c   :  { %10235 = vmatmul.bf16.vlgmr.msra.gmra.mxu3 %v21073_v30  ;;  %v18736_v13 = vld [vmem:[%s30893_s1 + $0x2fa0] sm:$0xf0] }
 0x21d   :  { %10292 = vmatpush.bf16.msrb.mxu3 %v15667_v34  ;;  %10272 = vmatpush.bf16.msra.mxu0 %v12851_v50  ;;  %v20210_v10 = vld [vmem:[%s30893_s1 + $0x2624] sm:$0xf]  ;;  %v18739_v17 = vor.u32 %v20498_v60, %v18736_v13 }
 0x21e   :  { %10248 = vmatmul.bf16.vlgmr.msra.gmra.mxu1 %v21084_v35  ;;  %v17584_v11 = vld [vmem:[%s30893_s1 + $0x26a0] sm:$0xf0] }
 0x21f   :  { %10305 = vmatpush.bf16.msrb.mxu1 %v16691_v36  ;;  %10285 = vmatpush.bf16.msrb.mxu2 %v13875_v53  ;;  %v19634_v14 = vld [vmem:[%s30893_s1 + $0x1424] sm:$0xf]  ;;  %v17587_v20 = vor.u32 %v20210_v10, %v17584_v11  ;;  %v23674_v37 = vpop.f32.mrf.mxu3 }
 0x220   :  { %v15280_v15 = vld [vmem:[%s30893_s1 + $0x14a0] sm:$0xf0]  ;;  %12381 = vrot.lane.b32.xlu2 %v9990_v39, %s20575_s19  ;;  %s20580_s19 = smov 42  }
 0x221   :  { %10293 = vmatpush.bf16.msrb.mxu3 %v15539_v63  ;;  %10273 = vmatpush.bf16.msra.mxu0 %v12723_v5  ;;  %v19890_v18 = vld [vmem:[%s30893_s1 + $0x1c24] sm:$0xf]  ;;  %v15283_v26 = vor.u32 %v19634_v14, %v15280_v15 }
 0x222   :  { %v16304_v19 = vld [vmem:[%s30893_s1 + $0x1ca0] sm:$0xf0] }
 0x223   :  { %10306 = vmatpush.bf16.msrb.mxu1 %v16563_v1  ;;  %v20466_v21 = vld [vmem:[%s30893_s1 + $0x2e24] sm:$0xf]  ;;  %10286 = vmatpush.bf16.msrb.mxu2 %v13747_v41  ;;  %v16307_v27 = vor.u32 %v19890_v18, %v16304_v19 }
 0x224   :  { %v18608_v22 = vld [vmem:[%s30893_s1 + $0x2ea0] sm:$0xf0]  ;;  %10274 = vmatmul.bf16.vlgmr.msra.gmra.mxu0 %v20870_v55 }
 0x225   :  { %10318 = vmatpush.bf16.msrb.mxu0 %v17715_v47  ;;  %v20178_v25 = vld [vmem:[%s30893_s1 + $0x2524] sm:$0xf]  ;;  %10294 = vmatpush.bf16.msrb.mxu3 %v15411_v9  ;;  %v18611_v29 = vor.u32 %v20466_v21, %v18608_v22 }
 0x226   :  { %v17456_v23 = vld [vmem:[%s30893_s1 + $0x25a0] sm:$0xf0]  ;;  %10287 = vmatmul.bf16.vlgmr.msrb.gmra.mxu2 %v20894_v4 }
 0x227   :  { %10307 = vmatpush.bf16.msrb.mxu1 %v16435_v12  ;;  %v19602_v48 = vld [vmem:[%s30893_s1 + $0x1324] sm:$0xf]  ;;  %10331 = vmatpush.bf16.msra.mxu2 %v18739_v17  ;;  %v17459_v40 = vor.u32 %v20178_v25, %v17456_v23  ;;  %v10030_v25 = vpop.f32.mrf.mxu0  ;;  %v23718_v23 = vpop.f32.mrf.mxu2 }
 0x228   :  { %v15152_v32 = vld [vmem:[%s30893_s1 + $0x13a0] sm:$0xf0] }
 0x229   :  { %v19858_v34 = vld [vmem:[%s30893_s1 + $0x1b24] sm:$0xf]  ;;  %10319 = vmatpush.bf16.msrb.mxu0 %v17587_v20  ;;  %10295 = vmatpush.bf16.msrb.mxu3 %v15283_v26  ;;  %v15155_v56 = vor.u32 %v19602_v48, %v15152_v32 }
 0x22a   :  { %v16176_v36 = vld [vmem:[%s30893_s1 + $0x1ba0] sm:$0xf0] }
 0x22b   :  { %v20434_v42 = vld [vmem:[%s30893_s1 + $0x2d24] sm:$0xf]  ;;  %10308 = vmatpush.bf16.msrb.mxu1 %v16307_v27  ;;  %v16179_v16 = vor.u32 %v19858_v34, %v16176_v36  ;;  %10332 = vmatpush.bf16.msra.mxu2 %v18611_v29  ;;  %v13622_v27 = vld [vmem:[%s30893_s1 + $0x728] sm:$0xf] }
 0x22c   :  { %v18480_v43 = vld [vmem:[%s30893_s1 + $0x2da0] sm:$0xf0] }
 0x22d   :  { %v20146_v50 = vld [vmem:[%s30893_s1 + $0x2424] sm:$0xf]  ;;  %v18483_v49 = vor.u32 %v20434_v42, %v18480_v43  ;;  %10320 = vmatpush.bf16.msrb.mxu0 %v17459_v40  ;;  %10296 = vmatpush.bf16.msrb.mxu3 %v15155_v56  ;;  %v10017_v42 = vpop.f32.mrf.mxu3  ;;  %v19491_v56 = vld [vmem:[%s30893_s1 + $0xfa4] sm:$0xf0] }
 0x22e   :  { %v17328_v44 = vld [vmem:[%s30893_s1 + $0x24a0] sm:$0xf0]  ;;  %v19395_v42 = vld [vmem:[%s30893_s1 + $0xca4] sm:$0xf0] }
 0x22f   :  { %v19570_v46 = vld [vmem:[%s30893_s1 + $0x1224] sm:$0xf]  ;;  %v17331_v62 = vor.u32 %v20146_v50, %v17328_v44  ;;  %10309 = vmatpush.bf16.msrb.mxu1 %v16179_v16  ;;  %10333 = vmatpush.bf16.msra.mxu2 %v18483_v49  ;;  %v13623_v50 = vor.u32 %v19235_v28, %v13622_v27  ;;  %v14646_v44 = vld [vmem:[%s30893_s1 + $0xf28] sm:$0xf] }
 0x230   :  { %v15024_v52 = vld [vmem:[%s30893_s1 + $0x12a0] sm:$0xf0]  ;;  %v19139_v27 = vld [vmem:[%s30893_s1 + $0x4a4] sm:$0xf0] }
 0x231   :  { %v19826_v53 = vld [vmem:[%s30893_s1 + $0x1a24] sm:$0xf]  ;;  %v15027_v39 = vor.u32 %v19570_v46, %v15024_v52  ;;  %10321 = vmatpush.bf16.msrb.mxu0 %v17331_v62 }
 0x232   :  { %v16048_v58 = vld [vmem:[%s30893_s1 + $0x1aa0] sm:$0xf0] }
 0x233   :  { %v20402_v63 = vld [vmem:[%s30893_s1 + $0x2c24] sm:$0xf]  ;;  %v16051_v5 = vor.u32 %v19826_v53, %v16048_v58  ;;  %10297 = vmatpush.bf16.msrb.mxu3 %v15027_v39  ;;  %v13494_v53 = vld [vmem:[%s30893_s1 + $0x628] sm:$0xf] }
 0x234   :  { %v18352_v1 = vld [vmem:[%s30893_s1 + $0x2ca0] sm:$0xf0]  ;;  %v19203_v58 = vld [vmem:[%s30893_s1 + $0x6a4] sm:$0xf0] }
 0x235   :  { %v20114_v33 = vld [vmem:[%s30893_s1 + $0x2324] sm:$0xf]  ;;  %v18355_v7 = vor.u32 %v20402_v63, %v18352_v1  ;;  %10310 = vmatpush.bf16.msrb.mxu1 %v16051_v5  ;;  %v14647_v1 = vor.u32 %v19491_v56, %v14646_v44  ;;  %v13495_v39 = vor.u32 %v19203_v58, %v13494_v53  ;;  %v14518_v5 = vld [vmem:[%s30893_s1 + $0xe28] sm:$0xf] }
 0x236   :  { %v17200_v2 = vld [vmem:[%s30893_s1 + $0x23a0] sm:$0xf0]  ;;  %v13110_v44 = vld [vmem:[%s30893_s1 + $0x328] sm:$0xf] }
 0x237   :  { %v19538_v61 = vld [vmem:[%s30893_s1 + $0x1124] sm:$0xf]  ;;  %v17203_v13 = vor.u32 %v20114_v33, %v17200_v2  ;;  %10334 = vmatpush.bf16.msra.mxu2 %v18355_v7  ;;  %v15670_v33 = vld [vmem:[%s30893_s1 + $0x1728] sm:$0xf] }
 0x238   :  { %v14896_v8 = vld [vmem:[%s30893_s1 + $0x11a0] sm:$0xf0]  ;;  %v19747_v2 = vld [vmem:[%s30893_s1 + $0x17a4] sm:$0xf0] }
 0x239   :  { %v19794_v47 = vld [vmem:[%s30893_s1 + $0x1924] sm:$0xf]  ;;  %v14899_v12 = vor.u32 %v19538_v61, %v14896_v8  ;;  %10322 = vmatpush.bf16.msrb.mxu0 %v17203_v13  ;;  %v19459_v61 = vld [vmem:[%s30893_s1 + $0xea4] sm:$0xf0] }
 0x23a   :  { %v15920_v60 = vld [vmem:[%s30893_s1 + $0x19a0] sm:$0xf0]  ;;  %v19171_v13 = vld [vmem:[%s30893_s1 + $0x5a4] sm:$0xf0] }
 0x23b   :  { %v20370_v41 = vld [vmem:[%s30893_s1 + $0x2b24] sm:$0xf]  ;;  %v15923_v14 = vor.u32 %v19794_v47, %v15920_v60  ;;  %10298 = vmatpush.bf16.msrb.mxu3 %v14899_v12  ;;  %v13366_v60 = vld [vmem:[%s30893_s1 + $0x528] sm:$0xf] }
 0x23c   :  { %v18224_v10 = vld [vmem:[%s30893_s1 + $0x2ba0] sm:$0xf0]  ;;  %v20003_v12 = vld [vmem:[%s30893_s1 + $0x1fa4] sm:$0xf0] }
 0x23d   :  { %v20082_v11 = vld [vmem:[%s30893_s1 + $0x2224] sm:$0xf]  ;;  %v18227_v19 = vor.u32 %v20370_v41, %v18224_v10  ;;  %10311 = vmatpush.bf16.msrb.mxu1 %v15923_v14  ;;  %v23786_v41 = vpop.f32.mrf.mxu0  ;;  %v10043_v10 = vpop.f32.mrf.mxu2  ;;  %v14519_v14 = vor.u32 %v19459_v61, %v14518_v5  ;;  %v19107_v56 = vld [vmem:[%s30893_s1 + $0x3a4] sm:$0xf0] }
 0x23e   :  { %v17072_v9 = vld [vmem:[%s30893_s1 + $0x22a0] sm:$0xf0]  ;;  %v15286_v53 = vld [vmem:[%s30893_s1 + $0x1428] sm:$0xf]  ;;  %v10067_v10 = vpop.f32.mrf.mxu3 }
 0x23f   :  { %v19506_v17 = vld [vmem:[%s30893_s1 + $0x1024] sm:$0xf]  ;;  %v17075_v26 = vor.u32 %v20082_v11, %v17072_v9  ;;  %10335 = vmatpush.bf16.msra.mxu2 %v18227_v19  ;;  %v15671_v11 = vor.u32 %v19747_v2, %v15670_v33  ;;  %v16694_v9 = vld [vmem:[%s30893_s1 + $0x1f28] sm:$0xf]  ;;  %v13367_v19 = vor.u32 %v19171_v13, %v13366_v60 }
 0x240   :  { %v14768_v15 = vld [vmem:[%s30893_s1 + $0x10a0] sm:$0xf0]  ;;  %v16695_v25 = vor.u32 %v20003_v12, %v16694_v9  ;;  %v19651_v58 = vld [vmem:[%s30893_s1 + $0x14a4] sm:$0xf0] }
 0x241   :  { %v19762_v18 = vld [vmem:[%s30893_s1 + $0x1824] sm:$0xf]  ;;  %v14771_v36 = vor.u32 %v19506_v17, %v14768_v15  ;;  %10323 = vmatpush.bf16.msrb.mxu0 %v17075_v26  ;;  %v15542_v17 = vld [vmem:[%s30893_s1 + $0x1628] sm:$0xf]  ;;  %v15287_v5 = vor.u32 %v19651_v58, %v15286_v53 }
 0x242   :  { %v15792_v20 = vld [vmem:[%s30893_s1 + $0x18a0] sm:$0xf0]  ;;  %v19715_v15 = vld [vmem:[%s30893_s1 + $0x16a4] sm:$0xf0] }
 0x243   :  { %v20338_v21 = vld [vmem:[%s30893_s1 + $0x2a24] sm:$0xf]  ;;  %v15795_v40 = vor.u32 %v19762_v18, %v15792_v20  ;;  %10299 = vmatpush.bf16.msrb.mxu3 %v14771_v36  ;;  %v14390_v20 = vld [vmem:[%s30893_s1 + $0xd28] sm:$0xf]  ;;  %v15543_v28 = vor.u32 %v19715_v15, %v15542_v17 }
 0x244   :  { %v18096_v22 = vld [vmem:[%s30893_s1 + $0x2aa0] sm:$0xf0]  ;;  %v13238_v26 = vld [vmem:[%s30893_s1 + $0x428] sm:$0xf] }
 0x245   :  { %v20050_v48 = vld [vmem:[%s30893_s1 + $0x2124] sm:$0xf]  ;;  %v18099_v43 = vor.u32 %v20338_v21, %v18096_v22  ;;  %10312 = vmatpush.bf16.msrb.mxu1 %v15795_v40  ;;  %v19427_v21 = vld [vmem:[%s30893_s1 + $0xda4] sm:$0xf0]  ;;  %v10016_v22 = vadd.f32 %v23674_v37, %v23619_v24  ;;  %v10054_v37 = vpop.f32.mrf.mxu1  ;;  %v13239_v36 = vor.u32 %v19139_v27, %v13238_v26 }
 0x246   :  { %v16944_v29 = vld [vmem:[%s30893_s1 + $0x21a0] sm:$0xf0]  ;;  %10300 = vmatmul.bf16.vlgmr.msrb.gmra.mxu3 %v20859_v51  ;;  %v19971_v24 = vld [vmem:[%s30893_s1 + $0x1ea4] sm:$0xf0] }
 0x247   :  { %v20530_v32 = vld [vmem:[%s30893_s1 + $0x3024] sm:$0xf]  ;;  %v16947_v46 = vor.u32 %v20050_v48, %v16944_v29  ;;  %10336 = vmatpush.bf16.msra.mxu2 %v18099_v43  ;;  %v16566_v48 = vld [vmem:[%s30893_s1 + $0x1e28] sm:$0xf]  ;;  %v14391_v29 = vor.u32 %v19427_v21, %v14390_v20  ;;  %v10029_v43 = vadd.f32 %v23660_v59, %v10016_v22 }
 0x248   :  { %v18864_v34 = vld [vmem:[%s30893_s1 + $0x30a0] sm:$0xf0]  ;;  %10313 = vmatmul.bf16.vlgmr.msrb.gmra.mxu1 %v20872_v57  ;;  %v14262_v40 = vld [vmem:[%s30893_s1 + $0xc28] sm:$0xf] }
 0x249   :  { %v20306_v16 = vld [vmem:[%s30893_s1 + $0x2924] sm:$0xf]  ;;  %v18867_v49 = vor.u32 %v20530_v32, %v18864_v34  ;;  %10357 = vmatpush.bf16.msra.mxu1 %v13623_v50  ;;  %10324 = vmatpush.bf16.msrb.mxu0 %v16947_v46  ;;  %v15414_v32 = vld [vmem:[%s30893_s1 + $0x1528] sm:$0xf]  ;;  %v16567_v50 = vor.u32 %v19971_v24, %v16566_v48  ;;  %v10042_v33 = vadd.f32 %v23718_v23, %v10029_v43 }
 0x24a   :  { %v17968_v52 = vld [vmem:[%s30893_s1 + $0x29a0] sm:$0xf0]  ;;  %v19683_v34 = vld [vmem:[%s30893_s1 + $0x15a4] sm:$0xf0] }
 0x24b   :  { %v20018_v62 = vld [vmem:[%s30893_s1 + $0x2024] sm:$0xf]  ;;  %v17971_v38 = vor.u32 %v20306_v16, %v17968_v52  ;;  %10351 = vmatpush.bf16.msra.mxu3 %v18867_v49  ;;  %v10082_v16 = vpop.f32.mrf.mxu0  ;;  %v15415_v46 = vor.u32 %v19683_v34, %v15414_v32  ;;  %v16438_v49 = vld [vmem:[%s30893_s1 + $0x1d28] sm:$0xf]  ;;  %v14263_v52 = vor.u32 %v19395_v42, %v14262_v40 }
 0x24c   :  { %v16816_v63 = vld [vmem:[%s30893_s1 + $0x20a0] sm:$0xf0]  ;;  %v19939_v59 = vld [vmem:[%s30893_s1 + $0x1da4] sm:$0xf0]  ;;  %v23940_v16 = vpop.f32.mrf.mxu2 }
 0x24d   :  { %v20274_v7 = vld [vmem:[%s30893_s1 + $0x2824] sm:$0xf]  ;;  %v16819_v8 = vor.u32 %v20018_v62, %v16816_v63  ;;  %10337 = vmatpush.bf16.msra.mxu2 %v17971_v38  ;;  %10358 = vmatpush.bf16.msra.mxu1 %v13495_v39  ;;  %v13111_v62 = vor.u32 %v19107_v56, %v13110_v44  ;;  %v14134_v63 = vld [vmem:[%s30893_s1 + $0xb28] sm:$0xf]  ;;  %v16439_v2 = vor.u32 %v19939_v59, %v16438_v49  ;;  %v10056_v13 = vpop.f32.mrf.mxu1 }
 0x24e   :  { %v17840_v47 = vld [vmem:[%s30893_s1 + $0x28a0] sm:$0xf0]  ;;  %v12982_v38 = vld [vmem:[%s30893_s1 + $0x228] sm:$0xf] }
 0x24f   :  { %10370 = vmatpush.bf16.msrb.mxu3 %v14647_v1  ;;  %v17843_v18 = vor.u32 %v20274_v7, %v17840_v47  ;;  %10325 = vmatpush.bf16.msrb.mxu0 %v16819_v8  ;;  %v19363_v1 = vld [vmem:[%s30893_s1 + $0xba4] sm:$0xf0]  ;;  %v10055_v7 = vadd.f32 %v10054_v37, %v10042_v33 }
 0x250   :  { %v19075_v39 = vld [vmem:[%s30893_s1 + $0x2a4] sm:$0xf0]  ;;  %v14135_v8 = vor.u32 %v19363_v1, %v14134_v63 }
 0x251   :  { %10338 = vmatpush.bf16.msra.mxu2 %v17843_v18  ;;  %10359 = vmatpush.bf16.msra.mxu1 %v13367_v19  ;;  %v16310_v61 = vld [vmem:[%s30893_s1 + $0x1c28] sm:$0xf] }
 0x252   :  { %10326 = vmatmul.bf16.vlgmr.msrb.gmra.mxu0 %v21073_v30  ;;  %v19907_v23 = vld [vmem:[%s30893_s1 + $0x1ca4] sm:$0xf0] }
 0x253   :  { %10383 = vmatpush.bf16.msra.mxu0 %v15671_v11  ;;  %10371 = vmatpush.bf16.msrb.mxu3 %v14519_v14  ;;  %v15158_v47 = vld [vmem:[%s30893_s1 + $0x1328] sm:$0xf]  ;;  %v12983_v11 = vor.u32 %v19075_v39, %v12982_v38  ;;  %v10068_v14 = vadd.f32 %v10067_v10, %v10055_v7  ;;  %v16311_v17 = vor.u32 %v19907_v23, %v16310_v61  ;;  %v23900_v22 = vpop.f32.mrf.mxu0 }
 0x254   :  { %10339 = vmatmul.bf16.vlgmr.msra.gmra.mxu2 %v21084_v35  ;;  %v19619_v60 = vld [vmem:[%s30893_s1 + $0x13a4] sm:$0xf0] }
 0x255   :  { %10396 = vmatpush.bf16.msrb.mxu2 %v16695_v25  ;;  %10360 = vmatpush.bf16.msra.mxu1 %v13239_v36  ;;  %v14006_v9 = vld [vmem:[%s30893_s1 + $0xa28] sm:$0xf]  ;;  %v15159_v19 = vor.u32 %v19619_v60, %v15158_v47  ;;  %v10081_v25 = vadd.f32 %v23786_v41, %v10068_v14 }
 0x256   :  { %v19331_v12 = vld [vmem:[%s30893_s1 + $0xaa4] sm:$0xf0]  ;;  %18965 = vmatmul.msk.bf16.vlgmr.msra.gmra.mxu3 %vm9443_vm0, %v20982_v45 }
 0x257   :  { %10384 = vmatpush.bf16.msra.mxu0 %v15543_v28  ;;  %10372 = vmatpush.bf16.msrb.mxu3 %v14391_v29  ;;  %v12854_v15 = vld [vmem:[%s30893_s1 + $0x128] sm:$0xf]  ;;  %v14007_v26 = vor.u32 %v19331_v12, %v14006_v9 }
 0x258   :  { %v19043_v18 = vld [vmem:[%s30893_s1 + $0x1a4] sm:$0xf0]  ;;  %12394 = vrot.lane.b32.xlu2 %v10081_v25, %s20576_s0  ;;  %v10095_v25 = vpop.f32.mrf.mxu2 }
 0x259   :  { %10397 = vmatpush.bf16.msrb.mxu2 %v16567_v50  ;;  %10361 = vmatpush.bf16.msra.mxu1 %v13111_v62  ;;  %v16182_v20 = vld [vmem:[%s30893_s1 + $0x1b28] sm:$0xf]  ;;  %v12855_v48 = vor.u32 %v19043_v18, %v12854_v15 }
 0x25a   :  { %v19875_v21 = vld [vmem:[%s30893_s1 + $0x1ba4] sm:$0xf0] }
 0x25b   :  { %10385 = vmatpush.bf16.msra.mxu0 %v15415_v46  ;;  %10373 = vmatpush.bf16.msrb.mxu3 %v14263_v52  ;;  %v15030_v27 = vld [vmem:[%s30893_s1 + $0x1228] sm:$0xf]  ;;  %v16183_v37 = vor.u32 %v19875_v21, %v16182_v20  ;;  %v10069_v52 = vpop.f32.mrf.mxu3  ;;  %v19219_v20 = vld [vmem:[%s30893_s1 + $0x72c] sm:$0xf] }
 0x25c   :  { %v19587_v28 = vld [vmem:[%s30893_s1 + $0x12a4] sm:$0xf0]  ;;  %v13624_v21 = vld [vmem:[%s30893_s1 + $0x7a8] sm:$0xf0] }
 0x25d   :  { %10398 = vmatpush.bf16.msrb.mxu2 %v16439_v2  ;;  %10362 = vmatpush.bf16.msra.mxu1 %v12983_v11  ;;  %v13878_v24 = vld [vmem:[%s30893_s1 + $0x928] sm:$0xf]  ;;  %v15031_v36 = vor.u32 %v19587_v28, %v15030_v27  ;;  %v19475_v27 = vld [vmem:[%s30893_s1 + $0xf2c] sm:$0xf] }
 0x25e   :  { %v19299_v41 = vld [vmem:[%s30893_s1 + $0x9a4] sm:$0xf0]  ;;  %v14648_v28 = vld [vmem:[%s30893_s1 + $0xfa8] sm:$0xf0] }
 0x25f   :  { %10386 = vmatpush.bf16.msra.mxu0 %v15287_v5  ;;  %10374 = vmatpush.bf16.msrb.mxu3 %v14135_v8  ;;  %v12726_v29 = vld [vmem:[%s30893_s1 + $0x28] sm:$0xf]  ;;  %v13879_v50 = vor.u32 %v19299_v41, %v13878_v24  ;;  %v10108_v5 = vpop.f32.mrf.mxu0 }
 0x260   :  { %v19011_v32 = vld [vmem:[%s30893_s1 + $0xa4] sm:$0xf0] }
 0x261   :  { %10399 = vmatpush.bf16.msrb.mxu2 %v16311_v17  ;;  %v16054_v34 = vld [vmem:[%s30893_s1 + $0x1a28] sm:$0xf]  ;;  %10363 = vmatpush.bf16.msra.mxu1 %v12855_v48  ;;  %v12727_v46 = vor.u32 %v19011_v32, %v12726_v29  ;;  %v13627_v29 = vor.u32 %v19219_v20, %v13624_v21 }
 0x262   :  { %v19843_v40 = vld [vmem:[%s30893_s1 + $0x1aa4] sm:$0xf0] }
 0x263   :  { %10387 = vmatpush.bf16.msra.mxu0 %v15159_v19  ;;  %v17718_v42 = vld [vmem:[%s30893_s1 + $0x2728] sm:$0xf]  ;;  %10375 = vmatpush.bf16.msrb.mxu3 %v14007_v26  ;;  %v16055_v53 = vor.u32 %v19843_v40, %v16054_v34  ;;  %v19187_v40 = vld [vmem:[%s30893_s1 + $0x62c] sm:$0xf] }
 0x264   :  { %v20259_v43 = vld [vmem:[%s30893_s1 + $0x27a4] sm:$0xf0] }
 0x265   :  { %v14902_v44 = vld [vmem:[%s30893_s1 + $0x1128] sm:$0xf]  ;;  %10400 = vmatpush.bf16.msrb.mxu2 %v16183_v37  ;;  %v17719_v58 = vor.u32 %v20259_v43, %v17718_v42  ;;  %10364 = vmatpush.bf16.msra.mxu1 %v12727_v46  ;;  %v13496_v42 = vld [vmem:[%s30893_s1 + $0x6a8] sm:$0xf0]  ;;  %v10119_v43 = vpop.f32.mrf.mxu1 }
 0x266   :  { %v19555_v56 = vld [vmem:[%s30893_s1 + $0x11a4] sm:$0xf0]  ;;  %v13499_v52 = vor.u32 %v19187_v40, %v13496_v42 }
 0x267   :  { %v13750_v49 = vld [vmem:[%s30893_s1 + $0x828] sm:$0xf]  ;;  %10388 = vmatpush.bf16.msra.mxu0 %v15031_v36  ;;  %v14903_v33 = vor.u32 %v19555_v56, %v14902_v44  ;;  %10376 = vmatpush.bf16.msrb.mxu3 %v13879_v50  ;;  %v14651_v36 = vor.u32 %v19475_v27, %v14648_v28  ;;  %v19443_v44 = vld [vmem:[%s30893_s1 + $0xe2c] sm:$0xf]  ;;  %v10158_v25 = vpop.f32.mrf.mxu0 }
 0x268   :  { %v19267_v59 = vld [vmem:[%s30893_s1 + $0x8a4] sm:$0xf0]  ;;  %10365 = vmatmul.bf16.vlgmr.msra.gmra.mxu1 %v20870_v55  ;;  %v14520_v56 = vld [vmem:[%s30893_s1 + $0xea8] sm:$0xf0] }
 0x269   :  { %v18742_v62 = vld [vmem:[%s30893_s1 + $0x2f28] sm:$0xf]  ;;  %v13751_v61 = vor.u32 %v19267_v59, %v13750_v49  ;;  %10401 = vmatpush.bf16.msrb.mxu2 %v16055_v53  ;;  %10409 = vmatpush.bf16.msrb.mxu1 %v17719_v58  ;;  %v19091_v28 = vld [vmem:[%s30893_s1 + $0x32c] sm:$0xf] }
 0x26a   :  { %v20515_v63 = vld [vmem:[%s30893_s1 + $0x2fa4] sm:$0xf0] }
 0x26b   :  { %v15926_v1 = vld [vmem:[%s30893_s1 + $0x1928] sm:$0xf]  ;;  %v18743_v8 = vor.u32 %v20515_v63, %v18742_v62  ;;  %10389 = vmatpush.bf16.msra.mxu0 %v14903_v33  ;;  %10377 = vmatpush.bf16.msrb.mxu3 %v13751_v61  ;;  %v12378_v62 = vpop.permute.xlu1 %12377  ;;  %v14523_v63 = vor.u32 %v19443_v44, %v14520_v56  ;;  %v13368_v33 = vld [vmem:[%s30893_s1 + $0x5a8] sm:$0xf0] }
 0x26c   :  { %v19811_v2 = vld [vmem:[%s30893_s1 + $0x19a4] sm:$0xf0] }
 0x26d   :  { %v17590_v38 = vld [vmem:[%s30893_s1 + $0x2628] sm:$0xf]  ;;  %v15927_v13 = vor.u32 %v19811_v2, %v15926_v1  ;;  %v19155_v1 = vld [vmem:[%s30893_s1 + $0x52c] sm:$0xf] }
 0x26e   :  { %v20227_v39 = vld [vmem:[%s30893_s1 + $0x26a4] sm:$0xf0]  ;;  %10378 = vmatmul.bf16.vlgmr.msrb.gmra.mxu3 %v20894_v4 }
 0x26f   :  { %v14774_v23 = vld [vmem:[%s30893_s1 + $0x1028] sm:$0xf]  ;;  %v17591_v10 = vor.u32 %v20227_v39, %v17590_v38  ;;  %10422 = vmatpush.bf16.msra.mxu3 %v18743_v8  ;;  %10402 = vmatpush.bf16.msrb.mxu2 %v15927_v13  ;;  %v19411_v38 = vld [vmem:[%s30893_s1 + $0xd2c] sm:$0xf] }
 0x270   :  { %v19523_v7 = vld [vmem:[%s30893_s1 + $0x10a4] sm:$0xf0]  ;;  %v14392_v39 = vld [vmem:[%s30893_s1 + $0xda8] sm:$0xf0] }
 0x271   :  { %v18870_v47 = vld [vmem:[%s30893_s1 + $0x3028] sm:$0xf]  ;;  %v14775_v14 = vor.u32 %v19523_v7, %v14774_v23  ;;  %10410 = vmatpush.bf16.msrb.mxu1 %v17591_v10  ;;  %v13371_v7 = vor.u32 %v19155_v1, %v13368_v33  ;;  %v19123_v13 = vld [vmem:[%s30893_s1 + $0x42c] sm:$0xf] }
 0x272   :  { %v20547_v60 = vld [vmem:[%s30893_s1 + $0x30a4] sm:$0xf0]  ;;  %v13240_v10 = vld [vmem:[%s30893_s1 + $0x4a8] sm:$0xf0] }
 0x273   :  { %v18614_v11 = vld [vmem:[%s30893_s1 + $0x2e28] sm:$0xf]  ;;  %v18871_v19 = vor.u32 %v20547_v60, %v18870_v47  ;;  %10390 = vmatpush.bf16.msra.mxu0 %v14775_v14  ;;  %v14395_v60 = vor.u32 %v19411_v38, %v14392_v39  ;;  %v19379_v14 = vld [vmem:[%s30893_s1 + $0xc2c] sm:$0xf] }
 0x274   :  { %v20483_v9 = vld [vmem:[%s30893_s1 + $0x2ea4] sm:$0xf0] }
 0x275   :  { %v15798_v12 = vld [vmem:[%s30893_s1 + $0x1828] sm:$0xf]  ;;  %v18615_v26 = vor.u32 %v20483_v9, %v18614_v11  ;;  %v10107_v11 = vadd.f32 %v23900_v22, %v23940_v16  ;;  %v10121_v9 = vpop.f32.mrf.mxu1  ;;  %v13243_v16 = vor.u32 %v19123_v13, %v13240_v10  ;;  %v12856_v13 = vld [vmem:[%s30893_s1 + $0x1a8] sm:$0xf0] }
 0x276   :  { %v19779_v17 = vld [vmem:[%s30893_s1 + $0x18a4] sm:$0xf0]  ;;  %10391 = vmatmul.bf16.vlgmr.msra.gmra.mxu0 %v20859_v51  ;;  %v19283_v10 = vld [vmem:[%s30893_s1 + $0x92c] sm:$0xf] }
 0x277   :  { %v17462_v15 = vld [vmem:[%s30893_s1 + $0x2528] sm:$0xf]  ;;  %v15799_v48 = vor.u32 %v19779_v17, %v15798_v12  ;;  %10442 = vmatpush.bf16.msrb.mxu0 %v18871_v19  ;;  %10423 = vmatpush.bf16.msra.mxu3 %v18615_v26  ;;  %v14264_v17 = vld [vmem:[%s30893_s1 + $0xca8] sm:$0xf0]  ;;  %v24098_v26 = vpop.permute.xlu1 %12379 }
 0x278   :  { %v20195_v18 = vld [vmem:[%s30893_s1 + $0x25a4] sm:$0xf0]  ;;  %v14267_v27 = vor.u32 %v19379_v14, %v14264_v17  ;;  %v13880_v9 = vld [vmem:[%s30893_s1 + $0x9a8] sm:$0xf0] }
 0x279   :  { %v17463_v24 = vor.u32 %v20195_v18, %v17462_v15  ;;  %v18486_v41 = vld [vmem:[%s30893_s1 + $0x2d28] sm:$0xf]  ;;  %10403 = vmatpush.bf16.msrb.mxu2 %v15799_v48  ;;  %v10132_v15 = vpop.f32.mrf.mxu3  ;;  %v13112_v48 = vld [vmem:[%s30893_s1 + $0x3a8] sm:$0xf0] }
 0x27a   :  { %v20451_v37 = vld [vmem:[%s30893_s1 + $0x2da4] sm:$0xf0]  ;;  %v15544_v14 = vld [vmem:[%s30893_s1 + $0x16a8] sm:$0xf0] }
 0x27b   :  { %v17334_v32 = vld [vmem:[%s30893_s1 + $0x2428] sm:$0xf]  ;;  %v18487_v50 = vor.u32 %v20451_v37, %v18486_v41  ;;  %10411 = vmatpush.bf16.msrb.mxu1 %v17463_v24  ;;  %10461 = vmatpush.bf16.msra.mxu0 %v14651_v36  ;;  %v10120_v24 = vadd.f32 %v10119_v43, %v10107_v11  ;;  %v12384_v41 = vsel %vm12383_vm2, %v12378_v62, %v24098_v26  ;;  %v19315_v62 = vld [vmem:[%s30893_s1 + $0xa2c] sm:$0xf] }
 0x27c   :  { %v20163_v34 = vld [vmem:[%s30893_s1 + $0x24a4] sm:$0xf0]  ;;  %10404 = vmatmul.bf16.vlgmr.msrb.gmra.mxu2 %v20872_v57 }
 0x27d   :  { %v17335_v46 = vor.u32 %v20163_v34, %v17334_v32  ;;  %v18358_v49 = vld [vmem:[%s30893_s1 + $0x2c28] sm:$0xf]  ;;  %10448 = vmatpush.bf16.msra.mxu2 %v13627_v29  ;;  %10424 = vmatpush.bf16.msra.mxu3 %v18487_v50  ;;  %v19347_v29 = vld [vmem:[%s30893_s1 + $0xb2c] sm:$0xf]  ;;  %v24117_v34 = vmax.f32 %v12373_v6, %v12384_v41  ;;  %v10133_v43 = vadd.f32 %v10132_v15, %v10120_v24  ;;  %v10145_v6 = vpop.f32.mrf.mxu2 }
 0x27e   :  { %v20419_v59 = vld [vmem:[%s30893_s1 + $0x2ca4] sm:$0xf0]  ;;  %v14136_v32 = vld [vmem:[%s30893_s1 + $0xba8] sm:$0xf0]  ;;  %v13115_v50 = vor.u32 %v19091_v28, %v13112_v48 }
 0x27f   :  { %v17206_v53 = vld [vmem:[%s30893_s1 + $0x2328] sm:$0xf]  ;;  %v18359_v2 = vor.u32 %v20419_v59, %v18358_v49  ;;  %10412 = vmatpush.bf16.msrb.mxu1 %v17335_v46  ;;  %10462 = vmatpush.bf16.msra.mxu0 %v14523_v63  ;;  %v14139_v56 = vor.u32 %v19347_v29, %v14136_v32  ;;  %v12984_v46 = vld [vmem:[%s30893_s1 + $0x2a8] sm:$0xf0] }
 0x280   :  { %v20131_v58 = vld [vmem:[%s30893_s1 + $0x23a4] sm:$0xf0]  ;;  %v19731_v49 = vld [vmem:[%s30893_s1 + $0x172c] sm:$0xf]  ;;  %v12987_v39 = vor.u32 %v19059_v3, %v12984_v46 }
 0x281   :  { %v17207_v5 = vor.u32 %v20131_v58, %v17206_v53  ;;  %v18230_v61 = vld [vmem:[%s30893_s1 + $0x2b28] sm:$0xf]  ;;  %10449 = vmatpush.bf16.msra.mxu2 %v13499_v52  ;;  %10425 = vmatpush.bf16.msra.mxu3 %v18359_v2  ;;  %v15672_v59 = vld [vmem:[%s30893_s1 + $0x17a8] sm:$0xf0]  ;;  %v10146_v52 = vadd.f32 %v10145_v6, %v10133_v43  ;;  %v10171_v53 = vpop.f32.mrf.mxu1  ;;  %v10134_v2 = vpop.f32.mrf.mxu3 }
 0x282   :  { %v20387_v23 = vld [vmem:[%s30893_s1 + $0x2ba4] sm:$0xf0]  ;;  %v14008_v63 = vld [vmem:[%s30893_s1 + $0xaa8] sm:$0xf0] }
 0x283   :  { %v17078_v8 = vld [vmem:[%s30893_s1 + $0x2228] sm:$0xf]  ;;  %v18231_v12 = vor.u32 %v20387_v23, %v18230_v61  ;;  %10413 = vmatpush.bf16.msrb.mxu1 %v17207_v5  ;;  %10463 = vmatpush.bf16.msra.mxu0 %v14395_v60  ;;  %v10159_v38 = vadd.f32 %v10158_v25, %v10146_v52  ;;  %v15675_v5 = vor.u32 %v19731_v49, %v15672_v59  ;;  %v19987_v23 = vld [vmem:[%s30893_s1 + $0x1f2c] sm:$0xf] }
 0x284   :  { %v20099_v47 = vld [vmem:[%s30893_s1 + $0x22a4] sm:$0xf0]  ;;  %v19027_v60 = vld [vmem:[%s30893_s1 + $0x12c] sm:$0xf] }
 0x285   :  { %v17079_v18 = vor.u32 %v20099_v47, %v17078_v8  ;;  %v18102_v19 = vld [vmem:[%s30893_s1 + $0x2a28] sm:$0xf]  ;;  %10450 = vmatpush.bf16.msra.mxu2 %v13371_v7  ;;  %10426 = vmatpush.bf16.msra.mxu3 %v18231_v12  ;;  %v16696_v7 = vld [vmem:[%s30893_s1 + $0x1fa8] sm:$0xf0]  ;;  %v10160_v8 = vpop.f32.mrf.mxu0  ;;  %v14011_v47 = vor.u32 %v19315_v62, %v14008_v63  ;;  %v10172_v11 = vadd.f32 %v10171_v53, %v10159_v38  ;;  %v10147_v25 = vpop.f32.mrf.mxu2 }
 0x286   :  { %v20355_v22 = vld [vmem:[%s30893_s1 + $0x2aa4] sm:$0xf0]  ;;  %18966 = vmatmul.msk.bf16.vlgmr.msrb.gmra.mxu0 %vm9443_vm0, %v20982_v45  ;;  %v19699_v12 = vld [vmem:[%s30893_s1 + $0x162c] sm:$0xf]  ;;  %v16699_v15 = vor.u32 %v19987_v23, %v16696_v7 }
 0x287   :  { %v16950_v20 = vld [vmem:[%s30893_s1 + $0x2128] sm:$0xf]  ;;  %v18103_v37 = vor.u32 %v20355_v22, %v18102_v19  ;;  %10414 = vmatpush.bf16.msrb.mxu1 %v17079_v18  ;;  %10464 = vmatpush.bf16.msra.mxu0 %v14267_v27  ;;  %v12859_v18 = vor.u32 %v19027_v60, %v12856_v13  ;;  %v19955_v19 = vld [vmem:[%s30893_s1 + $0x1e2c] sm:$0xf] }
 0x288   :  { %v20067_v21 = vld [vmem:[%s30893_s1 + $0x21a4] sm:$0xf0]  ;;  %v16568_v22 = vld [vmem:[%s30893_s1 + $0x1ea8] sm:$0xf0]  ;;  %12396 = vrot.lane.b32.xlu2 %v10172_v11, %s20576_s0  ;;  %12407 = vrot.lane.b32.xlu0 %v10172_v11, %s20577_s14 }
 0x289   :  { %v16951_v36 = vor.u32 %v20067_v21, %v16950_v20  ;;  %v17974_v40 = vld [vmem:[%s30893_s1 + $0x2928] sm:$0xf]  ;;  %10451 = vmatpush.bf16.msra.mxu2 %v13243_v16  ;;  %10427 = vmatpush.bf16.msra.mxu3 %v18103_v37  ;;  %v18995_v16 = vld [vmem:[%s30893_s1 + $0x2c] sm:$0xf]  ;;  %v13883_v20 = vor.u32 %v19283_v10, %v13880_v9  ;;  %v15547_v21 = vor.u32 %v19699_v12, %v15544_v14  ;;  %v10173_v29 = vpop.f32.mrf.mxu1 }
 0x28a   :  { %v20323_v42 = vld [vmem:[%s30893_s1 + $0x29a4] sm:$0xf0]  ;;  %v12728_v27 = vld [vmem:[%s30893_s1 + $0xa8] sm:$0xf0] }
 0x28b   :  { %v16822_v44 = vld [vmem:[%s30893_s1 + $0x2028] sm:$0xf]  ;;  %v17975_v58 = vor.u32 %v20323_v42, %v17974_v40  ;;  %10415 = vmatpush.bf16.msrb.mxu1 %v16951_v36  ;;  %10465 = vmatpush.bf16.msra.mxu0 %v14139_v56  ;;  %v19251_v28 = vld [vmem:[%s30893_s1 + $0x82c] sm:$0xf]  ;;  %v16571_v42 = vor.u32 %v19955_v19, %v16568_v22  ;;  %v12731_v43 = vor.u32 %v18995_v16, %v12728_v27 }
 0x28c   :  { %v16823_v1 = vor.u32 %v20035_v31, %v16822_v44  ;;  %v17846_v33 = vld [vmem:[%s30893_s1 + $0x2828] sm:$0xf]  ;;  %v13752_v48 = vld [vmem:[%s30893_s1 + $0x8a8] sm:$0xf0] }
 0x28d   :  { %10452 = vmatpush.bf16.msra.mxu2 %v13115_v50  ;;  %v20291_v61 = vld [vmem:[%s30893_s1 + $0x28a4] sm:$0xf0]  ;;  %10428 = vmatpush.bf16.msra.mxu3 %v17975_v58  ;;  %v19667_v24 = vld [vmem:[%s30893_s1 + $0x152c] sm:$0xf]  ;;  %v13755_v50 = vor.u32 %v19251_v28, %v13752_v48  ;;  %v24314_v29 = vpop.f32.mrf.mxu0 }
 0x28e   :  { %v17847_v17 = vor.u32 %v20291_v61, %v17846_v33  ;;  %v15416_v41 = vld [vmem:[%s30893_s1 + $0x15a8] sm:$0xf0] }
 0x28f   :  { %10416 = vmatpush.bf16.msrb.mxu1 %v16823_v1  ;;  %10466 = vmatpush.bf16.msra.mxu0 %v14011_v47  ;;  %v20243_v37 = vld [vmem:[%s30893_s1 + $0x272c] sm:$0xf]  ;;  %v15419_v44 = vor.u32 %v19667_v24, %v15416_v41 }
 0x290   :  { %v17720_v32 = vld [vmem:[%s30893_s1 + $0x27a8] sm:$0xf0] }
 0x291   :  { %10453 = vmatpush.bf16.msra.mxu2 %v12987_v39  ;;  %10429 = vmatpush.bf16.msra.mxu3 %v17847_v17  ;;  %v20499_v36 = vld [vmem:[%s30893_s1 + $0x2f2c] sm:$0xf]  ;;  %v17723_v6 = vor.u32 %v20243_v37, %v17720_v32  ;;  %v24269_v47 = vpop.f32.mrf.mxu1 }
 0x292   :  { %10417 = vmatmul.bf16.vlgmr.msrb.gmra.mxu1 %v21073_v30  ;;  %v18744_v40 = vld [vmem:[%s30893_s1 + $0x2fa8] sm:$0xf0] }
 0x293   :  { %10474 = vmatpush.bf16.msra.mxu1 %v15675_v5  ;;  %10467 = vmatpush.bf16.msra.mxu0 %v13883_v20  ;;  %v19923_v31 = vld [vmem:[%s30893_s1 + $0x1d2c] sm:$0xf]  ;;  %v18747_v56 = vor.u32 %v20499_v36, %v18744_v40  ;;  %v24297_v20 = vpop.f32.mrf.mxu3 }
 0x294   :  { %v16440_v3 = vld [vmem:[%s30893_s1 + $0x1da8] sm:$0xf0]  ;;  %10430 = vmatmul.bf16.vlgmr.msra.gmra.mxu3 %v21084_v35 }
 0x295   :  { %10487 = vmatpush.bf16.msrb.mxu3 %v16699_v15  ;;  %10454 = vmatpush.bf16.msra.mxu2 %v12859_v18  ;;  %v19635_v46 = vld [vmem:[%s30893_s1 + $0x142c] sm:$0xf]  ;;  %v16443_v62 = vor.u32 %v19923_v31, %v16440_v3  ;;  %v24331_v3 = vpop.f32.mrf.mxu2 }
 0x296   :  { %v15288_v49 = vld [vmem:[%s30893_s1 + $0x14a8] sm:$0xf0] }
 0x297   :  { %10475 = vmatpush.bf16.msra.mxu1 %v15547_v21  ;;  %v20211_v59 = vld [vmem:[%s30893_s1 + $0x262c] sm:$0xf]  ;;  %10468 = vmatpush.bf16.msra.mxu0 %v13755_v50  ;;  %v15291_v63 = vor.u32 %v19635_v46, %v15288_v49 }
 0x298   :  { %v17592_v52 = vld [vmem:[%s30893_s1 + $0x26a8] sm:$0xf0] }
 0x299   :  { %v20467_v53 = vld [vmem:[%s30893_s1 + $0x2e2c] sm:$0xf]  ;;  %10488 = vmatpush.bf16.msrb.mxu3 %v16571_v42  ;;  %10455 = vmatpush.bf16.msra.mxu2 %v12731_v43  ;;  %v17595_v2 = vor.u32 %v20211_v59, %v17592_v52  ;;  %v10199_v42 = vpop.f32.mrf.mxu1 }
 0x29a   :  { %v18616_v58 = vld [vmem:[%s30893_s1 + $0x2ea8] sm:$0xf0]  ;;  %10469 = vmatmul.bf16.vlgmr.msra.gmra.mxu0 %v20894_v4  ;;  %v16702_v42 = vld [vmem:[%s30893_s1 + $0x1f30] sm:$0xf] }
 0x29b   :  { %10476 = vmatpush.bf16.msra.mxu1 %v15419_v44  ;;  %v19891_v1 = vld [vmem:[%s30893_s1 + $0x1c2c] sm:$0xf]  ;;  %10513 = vmatpush.bf16.msrb.mxu0 %v18747_v56  ;;  %v18619_v38 = vor.u32 %v20467_v53, %v18616_v58 }
 0x29c   :  { %v16312_v33 = vld [vmem:[%s30893_s1 + $0x1ca8] sm:$0xf0]  ;;  %10456 = vmatmul.bf16.vlgmr.msra.gmra.mxu2 %v20870_v55 }
 0x29d   :  { %10500 = vmatpush.bf16.msrb.mxu2 %v17723_v6  ;;  %v19603_v39 = vld [vmem:[%s30893_s1 + $0x132c] sm:$0xf]  ;;  %10489 = vmatpush.bf16.msrb.mxu3 %v16443_v62  ;;  %v16315_v60 = vor.u32 %v19891_v1, %v16312_v33 }
 0x29e   :  { %v15160_v5 = vld [vmem:[%s30893_s1 + $0x13a8] sm:$0xf0] }
 0x29f   :  { %v20179_v61 = vld [vmem:[%s30893_s1 + $0x252c] sm:$0xf]  ;;  %10477 = vmatpush.bf16.msra.mxu1 %v15291_v63  ;;  %v15163_v13 = vor.u32 %v19603_v39, %v15160_v5  ;;  %10514 = vmatpush.bf16.msrb.mxu0 %v18619_v38  ;;  %v13630_v5 = vld [vmem:[%s30893_s1 + $0x730] sm:$0xf] }
 0x2a0   :  { %v17464_v23 = vld [vmem:[%s30893_s1 + $0x25a8] sm:$0xf0] }
 0x2a1   :  { %v20435_v7 = vld [vmem:[%s30893_s1 + $0x2d2c] sm:$0xf]  ;;  %10501 = vmatpush.bf16.msrb.mxu2 %v17595_v2  ;;  %v17467_v9 = vor.u32 %v20179_v61, %v17464_v23  ;;  %10490 = vmatpush.bf16.msrb.mxu3 %v16315_v60  ;;  %v10186_v2 = vpop.f32.mrf.mxu3  ;;  %v19236_v61 = vld [vmem:[%s30893_s1 + $0x7ac] sm:$0xf0] }
 0x2a2   :  { %v18488_v8 = vld [vmem:[%s30893_s1 + $0x2da8] sm:$0xf0]  ;;  %v19492_v60 = vld [vmem:[%s30893_s1 + $0xfac] sm:$0xf0] }
 0x2a3   :  { %v19859_v10 = vld [vmem:[%s30893_s1 + $0x1b2c] sm:$0xf]  ;;  %v18491_v12 = vor.u32 %v20435_v7, %v18488_v8  ;;  %10478 = vmatpush.bf16.msra.mxu1 %v15163_v13  ;;  %v14654_v8 = vld [vmem:[%s30893_s1 + $0xf30] sm:$0xf] }
 0x2a4   :  { %v16184_v11 = vld [vmem:[%s30893_s1 + $0x1ba8] sm:$0xf0]  ;;  %v19972_v2 = vld [vmem:[%s30893_s1 + $0x1eac] sm:$0xf0] }
 0x2a5   :  { %v19571_v14 = vld [vmem:[%s30893_s1 + $0x122c] sm:$0xf]  ;;  %v16187_v16 = vor.u32 %v19859_v10, %v16184_v11  ;;  %10502 = vmatpush.bf16.msrb.mxu2 %v17467_v9  ;;  %10515 = vmatpush.bf16.msrb.mxu0 %v18491_v12  ;;  %v10225_v10 = vpop.f32.mrf.mxu0  ;;  %v24378_v11 = vpop.permute.xlu2 %12366 }
 0x2a6   :  { %v15032_v17 = vld [vmem:[%s30893_s1 + $0x12a8] sm:$0xf0]  ;;  %v19684_v10 = vld [vmem:[%s30893_s1 + $0x15ac] sm:$0xf0] }
 0x2a7   :  { %v20147_v15 = vld [vmem:[%s30893_s1 + $0x242c] sm:$0xf]  ;;  %v15035_v21 = vor.u32 %v19571_v14, %v15032_v17  ;;  %10491 = vmatpush.bf16.msrb.mxu3 %v16187_v16  ;;  %v19204_v16 = vld [vmem:[%s30893_s1 + $0x6ac] sm:$0xf0] }
 0x2a8   :  { %v17336_v18 = vld [vmem:[%s30893_s1 + $0x24a8] sm:$0xf0] }
 0x2a9   :  { %v20403_v19 = vld [vmem:[%s30893_s1 + $0x2c2c] sm:$0xf]  ;;  %v17339_v28 = vor.u32 %v20147_v15, %v17336_v18  ;;  %10479 = vmatpush.bf16.msra.mxu1 %v15035_v21  ;;  %v13631_v18 = vor.u32 %v19236_v61, %v13630_v5  ;;  %v14526_v21 = vld [vmem:[%s30893_s1 + $0xe30] sm:$0xf] }
 0x2aa   :  { %v18360_v22 = vld [vmem:[%s30893_s1 + $0x2ca8] sm:$0xf0] }
 0x2ab   :  { %v19827_v25 = vld [vmem:[%s30893_s1 + $0x1a2c] sm:$0xf]  ;;  %v18363_v48 = vor.u32 %v20403_v19, %v18360_v22  ;;  %10503 = vmatpush.bf16.msrb.mxu2 %v17339_v28  ;;  %v14655_v19 = vor.u32 %v19492_v60, %v14654_v8  ;;  %v13502_v22 = vld [vmem:[%s30893_s1 + $0x630] sm:$0xf] }
 0x2ac   :  { %v16056_v27 = vld [vmem:[%s30893_s1 + $0x1aa8] sm:$0xf0]  ;;  %v19396_v8 = vld [vmem:[%s30893_s1 + $0xcac] sm:$0xf0] }
 0x2ad   :  { %v19539_v24 = vld [vmem:[%s30893_s1 + $0x112c] sm:$0xf]  ;;  %v16059_v43 = vor.u32 %v19827_v25, %v16056_v27  ;;  %10516 = vmatpush.bf16.msrb.mxu0 %v18363_v48  ;;  %v10212_v25 = vpop.f32.mrf.mxu2  ;;  %v19460_v48 = vld [vmem:[%s30893_s1 + $0xeac] sm:$0xf0] }
 0x2ae   :  { %v14904_v41 = vld [vmem:[%s30893_s1 + $0x11a8] sm:$0xf0]  ;;  %v15422_v60 = vld [vmem:[%s30893_s1 + $0x1530] sm:$0xf] }
 0x2af   :  { %v20115_v37 = vld [vmem:[%s30893_s1 + $0x232c] sm:$0xf]  ;;  %v14907_v50 = vor.u32 %v19539_v24, %v14904_v41  ;;  %10492 = vmatpush.bf16.msrb.mxu3 %v16059_v43  ;;  %v20004_v43 = vld [vmem:[%s30893_s1 + $0x1fac] sm:$0xf0] }
 0x2b0   :  { %v17208_v32 = vld [vmem:[%s30893_s1 + $0x23a8] sm:$0xf0]  ;;  %v15294_v25 = vld [vmem:[%s30893_s1 + $0x1430] sm:$0xf] }
 0x2b1   :  { %v20371_v36 = vld [vmem:[%s30893_s1 + $0x2b2c] sm:$0xf]  ;;  %v17211_v6 = vor.u32 %v20115_v37, %v17208_v32  ;;  %10480 = vmatpush.bf16.msra.mxu1 %v14907_v50  ;;  %v13503_v50 = vor.u32 %v19204_v16, %v13502_v22  ;;  %v14142_v16 = vld [vmem:[%s30893_s1 + $0xb30] sm:$0xf] }
 0x2b2   :  { %v18232_v40 = vld [vmem:[%s30893_s1 + $0x2ba8] sm:$0xf0] }
 0x2b3   :  { %v19795_v44 = vld [vmem:[%s30893_s1 + $0x192c] sm:$0xf]  ;;  %v18235_v56 = vor.u32 %v20371_v36, %v18232_v40  ;;  %10504 = vmatpush.bf16.msrb.mxu2 %v17211_v6  ;;  %v15678_v36 = vld [vmem:[%s30893_s1 + $0x1730] sm:$0xf] }
 0x2b4   :  { %v15928_v31 = vld [vmem:[%s30893_s1 + $0x19a8] sm:$0xf0]  ;;  %v19748_v40 = vld [vmem:[%s30893_s1 + $0x17ac] sm:$0xf0] }
 0x2b5   :  { %v19507_v46 = vld [vmem:[%s30893_s1 + $0x102c] sm:$0xf]  ;;  %v15931_v62 = vor.u32 %v19795_v44, %v15928_v31  ;;  %10517 = vmatpush.bf16.msrb.mxu0 %v18235_v56  ;;  %v14527_v44 = vor.u32 %v19460_v48, %v14526_v21  ;;  %v13374_v56 = vld [vmem:[%s30893_s1 + $0x530] sm:$0xf]  ;;  %v10262_v5 = vpop.f32.mrf.mxu2 }
 0x2b6   :  { %v14776_v49 = vld [vmem:[%s30893_s1 + $0x10a8] sm:$0xf0]  ;;  %v19364_v21 = vld [vmem:[%s30893_s1 + $0xbac] sm:$0xf0] }
 0x2b7   :  { %v20083_v59 = vld [vmem:[%s30893_s1 + $0x222c] sm:$0xf]  ;;  %v14779_v38 = vor.u32 %v19507_v46, %v14776_v49  ;;  %10493 = vmatpush.bf16.msrb.mxu3 %v15931_v62  ;;  %v19172_v46 = vld [vmem:[%s30893_s1 + $0x5ac] sm:$0xf0]  ;;  %v24432_v49 = vpop.permute.xlu2 %12392 }
 0x2b8   :  { %v17080_v52 = vld [vmem:[%s30893_s1 + $0x22a8] sm:$0xf0]  ;;  %v15550_v62 = vld [vmem:[%s30893_s1 + $0x1630] sm:$0xf] }
 0x2b9   :  { %v20339_v53 = vld [vmem:[%s30893_s1 + $0x2a2c] sm:$0xf]  ;;  %v17083_v23 = vor.u32 %v20083_v59, %v17080_v52  ;;  %10481 = vmatpush.bf16.msra.mxu1 %v14779_v38  ;;  %v15679_v59 = vor.u32 %v19748_v40, %v15678_v36  ;;  %v16703_v52 = vor.u32 %v20004_v43, %v16702_v42  ;;  %v13375_v38 = vor.u32 %v19172_v46, %v13374_v56  ;;  %v16318_v48 = vld [vmem:[%s30893_s1 + $0x1c30] sm:$0xf]  ;;  %v24524_v46 = vpop.f32.mrf.mxu0 }
 0x2ba   :  { %v18104_v58 = vld [vmem:[%s30893_s1 + $0x2aa8] sm:$0xf0]  ;;  %v12990_v40 = vld [vmem:[%s30893_s1 + $0x230] sm:$0xf] }
 0x2bb   :  { %v19763_v63 = vld [vmem:[%s30893_s1 + $0x182c] sm:$0xf]  ;;  %v18107_v7 = vor.u32 %v20339_v53, %v18104_v58  ;;  %10505 = vmatpush.bf16.msrb.mxu2 %v17083_v23  ;;  %v14398_v53 = vld [vmem:[%s30893_s1 + $0xd30] sm:$0xf] }
 0x2bc   :  { %v20531_v1 = vld [vmem:[%s30893_s1 + $0x302c] sm:$0xf]  ;;  %10482 = vmatmul.bf16.vlgmr.msra.gmra.mxu1 %v20859_v51  ;;  %v19428_v58 = vld [vmem:[%s30893_s1 + $0xdac] sm:$0xf0] }
 0x2bd   :  { %v18872_v33 = vld [vmem:[%s30893_s1 + $0x30a8] sm:$0xf0]  ;;  %10518 = vmatpush.bf16.msrb.mxu0 %v18107_v7  ;;  %v14270_v7 = vld [vmem:[%s30893_s1 + $0xc30] sm:$0xf]  ;;  %v10264_v43 = vpop.f32.mrf.mxu2 }
 0x2be   :  { %v15800_v39 = vld [vmem:[%s30893_s1 + $0x18a8] sm:$0xf0]  ;;  %v18875_v9 = vor.u32 %v20531_v1, %v18872_v33  ;;  %v19716_v1 = vld [vmem:[%s30893_s1 + $0x16ac] sm:$0xf0] }
 0x2bf   :  { %v20051_v13 = vld [vmem:[%s30893_s1 + $0x212c] sm:$0xf]  ;;  %v15803_v15 = vor.u32 %v19763_v63, %v15800_v39  ;;  %v10198_v63 = vadd.f32 %v24269_v47, %v24297_v20  ;;  %v16574_v33 = vld [vmem:[%s30893_s1 + $0x1e30] sm:$0xf]  ;;  %v14399_v39 = vor.u32 %v19428_v58, %v14398_v53  ;;  %v15551_v61 = vor.u32 %v19716_v1, %v15550_v62 }
 0x2c0   :  { %v16952_v12 = vld [vmem:[%s30893_s1 + $0x21a8] sm:$0xf0]  ;;  %10533 = vmatpush.bf16.msrb.mxu1 %v18875_v9  ;;  %v13246_v47 = vld [vmem:[%s30893_s1 + $0x430] sm:$0xf]  ;;  %v16575_v23 = vor.u32 %v19972_v2, %v16574_v33 }
 0x2c1   :  { %v20307_v14 = vld [vmem:[%s30893_s1 + $0x292c] sm:$0xf]  ;;  %v16955_v27 = vor.u32 %v20051_v13, %v16952_v12  ;;  %10494 = vmatpush.bf16.msrb.mxu3 %v15803_v15  ;;  %v19140_v20 = vld [vmem:[%s30893_s1 + $0x4ac] sm:$0xf0]  ;;  %v10211_v13 = vadd.f32 %v24331_v3, %v10198_v63  ;;  %v14271_v15 = vor.u32 %v19396_v8, %v14270_v7 }
 0x2c2   :  { %v17976_v17 = vld [vmem:[%s30893_s1 + $0x29a8] sm:$0xf0]  ;;  %v16446_v9 = vld [vmem:[%s30893_s1 + $0x1d30] sm:$0xf] }
 0x2c3   :  { %v17979_v28 = vor.u32 %v20307_v14, %v17976_v17  ;;  %v20019_v24 = vld [vmem:[%s30893_s1 + $0x202c] sm:$0xf]  ;;  %10506 = vmatpush.bf16.msrb.mxu2 %v16955_v27  ;;  %v19940_v12 = vld [vmem:[%s30893_s1 + $0x1dac] sm:$0xf0]  ;;  %v10249_v14 = vpop.f32.mrf.mxu1  ;;  %v13247_v17 = vor.u32 %v19140_v20, %v13246_v47  ;;  %v10224_v27 = vadd.f32 %v24314_v29, %v10211_v13  ;;  %v14143_v29 = vor.u32 %v19364_v21, %v14142_v16 }
 0x2c4   :  { %v16824_v41 = vld [vmem:[%s30893_s1 + $0x20a8] sm:$0xf0]  ;;  %10552 = vmatpush.bf16.msra.mxu1 %v14655_v19  ;;  %10495 = vmatmul.bf16.vlgmr.msrb.gmra.mxu3 %v20872_v57  ;;  %v13118_v3 = vld [vmem:[%s30893_s1 + $0x330] sm:$0xf]  ;;  %v15423_v19 = vor.u32 %v19684_v10, %v15422_v60  ;;  %v16447_v22 = vor.u32 %v19940_v12, %v16446_v9 }
 0x2c5   :  { %v20275_v37 = vld [vmem:[%s30893_s1 + $0x282c] sm:$0xf]  ;;  %10539 = vmatpush.bf16.msra.mxu3 %v13631_v18  ;;  %10519 = vmatpush.bf16.msrb.mxu0 %v17979_v28  ;;  %v16827_v31 = vor.u32 %v20019_v24, %v16824_v41  ;;  %v19108_v18 = vld [vmem:[%s30893_s1 + $0x3ac] sm:$0xf0]  ;;  %v24507_v41 = vpop.permute.xlu2 %12381 }
 0x2c6   :  { %v17848_v32 = vld [vmem:[%s30893_s1 + $0x28a8] sm:$0xf0]  ;;  %v19652_v28 = vld [vmem:[%s30893_s1 + $0x14ac] sm:$0xf0] }
 0x2c7   :  { %v17851_v6 = vor.u32 %v20275_v37, %v17848_v32  ;;  %10507 = vmatpush.bf16.msrb.mxu2 %v16827_v31  ;;  %v19908_v24 = vld [vmem:[%s30893_s1 + $0x1cac] sm:$0xf0]  ;;  %v10236_v37 = vpop.f32.mrf.mxu3  ;;  %v13119_v32 = vor.u32 %v19108_v18, %v13118_v3  ;;  %v24581_v18 = vpop.f32.mrf.mxu2 }
 0x2c8   :  { %10553 = vmatpush.bf16.msra.mxu1 %v14527_v44  ;;  %v10237_v36 = vadd.f32 %v10236_v37, %v10224_v27  ;;  %v19076_v42 = vld [vmem:[%s30893_s1 + $0x2ac] sm:$0xf0]  ;;  %v16319_v44 = vor.u32 %v19908_v24, %v16318_v48  ;;  %v10277_v27 = vpop.f32.mrf.mxu0 }
 0x2c9   :  { %10540 = vmatpush.bf16.msra.mxu3 %v13503_v50  ;;  %10520 = vmatpush.bf16.msrb.mxu0 %v17851_v6  ;;  %v15295_v50 = vor.u32 %v19652_v28, %v15294_v25  ;;  %v14014_v31 = vld [vmem:[%s30893_s1 + $0xa30] sm:$0xf]  ;;  %v12991_v63 = vor.u32 %v19076_v42, %v12990_v40  ;;  %v19444_v27 = vld [vmem:[%s30893_s1 + $0xe34] sm:$0xf] }
 0x2ca   :  { %10508 = vmatmul.bf16.vlgmr.msrb.gmra.mxu2 %v21073_v30  ;;  %v19332_v6 = vld [vmem:[%s30893_s1 + $0xaac] sm:$0xf0] }
 0x2cb   :  { %10565 = vmatpush.bf16.msra.mxu2 %v15679_v59  ;;  %v15166_v56 = vld [vmem:[%s30893_s1 + $0x1330] sm:$0xf]  ;;  %v10250_v59 = vadd.f32 %v10249_v14, %v10237_v36  ;;  %v10251_v62 = vpop.f32.mrf.mxu1  ;;  %v14015_v33 = vor.u32 %v19332_v6, %v14014_v31 }
 0x2cc   :  { %10554 = vmatpush.bf16.msra.mxu1 %v14399_v39  ;;  %10521 = vmatmul.bf16.vlgmr.msrb.gmra.mxu0 %v21084_v35  ;;  %v16190_v53 = vld [vmem:[%s30893_s1 + $0x1b30] sm:$0xf] }
 0x2cd   :  { %10578 = vmatpush.bf16.msra.mxu0 %v16703_v52  ;;  %10541 = vmatpush.bf16.msra.mxu3 %v13375_v38  ;;  %v19620_v52 = vld [vmem:[%s30893_s1 + $0x13ac] sm:$0xf0]  ;;  %v10263_v1 = vadd.f32 %v10262_v5, %v10250_v59  ;;  %v24562_v60 = vpop.permute.xlu2 %12394 }
 0x2ce   :  { %18967 = vmatmul.msk.bf16.vlgmr.msrb.gmra.mxu1 %vm9443_vm0, %v20982_v45  ;;  %v19876_v58 = vld [vmem:[%s30893_s1 + $0x1bac] sm:$0xf0]  ;;  %v15167_v39 = vor.u32 %v19620_v52, %v15166_v56  ;;  %v24570_v12 = vsel %vm12398_vm3, %v24432_v49, %v24562_v60 }
 0x2cf   :  { %10566 = vmatpush.bf16.msra.mxu2 %v15551_v61  ;;  %v12862_v2 = vld [vmem:[%s30893_s1 + $0x130] sm:$0xf]  ;;  %v16191_v47 = vor.u32 %v19876_v58, %v16190_v53  ;;  %12409 = vrot.lane.b32.xlu1 %v10263_v1, %s20577_s14  ;;  %v10238_v9 = vpop.f32.mrf.mxu3  ;;  %v12403_v49 = vmax.f32 %v24117_v34, %v24570_v12  ;;  %v14152_v34 = vld [vmem:[%s30893_s1 + $0xbb8] sm:$0xf0] }
 0x2d0   :  { %10555 = vmatpush.bf16.msra.mxu1 %v14271_v15  ;;  %v19044_v38 = vld [vmem:[%s30893_s1 + $0x1ac] sm:$0xf0] }
 0x2d1   :  { %10579 = vmatpush.bf16.msra.mxu0 %v16575_v23  ;;  %10542 = vmatpush.bf16.msra.mxu3 %v13247_v17  ;;  %v13886_v20 = vld [vmem:[%s30893_s1 + $0x930] sm:$0xf]  ;;  %v12863_v13 = vor.u32 %v19044_v38, %v12862_v2  ;;  %v13632_v2 = vld [vmem:[%s30893_s1 + $0x7b0] sm:$0xf0]  ;;  %v10290_v38 = vpop.f32.mrf.mxu2 }
 0x2d2   :  { %v19300_v5 = vld [vmem:[%s30893_s1 + $0x9ac] sm:$0xf0]  ;;  %v19380_v38 = vld [vmem:[%s30893_s1 + $0xc34] sm:$0xf] }
 0x2d3   :  { %10567 = vmatpush.bf16.msra.mxu2 %v15423_v19  ;;  %v15038_v61 = vld [vmem:[%s30893_s1 + $0x1230] sm:$0xf]  ;;  %v13887_v14 = vor.u32 %v19300_v5, %v13886_v20 }
 0x2d4   :  { %10556 = vmatpush.bf16.msra.mxu1 %v14143_v29  ;;  %v19588_v23 = vld [vmem:[%s30893_s1 + $0x12ac] sm:$0xf0] }
 0x2d5   :  { %10580 = vmatpush.bf16.msra.mxu0 %v16447_v22  ;;  %10543 = vmatpush.bf16.msra.mxu3 %v13119_v32  ;;  %v16062_v7 = vld [vmem:[%s30893_s1 + $0x1a30] sm:$0xf]  ;;  %v15039_v19 = vor.u32 %v19588_v23, %v15038_v61 }
 0x2d6   :  { %v19844_v8 = vld [vmem:[%s30893_s1 + $0x1aac] sm:$0xf0] }
 0x2d7   :  { %10568 = vmatpush.bf16.msra.mxu2 %v15295_v50  ;;  %v12734_v10 = vld [vmem:[%s30893_s1 + $0x30] sm:$0xf]  ;;  %v16063_v22 = vor.u32 %v19844_v8, %v16062_v7 }
 0x2d8   :  { %10557 = vmatpush.bf16.msra.mxu1 %v14015_v33  ;;  %v19012_v17 = vld [vmem:[%s30893_s1 + $0xac] sm:$0xf0]  ;;  %v19220_v33 = vld [vmem:[%s30893_s1 + $0x734] sm:$0xf] }
 0x2d9   :  { %10581 = vmatpush.bf16.msra.mxu0 %v16319_v44  ;;  %10544 = vmatpush.bf16.msra.mxu3 %v12991_v63  ;;  %v13758_v15 = vld [vmem:[%s30893_s1 + $0x830] sm:$0xf]  ;;  %v12735_v37 = vor.u32 %v19012_v17, %v12734_v10  ;;  %v14656_v10 = vld [vmem:[%s30893_s1 + $0xfb0] sm:$0xf0]  ;;  %v13635_v9 = vor.u32 %v19220_v33, %v13632_v2 }
 0x2da   :  { %v19268_v3 = vld [vmem:[%s30893_s1 + $0x8ac] sm:$0xf0]  ;;  %v19188_v17 = vld [vmem:[%s30893_s1 + $0x634] sm:$0xf] }
 0x2db   :  { %10569 = vmatpush.bf16.msra.mxu2 %v15167_v39  ;;  %v17726_v16 = vld [vmem:[%s30893_s1 + $0x2730] sm:$0xf]  ;;  %v13759_v29 = vor.u32 %v19268_v3, %v13758_v15  ;;  %v13504_v15 = vld [vmem:[%s30893_s1 + $0x6b0] sm:$0xf0] }
 0x2dc   :  { %v20260_v21 = vld [vmem:[%s30893_s1 + $0x27ac] sm:$0xf0]  ;;  %10558 = vmatpush.bf16.msra.mxu1 %v13887_v14 }
 0x2dd   :  { %10582 = vmatpush.bf16.msra.mxu0 %v16191_v47  ;;  %v18750_v25 = vld [vmem:[%s30893_s1 + $0x2f30] sm:$0xf]  ;;  %10545 = vmatpush.bf16.msra.mxu3 %v12863_v13  ;;  %v17727_v40 = vor.u32 %v20260_v21, %v17726_v16  ;;  %v19476_v13 = vld [vmem:[%s30893_s1 + $0xf34] sm:$0xf] }
 0x2de   :  { %v20516_v28 = vld [vmem:[%s30893_s1 + $0x2fac] sm:$0xf0] }
 0x2df   :  { %v14910_v48 = vld [vmem:[%s30893_s1 + $0x1130] sm:$0xf]  ;;  %10570 = vmatpush.bf16.msra.mxu2 %v15039_v19  ;;  %v18751_v43 = vor.u32 %v20516_v28, %v18750_v25  ;;  %v14659_v19 = vor.u32 %v19476_v13, %v14656_v10  ;;  %v14528_v28 = vld [vmem:[%s30893_s1 + $0xeb0] sm:$0xf0] }
 0x2e0   :  { %v19556_v24 = vld [vmem:[%s30893_s1 + $0x11ac] sm:$0xf0]  ;;  %10559 = vmatpush.bf16.msra.mxu1 %v13759_v29 }
 0x2e1   :  { %v15934_v32 = vld [vmem:[%s30893_s1 + $0x1930] sm:$0xf]  ;;  %10583 = vmatpush.bf16.msra.mxu0 %v16063_v22  ;;  %v14911_v50 = vor.u32 %v19556_v24, %v14910_v48  ;;  %10546 = vmatpush.bf16.msra.mxu3 %v12735_v37  ;;  %v13507_v48 = vor.u32 %v19188_v17, %v13504_v15  ;;  %v10314_v24 = vpop.f32.mrf.mxu1 }
 0x2e2   :  { %v19812_v36 = vld [vmem:[%s30893_s1 + $0x19ac] sm:$0xf0] }
 0x2e3   :  { %v17598_v42 = vld [vmem:[%s30893_s1 + $0x2630] sm:$0xf]  ;;  %v15935_v56 = vor.u32 %v19812_v36, %v15934_v32  ;;  %10571 = vmatpush.bf16.msra.mxu2 %v14911_v50  ;;  %10560 = vmatmul.bf16.vlgmr.msra.gmra.mxu1 %v20894_v4  ;;  %v19156_v32 = vld [vmem:[%s30893_s1 + $0x534] sm:$0xf] }
 0x2e4   :  { %v20228_v44 = vld [vmem:[%s30893_s1 + $0x26ac] sm:$0xf0]  ;;  %10604 = vmatpush.bf16.msrb.mxu1 %v18751_v43  ;;  %10547 = vmatmul.bf16.vlgmr.msra.gmra.mxu3 %v20870_v55  ;;  %v13376_v36 = vld [vmem:[%s30893_s1 + $0x5b0] sm:$0xf0] }
 0x2e5   :  { %v18622_v31 = vld [vmem:[%s30893_s1 + $0x2e30] sm:$0xf]  ;;  %10591 = vmatpush.bf16.msrb.mxu3 %v17727_v40  ;;  %v17599_v1 = vor.u32 %v20228_v44, %v17598_v42  ;;  %10584 = vmatpush.bf16.msra.mxu0 %v15935_v56  ;;  %v14531_v40 = vor.u32 %v19444_v27, %v14528_v28  ;;  %v13379_v56 = vor.u32 %v19156_v32, %v13376_v36  ;;  %v12992_v27 = vld [vmem:[%s30893_s1 + $0x2b0] sm:$0xf0] }
 0x2e6   :  { %v20484_v6 = vld [vmem:[%s30893_s1 + $0x2eac] sm:$0xf0] }
 0x2e7   :  { %v14782_v59 = vld [vmem:[%s30893_s1 + $0x1030] sm:$0xf]  ;;  %v18623_v39 = vor.u32 %v20484_v6, %v18622_v31  ;;  %v19412_v31 = vld [vmem:[%s30893_s1 + $0xd34] sm:$0xf] }
 0x2e8   :  { %v19524_v52 = vld [vmem:[%s30893_s1 + $0x10ac] sm:$0xf0]  ;;  %v14400_v6 = vld [vmem:[%s30893_s1 + $0xdb0] sm:$0xf0] }
 0x2e9   :  { %v15806_v53 = vld [vmem:[%s30893_s1 + $0x1830] sm:$0xf]  ;;  %v14783_v47 = vor.u32 %v19524_v52, %v14782_v59  ;;  %10592 = vmatpush.bf16.msrb.mxu3 %v17599_v1  ;;  %10605 = vmatpush.bf16.msrb.mxu1 %v18623_v39  ;;  %v10289_v59 = vadd.f32 %v24581_v18, %v24524_v46  ;;  %v14403_v1 = vor.u32 %v19412_v31, %v14400_v6  ;;  %v14272_v39 = vld [vmem:[%s30893_s1 + $0xcb0] sm:$0xf0] }
 0x2ea   :  { %v19780_v58 = vld [vmem:[%s30893_s1 + $0x18ac] sm:$0xf0]  ;;  %v14275_v10 = vor.u32 %v19380_v38, %v14272_v39  ;;  %v15680_v6 = vld [vmem:[%s30893_s1 + $0x17b0] sm:$0xf0] }
 0x2eb   :  { %v18878_v62 = vld [vmem:[%s30893_s1 + $0x3030] sm:$0xf]  ;;  %v15807_v23 = vor.u32 %v19780_v58, %v15806_v53  ;;  %10572 = vmatpush.bf16.msra.mxu2 %v14783_v47  ;;  %v19124_v53 = vld [vmem:[%s30893_s1 + $0x434] sm:$0xf]  ;;  %v10327_v47 = vpop.f32.mrf.mxu0 }
 0x2ec   :  { %v20548_v63 = vld [vmem:[%s30893_s1 + $0x30ac] sm:$0xf0]  ;;  %v13248_v58 = vld [vmem:[%s30893_s1 + $0x4b0] sm:$0xf0] }
 0x2ed   :  { %v17470_v20 = vld [vmem:[%s30893_s1 + $0x2530] sm:$0xf]  ;;  %v18879_v8 = vor.u32 %v20548_v63, %v18878_v62  ;;  %10585 = vmatpush.bf16.msra.mxu0 %v15807_v23  ;;  %v10301_v62 = vpop.f32.mrf.mxu3  ;;  %v19700_v38 = vld [vmem:[%s30893_s1 + $0x1634] sm:$0xf] }
 0x2ee   :  { %v20196_v5 = vld [vmem:[%s30893_s1 + $0x25ac] sm:$0xf0]  ;;  %10573 = vmatmul.bf16.vlgmr.msra.gmra.mxu2 %v20859_v51  ;;  %v15552_v39 = vld [vmem:[%s30893_s1 + $0x16b0] sm:$0xf0] }
 0x2ef   :  { %v18494_v61 = vld [vmem:[%s30893_s1 + $0x2d30] sm:$0xf]  ;;  %v17471_v14 = vor.u32 %v20196_v5, %v17470_v20  ;;  %10624 = vmatpush.bf16.msrb.mxu2 %v18879_v8  ;;  %v13251_v20 = vor.u32 %v19124_v53, %v13248_v58  ;;  %v10316_v5 = vpop.f32.mrf.mxu1  ;;  %v13120_v8 = vld [vmem:[%s30893_s1 + $0x3b0] sm:$0xf0] }
 0x2f0   :  { %v20452_v7 = vld [vmem:[%s30893_s1 + $0x2dac] sm:$0xf0]  ;;  %10586 = vmatmul.bf16.vlgmr.msra.gmra.mxu0 %v20872_v57 }
 0x2f1   :  { %v18495_v3 = vor.u32 %v20452_v7, %v18494_v61  ;;  %v17342_v22 = vld [vmem:[%s30893_s1 + $0x2430] sm:$0xf]  ;;  %10630 = vmatpush.bf16.msrb.mxu0 %v13635_v9  ;;  %10593 = vmatpush.bf16.msrb.mxu3 %v17471_v14  ;;  %v10302_v61 = vadd.f32 %v10301_v62, %v10289_v59  ;;  %v19092_v7 = vld [vmem:[%s30893_s1 + $0x334] sm:$0xf] }
 0x2f2   :  { %v20164_v16 = vld [vmem:[%s30893_s1 + $0x24ac] sm:$0xf0]  ;;  %v16704_v59 = vld [vmem:[%s30893_s1 + $0x1fb0] sm:$0xf0] }
 0x2f3   :  { %v18366_v21 = vld [vmem:[%s30893_s1 + $0x2c30] sm:$0xf]  ;;  %v17343_v37 = vor.u32 %v20164_v16, %v17342_v22  ;;  %10606 = vmatpush.bf16.msrb.mxu1 %v18495_v3  ;;  %10643 = vmatpush.bf16.msra.mxu2 %v14659_v19  ;;  %v19348_v3 = vld [vmem:[%s30893_s1 + $0xb34] sm:$0xf]  ;;  %v13123_v22 = vor.u32 %v19092_v7, %v13120_v8  ;;  %v10315_v16 = vadd.f32 %v10314_v24, %v10302_v61  ;;  %v12397_v8 = vpop.permute.xlu2 %12396 }
 0x2f4   :  { %v20420_v25 = vld [vmem:[%s30893_s1 + $0x2cac] sm:$0xf0]  ;;  %v14144_v19 = vld [vmem:[%s30893_s1 + $0xbb0] sm:$0xf0] }
 0x2f5   :  { %v18367_v29 = vor.u32 %v20420_v25, %v18366_v21  ;;  %v17214_v42 = vld [vmem:[%s30893_s1 + $0x2330] sm:$0xf]  ;;  %10631 = vmatpush.bf16.msrb.mxu0 %v13507_v48  ;;  %10594 = vmatpush.bf16.msrb.mxu3 %v17343_v37  ;;  %v19060_v25 = vld [vmem:[%s30893_s1 + $0x234] sm:$0xf]  ;;  %v10303_v48 = vpop.f32.mrf.mxu3  ;;  %v14147_v32 = vor.u32 %v19348_v3, %v14144_v19  ;;  %v10328_v53 = vadd.f32 %v10327_v47, %v10315_v16 }
 0x2f6   :  { %v20132_v43 = vld [vmem:[%s30893_s1 + $0x23ac] sm:$0xf0]  ;;  %v12995_v31 = vor.u32 %v19060_v25, %v12992_v27  ;;  %v19028_v62 = vld [vmem:[%s30893_s1 + $0x134] sm:$0xf] }
 0x2f7   :  { %v18238_v50 = vld [vmem:[%s30893_s1 + $0x2b30] sm:$0xf]  ;;  %v17215_v52 = vor.u32 %v20132_v43, %v17214_v42  ;;  %10607 = vmatpush.bf16.msrb.mxu1 %v18367_v29  ;;  %10644 = vmatpush.bf16.msra.mxu2 %v14531_v40  ;;  %v10340_v40 = vpop.f32.mrf.mxu2  ;;  %v19316_v42 = vld [vmem:[%s30893_s1 + $0xa34] sm:$0xf] }
 0x2f8   :  { %v20388_v44 = vld [vmem:[%s30893_s1 + $0x2bac] sm:$0xf0]  ;;  %v14016_v43 = vld [vmem:[%s30893_s1 + $0xab0] sm:$0xf0]  ;;  %v10341_v5 = vadd.f32 %v10340_v40, %v10328_v53 }
 0x2f9   :  { %v18239_v63 = vor.u32 %v20388_v44, %v18238_v50  ;;  %v17086_v33 = vld [vmem:[%s30893_s1 + $0x2230] sm:$0xf]  ;;  %10632 = vmatpush.bf16.msrb.mxu0 %v13379_v56  ;;  %10595 = vmatpush.bf16.msrb.mxu3 %v17215_v52  ;;  %v19732_v50 = vld [vmem:[%s30893_s1 + $0x1734] sm:$0xf]  ;;  %v10329_v44 = vpop.f32.mrf.mxu0  ;;  %v12370_v52 = vsel %vm12368_vm1, %v23462_v0, %v24378_v11  ;;  %v12385_v11 = vsel %vm12383_vm2, %v24098_v26, %v24507_v41  ;;  %vm12631_vm1 = vcmask 998400  }
 0x2fa   :  { %v20100_v46 = vld [vmem:[%s30893_s1 + $0x22ac] sm:$0xf0]  ;;  %v19988_v56 = vld [vmem:[%s30893_s1 + $0x1f34] sm:$0xf]  ;;  %v12374_v47 = vmax.f32 %v22281_v54, %v12370_v52 }
 0x2fb   :  { %v18110_v18 = vld [vmem:[%s30893_s1 + $0x2a30] sm:$0xf]  ;;  %v17087_v23 = vor.u32 %v20100_v46, %v17086_v33  ;;  %10608 = vmatpush.bf16.msrb.mxu1 %v18239_v63  ;;  %10645 = vmatpush.bf16.msra.mxu2 %v14403_v1  ;;  %v12864_v63 = vld [vmem:[%s30893_s1 + $0x1b0] sm:$0xf0]  ;;  %v14019_v33 = vor.u32 %v19316_v42, %v14016_v43  ;;  %v15683_v46 = vor.u32 %v19732_v50, %v15680_v6 }
 0x2fc   :  { %v20356_v2 = vld [vmem:[%s30893_s1 + $0x2aac] sm:$0xf0]  ;;  %v19284_v0 = vld [vmem:[%s30893_s1 + $0x934] sm:$0xf] }
 0x2fd   :  { %v18111_v13 = vor.u32 %v20356_v2, %v18110_v18  ;;  %v16958_v9 = vld [vmem:[%s30893_s1 + $0x2130] sm:$0xf]  ;;  %10633 = vmatpush.bf16.msrb.mxu0 %v13251_v20  ;;  %10596 = vmatpush.bf16.msrb.mxu3 %v17087_v23  ;;  %v16707_v18 = vor.u32 %v19988_v56, %v16704_v59  ;;  %v13888_v2 = vld [vmem:[%s30893_s1 + $0x9b0] sm:$0xf0]  ;;  %v12867_v20 = vor.u32 %v19028_v62, %v12864_v63  ;;  %v10353_v7 = vpop.f32.mrf.mxu3 }
 0x2fe   :  { %v20068_v14 = vld [vmem:[%s30893_s1 + $0x21ac] sm:$0xf0]  ;;  %18968 = vmatmul.msk.bf16.vlgmr.msrb.gmra.mxu2 %vm9443_vm0, %v20982_v45  ;;  %v19956_v26 = vld [vmem:[%s30893_s1 + $0x1e34] sm:$0xf]  ;;  %v24840_v23 = vmax.f32 %v12374_v47, %v12385_v11 }
 0x2ff   :  { %v17982_v17 = vld [vmem:[%s30893_s1 + $0x2930] sm:$0xf]  ;;  %v16959_v21 = vor.u32 %v20068_v14, %v16958_v9  ;;  %10609 = vmatpush.bf16.msrb.mxu1 %v18111_v13  ;;  %10646 = vmatpush.bf16.msra.mxu2 %v14275_v10  ;;  %v16576_v41 = vld [vmem:[%s30893_s1 + $0x1eb0] sm:$0xf0]  ;;  %v13891_v13 = vor.u32 %v19284_v0, %v13888_v2  ;;  %v15555_v10 = vor.u32 %v19700_v38, %v15552_v39 }
 0x300   :  { %v20324_v15 = vld [vmem:[%s30893_s1 + $0x29ac] sm:$0xf0]  ;;  %v18996_v61 = vld [vmem:[%s30893_s1 + $0x34] sm:$0xf]  ;;  %v16579_v3 = vor.u32 %v19956_v26, %v16576_v41 }
 0x301   :  { %v16830_v28 = vld [vmem:[%s30893_s1 + $0x2030] sm:$0xf]  ;;  %v17983_v37 = vor.u32 %v20324_v15, %v17982_v17  ;;  %10634 = vmatpush.bf16.msrb.mxu0 %v13123_v22  ;;  %10597 = vmatpush.bf16.msrb.mxu3 %v16959_v21  ;;  %v12736_v54 = vld [vmem:[%s30893_s1 + $0xb0] sm:$0xf0]  ;;  %v10354_v17 = vadd.f32 %v10353_v7, %v10341_v5  ;;  %v24850_v15 = vsel %vm12398_vm3, %v24562_v60, %v12397_v8  ;;  %v10342_v21 = vpop.f32.mrf.mxu2  ;;  %v24943_v7 = vpop.f32.mrf.mxu0 }
 0x302   :  { %v20036_v24 = vld [vmem:[%s30893_s1 + $0x20ac] sm:$0xf0]  ;;  %v20244_v9 = vld [vmem:[%s30893_s1 + $0x2734] sm:$0xf]  ;;  %v12404_v25 = vmax.f32 %v24840_v23, %v24850_v15  ;;  %v12739_v60 = vor.u32 %v18996_v61, %v12736_v54 }
 0x303   :  { %v17854_v36 = vld [vmem:[%s30893_s1 + $0x2830] sm:$0xf]  ;;  %v16831_v58 = vor.u32 %v20036_v24, %v16830_v28  ;;  %10610 = vmatpush.bf16.msrb.mxu1 %v17983_v37  ;;  %10647 = vmatpush.bf16.msra.mxu2 %v14147_v32  ;;  %v17728_v14 = vld [vmem:[%s30893_s1 + $0x27b0] sm:$0xf0] }
 0x304   :  { %v20292_v29 = vld [vmem:[%s30893_s1 + $0x28ac] sm:$0xf0]  ;;  %v19252_v19 = vld [vmem:[%s30893_s1 + $0x834] sm:$0xf]  ;;  %12411 = vrot.lane.b32.xlu2 %v10354_v17, %s20577_s14  ;;  %12422 = vrot.lane.b32.xlu0 %v10354_v17, %s20578_s20  ;;  %v17731_v37 = vor.u32 %v20244_v9, %v17728_v14 }
 0x305   :  { %v17855_v1 = vor.u32 %v20292_v29, %v17854_v36  ;;  %10635 = vmatpush.bf16.msrb.mxu0 %v12995_v31  ;;  %10598 = vmatpush.bf16.msrb.mxu3 %v16831_v58  ;;  %v13760_v22 = vld [vmem:[%s30893_s1 + $0x8b0] sm:$0xf0]  ;;  %v24906_v58 = vpop.f32.mrf.mxu1  ;;  %v10355_v62 = vpop.f32.mrf.mxu3 }
 0x306   :  { %v19668_v16 = vld [vmem:[%s30893_s1 + $0x1534] sm:$0xf]  ;;  %v13763_v36 = vor.u32 %v19252_v19, %v13760_v22 }
 0x307   :  { %10611 = vmatpush.bf16.msrb.mxu1 %v17855_v1  ;;  %10648 = vmatpush.bf16.msra.mxu2 %v14019_v33  ;;  %v15424_v27 = vld [vmem:[%s30893_s1 + $0x15b0] sm:$0xf0] }
 0x308   :  { %10599 = vmatmul.bf16.vlgmr.msrb.gmra.mxu3 %v21073_v30  ;;  %v19924_v28 = vld [vmem:[%s30893_s1 + $0x1d34] sm:$0xf]  ;;  %v15427_v42 = vor.u32 %v19668_v16, %v15424_v27 }
 0x309   :  { %10656 = vmatpush.bf16.msra.mxu3 %v15683_v46  ;;  %10636 = vmatpush.bf16.msrb.mxu0 %v12867_v20  ;;  %v16448_v48 = vld [vmem:[%s30893_s1 + $0x1db0] sm:$0xf0] }
 0x30a   :  { %v20500_v32 = vld [vmem:[%s30893_s1 + $0x2f34] sm:$0xf]  ;;  %10612 = vmatmul.bf16.vlgmr.msrb.gmra.mxu1 %v21084_v35  ;;  %v16451_v43 = vor.u32 %v19924_v28, %v16448_v48 }
 0x30b   :  { %10669 = vmatpush.bf16.msra.mxu1 %v16707_v18  ;;  %v18752_v24 = vld [vmem:[%s30893_s1 + $0x2fb0] sm:$0xf0]  ;;  %10649 = vmatpush.bf16.msra.mxu2 %v13891_v13 }
 0x30c   :  { %v20212_v29 = vld [vmem:[%s30893_s1 + $0x2634] sm:$0xf]  ;;  %v18755_v44 = vor.u32 %v20500_v32, %v18752_v24 }
 0x30d   :  { %v17600_v40 = vld [vmem:[%s30893_s1 + $0x26b0] sm:$0xf0]  ;;  %10657 = vmatpush.bf16.msra.mxu3 %v15555_v10  ;;  %10637 = vmatpush.bf16.msrb.mxu0 %v12739_v60  ;;  %v10368_v19 = vpop.f32.mrf.mxu1  ;;  %v24960_v22 = vpop.f32.mrf.mxu3 }
 0x30e   :  { %v19636_v50 = vld [vmem:[%s30893_s1 + $0x1434] sm:$0xf]  ;;  %v17603_v59 = vor.u32 %v20212_v29, %v17600_v40 }
 0x30f   :  { %10670 = vmatpush.bf16.msra.mxu1 %v16579_v3  ;;  %v15296_v31 = vld [vmem:[%s30893_s1 + $0x14b0] sm:$0xf0]  ;;  %10650 = vmatpush.bf16.msra.mxu2 %v13763_v36 }
 0x310   :  { %v19892_v6 = vld [vmem:[%s30893_s1 + $0x1c34] sm:$0xf]  ;;  %v15299_v33 = vor.u32 %v19636_v50, %v15296_v31  ;;  %10638 = vmatmul.bf16.vlgmr.msrb.gmra.mxu0 %v20870_v55 }
 0x311   :  { %v16320_v56 = vld [vmem:[%s30893_s1 + $0x1cb0] sm:$0xf0]  ;;  %10682 = vmatpush.bf16.msra.mxu0 %v17731_v37  ;;  %10658 = vmatpush.bf16.msra.mxu3 %v15427_v42 }
 0x312   :  { %v20468_v52 = vld [vmem:[%s30893_s1 + $0x2e34] sm:$0xf]  ;;  %v16323_v0 = vor.u32 %v19892_v6, %v16320_v56  ;;  %10651 = vmatmul.bf16.vlgmr.msra.gmra.mxu2 %v20894_v4 }
 0x313   :  { %v18624_v53 = vld [vmem:[%s30893_s1 + $0x2eb0] sm:$0xf0]  ;;  %10671 = vmatpush.bf16.msra.mxu1 %v16451_v43  ;;  %10695 = vmatpush.bf16.msrb.mxu2 %v18755_v44 }
 0x314   :  { %v20180_v63 = vld [vmem:[%s30893_s1 + $0x2534] sm:$0xf]  ;;  %v18627_v46 = vor.u32 %v20468_v52, %v18624_v53  ;;  %v25001_v52 = vpop.f32.mrf.mxu2 }
 0x315   :  { %v17472_v1 = vld [vmem:[%s30893_s1 + $0x25b0] sm:$0xf0]  ;;  %10683 = vmatpush.bf16.msra.mxu0 %v17603_v59  ;;  %10659 = vmatpush.bf16.msra.mxu3 %v15299_v33  ;;  %v10394_v59 = vpop.f32.mrf.mxu0 }
 0x316   :  { %v19604_v11 = vld [vmem:[%s30893_s1 + $0x1334] sm:$0xf]  ;;  %v17475_v39 = vor.u32 %v20180_v63, %v17472_v1 }
 0x317   :  { %v15168_v18 = vld [vmem:[%s30893_s1 + $0x13b0] sm:$0xf0]  ;;  %10672 = vmatpush.bf16.msra.mxu1 %v16323_v0  ;;  %10696 = vmatpush.bf16.msrb.mxu2 %v18627_v46  ;;  %v13638_v0 = vld [vmem:[%s30893_s1 + $0x738] sm:$0xf] }
 0x318   :  { %v19860_v2 = vld [vmem:[%s30893_s1 + $0x1b34] sm:$0xf]  ;;  %v15171_v5 = vor.u32 %v19604_v11, %v15168_v18  ;;  %v19237_v11 = vld [vmem:[%s30893_s1 + $0x7b4] sm:$0xf0] }
 0x319   :  { %v16192_v38 = vld [vmem:[%s30893_s1 + $0x1bb0] sm:$0xf0]  ;;  %10684 = vmatpush.bf16.msra.mxu0 %v17475_v39  ;;  %v10381_v39 = vpop.f32.mrf.mxu3 }
 0x31a   :  { %v20436_v47 = vld [vmem:[%s30893_s1 + $0x2d34] sm:$0xf]  ;;  %v16195_v61 = vor.u32 %v19860_v2, %v16192_v38  ;;  %10660 = vmatpush.bf16.msra.mxu3 %v15171_v5  ;;  %v14662_v5 = vld [vmem:[%s30893_s1 + $0xf38] sm:$0xf] }
 0x31b   :  { %v18496_v20 = vld [vmem:[%s30893_s1 + $0x2db0] sm:$0xf0]  ;;  %v19685_v39 = vld [vmem:[%s30893_s1 + $0x15b4] sm:$0xf0] }
 0x31c   :  { %v20148_v26 = vld [vmem:[%s30893_s1 + $0x2434] sm:$0xf]  ;;  %v18499_v8 = vor.u32 %v20436_v47, %v18496_v20  ;;  %10673 = vmatpush.bf16.msra.mxu1 %v16195_v61  ;;  %v19493_v61 = vld [vmem:[%s30893_s1 + $0xfb4] sm:$0xf0] }
 0x31d   :  { %v17344_v41 = vld [vmem:[%s30893_s1 + $0x24b0] sm:$0xf0]  ;;  %v14663_v19 = vor.u32 %v19493_v61, %v14662_v5 }
 0x31e   :  { %v19572_v54 = vld [vmem:[%s30893_s1 + $0x1234] sm:$0xf]  ;;  %v17347_v14 = vor.u32 %v20148_v26, %v17344_v41  ;;  %10697 = vmatpush.bf16.msrb.mxu2 %v18499_v8  ;;  %v13639_v41 = vor.u32 %v19237_v11, %v13638_v0  ;;  %v13254_v0 = vld [vmem:[%s30893_s1 + $0x438] sm:$0xf] }
 0x31f   :  { %v15040_v13 = vld [vmem:[%s30893_s1 + $0x12b0] sm:$0xf0]  ;;  %v19141_v11 = vld [vmem:[%s30893_s1 + $0x4b4] sm:$0xf0] }
 0x320   :  { %v19828_v10 = vld [vmem:[%s30893_s1 + $0x1a34] sm:$0xf]  ;;  %v15043_v60 = vor.u32 %v19572_v54, %v15040_v13  ;;  %10685 = vmatpush.bf16.msra.mxu0 %v17347_v14  ;;  %v19205_v14 = vld [vmem:[%s30893_s1 + $0x6b4] sm:$0xf0] }
 0x321   :  { %v16064_v9 = vld [vmem:[%s30893_s1 + $0x1ab0] sm:$0xf0] }
 0x322   :  { %v20404_v17 = vld [vmem:[%s30893_s1 + $0x2c34] sm:$0xf]  ;;  %v16067_v27 = vor.u32 %v19828_v10, %v16064_v9  ;;  %10661 = vmatpush.bf16.msra.mxu3 %v15043_v60  ;;  %v13510_v9 = vld [vmem:[%s30893_s1 + $0x638] sm:$0xf] }
 0x323   :  { %v18368_v3 = vld [vmem:[%s30893_s1 + $0x2cb0] sm:$0xf0] }
 0x324   :  { %v20116_v16 = vld [vmem:[%s30893_s1 + $0x2334] sm:$0xf]  ;;  %v18371_v48 = vor.u32 %v20404_v17, %v18368_v3  ;;  %10674 = vmatpush.bf16.msra.mxu1 %v16067_v27  ;;  %v13511_v27 = vor.u32 %v19205_v14, %v13510_v9  ;;  %v15302_v14 = vld [vmem:[%s30893_s1 + $0x1438] sm:$0xf] }
 0x325   :  { %v17216_v21 = vld [vmem:[%s30893_s1 + $0x23b0] sm:$0xf0] }
 0x326   :  { %v19540_v28 = vld [vmem:[%s30893_s1 + $0x1134] sm:$0xf]  ;;  %v17219_v36 = vor.u32 %v20116_v16, %v17216_v21  ;;  %10698 = vmatpush.bf16.msrb.mxu2 %v18371_v48  ;;  %v15686_v16 = vld [vmem:[%s30893_s1 + $0x1738] sm:$0xf] }
 0x327   :  { %v14912_v37 = vld [vmem:[%s30893_s1 + $0x11b0] sm:$0xf0]  ;;  %v19749_v21 = vld [vmem:[%s30893_s1 + $0x17b4] sm:$0xf0] }
 0x328   :  { %v19796_v32 = vld [vmem:[%s30893_s1 + $0x1934] sm:$0xf]  ;;  %v14915_v50 = vor.u32 %v19540_v28, %v14912_v37  ;;  %10686 = vmatpush.bf16.msra.mxu0 %v17219_v36  ;;  %v14534_v28 = vld [vmem:[%s30893_s1 + $0xe38] sm:$0xf] }
 0x329   :  { %v15936_v24 = vld [vmem:[%s30893_s1 + $0x19b0] sm:$0xf0]  ;;  %v19461_v48 = vld [vmem:[%s30893_s1 + $0xeb4] sm:$0xf0] }
 0x32a   :  { %v20372_v29 = vld [vmem:[%s30893_s1 + $0x2b34] sm:$0xf]  ;;  %v15939_v44 = vor.u32 %v19796_v32, %v15936_v24  ;;  %10662 = vmatpush.bf16.msra.mxu3 %v14915_v50  ;;  %v25069_v32 = vpop.f32.mrf.mxu0  ;;  %v10407_v24 = vpop.f32.mrf.mxu2  ;;  %v16710_v50 = vld [vmem:[%s30893_s1 + $0x1f38] sm:$0xf] }
 0x32b   :  { %v18240_v40 = vld [vmem:[%s30893_s1 + $0x2bb0] sm:$0xf0] }
 0x32c   :  { %v20084_v42 = vld [vmem:[%s30893_s1 + $0x2234] sm:$0xf]  ;;  %v18243_v53 = vor.u32 %v20372_v29, %v18240_v40  ;;  %10675 = vmatpush.bf16.msra.mxu1 %v15939_v44  ;;  %v13382_v40 = vld [vmem:[%s30893_s1 + $0x538] sm:$0xf] }
 0x32d   :  { %v17088_v43 = vld [vmem:[%s30893_s1 + $0x22b0] sm:$0xf0]  ;;  %v20005_v44 = vld [vmem:[%s30893_s1 + $0x1fb4] sm:$0xf0] }
 0x32e   :  { %v19508_v31 = vld [vmem:[%s30893_s1 + $0x1034] sm:$0xf]  ;;  %v17091_v33 = vor.u32 %v20084_v42, %v17088_v43  ;;  %10699 = vmatpush.bf16.msrb.mxu2 %v18243_v53  ;;  %v19173_v42 = vld [vmem:[%s30893_s1 + $0x5b4] sm:$0xf0]  ;;  %v15687_v43 = vor.u32 %v19749_v21, %v15686_v16 }
 0x32f   :  { %v14784_v6 = vld [vmem:[%s30893_s1 + $0x10b0] sm:$0xf0]  ;;  %v13383_v53 = vor.u32 %v19173_v42, %v13382_v40  ;;  %v19365_v16 = vld [vmem:[%s30893_s1 + $0xbb4] sm:$0xf0] }
 0x330   :  { %v19764_v56 = vld [vmem:[%s30893_s1 + $0x1834] sm:$0xf]  ;;  %v14787_v47 = vor.u32 %v19508_v31, %v14784_v6  ;;  %10687 = vmatpush.bf16.msra.mxu0 %v17091_v33  ;;  %v14535_v31 = vor.u32 %v19461_v48, %v14534_v28  ;;  %v15558_v6 = vld [vmem:[%s30893_s1 + $0x1638] sm:$0xf]  ;;  %v16711_v33 = vor.u32 %v20005_v44, %v16710_v50 }
 0x331   :  { %v15808_v62 = vld [vmem:[%s30893_s1 + $0x18b0] sm:$0xf0]  ;;  %v19077_v28 = vld [vmem:[%s30893_s1 + $0x2b4] sm:$0xf0] }
 0x332   :  { %v20340_v63 = vld [vmem:[%s30893_s1 + $0x2a34] sm:$0xf]  ;;  %v15811_v20 = vor.u32 %v19764_v56, %v15808_v62  ;;  %10663 = vmatpush.bf16.msra.mxu3 %v14787_v47  ;;  %v19717_v56 = vld [vmem:[%s30893_s1 + $0x16b4] sm:$0xf0]  ;;  %v13255_v47 = vor.u32 %v19141_v11, %v13254_v0 }
 0x333   :  { %v18112_v1 = vld [vmem:[%s30893_s1 + $0x2ab0] sm:$0xf0]  ;;  %v14406_v62 = vld [vmem:[%s30893_s1 + $0xd38] sm:$0xf] }
 0x334   :  { %v20052_v46 = vld [vmem:[%s30893_s1 + $0x2134] sm:$0xf]  ;;  %v18115_v26 = vor.u32 %v20340_v63, %v18112_v1  ;;  %10676 = vmatpush.bf16.msra.mxu1 %v15811_v20  ;;  %v19429_v63 = vld [vmem:[%s30893_s1 + $0xdb4] sm:$0xf0]  ;;  %v10380_v1 = vadd.f32 %v24960_v22, %v24906_v58 }
 0x335   :  { %v16960_v18 = vld [vmem:[%s30893_s1 + $0x21b0] sm:$0xf0]  ;;  %10664 = vmatmul.bf16.vlgmr.msra.gmra.mxu3 %v20859_v51  ;;  %v19973_v58 = vld [vmem:[%s30893_s1 + $0x1eb4] sm:$0xf0]  ;;  %v14407_v22 = vor.u32 %v19429_v63, %v14406_v62 }
 0x336   :  { %v20532_v2 = vld [vmem:[%s30893_s1 + $0x3034] sm:$0xf]  ;;  %v16963_v8 = vor.u32 %v20052_v46, %v16960_v18  ;;  %10700 = vmatpush.bf16.msrb.mxu2 %v18115_v26  ;;  %v10418_v46 = vpop.f32.mrf.mxu1  ;;  %v15559_v18 = vor.u32 %v19717_v56, %v15558_v6  ;;  %v14278_v20 = vld [vmem:[%s30893_s1 + $0xc38] sm:$0xf]  ;;  %v10393_v5 = vadd.f32 %v24943_v7, %v10380_v1 }
 0x337   :  { %v18880_v38 = vld [vmem:[%s30893_s1 + $0x30b0] sm:$0xf0]  ;;  %10677 = vmatmul.bf16.vlgmr.msra.gmra.mxu1 %v20872_v57  ;;  %v19397_v26 = vld [vmem:[%s30893_s1 + $0xcb4] sm:$0xf0] }
 0x338   :  { %v20308_v54 = vld [vmem:[%s30893_s1 + $0x2934] sm:$0xf]  ;;  %v18883_v13 = vor.u32 %v20532_v2, %v18880_v38  ;;  %10721 = vmatpush.bf16.msrb.mxu1 %v13639_v41  ;;  %10688 = vmatpush.bf16.msra.mxu0 %v16963_v8  ;;  %v16582_v2 = vld [vmem:[%s30893_s1 + $0x1e38] sm:$0xf]  ;;  %v10446_v41 = vpop.f32.mrf.mxu0  ;;  %v14279_v9 = vor.u32 %v19397_v26, %v14278_v20  ;;  %v10406_v21 = vadd.f32 %v25001_v52, %v10393_v5  ;;  %v25217_v20 = vpop.f32.mrf.mxu2 }
 0x339   :  { %v17984_v10 = vld [vmem:[%s30893_s1 + $0x29b0] sm:$0xf0]  ;;  %v15430_v38 = vld [vmem:[%s30893_s1 + $0x1538] sm:$0xf]  ;;  %v16583_v61 = vor.u32 %v19973_v58, %v16582_v2 }
 0x33a   :  { %v20020_v17 = vld [vmem:[%s30893_s1 + $0x2034] sm:$0xf]  ;;  %v17987_v60 = vor.u32 %v20308_v54, %v17984_v10  ;;  %10715 = vmatpush.bf16.msrb.mxu3 %v18883_v13  ;;  %v13126_v54 = vld [vmem:[%s30893_s1 + $0x338] sm:$0xf]  ;;  %v15431_v13 = vor.u32 %v19685_v39, %v15430_v38 }
 0x33b   :  { %v16832_v3 = vld [vmem:[%s30893_s1 + $0x20b0] sm:$0xf0]  ;;  %v19109_v8 = vld [vmem:[%s30893_s1 + $0x3b4] sm:$0xf0] }
 0x33c   :  { %v20276_v37 = vld [vmem:[%s30893_s1 + $0x2834] sm:$0xf]  ;;  %v16835_v36 = vor.u32 %v20020_v17, %v16832_v3  ;;  %10701 = vmatpush.bf16.msrb.mxu2 %v17987_v60  ;;  %10722 = vmatpush.bf16.msrb.mxu1 %v13511_v27  ;;  %v16454_v10 = vld [vmem:[%s30893_s1 + $0x1d38] sm:$0xf]  ;;  %v13127_v3 = vor.u32 %v19109_v8, %v13126_v54 }
 0x33d   :  { %v17856_v29 = vld [vmem:[%s30893_s1 + $0x28b0] sm:$0xf0]  ;;  %v19941_v7 = vld [vmem:[%s30893_s1 + $0x1db4] sm:$0xf0] }
 0x33e   :  { %10734 = vmatpush.bf16.msra.mxu3 %v14663_v19  ;;  %v17859_v59 = vor.u32 %v20276_v37, %v17856_v29  ;;  %10689 = vmatpush.bf16.msra.mxu0 %v16835_v36  ;;  %v19653_v17 = vld [vmem:[%s30893_s1 + $0x14b4] sm:$0xf0]  ;;  %v16455_v60 = vor.u32 %v19941_v7, %v16454_v10  ;;  %v10420_v24 = vpop.f32.mrf.mxu1  ;;  %v10419_v36 = vadd.f32 %v10418_v46, %v10406_v21 }
 0x33f   :  { %v14150_v19 = vld [vmem:[%s30893_s1 + $0xb38] sm:$0xf]  ;;  %v15303_v48 = vor.u32 %v19653_v17, %v15302_v14 }
 0x340   :  { %10702 = vmatpush.bf16.msrb.mxu2 %v17859_v59  ;;  %10723 = vmatpush.bf16.msrb.mxu1 %v13383_v53  ;;  %v12998_v27 = vld [vmem:[%s30893_s1 + $0x238] sm:$0xf]  ;;  %v14151_v29 = vor.u32 %v19365_v16, %v14150_v19  ;;  %v25178_v6 = vpop.f32.mrf.mxu0 }
 0x341   :  { %10690 = vmatmul.bf16.vlgmr.msra.gmra.mxu0 %v21073_v30  ;;  %v16326_v37 = vld [vmem:[%s30893_s1 + $0x1c38] sm:$0xf]  ;;  %v12999_v50 = vor.u32 %v19077_v28, %v12998_v27 }
 0x342   :  { %10747 = vmatpush.bf16.msrb.mxu0 %v15687_v43  ;;  %10735 = vmatpush.bf16.msra.mxu3 %v14535_v31  ;;  %v19909_v52 = vld [vmem:[%s30893_s1 + $0x1cb4] sm:$0xf0]  ;;  %v10431_v43 = vpop.f32.mrf.mxu3 }
 0x343   :  { %10703 = vmatmul.bf16.vlgmr.msrb.gmra.mxu2 %v21084_v35  ;;  %v15174_v40 = vld [vmem:[%s30893_s1 + $0x1338] sm:$0xf]  ;;  %v10432_v56 = vadd.f32 %v10431_v43, %v10419_v36  ;;  %v16327_v59 = vor.u32 %v19909_v52, %v16326_v37 }
 0x344   :  { %10760 = vmatpush.bf16.msra.mxu2 %v16711_v33  ;;  %10724 = vmatpush.bf16.msrb.mxu1 %v13255_v47  ;;  %v19621_v42 = vld [vmem:[%s30893_s1 + $0x13b4] sm:$0xf0] }
 0x345   :  { %v14022_v44 = vld [vmem:[%s30893_s1 + $0xa38] sm:$0xf]  ;;  %18969 = vmatmul.msk.bf16.vlgmr.msrb.gmra.mxu3 %vm9443_vm0, %v20982_v45  ;;  %v15175_v63 = vor.u32 %v19621_v42, %v15174_v40  ;;  %v10445_v0 = vadd.f32 %v25069_v32, %v10432_v56 }
 0x346   :  { %10748 = vmatpush.bf16.msrb.mxu0 %v15559_v18  ;;  %10736 = vmatpush.bf16.msra.mxu3 %v14407_v22  ;;  %v19333_v31 = vld [vmem:[%s30893_s1 + $0xab4] sm:$0xf0] }
 0x347   :  { %v12870_v53 = vld [vmem:[%s30893_s1 + $0x138] sm:$0xf]  ;;  %v14023_v11 = vor.u32 %v19333_v31, %v14022_v44  ;;  %12424 = vrot.lane.b32.xlu1 %v10445_v0, %s20578_s20  ;;  %v19221_v0 = vld [vmem:[%s30893_s1 + $0x73c] sm:$0xf] }
 0x348   :  { %10761 = vmatpush.bf16.msra.mxu2 %v16583_v61  ;;  %10725 = vmatpush.bf16.msrb.mxu1 %v13127_v3  ;;  %v19045_v62 = vld [vmem:[%s30893_s1 + $0x1b4] sm:$0xf0]  ;;  %v10472_v17 = vpop.f32.mrf.mxu0 }
 0x349   :  { %v16198_v1 = vld [vmem:[%s30893_s1 + $0x1b38] sm:$0xf]  ;;  %v12871_v2 = vor.u32 %v19045_v62, %v12870_v53 }
 0x34a   :  { %10749 = vmatpush.bf16.msrb.mxu0 %v15431_v13  ;;  %10737 = vmatpush.bf16.msra.mxu3 %v14279_v9  ;;  %v19877_v33 = vld [vmem:[%s30893_s1 + $0x1bb4] sm:$0xf0]  ;;  %v10433_v14 = vpop.f32.mrf.mxu3 }
 0x34b   :  { %v15046_v46 = vld [vmem:[%s30893_s1 + $0x1238] sm:$0xf]  ;;  %v16199_v22 = vor.u32 %v19877_v33, %v16198_v1 }
 0x34c   :  { %10762 = vmatpush.bf16.msra.mxu2 %v16455_v60  ;;  %v19589_v18 = vld [vmem:[%s30893_s1 + $0x12b4] sm:$0xf0]  ;;  %10726 = vmatpush.bf16.msrb.mxu1 %v12999_v50 }
 0x34d   :  { %v13894_v58 = vld [vmem:[%s30893_s1 + $0x938] sm:$0xf]  ;;  %v15047_v26 = vor.u32 %v19589_v18, %v15046_v46  ;;  %v19477_v18 = vld [vmem:[%s30893_s1 + $0xf3c] sm:$0xf] }
 0x34e   :  { %10750 = vmatpush.bf16.msrb.mxu0 %v15303_v48  ;;  %10738 = vmatpush.bf16.msra.mxu3 %v14151_v29  ;;  %v19301_v32 = vld [vmem:[%s30893_s1 + $0x9b4] sm:$0xf0] }
 0x34f   :  { %v12742_v38 = vld [vmem:[%s30893_s1 + $0x38] sm:$0xf]  ;;  %v13895_v54 = vor.u32 %v19301_v32, %v13894_v58 }
 0x350   :  { %10763 = vmatpush.bf16.msra.mxu2 %v16327_v59  ;;  %v19013_v39 = vld [vmem:[%s30893_s1 + $0xb4] sm:$0xf0]  ;;  %10727 = vmatpush.bf16.msrb.mxu1 %v12871_v2  ;;  %v10459_v59 = vpop.f32.mrf.mxu2  ;;  %v14664_v2 = vld [vmem:[%s30893_s1 + $0xfb8] sm:$0xf0] }
 0x351   :  { %v16070_v47 = vld [vmem:[%s30893_s1 + $0x1a38] sm:$0xf]  ;;  %v12743_v10 = vor.u32 %v19013_v39, %v12742_v38 }
 0x352   :  { %10751 = vmatpush.bf16.msrb.mxu0 %v15175_v63  ;;  %v19845_v41 = vld [vmem:[%s30893_s1 + $0x1ab4] sm:$0xf0]  ;;  %10739 = vmatpush.bf16.msra.mxu3 %v14023_v11  ;;  %v13640_v11 = vld [vmem:[%s30893_s1 + $0x7b8] sm:$0xf0] }
 0x353   :  { %v17734_v5 = vld [vmem:[%s30893_s1 + $0x2738] sm:$0xf]  ;;  %v16071_v3 = vor.u32 %v19845_v41, %v16070_v47  ;;  %v13643_v39 = vor.u32 %v19221_v0, %v13640_v11  ;;  %v14667_v41 = vor.u32 %v19477_v18, %v14664_v2  ;;  %v10522_v2 = vpop.f32.mrf.mxu0 }
 0x354   :  { %v20261_v61 = vld [vmem:[%s30893_s1 + $0x27b4] sm:$0xf0]  ;;  %10764 = vmatpush.bf16.msra.mxu2 %v16199_v22  ;;  %10728 = vmatpush.bf16.msrb.mxu1 %v12743_v10  ;;  %v14536_v10 = vld [vmem:[%s30893_s1 + $0xeb8] sm:$0xf0] }
 0x355   :  { %v14918_v8 = vld [vmem:[%s30893_s1 + $0x1138] sm:$0xf]  ;;  %v17735_v19 = vor.u32 %v20261_v61, %v17734_v5  ;;  %v19189_v5 = vld [vmem:[%s30893_s1 + $0x63c] sm:$0xf] }
 0x356   :  { %v19557_v13 = vld [vmem:[%s30893_s1 + $0x11b4] sm:$0xf0]  ;;  %10752 = vmatpush.bf16.msrb.mxu0 %v15047_v26  ;;  %10740 = vmatpush.bf16.msra.mxu3 %v13895_v54  ;;  %v13512_v61 = vld [vmem:[%s30893_s1 + $0x6b8] sm:$0xf0]  ;;  %v10483_v54 = vpop.f32.mrf.mxu1 }
 0x357   :  { %v13766_v7 = vld [vmem:[%s30893_s1 + $0x838] sm:$0xf]  ;;  %v14919_v27 = vor.u32 %v19557_v13, %v14918_v8  ;;  %10729 = vmatmul.bf16.vlgmr.msrb.gmra.mxu1 %v20870_v55  ;;  %v19445_v13 = vld [vmem:[%s30893_s1 + $0xe3c] sm:$0xf]  ;;  %v13515_v17 = vor.u32 %v19189_v5, %v13512_v61 }
 0x358   :  { %v19269_v9 = vld [vmem:[%s30893_s1 + $0x8b4] sm:$0xf0]  ;;  %10765 = vmatpush.bf16.msra.mxu2 %v16071_v3  ;;  %10773 = vmatpush.bf16.msra.mxu1 %v17735_v19 }
 0x359   :  { %v18758_v16 = vld [vmem:[%s30893_s1 + $0x2f38] sm:$0xf]  ;;  %v13767_v52 = vor.u32 %v19269_v9, %v13766_v7 }
 0x35a   :  { %v20517_v21 = vld [vmem:[%s30893_s1 + $0x2fb4] sm:$0xf0]  ;;  %10753 = vmatpush.bf16.msrb.mxu0 %v14919_v27 }
 0x35b   :  { %v15942_v60 = vld [vmem:[%s30893_s1 + $0x1938] sm:$0xf]  ;;  %v18759_v29 = vor.u32 %v20517_v21, %v18758_v16  ;;  %10741 = vmatpush.bf16.msra.mxu3 %v13767_v52  ;;  %v14539_v16 = vor.u32 %v19445_v13, %v14536_v10  ;;  %v19157_v21 = vld [vmem:[%s30893_s1 + $0x53c] sm:$0xf]  ;;  %v10509_v10 = vpop.f32.mrf.mxu2 }
 0x35c   :  { %v19813_v28 = vld [vmem:[%s30893_s1 + $0x19b4] sm:$0xf0]  ;;  %v19061_v13 = vld [vmem:[%s30893_s1 + $0x23c] sm:$0xf] }
 0x35d   :  { %v17606_v48 = vld [vmem:[%s30893_s1 + $0x2638] sm:$0xf]  ;;  %v15943_v43 = vor.u32 %v19813_v28, %v15942_v60  ;;  %v13384_v60 = vld [vmem:[%s30893_s1 + $0x5b8] sm:$0xf0] }
 0x35e   :  { %v20229_v37 = vld [vmem:[%s30893_s1 + $0x26b4] sm:$0xf0]  ;;  %10742 = vmatmul.bf16.vlgmr.msra.gmra.mxu3 %v20894_v4  ;;  %v19413_v28 = vld [vmem:[%s30893_s1 + $0xd3c] sm:$0xf] }
 0x35f   :  { %v14790_v24 = vld [vmem:[%s30893_s1 + $0x1038] sm:$0xf]  ;;  %v17607_v50 = vor.u32 %v20229_v37, %v17606_v48  ;;  %10786 = vmatpush.bf16.msrb.mxu3 %v18759_v29  ;;  %10766 = vmatpush.bf16.msra.mxu2 %v15943_v43  ;;  %v14408_v48 = vld [vmem:[%s30893_s1 + $0xdb8] sm:$0xf0] }
 0x360   :  { %v19525_v36 = vld [vmem:[%s30893_s1 + $0x10b4] sm:$0xf0]  ;;  %v19125_v43 = vld [vmem:[%s30893_s1 + $0x43c] sm:$0xf] }
 0x361   :  { %v18886_v40 = vld [vmem:[%s30893_s1 + $0x3038] sm:$0xf]  ;;  %v14791_v53 = vor.u32 %v19525_v36, %v14790_v24  ;;  %10774 = vmatpush.bf16.msra.mxu1 %v17607_v50  ;;  %v13387_v36 = vor.u32 %v19157_v21, %v13384_v60  ;;  %v13256_v50 = vld [vmem:[%s30893_s1 + $0x4b8] sm:$0xf0] }
 0x362   :  { %v20549_v42 = vld [vmem:[%s30893_s1 + $0x30b4] sm:$0xf0]  ;;  %v13259_v11 = vor.u32 %v19125_v43, %v13256_v50  ;;  %v19317_v21 = vld [vmem:[%s30893_s1 + $0xa3c] sm:$0xf] }
 0x363   :  { %v18630_v44 = vld [vmem:[%s30893_s1 + $0x2e38] sm:$0xf]  ;;  %v18887_v33 = vor.u32 %v20549_v42, %v18886_v40  ;;  %10754 = vmatpush.bf16.msrb.mxu0 %v14791_v53  ;;  %v14411_v42 = vor.u32 %v19413_v28, %v14408_v48  ;;  %v19381_v53 = vld [vmem:[%s30893_s1 + $0xc3c] sm:$0xf] }
 0x364   :  { %v20485_v31 = vld [vmem:[%s30893_s1 + $0x2eb4] sm:$0xf0]  ;;  %v14024_v60 = vld [vmem:[%s30893_s1 + $0xab8] sm:$0xf0] }
 0x365   :  { %v15814_v56 = vld [vmem:[%s30893_s1 + $0x1838] sm:$0xf]  ;;  %v18631_v46 = vor.u32 %v20485_v31, %v18630_v44  ;;  %v12408_v44 = vpop.permute.xlu0 %12407  ;;  %v10471_v31 = vadd.f32 %v25178_v6, %v25217_v20  ;;  %v14027_v43 = vor.u32 %v19317_v21, %v14024_v60  ;;  %v19029_v50 = vld [vmem:[%s30893_s1 + $0x13c] sm:$0xf] }
 0x366   :  { %v19781_v62 = vld [vmem:[%s30893_s1 + $0x18b4] sm:$0xf0]  ;;  %10755 = vmatmul.bf16.vlgmr.msrb.gmra.mxu0 %v20859_v51  ;;  %v18632_v21 = vld [vmem:[%s30893_s1 + $0x2eb8] sm:$0xf0] }
 0x367   :  { %v17478_v63 = vld [vmem:[%s30893_s1 + $0x2538] sm:$0xf]  ;;  %v15815_v58 = vor.u32 %v19781_v62, %v15814_v56  ;;  %10806 = vmatpush.bf16.msra.mxu0 %v18887_v33  ;;  %10787 = vmatpush.bf16.msrb.mxu3 %v18631_v46  ;;  %v10485_v56 = vpop.f32.mrf.mxu1  ;;  %v14280_v62 = vld [vmem:[%s30893_s1 + $0xcb8] sm:$0xf0] }
 0x368   :  { %v20197_v1 = vld [vmem:[%s30893_s1 + $0x25b4] sm:$0xf0] }
 0x369   :  { %v17479_v32 = vor.u32 %v20197_v1, %v17478_v63  ;;  %v18502_v22 = vld [vmem:[%s30893_s1 + $0x2d38] sm:$0xf]  ;;  %10767 = vmatpush.bf16.msra.mxu2 %v15815_v58  ;;  %v10496_v63 = vpop.f32.mrf.mxu3  ;;  %v25378_v1 = vpop.permute.xlu1 %12409 }
 0x36a   :  { %v20453_v38 = vld [vmem:[%s30893_s1 + $0x2db4] sm:$0xf0]  ;;  %v12414_v0 = vsel %vm12413_vm4, %v12408_v44, %v25378_v1  ;;  %v12872_v44 = vld [vmem:[%s30893_s1 + $0x1b8] sm:$0xf0] }
 0x36b   :  { %v17350_v47 = vld [vmem:[%s30893_s1 + $0x2438] sm:$0xf]  ;;  %v18503_v8 = vor.u32 %v20453_v38, %v18502_v22  ;;  %10775 = vmatpush.bf16.msra.mxu1 %v17479_v32  ;;  %10825 = vmatpush.bf16.msrb.mxu0 %v14667_v41  ;;  %v25397_v58 = vmax.f32 %v12403_v49, %v12414_v0  ;;  %v14283_v32 = vor.u32 %v19381_v53, %v14280_v62  ;;  %v19093_v22 = vld [vmem:[%s30893_s1 + $0x33c] sm:$0xf] }
 0x36c   :  { %v20165_v26 = vld [vmem:[%s30893_s1 + $0x24b4] sm:$0xf0]  ;;  %10768 = vmatmul.bf16.vlgmr.msra.gmra.mxu2 %v20872_v57  ;;  %v13128_v38 = vld [vmem:[%s30893_s1 + $0x3b8] sm:$0xf0] }
 0x36d   :  { %v17351_v7 = vor.u32 %v20165_v26, %v17350_v47  ;;  %v18374_v9 = vld [vmem:[%s30893_s1 + $0x2c38] sm:$0xf]  ;;  %10812 = vmatpush.bf16.msrb.mxu2 %v13643_v39  ;;  %10788 = vmatpush.bf16.msrb.mxu3 %v18503_v8  ;;  %v10484_v39 = vadd.f32 %v10483_v54, %v10471_v31  ;;  %v19349_v26 = vld [vmem:[%s30893_s1 + $0xb3c] sm:$0xf]  ;;  %v13131_v61 = vor.u32 %v19093_v22, %v13128_v38 }
 0x36e   :  { %v20421_v14 = vld [vmem:[%s30893_s1 + $0x2cb4] sm:$0xf0]  ;;  %v19285_v31 = vld [vmem:[%s30893_s1 + $0x93c] sm:$0xf] }
 0x36f   :  { %v17222_v3 = vld [vmem:[%s30893_s1 + $0x2338] sm:$0xf]  ;;  %v18375_v27 = vor.u32 %v20421_v14, %v18374_v9  ;;  %10776 = vmatpush.bf16.msra.mxu1 %v17351_v7  ;;  %10826 = vmatpush.bf16.msrb.mxu0 %v14539_v16  ;;  %v10497_v5 = vadd.f32 %v10496_v63, %v10484_v39  ;;  %v14155_v7 = vor.u32 %v19349_v26, %v14152_v34  ;;  %v13000_v9 = vld [vmem:[%s30893_s1 + $0x2b8] sm:$0xf0] }
 0x370   :  { %v20133_v19 = vld [vmem:[%s30893_s1 + $0x23b4] sm:$0xf0]  ;;  %v19733_v14 = vld [vmem:[%s30893_s1 + $0x173c] sm:$0xf] }
 0x371   :  { %v17223_v37 = vor.u32 %v20133_v19, %v17222_v3  ;;  %v18246_v52 = vld [vmem:[%s30893_s1 + $0x2b38] sm:$0xf]  ;;  %10813 = vmatpush.bf16.msrb.mxu2 %v13515_v17  ;;  %10789 = vmatpush.bf16.msrb.mxu3 %v18375_v27  ;;  %v15688_v17 = vld [vmem:[%s30893_s1 + $0x17b8] sm:$0xf0]  ;;  %v10510_v3 = vadd.f32 %v10509_v10, %v10497_v5  ;;  %v10535_v19 = vpop.f32.mrf.mxu1  ;;  %v10498_v48 = vpop.f32.mrf.mxu3 }
 0x372   :  { %v20389_v24 = vld [vmem:[%s30893_s1 + $0x2bb4] sm:$0xf0]  ;;  %v19701_v53 = vld [vmem:[%s30893_s1 + $0x163c] sm:$0xf] }
 0x373   :  { %v17094_v29 = vld [vmem:[%s30893_s1 + $0x2238] sm:$0xf]  ;;  %v18247_v59 = vor.u32 %v20389_v24, %v18246_v52  ;;  %10777 = vmatpush.bf16.msra.mxu1 %v17223_v37  ;;  %10827 = vmatpush.bf16.msrb.mxu0 %v14411_v42  ;;  %v10523_v37 = vadd.f32 %v10522_v2, %v10510_v3  ;;  %v13003_v52 = vor.u32 %v19061_v13, %v13000_v9  ;;  %v10524_v42 = vpop.f32.mrf.mxu0  ;;  %v15560_v62 = vld [vmem:[%s30893_s1 + $0x16b8] sm:$0xf0]  ;;  %v10511_v2 = vpop.f32.mrf.mxu2 }
 0x374   :  { %v20101_v40 = vld [vmem:[%s30893_s1 + $0x22b4] sm:$0xf0]  ;;  %v15691_v24 = vor.u32 %v19733_v14, %v15688_v17  ;;  %v16584_v0 = vld [vmem:[%s30893_s1 + $0x1eb8] sm:$0xf0] }
 0x375   :  { %v17095_v33 = vor.u32 %v20101_v40, %v17094_v29  ;;  %v18118_v6 = vld [vmem:[%s30893_s1 + $0x2a38] sm:$0xf]  ;;  %10814 = vmatpush.bf16.msrb.mxu2 %v13387_v36  ;;  %10790 = vmatpush.bf16.msrb.mxu3 %v18247_v59  ;;  %v19989_v29 = vld [vmem:[%s30893_s1 + $0x1f3c] sm:$0xf]  ;;  %v10536_v56 = vadd.f32 %v10535_v19, %v10523_v37 }
 0x376   :  { %v20357_v20 = vld [vmem:[%s30893_s1 + $0x2ab4] sm:$0xf0]  ;;  %v16712_v40 = vld [vmem:[%s30893_s1 + $0x1fb8] sm:$0xf0]  ;;  %18970 = vmatmul.msk.bf16.vlgmr.msra.gmra.mxu0 %vm9443_vm0, %v20982_v45 }
 0x377   :  { %v16966_v46 = vld [vmem:[%s30893_s1 + $0x2138] sm:$0xf]  ;;  %v18119_v47 = vor.u32 %v20357_v20, %v18118_v6  ;;  %10778 = vmatpush.bf16.msra.mxu1 %v17095_v33  ;;  %10828 = vmatpush.bf16.msrb.mxu0 %v14283_v32  ;;  %v13896_v59 = vld [vmem:[%s30893_s1 + $0x9b8] sm:$0xf0]  ;;  %v16715_v33 = vor.u32 %v19989_v29, %v16712_v40  ;;  %v12875_v6 = vor.u32 %v19029_v50, %v12872_v44 }
 0x378   :  { %v20069_v18 = vld [vmem:[%s30893_s1 + $0x21b4] sm:$0xf0]  ;;  %v19957_v20 = vld [vmem:[%s30893_s1 + $0x1e3c] sm:$0xf]  ;;  %12426 = vrot.lane.b32.xlu2 %v10536_v56, %s20578_s20  ;;  %12437 = vrot.lane.b32.xlu0 %v10536_v56, %s20579_s25 }
 0x379   :  { %v16967_v12 = vor.u32 %v20069_v18, %v16966_v46  ;;  %v17990_v49 = vld [vmem:[%s30893_s1 + $0x2938] sm:$0xf]  ;;  %10815 = vmatpush.bf16.msrb.mxu2 %v13259_v11  ;;  %10791 = vmatpush.bf16.msrb.mxu3 %v18119_v47  ;;  %v18997_v11 = vld [vmem:[%s30893_s1 + $0x3c] sm:$0xf]  ;;  %v13899_v46 = vor.u32 %v19285_v31, %v13896_v59  ;;  %v15563_v18 = vor.u32 %v19701_v53, %v15560_v62  ;;  %v10537_v34 = vpop.f32.mrf.mxu1 }
 0x37a   :  { %v20325_v41 = vld [vmem:[%s30893_s1 + $0x29b4] sm:$0xf0]  ;;  %v12744_v32 = vld [vmem:[%s30893_s1 + $0xb8] sm:$0xf0]  ;;  %v16587_v5 = vor.u32 %v19957_v20, %v16584_v0 }
 0x37b   :  { %v16838_v54 = vld [vmem:[%s30893_s1 + $0x2038] sm:$0xf]  ;;  %v17991_v16 = vor.u32 %v20325_v41, %v17990_v49  ;;  %10779 = vmatpush.bf16.msra.mxu1 %v16967_v12  ;;  %10829 = vmatpush.bf16.msrb.mxu0 %v14155_v7  ;;  %v19253_v22 = vld [vmem:[%s30893_s1 + $0x83c] sm:$0xf] }
 0x37c   :  { %v20037_v8 = vld [vmem:[%s30893_s1 + $0x20b4] sm:$0xf0]  ;;  %v13768_v38 = vld [vmem:[%s30893_s1 + $0x8b8] sm:$0xf0] }
 0x37d   :  { %v16839_v27 = vor.u32 %v20037_v8, %v16838_v54  ;;  %v17862_v28 = vld [vmem:[%s30893_s1 + $0x2838] sm:$0xf]  ;;  %10816 = vmatpush.bf16.msrb.mxu2 %v13131_v61  ;;  %10792 = vmatpush.bf16.msrb.mxu3 %v17991_v16  ;;  %v19669_v39 = vld [vmem:[%s30893_s1 + $0x153c] sm:$0xf]  ;;  %v12747_v61 = vor.u32 %v18997_v11, %v12744_v32  ;;  %v13771_v54 = vor.u32 %v19253_v22, %v13768_v38 }
 0x37e   :  { %v20293_v36 = vld [vmem:[%s30893_s1 + $0x28b4] sm:$0xf0]  ;;  %v15432_v47 = vld [vmem:[%s30893_s1 + $0x15b8] sm:$0xf0] }
 0x37f   :  { %10780 = vmatpush.bf16.msra.mxu1 %v16839_v27  ;;  %v17863_v63 = vor.u32 %v20293_v36, %v17862_v28  ;;  %10830 = vmatpush.bf16.msrb.mxu0 %v14027_v43  ;;  %v20245_v26 = vld [vmem:[%s30893_s1 + $0x273c] sm:$0xf]  ;;  %v15435_v8 = vor.u32 %v19669_v39, %v15432_v47 }
 0x380   :  { %v17736_v12 = vld [vmem:[%s30893_s1 + $0x27b8] sm:$0xf0] }
 0x381   :  { %10817 = vmatpush.bf16.msrb.mxu2 %v13003_v52  ;;  %10793 = vmatpush.bf16.msrb.mxu3 %v17863_v63  ;;  %v20501_v49 = vld [vmem:[%s30893_s1 + $0x2f3c] sm:$0xf]  ;;  %v17739_v7 = vor.u32 %v20245_v26, %v17736_v12  ;;  %v25561_v50 = vpop.f32.mrf.mxu1  ;;  %v25606_v12 = vpop.f32.mrf.mxu0 }
 0x382   :  { %10781 = vmatmul.bf16.vlgmr.msra.gmra.mxu1 %v21073_v30  ;;  %v18760_v41 = vld [vmem:[%s30893_s1 + $0x2fb8] sm:$0xf0] }
 0x383   :  { %10838 = vmatpush.bf16.msrb.mxu1 %v15691_v24  ;;  %10831 = vmatpush.bf16.msrb.mxu0 %v13899_v46  ;;  %v19925_v13 = vld [vmem:[%s30893_s1 + $0x1d3c] sm:$0xf]  ;;  %v18763_v9 = vor.u32 %v20501_v49, %v18760_v41 }
 0x384   :  { %v16456_v10 = vld [vmem:[%s30893_s1 + $0x1db8] sm:$0xf0]  ;;  %10794 = vmatmul.bf16.vlgmr.msrb.gmra.mxu3 %v21084_v35 }
 0x385   :  { %10851 = vmatpush.bf16.msra.mxu3 %v16715_v33  ;;  %10818 = vmatpush.bf16.msrb.mxu2 %v12875_v6  ;;  %v19637_v14 = vld [vmem:[%s30893_s1 + $0x143c] sm:$0xf]  ;;  %v16459_v60 = vor.u32 %v19925_v13, %v16456_v10 }
 0x386   :  { %v15304_v17 = vld [vmem:[%s30893_s1 + $0x14b8] sm:$0xf0] }
 0x387   :  { %10839 = vmatpush.bf16.msrb.mxu1 %v15563_v18  ;;  %v20213_v3 = vld [vmem:[%s30893_s1 + $0x263c] sm:$0xf]  ;;  %10832 = vmatpush.bf16.msrb.mxu0 %v13771_v54  ;;  %v15307_v27 = vor.u32 %v19637_v14, %v15304_v17  ;;  %v25589_v18 = vpop.f32.mrf.mxu3 }
 0x388   :  { %v17608_v19 = vld [vmem:[%s30893_s1 + $0x26b8] sm:$0xf0] }
 0x389   :  { %v20469_v16 = vld [vmem:[%s30893_s1 + $0x2e3c] sm:$0xf]  ;;  %10852 = vmatpush.bf16.msra.mxu3 %v16587_v5  ;;  %10819 = vmatpush.bf16.msrb.mxu2 %v12747_v61  ;;  %v17611_v37 = vor.u32 %v20213_v3, %v17608_v19  ;;  %v10563_v61 = vpop.f32.mrf.mxu1 }
 0x38a   :  { %v19893_v28 = vld [vmem:[%s30893_s1 + $0x1c3c] sm:$0xf]  ;;  %v18635_v52 = vor.u32 %v20469_v16, %v18632_v21  ;;  %10833 = vmatmul.bf16.vlgmr.msrb.gmra.mxu0 %v20894_v4  ;;  %v16718_v61 = vld [vmem:[%s30893_s1 + $0x1f40] sm:$0xf] }
 0x38b   :  { %10840 = vmatpush.bf16.msrb.mxu1 %v15435_v8  ;;  %v16328_v48 = vld [vmem:[%s30893_s1 + $0x1cb8] sm:$0xf0]  ;;  %10877 = vmatpush.bf16.msra.mxu0 %v18763_v9 }
 0x38c   :  { %v19605_v24 = vld [vmem:[%s30893_s1 + $0x133c] sm:$0xf]  ;;  %10820 = vmatmul.bf16.vlgmr.msrb.gmra.mxu2 %v20870_v55  ;;  %v16331_v44 = vor.u32 %v19893_v28, %v16328_v48 }
 0x38d   :  { %10864 = vmatpush.bf16.msra.mxu2 %v17739_v7  ;;  %v15176_v36 = vld [vmem:[%s30893_s1 + $0x13b8] sm:$0xf0]  ;;  %10853 = vmatpush.bf16.msra.mxu3 %v16459_v60  ;;  %v25623_v7 = vpop.f32.mrf.mxu2 }
 0x38e   :  { %v20181_v29 = vld [vmem:[%s30893_s1 + $0x253c] sm:$0xf]  ;;  %v15179_v31 = vor.u32 %v19605_v24, %v15176_v36 }
 0x38f   :  { %v17480_v40 = vld [vmem:[%s30893_s1 + $0x25b8] sm:$0xf0]  ;;  %10841 = vmatpush.bf16.msrb.mxu1 %v15307_v27  ;;  %10878 = vmatpush.bf16.msra.mxu0 %v18635_v52  ;;  %v10550_v52 = vpop.f32.mrf.mxu3 }
 0x390   :  { %v20437_v42 = vld [vmem:[%s30893_s1 + $0x2d3c] sm:$0xf]  ;;  %v17483_v53 = vor.u32 %v20181_v29, %v17480_v40  ;;  %v13646_v29 = vld [vmem:[%s30893_s1 + $0x740] sm:$0xf] }
 0x391   :  { %v18504_v43 = vld [vmem:[%s30893_s1 + $0x2db8] sm:$0xf0]  ;;  %10865 = vmatpush.bf16.msra.mxu2 %v17611_v37  ;;  %10854 = vmatpush.bf16.msra.mxu3 %v16331_v44  ;;  %v19238_v40 = vld [vmem:[%s30893_s1 + $0x7bc] sm:$0xf0] }
 0x392   :  { %v19861_v56 = vld [vmem:[%s30893_s1 + $0x1b3c] sm:$0xf]  ;;  %v18507_v62 = vor.u32 %v20437_v42, %v18504_v43  ;;  %v14670_v44 = vld [vmem:[%s30893_s1 + $0xf40] sm:$0xf] }
 0x393   :  { %v16200_v59 = vld [vmem:[%s30893_s1 + $0x1bb8] sm:$0xf0]  ;;  %10842 = vmatpush.bf16.msrb.mxu1 %v15179_v31  ;;  %v19494_v31 = vld [vmem:[%s30893_s1 + $0xfbc] sm:$0xf0] }
 0x394   :  { %v19573_v63 = vld [vmem:[%s30893_s1 + $0x123c] sm:$0xf]  ;;  %v16203_v46 = vor.u32 %v19861_v56, %v16200_v59  ;;  %10879 = vmatpush.bf16.msra.mxu0 %v18507_v62  ;;  %v10589_v59 = vpop.f32.mrf.mxu0 }
 0x395   :  { %v15048_v33 = vld [vmem:[%s30893_s1 + $0x12b8] sm:$0xf0]  ;;  %10866 = vmatpush.bf16.msra.mxu2 %v17483_v53  ;;  %v16462_v59 = vld [vmem:[%s30893_s1 + $0x1d40] sm:$0xf] }
 0x396   :  { %v20149_v6 = vld [vmem:[%s30893_s1 + $0x243c] sm:$0xf]  ;;  %v15051_v2 = vor.u32 %v19573_v63, %v15048_v33  ;;  %10855 = vmatpush.bf16.msra.mxu3 %v16203_v46  ;;  %v19206_v46 = vld [vmem:[%s30893_s1 + $0x6bc] sm:$0xf0] }
 0x397   :  { %v17352_v20 = vld [vmem:[%s30893_s1 + $0x24b8] sm:$0xf0] }
 0x398   :  { %v20405_v0 = vld [vmem:[%s30893_s1 + $0x2c3c] sm:$0xf]  ;;  %v17355_v38 = vor.u32 %v20149_v6, %v17352_v20  ;;  %10843 = vmatpush.bf16.msrb.mxu1 %v15051_v2  ;;  %v13647_v20 = vor.u32 %v19238_v40, %v13646_v29  ;;  %v14542_v2 = vld [vmem:[%s30893_s1 + $0xe40] sm:$0xf] }
 0x399   :  { %v18376_v11 = vld [vmem:[%s30893_s1 + $0x2cb8] sm:$0xf0] }
 0x39a   :  { %v19829_v32 = vld [vmem:[%s30893_s1 + $0x1a3c] sm:$0xf]  ;;  %v18379_v39 = vor.u32 %v20405_v0, %v18376_v11  ;;  %10867 = vmatpush.bf16.msra.mxu2 %v17355_v38  ;;  %v14671_v0 = vor.u32 %v19494_v31, %v14670_v44  ;;  %v13518_v11 = vld [vmem:[%s30893_s1 + $0x640] sm:$0xf] }
 0x39b   :  { %v16072_v22 = vld [vmem:[%s30893_s1 + $0x1ab8] sm:$0xf0]  ;;  %v15438_v44 = vld [vmem:[%s30893_s1 + $0x1540] sm:$0xf] }
 0x39c   :  { %v19541_v47 = vld [vmem:[%s30893_s1 + $0x113c] sm:$0xf]  ;;  %v16075_v54 = vor.u32 %v19829_v32, %v16072_v22  ;;  %10880 = vmatpush.bf16.msra.mxu0 %v18379_v39  ;;  %v10576_v32 = vpop.f32.mrf.mxu2  ;;  %v19462_v39 = vld [vmem:[%s30893_s1 + $0xebc] sm:$0xf0] }
 0x39d   :  { %v14920_v26 = vld [vmem:[%s30893_s1 + $0x11b8] sm:$0xf0] }
 0x39e   :  { %v20117_v34 = vld [vmem:[%s30893_s1 + $0x233c] sm:$0xf]  ;;  %v14923_v8 = vor.u32 %v19541_v47, %v14920_v26  ;;  %10856 = vmatpush.bf16.msra.mxu3 %v16075_v54  ;;  %v20006_v54 = vld [vmem:[%s30893_s1 + $0x1fbc] sm:$0xf0] }
 0x39f   :  { %v17224_v49 = vld [vmem:[%s30893_s1 + $0x23b8] sm:$0xf0] }
 0x3a0   :  { %v20373_v41 = vld [vmem:[%s30893_s1 + $0x2b3c] sm:$0xf]  ;;  %v17227_v9 = vor.u32 %v20117_v34, %v17224_v49  ;;  %10844 = vmatpush.bf16.msrb.mxu1 %v14923_v8  ;;  %v13519_v8 = vor.u32 %v19206_v46, %v13518_v11  ;;  %v14158_v11 = vld [vmem:[%s30893_s1 + $0xb40] sm:$0xf] }
 0x3a1   :  { %v18248_v5 = vld [vmem:[%s30893_s1 + $0x2bb8] sm:$0xf0]  ;;  %v19366_v46 = vld [vmem:[%s30893_s1 + $0xbbc] sm:$0xf0] }
 0x3a2   :  { %v19797_v13 = vld [vmem:[%s30893_s1 + $0x193c] sm:$0xf]  ;;  %v18251_v14 = vor.u32 %v20373_v41, %v18248_v5  ;;  %10868 = vmatpush.bf16.msra.mxu2 %v17227_v9  ;;  %v15694_v41 = vld [vmem:[%s30893_s1 + $0x1740] sm:$0xf] }
 0x3a3   :  { %v15944_v10 = vld [vmem:[%s30893_s1 + $0x19b8] sm:$0xf0]  ;;  %v19750_v5 = vld [vmem:[%s30893_s1 + $0x17bc] sm:$0xf0] }
 0x3a4   :  { %v19509_v17 = vld [vmem:[%s30893_s1 + $0x103c] sm:$0xf]  ;;  %v15947_v27 = vor.u32 %v19797_v13, %v15944_v10  ;;  %10881 = vmatpush.bf16.msra.mxu0 %v18251_v14  ;;  %v14543_v13 = vor.u32 %v19462_v39, %v14542_v2  ;;  %v13390_v14 = vld [vmem:[%s30893_s1 + $0x540] sm:$0xf] }
 0x3a5   :  { %v14792_v3 = vld [vmem:[%s30893_s1 + $0x10b8] sm:$0xf0]  ;;  %v15310_v2 = vld [vmem:[%s30893_s1 + $0x1440] sm:$0xf] }
 0x3a6   :  { %v20085_v19 = vld [vmem:[%s30893_s1 + $0x223c] sm:$0xf]  ;;  %v14795_v24 = vor.u32 %v19509_v17, %v14792_v3  ;;  %10857 = vmatpush.bf16.msra.mxu3 %v15947_v27  ;;  %v19174_v17 = vld [vmem:[%s30893_s1 + $0x5bc] sm:$0xf0]  ;;  %v15695_v3 = vor.u32 %v19750_v5, %v15694_v41  ;;  %v10562_v27 = vadd.f32 %v25561_v50, %v25589_v18 }
 0x3a7   :  { %v17096_v16 = vld [vmem:[%s30893_s1 + $0x22b8] sm:$0xf0]  ;;  %v13391_v52 = vor.u32 %v19174_v17, %v13390_v14  ;;  %v13262_v50 = vld [vmem:[%s30893_s1 + $0x440] sm:$0xf] }
 0x3a8   :  { %v20341_v21 = vld [vmem:[%s30893_s1 + $0x2a3c] sm:$0xf]  ;;  %v17099_v42 = vor.u32 %v20085_v19, %v17096_v16  ;;  %10845 = vmatpush.bf16.msrb.mxu1 %v14795_v24  ;;  %v16719_v19 = vor.u32 %v20006_v54, %v16718_v61  ;;  %v14414_v16 = vld [vmem:[%s30893_s1 + $0xd40] sm:$0xf]  ;;  %v10575_v31 = vadd.f32 %v25623_v7, %v10562_v27 }
 0x3a9   :  { %v18120_v60 = vld [vmem:[%s30893_s1 + $0x2ab8] sm:$0xf0]  ;;  %v19142_v18 = vld [vmem:[%s30893_s1 + $0x4bc] sm:$0xf0] }
 0x3aa   :  { %v19765_v28 = vld [vmem:[%s30893_s1 + $0x183c] sm:$0xf]  ;;  %v18123_v43 = vor.u32 %v20341_v21, %v18120_v60  ;;  %10869 = vmatpush.bf16.msra.mxu2 %v17099_v42  ;;  %v19430_v21 = vld [vmem:[%s30893_s1 + $0xdbc] sm:$0xf0]  ;;  %v10588_v32 = vadd.f32 %v25606_v12, %v10575_v31 }
 0x3ab   :  { %v20533_v48 = vld [vmem:[%s30893_s1 + $0x303c] sm:$0xf]  ;;  %10846 = vmatmul.bf16.vlgmr.msrb.gmra.mxu1 %v20859_v51  ;;  %v15566_v60 = vld [vmem:[%s30893_s1 + $0x1640] sm:$0xf]  ;;  %v14415_v24 = vor.u32 %v19430_v21, %v14414_v16 }
 0x3ac   :  { %v18888_v37 = vld [vmem:[%s30893_s1 + $0x30b8] sm:$0xf0]  ;;  %10882 = vmatpush.bf16.msra.mxu0 %v18123_v43  ;;  %v14286_v42 = vld [vmem:[%s30893_s1 + $0xc40] sm:$0xf] }
 0x3ad   :  { %v15816_v36 = vld [vmem:[%s30893_s1 + $0x18b8] sm:$0xf0]  ;;  %v18891_v53 = vor.u32 %v20533_v48, %v18888_v37  ;;  %v16590_v48 = vld [vmem:[%s30893_s1 + $0x1e40] sm:$0xf] }
 0x3ae   :  { %v20053_v56 = vld [vmem:[%s30893_s1 + $0x213c] sm:$0xf]  ;;  %v15819_v6 = vor.u32 %v19765_v28, %v15816_v36  ;;  %v19718_v28 = vld [vmem:[%s30893_s1 + $0x16bc] sm:$0xf0]  ;;  %v10626_v36 = vpop.f32.mrf.mxu2 }
 0x3af   :  { %v16968_v62 = vld [vmem:[%s30893_s1 + $0x21b8] sm:$0xf0]  ;;  %10897 = vmatpush.bf16.msra.mxu1 %v18891_v53  ;;  %v19974_v37 = vld [vmem:[%s30893_s1 + $0x1ebc] sm:$0xf0]  ;;  %v15567_v29 = vor.u32 %v19718_v28, %v15566_v60 }
 0x3b0   :  { %v20309_v63 = vld [vmem:[%s30893_s1 + $0x293c] sm:$0xf]  ;;  %v16971_v22 = vor.u32 %v20053_v56, %v16968_v62  ;;  %10858 = vmatpush.bf16.msra.mxu3 %v15819_v6  ;;  %v16591_v40 = vor.u32 %v19974_v37, %v16590_v48  ;;  %v19398_v43 = vld [vmem:[%s30893_s1 + $0xcbc] sm:$0xf0]  ;;  %v13263_v62 = vor.u32 %v19142_v18, %v13262_v50 }
 0x3b1   :  { %v17992_v33 = vld [vmem:[%s30893_s1 + $0x29b8] sm:$0xf0]  ;;  %v19686_v56 = vld [vmem:[%s30893_s1 + $0x15bc] sm:$0xf0] }
 0x3b2   :  { %v17995_v38 = vor.u32 %v20309_v63, %v17992_v33  ;;  %v20021_v47 = vld [vmem:[%s30893_s1 + $0x203c] sm:$0xf]  ;;  %10870 = vmatpush.bf16.msra.mxu2 %v16971_v22  ;;  %v19942_v53 = vld [vmem:[%s30893_s1 + $0x1dbc] sm:$0xf0]  ;;  %v10613_v63 = vpop.f32.mrf.mxu1  ;;  %v14287_v33 = vor.u32 %v19398_v43, %v14286_v42 }
 0x3b3   :  { %v16840_v26 = vld [vmem:[%s30893_s1 + $0x20b8] sm:$0xf0]  ;;  %10916 = vmatpush.bf16.msrb.mxu1 %v14671_v0  ;;  %10859 = vmatmul.bf16.vlgmr.msra.gmra.mxu3 %v20872_v57  ;;  %v13134_v7 = vld [vmem:[%s30893_s1 + $0x340] sm:$0xf]  ;;  %v16463_v0 = vor.u32 %v19942_v53, %v16462_v59 }
 0x3b4   :  { %v20277_v34 = vld [vmem:[%s30893_s1 + $0x283c] sm:$0xf]  ;;  %10903 = vmatpush.bf16.msrb.mxu3 %v13647_v20  ;;  %10883 = vmatpush.bf16.msra.mxu0 %v17995_v38  ;;  %v16843_v10 = vor.u32 %v20021_v47, %v16840_v26  ;;  %v19110_v6 = vld [vmem:[%s30893_s1 + $0x3bc] sm:$0xf0]  ;;  %v15439_v20 = vor.u32 %v19686_v56, %v15438_v44  ;;  %v10600_v47 = vpop.f32.mrf.mxu3 }
 0x3b5   :  { %v17864_v49 = vld [vmem:[%s30893_s1 + $0x28b8] sm:$0xf0]  ;;  %v19654_v22 = vld [vmem:[%s30893_s1 + $0x14bc] sm:$0xf0]  ;;  %v13135_v26 = vor.u32 %v19110_v6, %v13134_v7 }
 0x3b6   :  { %v17867_v9 = vor.u32 %v20277_v34, %v17864_v49  ;;  %10871 = vmatpush.bf16.msra.mxu2 %v16843_v10  ;;  %v16334_v38 = vld [vmem:[%s30893_s1 + $0x1c40] sm:$0xf]  ;;  %v10601_v34 = vadd.f32 %v10600_v47, %v10588_v32  ;;  %v14159_v49 = vor.u32 %v19366_v46, %v14158_v11  ;;  %v10628_v5 = vpop.f32.mrf.mxu2  ;;  %v15311_v61 = vor.u32 %v19654_v22, %v15310_v2 }
 0x3b7   :  { %10917 = vmatpush.bf16.msrb.mxu1 %v14543_v13  ;;  %v19910_v39 = vld [vmem:[%s30893_s1 + $0x1cbc] sm:$0xf0] }
 0x3b8   :  { %10904 = vmatpush.bf16.msrb.mxu3 %v13519_v8  ;;  %10884 = vmatpush.bf16.msra.mxu0 %v17867_v9  ;;  %v13006_v12 = vld [vmem:[%s30893_s1 + $0x240] sm:$0xf]  ;;  %v16335_v54 = vor.u32 %v19910_v39, %v16334_v38  ;;  %v25810_v9 = vpop.f32.mrf.mxu0  ;;  %v10614_v14 = vadd.f32 %v10613_v63, %v10601_v34 }
 0x3b9   :  { %10872 = vmatmul.bf16.vlgmr.msra.gmra.mxu2 %v21073_v30  ;;  %v19078_v41 = vld [vmem:[%s30893_s1 + $0x2bc] sm:$0xf0] }
 0x3ba   :  { %10929 = vmatpush.bf16.msrb.mxu2 %v15695_v3  ;;  %v14030_v8 = vld [vmem:[%s30893_s1 + $0xa40] sm:$0xf]  ;;  %v13007_v16 = vor.u32 %v19078_v41, %v13006_v12  ;;  %v10615_v21 = vpop.f32.mrf.mxu1  ;;  %v10627_v60 = vadd.f32 %v10626_v36, %v10614_v14 }
 0x3bb   :  { %10918 = vmatpush.bf16.msrb.mxu1 %v14415_v24  ;;  %10885 = vmatmul.bf16.vlgmr.msra.gmra.mxu0 %v21084_v35  ;;  %v19334_v13 = vld [vmem:[%s30893_s1 + $0xabc] sm:$0xf0] }
 0x3bc   :  { %10942 = vmatpush.bf16.msrb.mxu0 %v16719_v19  ;;  %10905 = vmatpush.bf16.msrb.mxu3 %v13391_v52  ;;  %v15182_v10 = vld [vmem:[%s30893_s1 + $0x1340] sm:$0xf]  ;;  %v14031_v27 = vor.u32 %v19334_v13, %v14030_v8  ;;  %v10602_v44 = vpop.f32.mrf.mxu3 }
 0x3bd   :  { %18971 = vmatmul.msk.bf16.vlgmr.msra.gmra.mxu1 %vm9443_vm0, %v20982_v45  ;;  %v19622_v17 = vld [vmem:[%s30893_s1 + $0x13bc] sm:$0xf0]  ;;  %12439 = vrot.lane.b32.xlu1 %v10627_v60, %s20579_s25 }
 0x3be   :  { %10930 = vmatpush.bf16.msrb.mxu2 %v15567_v29  ;;  %v16206_v3 = vld [vmem:[%s30893_s1 + $0x1b40] sm:$0xf]  ;;  %v15183_v37 = vor.u32 %v19622_v17, %v15182_v10 }
 0x3bf   :  { %10919 = vmatpush.bf16.msrb.mxu1 %v14287_v33  ;;  %v19878_v19 = vld [vmem:[%s30893_s1 + $0x1bbc] sm:$0xf0] }
 0x3c0   :  { %10943 = vmatpush.bf16.msrb.mxu0 %v16591_v40  ;;  %10906 = vmatpush.bf16.msrb.mxu3 %v13263_v62  ;;  %v12878_v28 = vld [vmem:[%s30893_s1 + $0x140] sm:$0xf]  ;;  %v16207_v52 = vor.u32 %v19878_v19, %v16206_v3  ;;  %v25860_v62 = vpop.f32.mrf.mxu2  ;;  %v19222_v19 = vld [vmem:[%s30893_s1 + $0x744] sm:$0xf] }
 0x3c1   :  { %v19046_v48 = vld [vmem:[%s30893_s1 + $0x1bc] sm:$0xf0] }
 0x3c2   :  { %10931 = vmatpush.bf16.msrb.mxu2 %v15439_v20  ;;  %v13902_v24 = vld [vmem:[%s30893_s1 + $0x940] sm:$0xf]  ;;  %v12879_v42 = vor.u32 %v19046_v48, %v12878_v28 }
 0x3c3   :  { %10920 = vmatpush.bf16.msrb.mxu1 %v14159_v49  ;;  %v19302_v50 = vld [vmem:[%s30893_s1 + $0x9bc] sm:$0xf0] }
 0x3c4   :  { %10944 = vmatpush.bf16.msrb.mxu0 %v16463_v0  ;;  %10907 = vmatpush.bf16.msrb.mxu3 %v13135_v26  ;;  %v15054_v18 = vld [vmem:[%s30893_s1 + $0x1240] sm:$0xf]  ;;  %v13903_v31 = vor.u32 %v19302_v50, %v13902_v24  ;;  %v10641_v0 = vpop.f32.mrf.mxu0 }
 0x3c5   :  { %v19590_v36 = vld [vmem:[%s30893_s1 + $0x12bc] sm:$0xf0] }
 0x3c6   :  { %10932 = vmatpush.bf16.msrb.mxu2 %v15311_v61  ;;  %v16078_v29 = vld [vmem:[%s30893_s1 + $0x1a40] sm:$0xf]  ;;  %v15055_v63 = vor.u32 %v19590_v36, %v15054_v18  ;;  %v19478_v18 = vld [vmem:[%s30893_s1 + $0xf44] sm:$0xf] }
 0x3c7   :  { %v19846_v40 = vld [vmem:[%s30893_s1 + $0x1abc] sm:$0xf0]  ;;  %10921 = vmatpush.bf16.msrb.mxu1 %v14031_v27  ;;  %v14672_v36 = vld [vmem:[%s30893_s1 + $0xfc0] sm:$0xf0] }
 0x3c8   :  { %10945 = vmatpush.bf16.msrb.mxu0 %v16335_v54  ;;  %10908 = vmatpush.bf16.msrb.mxu3 %v13007_v16  ;;  %v12750_v43 = vld [vmem:[%s30893_s1 + $0x40] sm:$0xf]  ;;  %v16079_v33 = vor.u32 %v19846_v40, %v16078_v29  ;;  %v13648_v16 = vld [vmem:[%s30893_s1 + $0x7c0] sm:$0xf0]  ;;  %v10654_v21 = vpop.f32.mrf.mxu2 }
 0x3c9   :  { %v19014_v56 = vld [vmem:[%s30893_s1 + $0xbc] sm:$0xf0]  ;;  %v13651_v29 = vor.u32 %v19222_v19, %v13648_v16 }
 0x3ca   :  { %v13774_v59 = vld [vmem:[%s30893_s1 + $0x840] sm:$0xf]  ;;  %10933 = vmatpush.bf16.msrb.mxu2 %v15183_v37  ;;  %v12751_v32 = vor.u32 %v19014_v56, %v12750_v43  ;;  %v13520_v43 = vld [vmem:[%s30893_s1 + $0x6c0] sm:$0xf0] }
 0x3cb   :  { %v19270_v53 = vld [vmem:[%s30893_s1 + $0x8bc] sm:$0xf0]  ;;  %10922 = vmatpush.bf16.msrb.mxu1 %v13903_v31  ;;  %v14675_v31 = vor.u32 %v19478_v18, %v14672_v36 }
 0x3cc   :  { %10946 = vmatpush.bf16.msrb.mxu0 %v16207_v52  ;;  %v17742_v7 = vld [vmem:[%s30893_s1 + $0x2740] sm:$0xf]  ;;  %10909 = vmatpush.bf16.msrb.mxu3 %v12879_v42  ;;  %v13775_v39 = vor.u32 %v19270_v53, %v13774_v59  ;;  %v19190_v42 = vld [vmem:[%s30893_s1 + $0x644] sm:$0xf]  ;;  %v10691_v19 = vpop.f32.mrf.mxu0 }
 0x3cd   :  { %v20262_v6 = vld [vmem:[%s30893_s1 + $0x27bc] sm:$0xf0] }
 0x3ce   :  { %v18766_v20 = vld [vmem:[%s30893_s1 + $0x2f40] sm:$0xf]  ;;  %v17743_v47 = vor.u32 %v20262_v6, %v17742_v7  ;;  %10934 = vmatpush.bf16.msrb.mxu2 %v15055_v63  ;;  %v14544_v7 = vld [vmem:[%s30893_s1 + $0xec0] sm:$0xf0]  ;;  %v13523_v6 = vor.u32 %v19190_v42, %v13520_v43 }
 0x3cf   :  { %v20518_v11 = vld [vmem:[%s30893_s1 + $0x2fbc] sm:$0xf0]  ;;  %10923 = vmatpush.bf16.msrb.mxu1 %v13775_v39 }
 0x3d0   :  { %v14926_v46 = vld [vmem:[%s30893_s1 + $0x1140] sm:$0xf]  ;;  %10947 = vmatpush.bf16.msrb.mxu0 %v16079_v33  ;;  %v18767_v34 = vor.u32 %v20518_v11, %v18766_v20  ;;  %10910 = vmatpush.bf16.msrb.mxu3 %v12751_v32  ;;  %v19446_v33 = vld [vmem:[%s30893_s1 + $0xe44] sm:$0xf]  ;;  %v10678_v20 = vpop.f32.mrf.mxu1 }
 0x3d1   :  { %v19558_v2 = vld [vmem:[%s30893_s1 + $0x11bc] sm:$0xf0]  ;;  %v19158_v11 = vld [vmem:[%s30893_s1 + $0x544] sm:$0xf]  ;;  %v14547_v32 = vor.u32 %v19446_v33, %v14544_v7 }
 0x3d2   :  { %v15950_v22 = vld [vmem:[%s30893_s1 + $0x1940] sm:$0xf]  ;;  %v14927_v49 = vor.u32 %v19558_v2, %v14926_v46  ;;  %10924 = vmatmul.bf16.vlgmr.msrb.gmra.mxu1 %v20894_v4  ;;  %v13392_v46 = vld [vmem:[%s30893_s1 + $0x5c0] sm:$0xf0] }
 0x3d3   :  { %v19814_v38 = vld [vmem:[%s30893_s1 + $0x19bc] sm:$0xf0]  ;;  %10968 = vmatpush.bf16.msra.mxu1 %v18767_v34  ;;  %10911 = vmatmul.bf16.vlgmr.msrb.gmra.mxu3 %v20870_v55  ;;  %v14416_v34 = vld [vmem:[%s30893_s1 + $0xdc0] sm:$0xf0] }
 0x3d4   :  { %v17614_v26 = vld [vmem:[%s30893_s1 + $0x2640] sm:$0xf]  ;;  %v15951_v61 = vor.u32 %v19814_v38, %v15950_v22  ;;  %10955 = vmatpush.bf16.msra.mxu3 %v17743_v47  ;;  %10935 = vmatpush.bf16.msrb.mxu2 %v14927_v49  ;;  %v13395_v49 = vor.u32 %v19158_v11, %v13392_v46  ;;  %v19318_v11 = vld [vmem:[%s30893_s1 + $0xa44] sm:$0xf] }
 0x3d5   :  { %v20230_v12 = vld [vmem:[%s30893_s1 + $0x26bc] sm:$0xf0]  ;;  %v14032_v46 = vld [vmem:[%s30893_s1 + $0xac0] sm:$0xf0] }
 0x3d6   :  { %v18638_v41 = vld [vmem:[%s30893_s1 + $0x2e40] sm:$0xf]  ;;  %v17615_v3 = vor.u32 %v20230_v12, %v17614_v26  ;;  %10948 = vmatpush.bf16.msrb.mxu0 %v15951_v61  ;;  %v19414_v26 = vld [vmem:[%s30893_s1 + $0xd44] sm:$0xf]  ;;  %v10653_v12 = vadd.f32 %v25860_v62, %v25810_v9 }
 0x3d7   :  { %v20486_v5 = vld [vmem:[%s30893_s1 + $0x2ebc] sm:$0xf0]  ;;  %v13264_v61 = vld [vmem:[%s30893_s1 + $0x4c0] sm:$0xf0] }
 0x3d8   :  { %v14798_v54 = vld [vmem:[%s30893_s1 + $0x1040] sm:$0xf]  ;;  %v18639_v60 = vor.u32 %v20486_v5, %v18638_v41  ;;  %10956 = vmatpush.bf16.msra.mxu3 %v17615_v3  ;;  %v19126_v5 = vld [vmem:[%s30893_s1 + $0x444] sm:$0xf]  ;;  %v10680_v21 = vpop.f32.mrf.mxu1 }
 0x3d9   :  { %v19526_v8 = vld [vmem:[%s30893_s1 + $0x10bc] sm:$0xf0]  ;;  %v14288_v3 = vld [vmem:[%s30893_s1 + $0xcc0] sm:$0xf0]  ;;  %v13267_v16 = vor.u32 %v19126_v5, %v13264_v61  ;;  %v14035_v5 = vor.u32 %v19318_v11, %v14032_v46 }
 0x3da   :  { %v15822_v13 = vld [vmem:[%s30893_s1 + $0x1840] sm:$0xf]  ;;  %v14799_v27 = vor.u32 %v19526_v8, %v14798_v54  ;;  %10969 = vmatpush.bf16.msra.mxu1 %v18639_v60  ;;  %v10665_v54 = vpop.f32.mrf.mxu3  ;;  %v19894_v11 = vld [vmem:[%s30893_s1 + $0x1c44] sm:$0xf] }
 0x3db   :  { %v19782_v10 = vld [vmem:[%s30893_s1 + $0x18bc] sm:$0xf0]  ;;  %v10666_v60 = vadd.f32 %v10665_v54, %v10653_v12  ;;  %v12880_v12 = vld [vmem:[%s30893_s1 + $0x1c0] sm:$0xf0] }
 0x3dc   :  { %v18894_v14 = vld [vmem:[%s30893_s1 + $0x3040] sm:$0xf]  ;;  %v15823_v52 = vor.u32 %v19782_v10, %v15822_v13  ;;  %10936 = vmatpush.bf16.msrb.mxu2 %v14799_v27  ;;  %v14419_v13 = vor.u32 %v19414_v26, %v14416_v34  ;;  %v16336_v46 = vld [vmem:[%s30893_s1 + $0x1cc0] sm:$0xf0] }
 0x3dd   :  { %v20550_v17 = vld [vmem:[%s30893_s1 + $0x30bc] sm:$0xf0]  ;;  %v10679_v43 = vadd.f32 %v10678_v20, %v10666_v60 }
 0x3de   :  { %v17486_v28 = vld [vmem:[%s30893_s1 + $0x2540] sm:$0xf]  ;;  %v18895_v50 = vor.u32 %v20550_v17, %v18894_v14  ;;  %10949 = vmatpush.bf16.msrb.mxu0 %v15823_v52  ;;  %v19382_v17 = vld [vmem:[%s30893_s1 + $0xc44] sm:$0xf] }
 0x3df   :  { %v20198_v48 = vld [vmem:[%s30893_s1 + $0x25bc] sm:$0xf0]  ;;  %10937 = vmatmul.bf16.vlgmr.msrb.gmra.mxu2 %v20859_v51  ;;  %v14291_v52 = vor.u32 %v19382_v17, %v14288_v3  ;;  %v10692_v26 = vadd.f32 %v10691_v19, %v10679_v43  ;;  %v16592_v17 = vld [vmem:[%s30893_s1 + $0x1ec0] sm:$0xf0] }
 0x3e0   :  { %v18510_v37 = vld [vmem:[%s30893_s1 + $0x2d40] sm:$0xf]  ;;  %v17487_v40 = vor.u32 %v20198_v48, %v17486_v28  ;;  %10988 = vmatpush.bf16.msra.mxu2 %v18895_v50  ;;  %v19094_v28 = vld [vmem:[%s30893_s1 + $0x344] sm:$0xf] }
 0x3e1   :  { %v20454_v24 = vld [vmem:[%s30893_s1 + $0x2dbc] sm:$0xf0]  ;;  %10950 = vmatmul.bf16.vlgmr.msrb.gmra.mxu0 %v20872_v57  ;;  %v13136_v48 = vld [vmem:[%s30893_s1 + $0x3c0] sm:$0xf0] }
 0x3e2   :  { %v18511_v44 = vor.u32 %v20454_v24, %v18510_v37  ;;  %v17358_v56 = vld [vmem:[%s30893_s1 + $0x2440] sm:$0xf]  ;;  %10994 = vmatpush.bf16.msra.mxu0 %v13651_v29  ;;  %10957 = vmatpush.bf16.msra.mxu3 %v17487_v40  ;;  %v19350_v29 = vld [vmem:[%s30893_s1 + $0xb44] sm:$0xf]  ;;  %v13139_v42 = vor.u32 %v19094_v28, %v13136_v48 }
 0x3e3   :  { %v20166_v59 = vld [vmem:[%s30893_s1 + $0x24bc] sm:$0xf0]  ;;  %v14160_v40 = vld [vmem:[%s30893_s1 + $0xbc0] sm:$0xf0] }
 0x3e4   :  { %v18382_v53 = vld [vmem:[%s30893_s1 + $0x2c40] sm:$0xf]  ;;  %v17359_v0 = vor.u32 %v20166_v59, %v17358_v56  ;;  %10970 = vmatpush.bf16.msra.mxu1 %v18511_v44  ;;  %11007 = vmatpush.bf16.msrb.mxu2 %v14675_v31  ;;  %v19062_v31 = vld [vmem:[%s30893_s1 + $0x244] sm:$0xf]  ;;  %v14163_v33 = vor.u32 %v19350_v29, %v14160_v40 }
 0x3e5   :  { %v20422_v63 = vld [vmem:[%s30893_s1 + $0x2cbc] sm:$0xf0]  ;;  %v13008_v56 = vld [vmem:[%s30893_s1 + $0x2c0] sm:$0xf0] }
 0x3e6   :  { %v18383_v2 = vor.u32 %v20422_v63, %v18382_v53  ;;  %v17230_v22 = vld [vmem:[%s30893_s1 + $0x2340] sm:$0xf]  ;;  %10995 = vmatpush.bf16.msra.mxu0 %v13523_v6  ;;  %10958 = vmatpush.bf16.msra.mxu3 %v17359_v0  ;;  %v10667_v53 = vpop.f32.mrf.mxu3  ;;  %v10704_v0 = vpop.f32.mrf.mxu2  ;;  %v18998_v19 = vld [vmem:[%s30893_s1 + $0x44] sm:$0xf] }
 0x3e7   :  { %v20134_v38 = vld [vmem:[%s30893_s1 + $0x23bc] sm:$0xf0]  ;;  %v10705_v3 = vadd.f32 %v10704_v0, %v10692_v26  ;;  %v17744_v28 = vld [vmem:[%s30893_s1 + $0x27c0] sm:$0xf0] }
 0x3e8   :  { %v18254_v39 = vld [vmem:[%s30893_s1 + $0x2b40] sm:$0xf]  ;;  %v17231_v41 = vor.u32 %v20134_v38, %v17230_v22  ;;  %10971 = vmatpush.bf16.msra.mxu1 %v18383_v2  ;;  %11008 = vmatpush.bf16.msrb.mxu2 %v14547_v32  ;;  %v19734_v2 = vld [vmem:[%s30893_s1 + $0x1744] sm:$0xf]  ;;  %v10693_v32 = vpop.f32.mrf.mxu0  ;;  %v13011_v22 = vor.u32 %v19062_v31, %v13008_v56 }
 0x3e9   :  { %v20390_v47 = vld [vmem:[%s30893_s1 + $0x2bbc] sm:$0xf0]  ;;  %v15696_v38 = vld [vmem:[%s30893_s1 + $0x17c0] sm:$0xf0] }
 0x3ea   :  { %v18255_v8 = vor.u32 %v20390_v47, %v18254_v39  ;;  %v17102_v10 = vld [vmem:[%s30893_s1 + $0x2240] sm:$0xf]  ;;  %10996 = vmatpush.bf16.msra.mxu0 %v13395_v49  ;;  %10959 = vmatpush.bf16.msra.mxu3 %v17231_v41  ;;  %v19990_v39 = vld [vmem:[%s30893_s1 + $0x1f44] sm:$0xf]  ;;  %v15699_v61 = vor.u32 %v19734_v2, %v15696_v38  ;;  %v26168_v38 = vpop.f32.mrf.mxu1 }
 0x3eb   :  { %v20102_v9 = vld [vmem:[%s30893_s1 + $0x22bc] sm:$0xf0]  ;;  %v16720_v47 = vld [vmem:[%s30893_s1 + $0x1fc0] sm:$0xf0] }
 0x3ec   :  { %v18126_v62 = vld [vmem:[%s30893_s1 + $0x2a40] sm:$0xf]  ;;  %v17103_v27 = vor.u32 %v20102_v9, %v17102_v10  ;;  %10972 = vmatpush.bf16.msra.mxu1 %v18255_v8  ;;  %11009 = vmatpush.bf16.msrb.mxu2 %v14419_v13  ;;  %v19030_v49 = vld [vmem:[%s30893_s1 + $0x144] sm:$0xf]  ;;  %v16723_v54 = vor.u32 %v19990_v39, %v16720_v47 }
 0x3ed   :  { %v20358_v14 = vld [vmem:[%s30893_s1 + $0x2abc] sm:$0xf0]  ;;  %v19286_v8 = vld [vmem:[%s30893_s1 + $0x944] sm:$0xf]  ;;  %v12883_v9 = vor.u32 %v19030_v49, %v12880_v12  ;;  %v16339_v49 = vor.u32 %v19894_v11, %v16336_v46 }
 0x3ee   :  { %v18127_v37 = vor.u32 %v20358_v14, %v18126_v62  ;;  %v16974_v24 = vld [vmem:[%s30893_s1 + $0x2140] sm:$0xf]  ;;  %10997 = vmatpush.bf16.msra.mxu0 %v13267_v16  ;;  %10960 = vmatpush.bf16.msra.mxu3 %v17103_v27  ;;  %v13904_v13 = vld [vmem:[%s30893_s1 + $0x9c0] sm:$0xf0]  ;;  %v10717_v21 = vpop.f32.mrf.mxu3 }
 0x3ef   :  { %v20070_v50 = vld [vmem:[%s30893_s1 + $0x21bc] sm:$0xf0]  ;;  %18972 = vmatmul.msk.bf16.vlgmr.msra.gmra.mxu2 %vm9443_vm0, %v20982_v45  ;;  %v19702_v10 = vld [vmem:[%s30893_s1 + $0x1644] sm:$0xf]  ;;  %v13907_v60 = vor.u32 %v19286_v8, %v13904_v13  ;;  %v10718_v48 = vadd.f32 %v10717_v21, %v10705_v3 }
 0x3f0   :  { %v17998_v18 = vld [vmem:[%s30893_s1 + $0x2940] sm:$0xf]  ;;  %v16975_v44 = vor.u32 %v20070_v50, %v16974_v24  ;;  %10973 = vmatpush.bf16.msra.mxu1 %v18127_v37  ;;  %11010 = vmatpush.bf16.msrb.mxu2 %v14291_v52  ;;  %v15568_v62 = vld [vmem:[%s30893_s1 + $0x16c0] sm:$0xf0] }
 0x3f1   :  { %v20326_v36 = vld [vmem:[%s30893_s1 + $0x29bc] sm:$0xf0]  ;;  %v19958_v14 = vld [vmem:[%s30893_s1 + $0x1e44] sm:$0xf]  ;;  %v15571_v37 = vor.u32 %v19702_v10, %v15568_v62  ;;  %12441 = vrot.lane.b32.xlu2 %v10718_v48, %s20579_s25  ;;  %12452 = vrot.lane.b32.xlu0 %v10718_v48, %s20580_s19 }
 0x3f2   :  { %v16846_v59 = vld [vmem:[%s30893_s1 + $0x2040] sm:$0xf]  ;;  %v17999_v63 = vor.u32 %v20326_v36, %v17998_v18  ;;  %10998 = vmatpush.bf16.msra.mxu0 %v13139_v42  ;;  %10961 = vmatpush.bf16.msra.mxu3 %v16975_v44  ;;  %v12752_v16 = vld [vmem:[%s30893_s1 + $0xc0] sm:$0xf0]  ;;  %v16595_v52 = vor.u32 %v19958_v14, %v16592_v17  ;;  %v10706_v36 = vpop.f32.mrf.mxu2 }
 0x3f3   :  { %v20038_v7 = vld [vmem:[%s30893_s1 + $0x20bc] sm:$0xf0]  ;;  %v20246_v27 = vld [vmem:[%s30893_s1 + $0x2744] sm:$0xf]  ;;  %v12755_v29 = vor.u32 %v18998_v19, %v12752_v16  ;;  %v26205_v19 = vpop.f32.mrf.mxu0 }
 0x3f4   :  { %v17870_v6 = vld [vmem:[%s30893_s1 + $0x2840] sm:$0xf]  ;;  %v16847_v34 = vor.u32 %v20038_v7, %v16846_v59  ;;  %10974 = vmatpush.bf16.msra.mxu1 %v17999_v63  ;;  %11011 = vmatpush.bf16.msrb.mxu2 %v14163_v33  ;;  %v19254_v24 = vld [vmem:[%s30893_s1 + $0x844] sm:$0xf]  ;;  %v17747_v44 = vor.u32 %v20246_v27, %v17744_v28 }
 0x3f5   :  { %v20294_v20 = vld [vmem:[%s30893_s1 + $0x28bc] sm:$0xf0]  ;;  %v13776_v50 = vld [vmem:[%s30893_s1 + $0x8c0] sm:$0xf0] }
 0x3f6   :  { %v17871_v41 = vor.u32 %v20294_v20, %v17870_v6  ;;  %10999 = vmatpush.bf16.msra.mxu0 %v13011_v22  ;;  %10962 = vmatpush.bf16.msra.mxu3 %v16847_v34  ;;  %v19670_v18 = vld [vmem:[%s30893_s1 + $0x1544] sm:$0xf]  ;;  %v13779_v59 = vor.u32 %v19254_v24, %v13776_v50  ;;  %v10719_v39 = vpop.f32.mrf.mxu3 }
 0x3f7   :  { %v15440_v40 = vld [vmem:[%s30893_s1 + $0x15c0] sm:$0xf0] }
 0x3f8   :  { %10975 = vmatpush.bf16.msra.mxu1 %v17871_v41  ;;  %11012 = vmatpush.bf16.msrb.mxu2 %v14035_v5  ;;  %v19926_v42 = vld [vmem:[%s30893_s1 + $0x1d44] sm:$0xf]  ;;  %v15443_v33 = vor.u32 %v19670_v18, %v15440_v40 }
 0x3f9   :  { %10963 = vmatmul.bf16.vlgmr.msra.gmra.mxu3 %v21073_v30  ;;  %v16464_v43 = vld [vmem:[%s30893_s1 + $0x1dc0] sm:$0xf0] }
 0x3fa   :  { %11020 = vmatpush.bf16.msrb.mxu3 %v15699_v61  ;;  %11000 = vmatpush.bf16.msra.mxu0 %v12883_v9  ;;  %v20502_v31 = vld [vmem:[%s30893_s1 + $0x2f44] sm:$0xf]  ;;  %v16467_v7 = vor.u32 %v19926_v42, %v16464_v43 }
 0x3fb   :  { %v18768_v56 = vld [vmem:[%s30893_s1 + $0x2fc0] sm:$0xf0]  ;;  %10976 = vmatmul.bf16.vlgmr.msra.gmra.mxu1 %v21084_v35  ;;  %v10758_v46 = vpop.f32.mrf.mxu0 }
 0x3fc   :  { %11033 = vmatpush.bf16.msrb.mxu1 %v16723_v54  ;;  %11013 = vmatpush.bf16.msrb.mxu2 %v13907_v60  ;;  %v20214_v53 = vld [vmem:[%s30893_s1 + $0x2644] sm:$0xf]  ;;  %v18771_v20 = vor.u32 %v20502_v31, %v18768_v56 }
 0x3fd   :  { %v17616_v63 = vld [vmem:[%s30893_s1 + $0x26c0] sm:$0xf0] }
 0x3fe   :  { %11021 = vmatpush.bf16.msrb.mxu3 %v15571_v37  ;;  %v19638_v6 = vld [vmem:[%s30893_s1 + $0x1444] sm:$0xf]  ;;  %11001 = vmatpush.bf16.msra.mxu0 %v12755_v29  ;;  %v17619_v2 = vor.u32 %v20214_v53, %v17616_v63  ;;  %v26222_v24 = vpop.f32.mrf.mxu3 }
 0x3ff   :  { %v15312_v0 = vld [vmem:[%s30893_s1 + $0x14c0] sm:$0xf0] }
 0x400   :  { %11034 = vmatpush.bf16.msrb.mxu1 %v16595_v52  ;;  %v20470_v32 = vld [vmem:[%s30893_s1 + $0x2e44] sm:$0xf]  ;;  %11014 = vmatpush.bf16.msrb.mxu2 %v13779_v59  ;;  %v15315_v34 = vor.u32 %v19638_v6, %v15312_v0  ;;  %v10732_v52 = vpop.f32.mrf.mxu1 }
 0x401   :  { %v18640_v22 = vld [vmem:[%s30893_s1 + $0x2ec0] sm:$0xf0]  ;;  %11002 = vmatmul.bf16.vlgmr.msra.gmra.mxu0 %v20870_v55  ;;  %v15702_v52 = vld [vmem:[%s30893_s1 + $0x1748] sm:$0xf] }
 0x402   :  { %11046 = vmatpush.bf16.msrb.mxu0 %v17747_v44  ;;  %v20182_v47 = vld [vmem:[%s30893_s1 + $0x2544] sm:$0xf]  ;;  %11022 = vmatpush.bf16.msrb.mxu3 %v15443_v33  ;;  %v18643_v41 = vor.u32 %v20470_v32, %v18640_v22 }
 0x403   :  { %v17488_v26 = vld [vmem:[%s30893_s1 + $0x25c0] sm:$0xf0]  ;;  %11015 = vmatmul.bf16.vlgmr.msrb.gmra.mxu2 %v20894_v4 }
 0x404   :  { %11035 = vmatpush.bf16.msrb.mxu1 %v16467_v7  ;;  %v19606_v12 = vld [vmem:[%s30893_s1 + $0x1344] sm:$0xf]  ;;  %11059 = vmatpush.bf16.msra.mxu2 %v18771_v20  ;;  %v17491_v8 = vor.u32 %v20182_v47, %v17488_v26 }
 0x405   :  { %v15184_v5 = vld [vmem:[%s30893_s1 + $0x13c0] sm:$0xf0] }
 0x406   :  { %v19862_v61 = vld [vmem:[%s30893_s1 + $0x1b44] sm:$0xf]  ;;  %11047 = vmatpush.bf16.msrb.mxu0 %v17619_v2  ;;  %11023 = vmatpush.bf16.msrb.mxu3 %v15315_v34  ;;  %v15187_v14 = vor.u32 %v19606_v12, %v15184_v5  ;;  %v26263_v2 = vpop.f32.mrf.mxu2  ;;  %v13654_v34 = vld [vmem:[%s30893_s1 + $0x748] sm:$0xf] }
 0x407   :  { %v16208_v54 = vld [vmem:[%s30893_s1 + $0x1bc0] sm:$0xf0] }
 0x408   :  { %v20438_v13 = vld [vmem:[%s30893_s1 + $0x2d44] sm:$0xf]  ;;  %11036 = vmatpush.bf16.msrb.mxu1 %v16339_v49  ;;  %v16211_v17 = vor.u32 %v19862_v61, %v16208_v54  ;;  %11060 = vmatpush.bf16.msra.mxu2 %v18643_v41  ;;  %v19239_v49 = vld [vmem:[%s30893_s1 + $0x7c4] sm:$0xf0]  ;;  %v10745_v54 = vpop.f32.mrf.mxu3 }
 0x409   :  { %v18512_v10 = vld [vmem:[%s30893_s1 + $0x2dc0] sm:$0xf0] }
 0x40a   :  { %v20150_v9 = vld [vmem:[%s30893_s1 + $0x2444] sm:$0xf]  ;;  %v18515_v16 = vor.u32 %v20438_v13, %v18512_v10  ;;  %11048 = vmatpush.bf16.msrb.mxu0 %v17491_v8  ;;  %11024 = vmatpush.bf16.msrb.mxu3 %v15187_v14  ;;  %v19495_v14 = vld [vmem:[%s30893_s1 + $0xfc4] sm:$0xf0] }
 0x40b   :  { %v17360_v62 = vld [vmem:[%s30893_s1 + $0x24c0] sm:$0xf0] }
 0x40c   :  { %v19574_v3 = vld [vmem:[%s30893_s1 + $0x1244] sm:$0xf]  ;;  %v17363_v28 = vor.u32 %v20150_v9, %v17360_v62  ;;  %11037 = vmatpush.bf16.msrb.mxu1 %v16211_v17  ;;  %11061 = vmatpush.bf16.msra.mxu2 %v18515_v16  ;;  %v13655_v9 = vor.u32 %v19239_v49, %v13654_v34  ;;  %v14678_v62 = vld [vmem:[%s30893_s1 + $0xf48] sm:$0xf]  ;;  %v10782_v49 = vpop.f32.mrf.mxu1 }
 0x40d   :  { %v15056_v21 = vld [vmem:[%s30893_s1 + $0x12c0] sm:$0xf0]  ;;  %v19143_v34 = vld [vmem:[%s30893_s1 + $0x4c4] sm:$0xf0] }
 0x40e   :  { %v19830_v60 = vld [vmem:[%s30893_s1 + $0x1a44] sm:$0xf]  ;;  %v15059_v36 = vor.u32 %v19574_v3, %v15056_v21  ;;  %11049 = vmatpush.bf16.msrb.mxu0 %v17363_v28 }
 0x40f   :  { %v16080_v27 = vld [vmem:[%s30893_s1 + $0x1ac0] sm:$0xf0] }
 0x410   :  { %v20406_v48 = vld [vmem:[%s30893_s1 + $0x2c44] sm:$0xf]  ;;  %v16083_v29 = vor.u32 %v19830_v60, %v16080_v27  ;;  %11025 = vmatpush.bf16.msrb.mxu3 %v15059_v36  ;;  %v13526_v60 = vld [vmem:[%s30893_s1 + $0x648] sm:$0xf] }
 0x411   :  { %v18384_v37 = vld [vmem:[%s30893_s1 + $0x2cc0] sm:$0xf0]  ;;  %v19207_v27 = vld [vmem:[%s30893_s1 + $0x6c4] sm:$0xf0] }
 0x412   :  { %v20118_v50 = vld [vmem:[%s30893_s1 + $0x2344] sm:$0xf]  ;;  %v18387_v42 = vor.u32 %v20406_v48, %v18384_v37  ;;  %11038 = vmatpush.bf16.msrb.mxu1 %v16083_v29  ;;  %v14679_v37 = vor.u32 %v19495_v14, %v14678_v62  ;;  %v13527_v36 = vor.u32 %v19207_v27, %v13526_v60  ;;  %v14550_v29 = vld [vmem:[%s30893_s1 + $0xe48] sm:$0xf] }
 0x413   :  { %v17232_v18 = vld [vmem:[%s30893_s1 + $0x23c0] sm:$0xf0]  ;;  %v13142_v14 = vld [vmem:[%s30893_s1 + $0x348] sm:$0xf] }
 0x414   :  { %v19542_v40 = vld [vmem:[%s30893_s1 + $0x1144] sm:$0xf]  ;;  %v17235_v56 = vor.u32 %v20118_v50, %v17232_v18  ;;  %11062 = vmatpush.bf16.msra.mxu2 %v18387_v42  ;;  %v19751_v50 = vld [vmem:[%s30893_s1 + $0x17c4] sm:$0xf0] }
 0x415   :  { %v14928_v43 = vld [vmem:[%s30893_s1 + $0x11c0] sm:$0xf0]  ;;  %v15318_v60 = vld [vmem:[%s30893_s1 + $0x1448] sm:$0xf] }
 0x416   :  { %v19798_v44 = vld [vmem:[%s30893_s1 + $0x1944] sm:$0xf]  ;;  %v14931_v7 = vor.u32 %v19542_v40, %v14928_v43  ;;  %11050 = vmatpush.bf16.msrb.mxu0 %v17235_v56  ;;  %v19463_v40 = vld [vmem:[%s30893_s1 + $0xec4] sm:$0xf0]  ;;  %v26331_v43 = vpop.f32.mrf.mxu0 }
 0x417   :  { %v15952_v31 = vld [vmem:[%s30893_s1 + $0x19c0] sm:$0xf0]  ;;  %v19655_v27 = vld [vmem:[%s30893_s1 + $0x14c4] sm:$0xf0] }
 0x418   :  { %v20374_v59 = vld [vmem:[%s30893_s1 + $0x2b44] sm:$0xf]  ;;  %v15955_v6 = vor.u32 %v19798_v44, %v15952_v31  ;;  %11026 = vmatpush.bf16.msrb.mxu3 %v14931_v7  ;;  %v10771_v44 = vpop.f32.mrf.mxu2  ;;  %v20007_v7 = vld [vmem:[%s30893_s1 + $0x1fc4] sm:$0xf0] }
 0x419   :  { %v18256_v53 = vld [vmem:[%s30893_s1 + $0x2bc0] sm:$0xf0] }
 0x41a   :  { %v20086_v63 = vld [vmem:[%s30893_s1 + $0x2244] sm:$0xf]  ;;  %v18259_v32 = vor.u32 %v20374_v59, %v18256_v53  ;;  %11039 = vmatpush.bf16.msrb.mxu1 %v15955_v6  ;;  %v13398_v59 = vld [vmem:[%s30893_s1 + $0x548] sm:$0xf]  ;;  %v14551_v6 = vor.u32 %v19463_v40, %v14550_v29  ;;  %v15319_v29 = vor.u32 %v19655_v27, %v15318_v60 }
 0x41b   :  { %v17104_v33 = vld [vmem:[%s30893_s1 + $0x22c0] sm:$0xf0]  ;;  %v19175_v53 = vld [vmem:[%s30893_s1 + $0x5c4] sm:$0xf0] }
 0x41c   :  { %v19510_v20 = vld [vmem:[%s30893_s1 + $0x1044] sm:$0xf]  ;;  %v17107_v26 = vor.u32 %v20086_v63, %v17104_v33  ;;  %11063 = vmatpush.bf16.msra.mxu2 %v18259_v32  ;;  %v15703_v63 = vor.u32 %v19751_v50, %v15702_v52  ;;  %v16726_v33 = vld [vmem:[%s30893_s1 + $0x1f48] sm:$0xf]  ;;  %v13399_v46 = vor.u32 %v19175_v53, %v13398_v59  ;;  %v10795_v53 = vpop.f32.mrf.mxu3 }
 0x41d   :  { %v14800_v0 = vld [vmem:[%s30893_s1 + $0x10c0] sm:$0xf0]  ;;  %v14422_v32 = vld [vmem:[%s30893_s1 + $0xd48] sm:$0xf] }
 0x41e   :  { %v19766_v11 = vld [vmem:[%s30893_s1 + $0x1844] sm:$0xf]  ;;  %v14803_v8 = vor.u32 %v19510_v20, %v14800_v0  ;;  %11051 = vmatpush.bf16.msrb.mxu0 %v17107_v26  ;;  %v15574_v20 = vld [vmem:[%s30893_s1 + $0x1648] sm:$0xf] }
 0x41f   :  { %v15824_v22 = vld [vmem:[%s30893_s1 + $0x18c0] sm:$0xf0]  ;;  %v19719_v0 = vld [vmem:[%s30893_s1 + $0x16c4] sm:$0xf0] }
 0x420   :  { %v20342_v39 = vld [vmem:[%s30893_s1 + $0x2a44] sm:$0xf]  ;;  %v15827_v13 = vor.u32 %v19766_v11, %v15824_v22  ;;  %11027 = vmatpush.bf16.msrb.mxu3 %v14803_v8  ;;  %v19431_v22 = vld [vmem:[%s30893_s1 + $0xdc4] sm:$0xf0] }
 0x421   :  { %v18128_v47 = vld [vmem:[%s30893_s1 + $0x2ac0] sm:$0xf0]  ;;  %v13270_v26 = vld [vmem:[%s30893_s1 + $0x448] sm:$0xf] }
 0x422   :  { %v20054_v12 = vld [vmem:[%s30893_s1 + $0x2144] sm:$0xf]  ;;  %v18131_v10 = vor.u32 %v20342_v39, %v18128_v47  ;;  %11040 = vmatpush.bf16.msrb.mxu1 %v15827_v13  ;;  %v10744_v39 = vadd.f32 %v26222_v24, %v26168_v38  ;;  %v16727_v47 = vor.u32 %v20007_v7, %v16726_v33  ;;  %v19975_v38 = vld [vmem:[%s30893_s1 + $0x1ec4] sm:$0xf0]  ;;  %v14423_v24 = vor.u32 %v19431_v22, %v14422_v32 }
 0x423   :  { %v16976_v41 = vld [vmem:[%s30893_s1 + $0x21c0] sm:$0xf0]  ;;  %11028 = vmatmul.bf16.vlgmr.msrb.gmra.mxu3 %v20859_v51  ;;  %v13271_v54 = vor.u32 %v19143_v34, %v13270_v26  ;;  %v14294_v8 = vld [vmem:[%s30893_s1 + $0xc48] sm:$0xf] }
 0x424   :  { %v20534_v5 = vld [vmem:[%s30893_s1 + $0x3044] sm:$0xf]  ;;  %v16979_v3 = vor.u32 %v20054_v12, %v16976_v41  ;;  %11064 = vmatpush.bf16.msra.mxu2 %v18131_v10  ;;  %v15575_v12 = vor.u32 %v19719_v0, %v15574_v20  ;;  %v16598_v41 = vld [vmem:[%s30893_s1 + $0x1e48] sm:$0xf]  ;;  %v10810_v10 = vpop.f32.mrf.mxu0 }
 0x425   :  { %v18896_v61 = vld [vmem:[%s30893_s1 + $0x30c0] sm:$0xf0]  ;;  %11041 = vmatmul.bf16.vlgmr.msrb.gmra.mxu1 %v20872_v57  ;;  %v19399_v13 = vld [vmem:[%s30893_s1 + $0xcc4] sm:$0xf0]  ;;  %v16599_v62 = vor.u32 %v19975_v38, %v16598_v41 }
 0x426   :  { %v20310_v17 = vld [vmem:[%s30893_s1 + $0x2944] sm:$0xf]  ;;  %v18899_v16 = vor.u32 %v20534_v5, %v18896_v61  ;;  %11085 = vmatpush.bf16.msra.mxu1 %v13655_v9  ;;  %11052 = vmatpush.bf16.msrb.mxu0 %v16979_v3  ;;  %v15446_v5 = vld [vmem:[%s30893_s1 + $0x1548] sm:$0xf]  ;;  %v10757_v9 = vadd.f32 %v26205_v19, %v10744_v39 }
 0x427   :  { %v18000_v21 = vld [vmem:[%s30893_s1 + $0x29c0] sm:$0xf0]  ;;  %v19687_v61 = vld [vmem:[%s30893_s1 + $0x15c4] sm:$0xf0] }
 0x428   :  { %v20022_v28 = vld [vmem:[%s30893_s1 + $0x2044] sm:$0xf]  ;;  %v18003_v18 = vor.u32 %v20310_v17, %v18000_v21  ;;  %11079 = vmatpush.bf16.msra.mxu3 %v18899_v16  ;;  %v19111_v17 = vld [vmem:[%s30893_s1 + $0x3c4] sm:$0xf0]  ;;  %v15447_v3 = vor.u32 %v19687_v61, %v15446_v5  ;;  %v14295_v21 = vor.u32 %v19399_v13, %v14294_v8  ;;  %v10770_v52 = vadd.f32 %v26263_v2, %v10757_v9 }
 0x429   :  { %v16848_v48 = vld [vmem:[%s30893_s1 + $0x20c0] sm:$0xf0]  ;;  %v16470_v16 = vld [vmem:[%s30893_s1 + $0x1d48] sm:$0xf] }
 0x42a   :  { %v20278_v42 = vld [vmem:[%s30893_s1 + $0x2844] sm:$0xf]  ;;  %v16851_v31 = vor.u32 %v20022_v28, %v16848_v48  ;;  %11065 = vmatpush.bf16.msra.mxu2 %v18003_v18  ;;  %11086 = vmatpush.bf16.msra.mxu1 %v13527_v36  ;;  %v19943_v19 = vld [vmem:[%s30893_s1 + $0x1dc4] sm:$0xf0]  ;;  %v13143_v28 = vor.u32 %v19111_v17, %v13142_v14  ;;  %v10783_v44 = vadd.f32 %v10782_v49, %v10770_v52 }
 0x42b   :  { %v17872_v56 = vld [vmem:[%s30893_s1 + $0x28c0] sm:$0xf0]  ;;  %v14166_v48 = vld [vmem:[%s30893_s1 + $0xb48] sm:$0xf]  ;;  %v16471_v50 = vor.u32 %v19943_v19, %v16470_v16 }
 0x42c   :  { %11098 = vmatpush.bf16.msrb.mxu3 %v14679_v37  ;;  %v17875_v11 = vor.u32 %v20278_v42, %v17872_v56  ;;  %11053 = vmatpush.bf16.msrb.mxu0 %v16851_v31  ;;  %v19367_v37 = vld [vmem:[%s30893_s1 + $0xbc4] sm:$0xf0]  ;;  %v10784_v42 = vpop.f32.mrf.mxu1  ;;  %v10796_v20 = vadd.f32 %v10795_v53, %v10783_v44 }
 0x42d   :  { %v13014_v18 = vld [vmem:[%s30893_s1 + $0x248] sm:$0xf]  ;;  %v14167_v31 = vor.u32 %v19367_v37, %v14166_v48 }
 0x42e   :  { %11066 = vmatpush.bf16.msra.mxu2 %v17875_v11  ;;  %11087 = vmatpush.bf16.msra.mxu1 %v13399_v46  ;;  %v19079_v36 = vld [vmem:[%s30893_s1 + $0x2c4] sm:$0xf0] }
 0x42f   :  { %11054 = vmatmul.bf16.vlgmr.msrb.gmra.mxu0 %v21073_v30  ;;  %v16342_v40 = vld [vmem:[%s30893_s1 + $0x1c48] sm:$0xf] }
 0x430   :  { %11111 = vmatpush.bf16.msra.mxu0 %v15703_v63  ;;  %11099 = vmatpush.bf16.msrb.mxu3 %v14551_v6  ;;  %v19911_v2 = vld [vmem:[%s30893_s1 + $0x1cc4] sm:$0xf0]  ;;  %v13015_v63 = vor.u32 %v19079_v36, %v13014_v18  ;;  %v26440_v6 = vpop.f32.mrf.mxu0 }
 0x431   :  { %11067 = vmatmul.bf16.vlgmr.msra.gmra.mxu2 %v21084_v35  ;;  %v15190_v56 = vld [vmem:[%s30893_s1 + $0x1348] sm:$0xf]  ;;  %v16343_v0 = vor.u32 %v19911_v2, %v16342_v40 }
 0x432   :  { %11124 = vmatpush.bf16.msrb.mxu2 %v16727_v47  ;;  %11088 = vmatpush.bf16.msra.mxu1 %v13271_v54  ;;  %v19623_v59 = vld [vmem:[%s30893_s1 + $0x13c4] sm:$0xf0]  ;;  %v10809_v47 = vadd.f32 %v26331_v43, %v10796_v20  ;;  %v26479_v54 = vpop.f32.mrf.mxu2 }
 0x433   :  { %v14038_v33 = vld [vmem:[%s30893_s1 + $0xa48] sm:$0xf]  ;;  %18973 = vmatmul.msk.bf16.vlgmr.msra.gmra.mxu3 %vm9443_vm0, %v20982_v45  ;;  %v15191_v32 = vor.u32 %v19623_v59, %v15190_v56 }
 0x434   :  { %11112 = vmatpush.bf16.msra.mxu0 %v15575_v12  ;;  %11100 = vmatpush.bf16.msrb.mxu3 %v14423_v24  ;;  %v19335_v7 = vld [vmem:[%s30893_s1 + $0xac4] sm:$0xf0] }
 0x435   :  { %v12886_v11 = vld [vmem:[%s30893_s1 + $0x148] sm:$0xf]  ;;  %v14039_v26 = vor.u32 %v19335_v7, %v14038_v33  ;;  %12454 = vrot.lane.b32.xlu1 %v10809_v47, %s20580_s19  ;;  %v13656_v47 = vld [vmem:[%s30893_s1 + $0x7c8] sm:$0xf0] }
 0x436   :  { %11125 = vmatpush.bf16.msrb.mxu2 %v16599_v62  ;;  %11089 = vmatpush.bf16.msra.mxu1 %v13143_v28  ;;  %v19047_v46 = vld [vmem:[%s30893_s1 + $0x1c4] sm:$0xf0] }
 0x437   :  { %v16214_v22 = vld [vmem:[%s30893_s1 + $0x1b48] sm:$0xf]  ;;  %v12887_v12 = vor.u32 %v19047_v46, %v12886_v11 }
 0x438   :  { %11113 = vmatpush.bf16.msra.mxu0 %v15447_v3  ;;  %11101 = vmatpush.bf16.msrb.mxu3 %v14295_v21  ;;  %v19879_v39 = vld [vmem:[%s30893_s1 + $0x1bc4] sm:$0xf0]  ;;  %v10797_v21 = vpop.f32.mrf.mxu3  ;;  %v10836_v60 = vpop.f32.mrf.mxu0 }
 0x439   :  { %v15062_v34 = vld [vmem:[%s30893_s1 + $0x1248] sm:$0xf]  ;;  %v16215_v38 = vor.u32 %v19879_v39, %v16214_v22  ;;  %v19223_v39 = vld [vmem:[%s30893_s1 + $0x74c] sm:$0xf] }
 0x43a   :  { %11126 = vmatpush.bf16.msrb.mxu2 %v16471_v50  ;;  %v19591_v49 = vld [vmem:[%s30893_s1 + $0x12c4] sm:$0xf0]  ;;  %11090 = vmatpush.bf16.msra.mxu1 %v13015_v63  ;;  %v10823_v20 = vpop.f32.mrf.mxu2 }
 0x43b   :  { %v13910_v41 = vld [vmem:[%s30893_s1 + $0x948] sm:$0xf]  ;;  %v15063_v8 = vor.u32 %v19591_v49, %v15062_v34  ;;  %v19479_v34 = vld [vmem:[%s30893_s1 + $0xf4c] sm:$0xf] }
 0x43c   :  { %11114 = vmatpush.bf16.msra.mxu0 %v15319_v29  ;;  %11102 = vmatpush.bf16.msrb.mxu3 %v14167_v31  ;;  %v19303_v43 = vld [vmem:[%s30893_s1 + $0x9c4] sm:$0xf0]  ;;  %v14680_v49 = vld [vmem:[%s30893_s1 + $0xfc8] sm:$0xf0] }
 0x43d   :  { %v12758_v24 = vld [vmem:[%s30893_s1 + $0x48] sm:$0xf]  ;;  %v13911_v62 = vor.u32 %v19303_v43, %v13910_v41  ;;  %v14296_v20 = vld [vmem:[%s30893_s1 + $0xcc8] sm:$0xf0] }
 0x43e   :  { %11127 = vmatpush.bf16.msrb.mxu2 %v16343_v0  ;;  %v19015_v5 = vld [vmem:[%s30893_s1 + $0xc4] sm:$0xf0]  ;;  %11091 = vmatpush.bf16.msra.mxu1 %v12887_v12 }
 0x43f   :  { %v16086_v61 = vld [vmem:[%s30893_s1 + $0x1a48] sm:$0xf]  ;;  %v12759_v3 = vor.u32 %v19015_v5, %v12758_v24  ;;  %v13659_v24 = vor.u32 %v19223_v39, %v13656_v47  ;;  %v12412_v47 = vpop.permute.xlu2 %12411 }
 0x440   :  { %11115 = vmatpush.bf16.msra.mxu0 %v15191_v32  ;;  %v19847_v13 = vld [vmem:[%s30893_s1 + $0x1ac4] sm:$0xf0]  ;;  %11103 = vmatpush.bf16.msrb.mxu3 %v14039_v26  ;;  %v10886_v39 = vpop.f32.mrf.mxu0 }
 0x441   :  { %v17750_v10 = vld [vmem:[%s30893_s1 + $0x2748] sm:$0xf]  ;;  %v16087_v27 = vor.u32 %v19847_v13, %v16086_v61  ;;  %v19191_v13 = vld [vmem:[%s30893_s1 + $0x64c] sm:$0xf] }
 0x442   :  { %v20263_v9 = vld [vmem:[%s30893_s1 + $0x27c4] sm:$0xf0]  ;;  %11128 = vmatpush.bf16.msrb.mxu2 %v16215_v38  ;;  %11092 = vmatpush.bf16.msra.mxu1 %v12759_v3 }
 0x443   :  { %v14934_v14 = vld [vmem:[%s30893_s1 + $0x1148] sm:$0xf]  ;;  %v17751_v28 = vor.u32 %v20263_v9, %v17750_v10  ;;  %v13528_v10 = vld [vmem:[%s30893_s1 + $0x6c8] sm:$0xf0]  ;;  %v10847_v9 = vpop.f32.mrf.mxu1 }
 0x444   :  { %v19559_v17 = vld [vmem:[%s30893_s1 + $0x11c4] sm:$0xf0]  ;;  %11116 = vmatpush.bf16.msra.mxu0 %v15063_v8  ;;  %11104 = vmatpush.bf16.msrb.mxu3 %v13911_v62  ;;  %v14683_v8 = vor.u32 %v19479_v34, %v14680_v49  ;;  %v13531_v21 = vor.u32 %v19191_v13, %v13528_v10  ;;  %v19095_v34 = vld [vmem:[%s30893_s1 + $0x34c] sm:$0xf] }
 0x445   :  { %v13782_v16 = vld [vmem:[%s30893_s1 + $0x848] sm:$0xf]  ;;  %v14935_v50 = vor.u32 %v19559_v17, %v14934_v14  ;;  %11093 = vmatmul.bf16.vlgmr.msra.gmra.mxu1 %v20870_v55  ;;  %v19447_v14 = vld [vmem:[%s30893_s1 + $0xe4c] sm:$0xf] }
 0x446   :  { %v19271_v19 = vld [vmem:[%s30893_s1 + $0x8c4] sm:$0xf0]  ;;  %11129 = vmatpush.bf16.msrb.mxu2 %v16087_v27  ;;  %11137 = vmatpush.bf16.msrb.mxu1 %v17751_v28  ;;  %v14552_v17 = vld [vmem:[%s30893_s1 + $0xec8] sm:$0xf0] }
 0x447   :  { %v18774_v48 = vld [vmem:[%s30893_s1 + $0x2f48] sm:$0xf]  ;;  %v13783_v40 = vor.u32 %v19271_v19, %v13782_v16  ;;  %v14555_v28 = vor.u32 %v19447_v14, %v14552_v17  ;;  %v13144_v49 = vld [vmem:[%s30893_s1 + $0x3c8] sm:$0xf0]  ;;  %v10873_v14 = vpop.f32.mrf.mxu2 }
 0x448   :  { %v20519_v37 = vld [vmem:[%s30893_s1 + $0x2fc4] sm:$0xf0]  ;;  %11117 = vmatpush.bf16.msra.mxu0 %v14935_v50  ;;  %v19415_v50 = vld [vmem:[%s30893_s1 + $0xd4c] sm:$0xf]  ;;  %v13147_v13 = vor.u32 %v19095_v34, %v13144_v49 }
 0x449   :  { %v15958_v52 = vld [vmem:[%s30893_s1 + $0x1948] sm:$0xf]  ;;  %v18775_v44 = vor.u32 %v20519_v37, %v18774_v48  ;;  %11105 = vmatpush.bf16.msrb.mxu3 %v13783_v40  ;;  %v19159_v48 = vld [vmem:[%s30893_s1 + $0x54c] sm:$0xf] }
 0x44a   :  { %v19815_v18 = vld [vmem:[%s30893_s1 + $0x19c4] sm:$0xf0]  ;;  %v13400_v37 = vld [vmem:[%s30893_s1 + $0x5c8] sm:$0xf0] }
 0x44b   :  { %v17622_v36 = vld [vmem:[%s30893_s1 + $0x2648] sm:$0xf]  ;;  %v15959_v59 = vor.u32 %v19815_v18, %v15958_v52  ;;  %v14424_v18 = vld [vmem:[%s30893_s1 + $0xdc8] sm:$0xf0] }
 0x44c   :  { %v20231_v29 = vld [vmem:[%s30893_s1 + $0x26c4] sm:$0xf0]  ;;  %11106 = vmatmul.bf16.vlgmr.msrb.gmra.mxu3 %v20894_v4  ;;  %v12760_v49 = vld [vmem:[%s30893_s1 + $0xc8] sm:$0xf0] }
 0x44d   :  { %v14806_v2 = vld [vmem:[%s30893_s1 + $0x1048] sm:$0xf]  ;;  %v17623_v53 = vor.u32 %v20231_v29, %v17622_v36  ;;  %11150 = vmatpush.bf16.msra.mxu3 %v18775_v44  ;;  %11130 = vmatpush.bf16.msrb.mxu2 %v15959_v59  ;;  %v13272_v59 = vld [vmem:[%s30893_s1 + $0x4c8] sm:$0xf0] }
 0x44e   :  { %v19527_v42 = vld [vmem:[%s30893_s1 + $0x10c4] sm:$0xf0] }
 0x44f   :  { %v18902_v31 = vld [vmem:[%s30893_s1 + $0x3048] sm:$0xf]  ;;  %v14807_v0 = vor.u32 %v19527_v42, %v14806_v2  ;;  %11138 = vmatpush.bf16.msrb.mxu1 %v17623_v53  ;;  %v13403_v2 = vor.u32 %v19159_v48, %v13400_v37  ;;  %v10835_v53 = vadd.f32 %v26440_v6, %v26479_v54  ;;  %v14040_v48 = vld [vmem:[%s30893_s1 + $0xac8] sm:$0xf0]  ;;  %v10875_v34 = vpop.f32.mrf.mxu2 }
 0x450   :  { %v20551_v56 = vld [vmem:[%s30893_s1 + $0x30c4] sm:$0xf0]  ;;  %v20407_v34 = vld [vmem:[%s30893_s1 + $0x2c4c] sm:$0xf] }
 0x451   :  { %v18646_v63 = vld [vmem:[%s30893_s1 + $0x2e48] sm:$0xf]  ;;  %v18903_v22 = vor.u32 %v20551_v56, %v18902_v31  ;;  %11118 = vmatpush.bf16.msra.mxu0 %v14807_v0  ;;  %v14427_v31 = vor.u32 %v19415_v50, %v14424_v18  ;;  %v19127_v56 = vld [vmem:[%s30893_s1 + $0x44c] sm:$0xf]  ;;  %v10860_v0 = vpop.f32.mrf.mxu3 }
 0x452   :  { %v20487_v33 = vld [vmem:[%s30893_s1 + $0x2ec4] sm:$0xf0]  ;;  %v13275_v54 = vor.u32 %v19127_v56, %v13272_v59  ;;  %v12427_v56 = vpop.permute.xlu2 %12426 }
 0x453   :  { %v15830_v7 = vld [vmem:[%s30893_s1 + $0x1848] sm:$0xf]  ;;  %v18647_v26 = vor.u32 %v20487_v33, %v18646_v63  ;;  %v10849_v63 = vpop.f32.mrf.mxu1 }
 0x454   :  { %v19783_v11 = vld [vmem:[%s30893_s1 + $0x18c4] sm:$0xf0]  ;;  %11119 = vmatmul.bf16.vlgmr.msra.gmra.mxu0 %v20859_v51  ;;  %v12888_v63 = vld [vmem:[%s30893_s1 + $0x1c8] sm:$0xf0] }
 0x455   :  { %v17494_v46 = vld [vmem:[%s30893_s1 + $0x2548] sm:$0xf]  ;;  %v15831_v12 = vor.u32 %v19783_v11, %v15830_v7  ;;  %11170 = vmatpush.bf16.msrb.mxu0 %v18903_v22  ;;  %11151 = vmatpush.bf16.msra.mxu3 %v18647_v26  ;;  %v19383_v7 = vld [vmem:[%s30893_s1 + $0xc4c] sm:$0xf] }
 0x456   :  { %v20199_v32 = vld [vmem:[%s30893_s1 + $0x25c4] sm:$0xf0]  ;;  %v14299_v26 = vor.u32 %v19383_v7, %v14296_v20  ;;  %v13912_v20 = vld [vmem:[%s30893_s1 + $0x9c8] sm:$0xf0] }
 0x457   :  { %v17495_v41 = vor.u32 %v20199_v32, %v17494_v46  ;;  %v18518_v43 = vld [vmem:[%s30893_s1 + $0x2d48] sm:$0xf]  ;;  %11131 = vmatpush.bf16.msrb.mxu2 %v15831_v12  ;;  %v10848_v12 = vadd.f32 %v10847_v9, %v10835_v53  ;;  %v19031_v53 = vld [vmem:[%s30893_s1 + $0x14c] sm:$0xf] }
 0x458   :  { %v20455_v38 = vld [vmem:[%s30893_s1 + $0x2dc4] sm:$0xf0] }
 0x459   :  { %v17366_v5 = vld [vmem:[%s30893_s1 + $0x2448] sm:$0xf]  ;;  %v18519_v62 = vor.u32 %v20455_v38, %v18518_v43  ;;  %11139 = vmatpush.bf16.msrb.mxu1 %v17495_v41  ;;  %11189 = vmatpush.bf16.msra.mxu0 %v14683_v8  ;;  %v19351_v43 = vld [vmem:[%s30893_s1 + $0xb4c] sm:$0xf]  ;;  %v10861_v8 = vadd.f32 %v10860_v0, %v10848_v12  ;;  %v10862_v50 = vpop.f32.mrf.mxu3 }
 0x45a   :  { %v20167_v61 = vld [vmem:[%s30893_s1 + $0x24c4] sm:$0xf0]  ;;  %11132 = vmatmul.bf16.vlgmr.msrb.gmra.mxu2 %v20872_v57  ;;  %v14168_v38 = vld [vmem:[%s30893_s1 + $0xbc8] sm:$0xf0]  ;;  %v12442_v15 = vpop.permute.xlu2 %12441 }
 0x45b   :  { %v17367_v3 = vor.u32 %v20167_v61, %v17366_v5  ;;  %v18390_v16 = vld [vmem:[%s30893_s1 + $0x2c48] sm:$0xf]  ;;  %11176 = vmatpush.bf16.msra.mxu2 %v13659_v24  ;;  %11152 = vmatpush.bf16.msra.mxu3 %v18519_v62  ;;  %v19063_v62 = vld [vmem:[%s30893_s1 + $0x24c] sm:$0xf]  ;;  %v14171_v17 = vor.u32 %v19351_v43, %v14168_v38 }
 0x45c   :  { %v20423_v19 = vld [vmem:[%s30893_s1 + $0x2cc4] sm:$0xf0]  ;;  %v19703_v0 = vld [vmem:[%s30893_s1 + $0x164c] sm:$0xf] }
 0x45d   :  { %v17238_v60 = vld [vmem:[%s30893_s1 + $0x2348] sm:$0xf]  ;;  %v18391_v52 = vor.u32 %v20423_v19, %v18390_v16  ;;  %11140 = vmatpush.bf16.msrb.mxu1 %v17367_v3  ;;  %11190 = vmatpush.bf16.msra.mxu0 %v14555_v28  ;;  %v13016_v3 = vld [vmem:[%s30893_s1 + $0x2c8] sm:$0xf0] }
 0x45e   :  { %v20135_v27 = vld [vmem:[%s30893_s1 + $0x23c4] sm:$0xf0]  ;;  %v19735_v16 = vld [vmem:[%s30893_s1 + $0x174c] sm:$0xf] }
 0x45f   :  { %v17239_v36 = vor.u32 %v20135_v27, %v17238_v60  ;;  %v18262_v29 = vld [vmem:[%s30893_s1 + $0x2b48] sm:$0xf]  ;;  %11177 = vmatpush.bf16.msra.mxu2 %v13531_v21  ;;  %11153 = vmatpush.bf16.msra.mxu3 %v18391_v52  ;;  %v15704_v19 = vld [vmem:[%s30893_s1 + $0x17c8] sm:$0xf0]  ;;  %v10874_v21 = vadd.f32 %v10873_v14, %v10861_v8  ;;  %v10899_v60 = vpop.f32.mrf.mxu1 }
 0x460   :  { %v20391_v40 = vld [vmem:[%s30893_s1 + $0x2bc4] sm:$0xf0]  ;;  %v19319_v28 = vld [vmem:[%s30893_s1 + $0xa4c] sm:$0xf] }
 0x461   :  { %v17110_v42 = vld [vmem:[%s30893_s1 + $0x2248] sm:$0xf]  ;;  %v18263_v33 = vor.u32 %v20391_v40, %v18262_v29  ;;  %11141 = vmatpush.bf16.msrb.mxu1 %v17239_v36  ;;  %11191 = vmatpush.bf16.msra.mxu0 %v14427_v31  ;;  %v10887_v18 = vadd.f32 %v10886_v39, %v10874_v21  ;;  %v13019_v36 = vor.u32 %v19063_v62, %v13016_v3  ;;  %v26708_v31 = vpop.permute.xlu1 %12424  ;;  %v16600_v39 = vld [vmem:[%s30893_s1 + $0x1ec8] sm:$0xf0] }
 0x462   :  { %v20103_v44 = vld [vmem:[%s30893_s1 + $0x22c4] sm:$0xf0]  ;;  %v15707_v29 = vor.u32 %v19735_v16, %v15704_v19  ;;  %v14043_v59 = vor.u32 %v19319_v28, %v14040_v48  ;;  %v19255_v12 = vld [vmem:[%s30893_s1 + $0x84c] sm:$0xf]  ;;  %v12430_v43 = vsel %vm12428_vm5, %v26708_v31, %v12427_v56 }
 0x463   :  { %v17111_v11 = vor.u32 %v20103_v44, %v17110_v42  ;;  %v18134_v46 = vld [vmem:[%s30893_s1 + $0x2a48] sm:$0xf]  ;;  %11178 = vmatpush.bf16.msra.mxu2 %v13403_v2  ;;  %11154 = vmatpush.bf16.msra.mxu3 %v18263_v33  ;;  %v19991_v2 = vld [vmem:[%s30893_s1 + $0x1f4c] sm:$0xf]  ;;  %v10888_v44 = vpop.f32.mrf.mxu0  ;;  %v10900_v7 = vadd.f32 %v10899_v60, %v10887_v18 }
 0x464   :  { %v20359_v6 = vld [vmem:[%s30893_s1 + $0x2ac4] sm:$0xf0]  ;;  %v16728_v42 = vld [vmem:[%s30893_s1 + $0x1fc8] sm:$0xf0]  ;;  %18974 = vmatmul.msk.bf16.vlgmr.msrb.gmra.mxu0 %vm9443_vm0, %v20982_v45 }
 0x465   :  { %v16982_v32 = vld [vmem:[%s30893_s1 + $0x2148] sm:$0xf]  ;;  %v18135_v41 = vor.u32 %v20359_v6, %v18134_v46  ;;  %11142 = vmatpush.bf16.msrb.mxu1 %v17111_v11  ;;  %11192 = vmatpush.bf16.msra.mxu0 %v14299_v26  ;;  %v19287_v33 = vld [vmem:[%s30893_s1 + $0x94c] sm:$0xf]  ;;  %v12415_v6 = vsel %vm12413_vm4, %v25378_v1, %v12412_v47 }
 0x466   :  { %v20071_v22 = vld [vmem:[%s30893_s1 + $0x21c4] sm:$0xf0]  ;;  %v15576_v11 = vld [vmem:[%s30893_s1 + $0x16c8] sm:$0xf0]  ;;  %12456 = vrot.lane.b32.xlu2 %v10900_v7, %s20580_s19  ;;  %v13915_v1 = vor.u32 %v19287_v33, %v13912_v20  ;;  %12467 = vrot.lane.b32.xlu0 %v10900_v7, %s20581_s8  ;;  %v12419_v8 = vmax.f32 %v12404_v25, %v12415_v6 }
 0x467   :  { %v16983_v24 = vor.u32 %v20071_v22, %v16982_v32  ;;  %v18006_v5 = vld [vmem:[%s30893_s1 + $0x2948] sm:$0xf]  ;;  %11179 = vmatpush.bf16.msra.mxu2 %v13275_v54  ;;  %11155 = vmatpush.bf16.msra.mxu3 %v18135_v41  ;;  %v16731_v54 = vor.u32 %v19991_v2, %v16728_v42  ;;  %v12891_v32 = vor.u32 %v19031_v53, %v12888_v63  ;;  %v19959_v22 = vld [vmem:[%s30893_s1 + $0x1e4c] sm:$0xf] }
 0x468   :  { %v20327_v61 = vld [vmem:[%s30893_s1 + $0x29c4] sm:$0xf0]  ;;  %v18999_v26 = vld [vmem:[%s30893_s1 + $0x4c] sm:$0xf]  ;;  %v15579_v47 = vor.u32 %v19703_v0, %v15576_v11  ;;  %v16603_v62 = vor.u32 %v19959_v22, %v16600_v39 }
 0x469   :  { %v16854_v10 = vld [vmem:[%s30893_s1 + $0x2048] sm:$0xf]  ;;  %v18007_v27 = vor.u32 %v20327_v61, %v18006_v5  ;;  %11143 = vmatpush.bf16.msrb.mxu1 %v16983_v24  ;;  %11193 = vmatpush.bf16.msra.mxu0 %v14171_v17  ;;  %v13784_v41 = vld [vmem:[%s30893_s1 + $0x8c8] sm:$0xf0]  ;;  %v10901_v61 = vpop.f32.mrf.mxu1  ;;  %v12763_v14 = vor.u32 %v18999_v26, %v12760_v49  ;;  %v12434_v17 = vmax.f32 %v12419_v8, %v12430_v43  ;;  %v26774_v23 = vpop.permute.xlu1 %12439 }
 0x46a   :  { %v20039_v9 = vld [vmem:[%s30893_s1 + $0x20c4] sm:$0xf0]  ;;  %v19671_v38 = vld [vmem:[%s30893_s1 + $0x154c] sm:$0xf]  ;;  %v13787_v25 = vor.u32 %v19255_v12, %v13784_v41  ;;  %v12445_v21 = vsel %vm12443_vm6, %v26774_v23, %v12442_v15  ;;  %v26857_v41 = vpop.f32.mrf.mxu3 }
 0x46b   :  { %v16855_v37 = vor.u32 %v20039_v9, %v16854_v10  ;;  %v17878_v52 = vld [vmem:[%s30893_s1 + $0x2848] sm:$0xf]  ;;  %11180 = vmatpush.bf16.msra.mxu2 %v13147_v13  ;;  %11156 = vmatpush.bf16.msra.mxu3 %v18007_v27  ;;  %v15448_v24 = vld [vmem:[%s30893_s1 + $0x15c8] sm:$0xf0] }
 0x46c   :  { %v20295_v40 = vld [vmem:[%s30893_s1 + $0x28c4] sm:$0xf0]  ;;  %v20247_v5 = vld [vmem:[%s30893_s1 + $0x274c] sm:$0xf]  ;;  %v15451_v3 = vor.u32 %v19671_v38, %v15448_v24 }
 0x46d   :  { %11144 = vmatpush.bf16.msrb.mxu1 %v16855_v37  ;;  %v17879_v46 = vor.u32 %v20295_v40, %v17878_v52  ;;  %11194 = vmatpush.bf16.msra.mxu0 %v14043_v59  ;;  %v17752_v13 = vld [vmem:[%s30893_s1 + $0x27c8] sm:$0xf0]  ;;  %v26794_v52 = vmax.f32 %v12434_v17, %v12445_v21  ;;  %v26891_v21 = vpop.f32.mrf.mxu2 }
 0x46e   :  { %v20503_v10 = vld [vmem:[%s30893_s1 + $0x2f4c] sm:$0xf]  ;;  %v17755_v60 = vor.u32 %v20247_v5, %v17752_v13 }
 0x46f   :  { %11181 = vmatpush.bf16.msra.mxu2 %v13019_v36  ;;  %11157 = vmatpush.bf16.msra.mxu3 %v17879_v46  ;;  %v18776_v9 = vld [vmem:[%s30893_s1 + $0x2fc8] sm:$0xf0] }
 0x470   :  { %11145 = vmatmul.bf16.vlgmr.msrb.gmra.mxu1 %v21073_v30  ;;  %v19927_v16 = vld [vmem:[%s30893_s1 + $0x1d4c] sm:$0xf]  ;;  %v18779_v27 = vor.u32 %v20503_v10, %v18776_v9  ;;  %v26874_v9 = vpop.f32.mrf.mxu0 }
 0x471   :  { %11202 = vmatpush.bf16.msra.mxu1 %v15707_v29  ;;  %11195 = vmatpush.bf16.msra.mxu0 %v13915_v1  ;;  %v16472_v19 = vld [vmem:[%s30893_s1 + $0x1dc8] sm:$0xf0]  ;;  %v26829_v0 = vpop.f32.mrf.mxu1 }
 0x472   :  { %11158 = vmatmul.bf16.vlgmr.msra.gmra.mxu3 %v21084_v35  ;;  %v19639_v28 = vld [vmem:[%s30893_s1 + $0x144c] sm:$0xf]  ;;  %v16475_v29 = vor.u32 %v19927_v16, %v16472_v19 }
 0x473   :  { %11215 = vmatpush.bf16.msrb.mxu3 %v16731_v54  ;;  %11182 = vmatpush.bf16.msra.mxu2 %v12891_v32  ;;  %v15320_v48 = vld [vmem:[%s30893_s1 + $0x14c8] sm:$0xf0] }
 0x474   :  { %v20215_v37 = vld [vmem:[%s30893_s1 + $0x264c] sm:$0xf]  ;;  %v15323_v40 = vor.u32 %v19639_v28, %v15320_v48 }
 0x475   :  { %11203 = vmatpush.bf16.msra.mxu1 %v15579_v47  ;;  %v17624_v50 = vld [vmem:[%s30893_s1 + $0x26c8] sm:$0xf0]  ;;  %11196 = vmatpush.bf16.msra.mxu0 %v13787_v25 }
 0x476   :  { %v20471_v18 = vld [vmem:[%s30893_s1 + $0x2e4c] sm:$0xf]  ;;  %v17627_v44 = vor.u32 %v20215_v37, %v17624_v50 }
 0x477   :  { %v18648_v36 = vld [vmem:[%s30893_s1 + $0x2ec8] sm:$0xf0]  ;;  %11216 = vmatpush.bf16.msrb.mxu3 %v16603_v62  ;;  %11183 = vmatpush.bf16.msra.mxu2 %v12763_v14 }
 0x478   :  { %v19895_v2 = vld [vmem:[%s30893_s1 + $0x1c4c] sm:$0xf]  ;;  %v18651_v56 = vor.u32 %v20471_v18, %v18648_v36  ;;  %11197 = vmatmul.bf16.vlgmr.msra.gmra.mxu0 %v20894_v4 }
 0x479   :  { %11204 = vmatpush.bf16.msra.mxu1 %v15451_v3  ;;  %v16344_v42 = vld [vmem:[%s30893_s1 + $0x1cc8] sm:$0xf0]  ;;  %11241 = vmatpush.bf16.msrb.mxu0 %v18779_v27  ;;  %v10927_v15 = vpop.f32.mrf.mxu1 }
 0x47a   :  { %v19607_v59 = vld [vmem:[%s30893_s1 + $0x134c] sm:$0xf]  ;;  %11184 = vmatmul.bf16.vlgmr.msra.gmra.mxu2 %v20870_v55  ;;  %v16347_v11 = vor.u32 %v19895_v2, %v16344_v42  ;;  %v20008_v15 = vld [vmem:[%s30893_s1 + $0x1fcc] sm:$0xf0] }
 0x47b   :  { %11228 = vmatpush.bf16.msrb.mxu2 %v17755_v60  ;;  %v15192_v53 = vld [vmem:[%s30893_s1 + $0x13c8] sm:$0xf0]  ;;  %11217 = vmatpush.bf16.msrb.mxu3 %v16475_v29 }
 0x47c   :  { %v20183_v63 = vld [vmem:[%s30893_s1 + $0x254c] sm:$0xf]  ;;  %v15195_v46 = vor.u32 %v19607_v59, %v15192_v53  ;;  %v13662_v53 = vld [vmem:[%s30893_s1 + $0x750] sm:$0xf] }
 0x47d   :  { %v17496_v33 = vld [vmem:[%s30893_s1 + $0x25c8] sm:$0xf0]  ;;  %11205 = vmatpush.bf16.msra.mxu1 %v15323_v40  ;;  %11242 = vmatpush.bf16.msrb.mxu0 %v18651_v56 }
 0x47e   :  { %v20439_v7 = vld [vmem:[%s30893_s1 + $0x2d4c] sm:$0xf]  ;;  %v17499_v32 = vor.u32 %v20183_v63, %v17496_v33  ;;  %v19240_v63 = vld [vmem:[%s30893_s1 + $0x7cc] sm:$0xf0] }
 0x47f   :  { %v18520_v20 = vld [vmem:[%s30893_s1 + $0x2dc8] sm:$0xf0]  ;;  %11229 = vmatpush.bf16.msrb.mxu2 %v17627_v44  ;;  %11218 = vmatpush.bf16.msrb.mxu3 %v16347_v11  ;;  %v10914_v44 = vpop.f32.mrf.mxu3  ;;  %v19496_v11 = vld [vmem:[%s30893_s1 + $0xfcc] sm:$0xf0] }
 0x480   :  { %v19863_v6 = vld [vmem:[%s30893_s1 + $0x1b4c] sm:$0xf]  ;;  %v18523_v22 = vor.u32 %v20439_v7, %v18520_v20  ;;  %v14686_v20 = vld [vmem:[%s30893_s1 + $0xf50] sm:$0xf] }
 0x481   :  { %v16216_v54 = vld [vmem:[%s30893_s1 + $0x1bc8] sm:$0xf0]  ;;  %11206 = vmatpush.bf16.msra.mxu1 %v15195_v46 }
 0x482   :  { %v19575_v39 = vld [vmem:[%s30893_s1 + $0x124c] sm:$0xf]  ;;  %v16219_v12 = vor.u32 %v19863_v6, %v16216_v54  ;;  %11243 = vmatpush.bf16.msrb.mxu0 %v18523_v22  ;;  %v10953_v6 = vpop.f32.mrf.mxu0 }
 0x483   :  { %v15064_v26 = vld [vmem:[%s30893_s1 + $0x12c8] sm:$0xf0]  ;;  %11230 = vmatpush.bf16.msrb.mxu2 %v17499_v32  ;;  %v19944_v6 = vld [vmem:[%s30893_s1 + $0x1dcc] sm:$0xf0] }
 0x484   :  { %v20151_v1 = vld [vmem:[%s30893_s1 + $0x244c] sm:$0xf]  ;;  %v15067_v43 = vor.u32 %v19575_v39, %v15064_v26  ;;  %11219 = vmatpush.bf16.msrb.mxu3 %v16219_v12  ;;  %v14558_v12 = vld [vmem:[%s30893_s1 + $0xe50] sm:$0xf] }
 0x485   :  { %v17368_v47 = vld [vmem:[%s30893_s1 + $0x24c8] sm:$0xf0] }
 0x486   :  { %v18392_v49 = vld [vmem:[%s30893_s1 + $0x2cc8] sm:$0xf0]  ;;  %v17371_v5 = vor.u32 %v20151_v1, %v17368_v47  ;;  %11207 = vmatpush.bf16.msra.mxu1 %v15067_v43  ;;  %v13663_v1 = vor.u32 %v19240_v63, %v13662_v53  ;;  %v14687_v47 = vor.u32 %v19496_v11, %v14686_v20  ;;  %v10940_v43 = vpop.f32.mrf.mxu2  ;;  %v14302_v63 = vld [vmem:[%s30893_s1 + $0xc50] sm:$0xf] }
 0x487   :  { %v19831_v38 = vld [vmem:[%s30893_s1 + $0x1a4c] sm:$0xf]  ;;  %v18395_v61 = vor.u32 %v20407_v34, %v18392_v49  ;;  %v13534_v34 = vld [vmem:[%s30893_s1 + $0x650] sm:$0xf] }
 0x488   :  { %v16088_v24 = vld [vmem:[%s30893_s1 + $0x1ac8] sm:$0xf0]  ;;  %11231 = vmatpush.bf16.msrb.mxu2 %v17371_v5  ;;  %v19208_v49 = vld [vmem:[%s30893_s1 + $0x6cc] sm:$0xf0] }
 0x489   :  { %v19543_v8 = vld [vmem:[%s30893_s1 + $0x114c] sm:$0xf]  ;;  %v16091_v25 = vor.u32 %v19831_v38, %v16088_v24  ;;  %11244 = vmatpush.bf16.msrb.mxu0 %v18395_v61  ;;  %v19464_v5 = vld [vmem:[%s30893_s1 + $0xecc] sm:$0xf0] }
 0x48a   :  { %v14936_v13 = vld [vmem:[%s30893_s1 + $0x11c8] sm:$0xf0]  ;;  %v19688_v11 = vld [vmem:[%s30893_s1 + $0x15cc] sm:$0xf0] }
 0x48b   :  { %v20119_v10 = vld [vmem:[%s30893_s1 + $0x234c] sm:$0xf]  ;;  %v14939_v3 = vor.u32 %v19543_v8, %v14936_v13  ;;  %11220 = vmatpush.bf16.msrb.mxu3 %v16091_v25  ;;  %v13535_v25 = vor.u32 %v19208_v49, %v13534_v34  ;;  %v19368_v34 = vld [vmem:[%s30893_s1 + $0xbcc] sm:$0xf0] }
 0x48c   :  { %v17240_v62 = vld [vmem:[%s30893_s1 + $0x23c8] sm:$0xf0]  ;;  %v15326_v49 = vld [vmem:[%s30893_s1 + $0x1450] sm:$0xf] }
 0x48d   :  { %v20375_v14 = vld [vmem:[%s30893_s1 + $0x2b4c] sm:$0xf]  ;;  %v17243_v60 = vor.u32 %v20119_v10, %v17240_v62  ;;  %11208 = vmatpush.bf16.msra.mxu1 %v14939_v3  ;;  %v15710_v62 = vld [vmem:[%s30893_s1 + $0x1750] sm:$0xf]  ;;  %v14559_v3 = vor.u32 %v19464_v5, %v14558_v12  ;;  %v10964_v5 = vpop.f32.mrf.mxu3 }
 0x48e   :  { %v18264_v17 = vld [vmem:[%s30893_s1 + $0x2bc8] sm:$0xf0]  ;;  %v19656_v43 = vld [vmem:[%s30893_s1 + $0x14cc] sm:$0xf0] }
 0x48f   :  { %v19799_v16 = vld [vmem:[%s30893_s1 + $0x194c] sm:$0xf]  ;;  %v18267_v27 = vor.u32 %v20375_v14, %v18264_v17  ;;  %11232 = vmatpush.bf16.msrb.mxu2 %v17243_v60  ;;  %v19752_v14 = vld [vmem:[%s30893_s1 + $0x17cc] sm:$0xf0] }
 0x490   :  { %v15960_v19 = vld [vmem:[%s30893_s1 + $0x19c8] sm:$0xf0]  ;;  %v16734_v17 = vld [vmem:[%s30893_s1 + $0x1f50] sm:$0xf] }
 0x491   :  { %v19511_v28 = vld [vmem:[%s30893_s1 + $0x104c] sm:$0xf]  ;;  %v15963_v29 = vor.u32 %v19799_v16, %v15960_v19  ;;  %11245 = vmatpush.bf16.msrb.mxu0 %v18267_v27  ;;  %v13406_v60 = vld [vmem:[%s30893_s1 + $0x550] sm:$0xf] }
 0x492   :  { %v14808_v48 = vld [vmem:[%s30893_s1 + $0x10c8] sm:$0xf0]  ;;  %v19176_v27 = vld [vmem:[%s30893_s1 + $0x5cc] sm:$0xf0] }
 0x493   :  { %v20087_v37 = vld [vmem:[%s30893_s1 + $0x224c] sm:$0xf]  ;;  %v14811_v56 = vor.u32 %v19511_v28, %v14808_v48  ;;  %11221 = vmatpush.bf16.msrb.mxu3 %v15963_v29  ;;  %v15711_v28 = vor.u32 %v19752_v14, %v15710_v62  ;;  %v16735_v48 = vor.u32 %v20008_v15, %v16734_v17  ;;  %v19720_v29 = vld [vmem:[%s30893_s1 + $0x16cc] sm:$0xf0]  ;;  %v15327_v14 = vor.u32 %v19656_v43, %v15326_v49 }
 0x494   :  { %v17112_v50 = vld [vmem:[%s30893_s1 + $0x22c8] sm:$0xf0]  ;;  %v14046_v15 = vld [vmem:[%s30893_s1 + $0xa50] sm:$0xf] }
 0x495   :  { %v20343_v18 = vld [vmem:[%s30893_s1 + $0x2a4c] sm:$0xf]  ;;  %v17115_v33 = vor.u32 %v20087_v37, %v17112_v50  ;;  %11209 = vmatpush.bf16.msra.mxu1 %v14811_v56  ;;  %v14430_v37 = vld [vmem:[%s30893_s1 + $0xd50] sm:$0xf]  ;;  %v10990_v56 = vpop.f32.mrf.mxu2 }
 0x496   :  { %v18136_v36 = vld [vmem:[%s30893_s1 + $0x2ac8] sm:$0xf0]  ;;  %v19432_v50 = vld [vmem:[%s30893_s1 + $0xdcc] sm:$0xf0] }
 0x497   :  { %v19767_v40 = vld [vmem:[%s30893_s1 + $0x184c] sm:$0xf]  ;;  %v18139_v7 = vor.u32 %v20343_v18, %v18136_v36  ;;  %11233 = vmatpush.bf16.msrb.mxu2 %v17115_v33  ;;  %v15582_v18 = vld [vmem:[%s30893_s1 + $0x1650] sm:$0xf]  ;;  %v10926_v36 = vadd.f32 %v26829_v0, %v26857_v41  ;;  %v14431_v44 = vor.u32 %v19432_v50, %v14430_v37 }
 0x498   :  { %v20535_v2 = vld [vmem:[%s30893_s1 + $0x304c] sm:$0xf]  ;;  %11210 = vmatmul.bf16.vlgmr.msra.gmra.mxu1 %v20859_v51  ;;  %v13278_v0 = vld [vmem:[%s30893_s1 + $0x450] sm:$0xf] }
 0x499   :  { %v18904_v42 = vld [vmem:[%s30893_s1 + $0x30c8] sm:$0xf0]  ;;  %11246 = vmatpush.bf16.msrb.mxu0 %v18139_v7  ;;  %v19144_v41 = vld [vmem:[%s30893_s1 + $0x4cc] sm:$0xf0]  ;;  %v10939_v20 = vadd.f32 %v26891_v21, %v10926_v36 }
 0x49a   :  { %v15832_v59 = vld [vmem:[%s30893_s1 + $0x18c8] sm:$0xf0]  ;;  %v18907_v54 = vor.u32 %v20535_v2, %v18904_v42  ;;  %v19976_v2 = vld [vmem:[%s30893_s1 + $0x1ecc] sm:$0xf0]  ;;  %v13407_v42 = vor.u32 %v19176_v27, %v13406_v60 }
 0x49b   :  { %v20055_v46 = vld [vmem:[%s30893_s1 + $0x214c] sm:$0xf]  ;;  %v15835_v26 = vor.u32 %v19767_v40, %v15832_v59  ;;  %v16606_v40 = vld [vmem:[%s30893_s1 + $0x1e50] sm:$0xf]  ;;  %v15583_v59 = vor.u32 %v19720_v29, %v15582_v18  ;;  %v10952_v12 = vadd.f32 %v26874_v9, %v10939_v20 }
 0x49c   :  { %v16984_v32 = vld [vmem:[%s30893_s1 + $0x21c8] sm:$0xf0]  ;;  %11261 = vmatpush.bf16.msrb.mxu1 %v18907_v54  ;;  %v16607_v53 = vor.u32 %v19976_v2, %v16606_v40  ;;  %v19400_v33 = vld [vmem:[%s30893_s1 + $0xccc] sm:$0xf0]  ;;  %v13279_v54 = vor.u32 %v19144_v41, %v13278_v0 }
 0x49d   :  { %v20311_v22 = vld [vmem:[%s30893_s1 + $0x294c] sm:$0xf]  ;;  %v16987_v38 = vor.u32 %v20055_v46, %v16984_v32  ;;  %11222 = vmatpush.bf16.msrb.mxu3 %v15835_v26  ;;  %v15454_v7 = vld [vmem:[%s30893_s1 + $0x1550] sm:$0xf]  ;;  %v10977_v32 = vpop.f32.mrf.mxu1  ;;  %v10992_v62 = vpop.f32.mrf.mxu2 }
 0x49e   :  { %v18008_v39 = vld [vmem:[%s30893_s1 + $0x29c8] sm:$0xf0]  ;;  %v16478_v46 = vld [vmem:[%s30893_s1 + $0x1d50] sm:$0xf]  ;;  %v15455_v26 = vor.u32 %v19688_v11, %v15454_v7 }
 0x49f   :  { %v18011_v24 = vor.u32 %v20311_v22, %v18008_v39  ;;  %v20023_v61 = vld [vmem:[%s30893_s1 + $0x204c] sm:$0xf]  ;;  %11234 = vmatpush.bf16.msrb.mxu2 %v16987_v38  ;;  %v14303_v22 = vor.u32 %v19400_v33, %v14302_v63  ;;  %v13150_v21 = vld [vmem:[%s30893_s1 + $0x350] sm:$0xf]  ;;  %v10966_v33 = vpop.f32.mrf.mxu3 }
 0x4a0   :  { %v16856_v8 = vld [vmem:[%s30893_s1 + $0x20c8] sm:$0xf0]  ;;  %11280 = vmatpush.bf16.msra.mxu1 %v14687_v47  ;;  %11223 = vmatmul.bf16.vlgmr.msrb.gmra.mxu3 %v20872_v57  ;;  %v19112_v39 = vld [vmem:[%s30893_s1 + $0x3cc] sm:$0xf0] }
 0x4a1   :  { %v20279_v13 = vld [vmem:[%s30893_s1 + $0x284c] sm:$0xf]  ;;  %11267 = vmatpush.bf16.msra.mxu3 %v13663_v1  ;;  %11247 = vmatpush.bf16.msrb.mxu0 %v18011_v24  ;;  %v16859_v16 = vor.u32 %v20023_v61, %v16856_v8  ;;  %v16479_v1 = vor.u32 %v19944_v6, %v16478_v46  ;;  %v14174_v47 = vld [vmem:[%s30893_s1 + $0xb50] sm:$0xf]  ;;  %v13151_v61 = vor.u32 %v19112_v39, %v13150_v21 }
 0x4a2   :  { %v17880_v10 = vld [vmem:[%s30893_s1 + $0x28c8] sm:$0xf0]  ;;  %v16350_v38 = vld [vmem:[%s30893_s1 + $0x1c50] sm:$0xf]  ;;  %v10965_v8 = vadd.f32 %v10964_v5, %v10952_v12 }
 0x4a3   :  { %v17883_v19 = vor.u32 %v20279_v13, %v17880_v10  ;;  %11235 = vmatpush.bf16.msrb.mxu2 %v16859_v16  ;;  %v19912_v24 = vld [vmem:[%s30893_s1 + $0x1ccc] sm:$0xf0]  ;;  %v14175_v13 = vor.u32 %v19368_v34, %v14174_v47  ;;  %v27078_v16 = vpop.f32.mrf.mxu0 }
 0x4a4   :  { %11281 = vmatpush.bf16.msra.mxu1 %v14559_v3  ;;  %v13022_v9 = vld [vmem:[%s30893_s1 + $0x250] sm:$0xf]  ;;  %v16351_v17 = vor.u32 %v19912_v24, %v16350_v38 }
 0x4a5   :  { %11268 = vmatpush.bf16.msra.mxu3 %v13535_v25  ;;  %11248 = vmatpush.bf16.msrb.mxu0 %v17883_v19  ;;  %v19080_v10 = vld [vmem:[%s30893_s1 + $0x2cc] sm:$0xf0]  ;;  %v10978_v19 = vadd.f32 %v10977_v32, %v10965_v8  ;;  %v10979_v37 = vpop.f32.mrf.mxu1  ;;  %v27128_v6 = vpop.f32.mrf.mxu2 }
 0x4a6   :  { %11236 = vmatmul.bf16.vlgmr.msrb.gmra.mxu2 %v21073_v30  ;;  %v19336_v25 = vld [vmem:[%s30893_s1 + $0xacc] sm:$0xf0] }
 0x4a7   :  { %11293 = vmatpush.bf16.msra.mxu2 %v15711_v28  ;;  %v15198_v3 = vld [vmem:[%s30893_s1 + $0x1350] sm:$0xf]  ;;  %v10991_v50 = vadd.f32 %v10990_v56, %v10978_v19  ;;  %v14047_v18 = vor.u32 %v19336_v25, %v14046_v15 }
 0x4a8   :  { %11282 = vmatpush.bf16.msra.mxu1 %v14431_v44  ;;  %11249 = vmatmul.bf16.vlgmr.msrb.gmra.mxu0 %v21084_v35  ;;  %v19624_v60 = vld [vmem:[%s30893_s1 + $0x13cc] sm:$0xf0] }
 0x4a9   :  { %11306 = vmatpush.bf16.msra.mxu0 %v16735_v48  ;;  %11269 = vmatpush.bf16.msra.mxu3 %v13407_v42  ;;  %v16222_v27 = vld [vmem:[%s30893_s1 + $0x1b50] sm:$0xf]  ;;  %v13023_v48 = vor.u32 %v19080_v10, %v13022_v9  ;;  %v15199_v40 = vor.u32 %v19624_v60, %v15198_v3 }
 0x4aa   :  { %18975 = vmatmul.msk.bf16.vlgmr.msrb.gmra.mxu1 %vm9443_vm0, %v20982_v45  ;;  %v19880_v28 = vld [vmem:[%s30893_s1 + $0x1bcc] sm:$0xf0]  ;;  %12469 = vrot.lane.b32.xlu1 %v10991_v50, %s20581_s8 }
 0x4ab   :  { %11294 = vmatpush.bf16.msra.mxu2 %v15583_v59  ;;  %v12894_v36 = vld [vmem:[%s30893_s1 + $0x150] sm:$0xf]  ;;  %v16223_v2 = vor.u32 %v19880_v28, %v16222_v27  ;;  %v19224_v27 = vld [vmem:[%s30893_s1 + $0x754] sm:$0xf] }
 0x4ac   :  { %11283 = vmatpush.bf16.msra.mxu1 %v14303_v22  ;;  %v19048_v29 = vld [vmem:[%s30893_s1 + $0x1cc] sm:$0xf0]  ;;  %v13664_v28 = vld [vmem:[%s30893_s1 + $0x7d0] sm:$0xf0] }
 0x4ad   :  { %11307 = vmatpush.bf16.msra.mxu0 %v16607_v53  ;;  %11270 = vmatpush.bf16.msra.mxu3 %v13279_v54  ;;  %v13918_v42 = vld [vmem:[%s30893_s1 + $0x950] sm:$0xf]  ;;  %v12895_v53 = vor.u32 %v19048_v29, %v12894_v36 }
 0x4ae   :  { %v19304_v44 = vld [vmem:[%s30893_s1 + $0x9cc] sm:$0xf0] }
 0x4af   :  { %11295 = vmatpush.bf16.msra.mxu2 %v15455_v26  ;;  %v15070_v0 = vld [vmem:[%s30893_s1 + $0x1250] sm:$0xf]  ;;  %v13919_v7 = vor.u32 %v19304_v44, %v13918_v42  ;;  %v11005_v26 = vpop.f32.mrf.mxu0  ;;  %v19480_v44 = vld [vmem:[%s30893_s1 + $0xf54] sm:$0xf] }
 0x4b0   :  { %11284 = vmatpush.bf16.msra.mxu1 %v14175_v13  ;;  %v19592_v41 = vld [vmem:[%s30893_s1 + $0x12cc] sm:$0xf0]  ;;  %v19160_v26 = vld [vmem:[%s30893_s1 + $0x554] sm:$0xf] }
 0x4b1   :  { %11308 = vmatpush.bf16.msra.mxu0 %v16479_v1  ;;  %11271 = vmatpush.bf16.msra.mxu3 %v13151_v61  ;;  %v16094_v56 = vld [vmem:[%s30893_s1 + $0x1a50] sm:$0xf]  ;;  %v15071_v54 = vor.u32 %v19592_v41, %v15070_v0  ;;  %v14688_v0 = vld [vmem:[%s30893_s1 + $0xfd0] sm:$0xf0]  ;;  %v13667_v41 = vor.u32 %v19224_v27, %v13664_v28 }
 0x4b2   :  { %v19848_v59 = vld [vmem:[%s30893_s1 + $0x1acc] sm:$0xf0]  ;;  %v14691_v33 = vor.u32 %v19480_v44, %v14688_v0  ;;  %v19352_v0 = vld [vmem:[%s30893_s1 + $0xb54] sm:$0xf] }
 0x4b3   :  { %11296 = vmatpush.bf16.msra.mxu2 %v15327_v14  ;;  %v12766_v63 = vld [vmem:[%s30893_s1 + $0x50] sm:$0xf]  ;;  %v16095_v32 = vor.u32 %v19848_v59, %v16094_v56  ;;  %v19192_v59 = vld [vmem:[%s30893_s1 + $0x654] sm:$0xf] }
 0x4b4   :  { %11285 = vmatpush.bf16.msra.mxu1 %v14047_v18  ;;  %v19016_v20 = vld [vmem:[%s30893_s1 + $0xcc] sm:$0xf0] }
 0x4b5   :  { %11309 = vmatpush.bf16.msra.mxu0 %v16351_v17  ;;  %11272 = vmatpush.bf16.msra.mxu3 %v13023_v48  ;;  %v13790_v11 = vld [vmem:[%s30893_s1 + $0x850] sm:$0xf]  ;;  %v12767_v49 = vor.u32 %v19016_v20, %v12766_v63  ;;  %v11018_v48 = vpop.f32.mrf.mxu2 }
 0x4b6   :  { %v19272_v46 = vld [vmem:[%s30893_s1 + $0x8cc] sm:$0xf0] }
 0x4b7   :  { %11297 = vmatpush.bf16.msra.mxu2 %v15199_v40  ;;  %v17758_v22 = vld [vmem:[%s30893_s1 + $0x2750] sm:$0xf]  ;;  %v13791_v38 = vor.u32 %v19272_v46, %v13790_v11 }
 0x4b8   :  { %v20264_v21 = vld [vmem:[%s30893_s1 + $0x27cc] sm:$0xf0]  ;;  %11286 = vmatpush.bf16.msra.mxu1 %v13919_v7 }
 0x4b9   :  { %11310 = vmatpush.bf16.msra.mxu0 %v16223_v2  ;;  %v18782_v39 = vld [vmem:[%s30893_s1 + $0x2f50] sm:$0xf]  ;;  %11273 = vmatpush.bf16.msra.mxu3 %v12895_v53  ;;  %v17759_v24 = vor.u32 %v20264_v21, %v17758_v22  ;;  %v13536_v53 = vld [vmem:[%s30893_s1 + $0x6d0] sm:$0xf0]  ;;  %v11042_v21 = vpop.f32.mrf.mxu1 }
 0x4ba   :  { %v20520_v1 = vld [vmem:[%s30893_s1 + $0x2fcc] sm:$0xf0]  ;;  %v13539_v22 = vor.u32 %v19192_v59, %v13536_v53 }
 0x4bb   :  { %v14942_v47 = vld [vmem:[%s30893_s1 + $0x1150] sm:$0xf]  ;;  %11298 = vmatpush.bf16.msra.mxu2 %v15071_v54  ;;  %v18783_v61 = vor.u32 %v20520_v1, %v18782_v39  ;;  %v19448_v54 = vld [vmem:[%s30893_s1 + $0xe54] sm:$0xf] }
 0x4bc   :  { %v19560_v34 = vld [vmem:[%s30893_s1 + $0x11cc] sm:$0xf0]  ;;  %11287 = vmatpush.bf16.msra.mxu1 %v13791_v38  ;;  %v13408_v1 = vld [vmem:[%s30893_s1 + $0x5d0] sm:$0xf0] }
 0x4bd   :  { %v15966_v12 = vld [vmem:[%s30893_s1 + $0x1950] sm:$0xf]  ;;  %11311 = vmatpush.bf16.msra.mxu0 %v16095_v32  ;;  %v14943_v8 = vor.u32 %v19560_v34, %v14942_v47  ;;  %11274 = vmatpush.bf16.msra.mxu3 %v12767_v49  ;;  %v14560_v32 = vld [vmem:[%s30893_s1 + $0xed0] sm:$0xf0] }
 0x4be   :  { %v19816_v43 = vld [vmem:[%s30893_s1 + $0x19cc] sm:$0xf0]  ;;  %v14563_v34 = vor.u32 %v19448_v54, %v14560_v32 }
 0x4bf   :  { %v17630_v5 = vld [vmem:[%s30893_s1 + $0x2650] sm:$0xf]  ;;  %v15967_v62 = vor.u32 %v19816_v43, %v15966_v12  ;;  %11299 = vmatpush.bf16.msra.mxu2 %v14943_v8  ;;  %11288 = vmatmul.bf16.vlgmr.msra.gmra.mxu1 %v20894_v4  ;;  %v11017_v8 = vadd.f32 %v27128_v6, %v27078_v16 }
 0x4c0   :  { %v20232_v13 = vld [vmem:[%s30893_s1 + $0x26cc] sm:$0xf0]  ;;  %11332 = vmatpush.bf16.msrb.mxu1 %v18783_v61  ;;  %11275 = vmatmul.bf16.vlgmr.msra.gmra.mxu3 %v20870_v55  ;;  %v13411_v61 = vor.u32 %v19160_v26, %v13408_v1  ;;  %v14048_v26 = vld [vmem:[%s30893_s1 + $0xad0] sm:$0xf0] }
 0x4c1   :  { %v18654_v9 = vld [vmem:[%s30893_s1 + $0x2e50] sm:$0xf]  ;;  %11319 = vmatpush.bf16.msrb.mxu3 %v17759_v24  ;;  %v17631_v60 = vor.u32 %v20232_v13, %v17630_v5  ;;  %11312 = vmatpush.bf16.msra.mxu0 %v15967_v62  ;;  %v19416_v24 = vld [vmem:[%s30893_s1 + $0xd54] sm:$0xf]  ;;  %v11029_v62 = vpop.f32.mrf.mxu3  ;;  %v11044_v28 = vpop.f32.mrf.mxu1 }
 0x4c2   :  { %v20488_v10 = vld [vmem:[%s30893_s1 + $0x2ecc] sm:$0xf0]  ;;  %v14432_v5 = vld [vmem:[%s30893_s1 + $0xdd0] sm:$0xf0]  ;;  %v11030_v48 = vadd.f32 %v11029_v62, %v11017_v8 }
 0x4c3   :  { %v14814_v14 = vld [vmem:[%s30893_s1 + $0x1050] sm:$0xf]  ;;  %v18655_v37 = vor.u32 %v20488_v10, %v18654_v9  ;;  %v19128_v9 = vld [vmem:[%s30893_s1 + $0x454] sm:$0xf] }
 0x4c4   :  { %v19528_v17 = vld [vmem:[%s30893_s1 + $0x10cc] sm:$0xf0]  ;;  %v13280_v10 = vld [vmem:[%s30893_s1 + $0x4d0] sm:$0xf0]  ;;  %v11043_v59 = vadd.f32 %v11042_v21, %v11030_v48  ;;  %v11068_v21 = vpop.f32.mrf.mxu2 }
 0x4c5   :  { %v15838_v15 = vld [vmem:[%s30893_s1 + $0x1850] sm:$0xf]  ;;  %v14815_v50 = vor.u32 %v19528_v17, %v14814_v14  ;;  %11320 = vmatpush.bf16.msrb.mxu3 %v17631_v60  ;;  %11333 = vmatpush.bf16.msrb.mxu1 %v18655_v37  ;;  %v14435_v17 = vor.u32 %v19416_v24, %v14432_v5  ;;  %v11055_v60 = vpop.f32.mrf.mxu0  ;;  %v13283_v27 = vor.u32 %v19128_v9, %v13280_v10  ;;  %v19736_v1 = vld [vmem:[%s30893_s1 + $0x1754] sm:$0xf] }
 0x4c6   :  { %v19784_v25 = vld [vmem:[%s30893_s1 + $0x18cc] sm:$0xf0]  ;;  %v19032_v5 = vld [vmem:[%s30893_s1 + $0x154] sm:$0xf] }
 0x4c7   :  { %v18910_v3 = vld [vmem:[%s30893_s1 + $0x3050] sm:$0xf]  ;;  %v15839_v40 = vor.u32 %v19784_v25, %v15838_v15  ;;  %11300 = vmatpush.bf16.msra.mxu2 %v14815_v50  ;;  %v19096_v50 = vld [vmem:[%s30893_s1 + $0x354] sm:$0xf] }
 0x4c8   :  { %v20552_v19 = vld [vmem:[%s30893_s1 + $0x30cc] sm:$0xf0]  ;;  %v19288_v62 = vld [vmem:[%s30893_s1 + $0x954] sm:$0xf] }
 0x4c9   :  { %v17502_v18 = vld [vmem:[%s30893_s1 + $0x2550] sm:$0xf]  ;;  %v18911_v42 = vor.u32 %v20552_v19, %v18910_v3  ;;  %11313 = vmatpush.bf16.msra.mxu0 %v15839_v40  ;;  %v19384_v3 = vld [vmem:[%s30893_s1 + $0xc54] sm:$0xf] }
 0x4ca   :  { %v20200_v36 = vld [vmem:[%s30893_s1 + $0x25cc] sm:$0xf0]  ;;  %11301 = vmatmul.bf16.vlgmr.msra.gmra.mxu2 %v20859_v51  ;;  %v14304_v19 = vld [vmem:[%s30893_s1 + $0xcd0] sm:$0xf0] }
 0x4cb   :  { %v18526_v29 = vld [vmem:[%s30893_s1 + $0x2d50] sm:$0xf]  ;;  %v17503_v56 = vor.u32 %v20200_v36, %v17502_v18  ;;  %11352 = vmatpush.bf16.msrb.mxu2 %v18911_v42  ;;  %v13152_v18 = vld [vmem:[%s30893_s1 + $0x3d0] sm:$0xf0] }
 0x4cc   :  { %v20456_v2 = vld [vmem:[%s30893_s1 + $0x2dcc] sm:$0xf0]  ;;  %11314 = vmatmul.bf16.vlgmr.msra.gmra.mxu0 %v20872_v57  ;;  %v20248_v48 = vld [vmem:[%s30893_s1 + $0x2754] sm:$0xf] }
 0x4cd   :  { %v18527_v63 = vor.u32 %v20456_v2, %v18526_v29  ;;  %v17374_v7 = vld [vmem:[%s30893_s1 + $0x2450] sm:$0xf]  ;;  %11358 = vmatpush.bf16.msrb.mxu0 %v13667_v41  ;;  %11321 = vmatpush.bf16.msrb.mxu3 %v17503_v56  ;;  %v14307_v29 = vor.u32 %v19384_v3, %v14304_v19  ;;  %v14176_v41 = vld [vmem:[%s30893_s1 + $0xbd0] sm:$0xf0]  ;;  %v13155_v56 = vor.u32 %v19096_v50, %v13152_v18 }
 0x4ce   :  { %v20168_v20 = vld [vmem:[%s30893_s1 + $0x24cc] sm:$0xf0]  ;;  %v19000_v19 = vld [vmem:[%s30893_s1 + $0x54] sm:$0xf] }
 0x4cf   :  { %v18398_v11 = vld [vmem:[%s30893_s1 + $0x2c50] sm:$0xf]  ;;  %v17375_v39 = vor.u32 %v20168_v20, %v17374_v7  ;;  %11334 = vmatpush.bf16.msrb.mxu1 %v18527_v63  ;;  %11371 = vmatpush.bf16.msra.mxu2 %v14691_v33  ;;  %v19064_v63 = vld [vmem:[%s30893_s1 + $0x254] sm:$0xf]  ;;  %v11031_v20 = vpop.f32.mrf.mxu3 }
 0x4d0   :  { %v20424_v46 = vld [vmem:[%s30893_s1 + $0x2ccc] sm:$0xf0]  ;;  %v13024_v33 = vld [vmem:[%s30893_s1 + $0x2d0] sm:$0xf0] }
 0x4d1   :  { %v18399_v47 = vor.u32 %v20424_v46, %v18398_v11  ;;  %v17246_v49 = vld [vmem:[%s30893_s1 + $0x2350] sm:$0xf]  ;;  %11359 = vmatpush.bf16.msrb.mxu0 %v13539_v22  ;;  %11322 = vmatpush.bf16.msrb.mxu3 %v17375_v39  ;;  %v14179_v46 = vor.u32 %v19352_v0, %v14176_v41  ;;  %v19320_v39 = vld [vmem:[%s30893_s1 + $0xa54] sm:$0xf] }
 0x4d2   :  { %v20136_v12 = vld [vmem:[%s30893_s1 + $0x23cc] sm:$0xf0]  ;;  %v15456_v0 = vld [vmem:[%s30893_s1 + $0x15d0] sm:$0xf0] }
 0x4d3   :  { %v18270_v43 = vld [vmem:[%s30893_s1 + $0x2b50] sm:$0xf]  ;;  %v17247_v13 = vor.u32 %v20136_v12, %v17246_v49  ;;  %11335 = vmatpush.bf16.msrb.mxu1 %v18399_v47  ;;  %11372 = vmatpush.bf16.msra.mxu2 %v14563_v34  ;;  %v11057_v47 = vpop.f32.mrf.mxu0  ;;  %v13027_v34 = vor.u32 %v19064_v63, %v13024_v33  ;;  %v15712_v49 = vld [vmem:[%s30893_s1 + $0x17d0] sm:$0xf0] }
 0x4d4   :  { %v20392_v38 = vld [vmem:[%s30893_s1 + $0x2bcc] sm:$0xf0]  ;;  %v19992_v12 = vld [vmem:[%s30893_s1 + $0x1f54] sm:$0xf]  ;;  %v15715_v9 = vor.u32 %v19736_v1, %v15712_v49 }
 0x4d5   :  { %v18271_v14 = vor.u32 %v20392_v38, %v18270_v43  ;;  %v17118_v15 = vld [vmem:[%s30893_s1 + $0x2250] sm:$0xf]  ;;  %11360 = vmatpush.bf16.msrb.mxu0 %v13411_v61  ;;  %11323 = vmatpush.bf16.msrb.mxu3 %v17247_v13  ;;  %v16736_v43 = vld [vmem:[%s30893_s1 + $0x1fd0] sm:$0xf0]  ;;  %v11056_v38 = vadd.f32 %v11055_v60, %v11043_v59  ;;  %v14051_v13 = vor.u32 %v19320_v39, %v14048_v26 }
 0x4d6   :  { %v20104_v16 = vld [vmem:[%s30893_s1 + $0x22cc] sm:$0xf0]  ;;  %v12896_v61 = vld [vmem:[%s30893_s1 + $0x1d0] sm:$0xf0]  ;;  %v16739_v10 = vor.u32 %v19992_v12, %v16736_v43 }
 0x4d7   :  { %v18142_v6 = vld [vmem:[%s30893_s1 + $0x2a50] sm:$0xf]  ;;  %v17119_v37 = vor.u32 %v20104_v16, %v17118_v15  ;;  %11336 = vmatpush.bf16.msrb.mxu1 %v18271_v14  ;;  %11373 = vmatpush.bf16.msra.mxu2 %v14435_v17  ;;  %v13920_v14 = vld [vmem:[%s30893_s1 + $0x9d0] sm:$0xf0]  ;;  %v12899_v15 = vor.u32 %v19032_v5, %v12896_v61  ;;  %v11069_v3 = vadd.f32 %v11068_v21, %v11056_v38 }
 0x4d8   :  { %v20360_v25 = vld [vmem:[%s30893_s1 + $0x2acc] sm:$0xf0]  ;;  %v19704_v17 = vld [vmem:[%s30893_s1 + $0x1654] sm:$0xf]  ;;  %v13923_v28 = vor.u32 %v19288_v62, %v13920_v14 }
 0x4d9   :  { %v18143_v36 = vor.u32 %v20360_v25, %v18142_v6  ;;  %v16990_v40 = vld [vmem:[%s30893_s1 + $0x2150] sm:$0xf]  ;;  %11361 = vmatpush.bf16.msrb.mxu0 %v13283_v27  ;;  %11324 = vmatpush.bf16.msrb.mxu3 %v17119_v37  ;;  %v15584_v16 = vld [vmem:[%s30893_s1 + $0x16d0] sm:$0xf0]  ;;  %v11081_v27 = vpop.f32.mrf.mxu3 }
 0x4da   :  { %v20072_v2 = vld [vmem:[%s30893_s1 + $0x21cc] sm:$0xf0]  ;;  %18976 = vmatmul.msk.bf16.vlgmr.msrb.gmra.mxu2 %vm9443_vm0, %v20982_v45  ;;  %v19960_v6 = vld [vmem:[%s30893_s1 + $0x1e54] sm:$0xf]  ;;  %v11082_v50 = vadd.f32 %v11081_v27, %v11069_v3  ;;  %v15587_v18 = vor.u32 %v19704_v17, %v15584_v16 }
 0x4db   :  { %v18014_v42 = vld [vmem:[%s30893_s1 + $0x2950] sm:$0xf]  ;;  %v16991_v53 = vor.u32 %v20072_v2, %v16990_v40  ;;  %11337 = vmatpush.bf16.msrb.mxu1 %v18143_v36  ;;  %11374 = vmatpush.bf16.msra.mxu2 %v14307_v29  ;;  %v16608_v25 = vld [vmem:[%s30893_s1 + $0x1ed0] sm:$0xf0]  ;;  %v27473_v3 = vpop.f32.mrf.mxu0 }
 0x4dc   :  { %v20328_v44 = vld [vmem:[%s30893_s1 + $0x29cc] sm:$0xf0]  ;;  %v12768_v60 = vld [vmem:[%s30893_s1 + $0xd0] sm:$0xf0]  ;;  %v16611_v36 = vor.u32 %v19960_v6, %v16608_v25  ;;  %12471 = vrot.lane.b32.xlu2 %v11082_v50, %s20581_s8  ;;  %12482 = vrot.lane.b32.xlu0 %v11082_v50, %s20582_s11 }
 0x4dd   :  { %v16862_v7 = vld [vmem:[%s30893_s1 + $0x2050] sm:$0xf]  ;;  %v18015_v11 = vor.u32 %v20328_v44, %v18014_v42  ;;  %11362 = vmatpush.bf16.msrb.mxu0 %v13155_v56  ;;  %11325 = vmatpush.bf16.msrb.mxu3 %v16991_v53  ;;  %v17760_v37 = vld [vmem:[%s30893_s1 + $0x27d0] sm:$0xf0]  ;;  %v11070_v42 = vpop.f32.mrf.mxu2  ;;  %v12771_v44 = vor.u32 %v19000_v19, %v12768_v60 }
 0x4de   :  { %v20040_v54 = vld [vmem:[%s30893_s1 + $0x20cc] sm:$0xf0]  ;;  %v19256_v29 = vld [vmem:[%s30893_s1 + $0x854] sm:$0xf]  ;;  %v17763_v59 = vor.u32 %v20248_v48, %v17760_v37 }
 0x4df   :  { %v17886_v32 = vld [vmem:[%s30893_s1 + $0x2850] sm:$0xf]  ;;  %v16863_v24 = vor.u32 %v20040_v54, %v16862_v7  ;;  %11338 = vmatpush.bf16.msrb.mxu1 %v18015_v11  ;;  %11375 = vmatpush.bf16.msra.mxu2 %v14179_v46  ;;  %v13792_v40 = vld [vmem:[%s30893_s1 + $0x8d0] sm:$0xf0] }
 0x4e0   :  { %v20296_v22 = vld [vmem:[%s30893_s1 + $0x28cc] sm:$0xf0]  ;;  %v19672_v2 = vld [vmem:[%s30893_s1 + $0x1554] sm:$0xf]  ;;  %v13795_v33 = vor.u32 %v19256_v29, %v13792_v40 }
 0x4e1   :  { %v17887_v8 = vor.u32 %v20296_v22, %v17886_v32  ;;  %11363 = vmatpush.bf16.msrb.mxu0 %v13027_v34  ;;  %11326 = vmatpush.bf16.msrb.mxu3 %v16863_v24  ;;  %v19928_v41 = vld [vmem:[%s30893_s1 + $0x1d54] sm:$0xf]  ;;  %v15459_v11 = vor.u32 %v19672_v2, %v15456_v0  ;;  %v27436_v34 = vpop.f32.mrf.mxu1  ;;  %v11083_v49 = vpop.f32.mrf.mxu3 }
 0x4e2   :  { %v16480_v56 = vld [vmem:[%s30893_s1 + $0x1dd0] sm:$0xf0] }
 0x4e3   :  { %11339 = vmatpush.bf16.msrb.mxu1 %v17887_v8  ;;  %11376 = vmatpush.bf16.msra.mxu2 %v14051_v13  ;;  %v20504_v53 = vld [vmem:[%s30893_s1 + $0x2f54] sm:$0xf]  ;;  %v16483_v46 = vor.u32 %v19928_v41, %v16480_v56 }
 0x4e4   :  { %11327 = vmatmul.bf16.vlgmr.msrb.gmra.mxu3 %v21073_v30  ;;  %v18784_v63 = vld [vmem:[%s30893_s1 + $0x2fd0] sm:$0xf0] }
 0x4e5   :  { %11384 = vmatpush.bf16.msra.mxu3 %v15715_v9  ;;  %11364 = vmatpush.bf16.msrb.mxu0 %v12899_v15  ;;  %v20216_v7 = vld [vmem:[%s30893_s1 + $0x2654] sm:$0xf]  ;;  %v18787_v32 = vor.u32 %v20504_v53, %v18784_v63 }
 0x4e6   :  { %11340 = vmatmul.bf16.vlgmr.msrb.gmra.mxu1 %v21084_v35  ;;  %v17632_v20 = vld [vmem:[%s30893_s1 + $0x26d0] sm:$0xf0] }
 0x4e7   :  { %11397 = vmatpush.bf16.msra.mxu1 %v16739_v10  ;;  %11377 = vmatpush.bf16.msra.mxu2 %v13923_v28  ;;  %v19640_v54 = vld [vmem:[%s30893_s1 + $0x1454] sm:$0xf]  ;;  %v17635_v26 = vor.u32 %v20216_v7, %v17632_v20 }
 0x4e8   :  { %v15328_v22 = vld [vmem:[%s30893_s1 + $0x14d0] sm:$0xf0] }
 0x4e9   :  { %11385 = vmatpush.bf16.msra.mxu3 %v15587_v18  ;;  %11365 = vmatpush.bf16.msrb.mxu0 %v12771_v44  ;;  %v19896_v21 = vld [vmem:[%s30893_s1 + $0x1c54] sm:$0xf]  ;;  %v15331_v38 = vor.u32 %v19640_v54, %v15328_v22  ;;  %v11096_v18 = vpop.f32.mrf.mxu1 }
 0x4ea   :  { %v16352_v39 = vld [vmem:[%s30893_s1 + $0x1cd0] sm:$0xf0]  ;;  %v19753_v18 = vld [vmem:[%s30893_s1 + $0x17d4] sm:$0xf0] }
 0x4eb   :  { %11398 = vmatpush.bf16.msra.mxu1 %v16611_v36  ;;  %v20472_v1 = vld [vmem:[%s30893_s1 + $0x2e54] sm:$0xf]  ;;  %11378 = vmatpush.bf16.msra.mxu2 %v13795_v33  ;;  %v16355_v24 = vor.u32 %v19896_v21, %v16352_v39  ;;  %v27490_v36 = vpop.f32.mrf.mxu3  ;;  %v11122_v21 = vpop.f32.mrf.mxu0 }
 0x4ec   :  { %v18656_v47 = vld [vmem:[%s30893_s1 + $0x2ed0] sm:$0xf0]  ;;  %11366 = vmatmul.bf16.vlgmr.msrb.gmra.mxu0 %v20870_v55  ;;  %v27531_v39 = vpop.f32.mrf.mxu2  ;;  %v14438_v21 = vld [vmem:[%s30893_s1 + $0xd58] sm:$0xf] }
 0x4ed   :  { %11410 = vmatpush.bf16.msra.mxu0 %v17763_v59  ;;  %v20184_v12 = vld [vmem:[%s30893_s1 + $0x2554] sm:$0xf]  ;;  %11386 = vmatpush.bf16.msra.mxu3 %v15459_v11  ;;  %v18659_v61 = vor.u32 %v20472_v1, %v18656_v47 }
 0x4ee   :  { %v17504_v43 = vld [vmem:[%s30893_s1 + $0x25d0] sm:$0xf0]  ;;  %11379 = vmatmul.bf16.vlgmr.msra.gmra.mxu2 %v20894_v4 }
 0x4ef   :  { %11399 = vmatpush.bf16.msra.mxu1 %v16483_v46  ;;  %v19608_v5 = vld [vmem:[%s30893_s1 + $0x1354] sm:$0xf]  ;;  %11423 = vmatpush.bf16.msrb.mxu2 %v18787_v32  ;;  %v17507_v10 = vor.u32 %v20184_v12, %v17504_v43  ;;  %v13670_v43 = vld [vmem:[%s30893_s1 + $0x758] sm:$0xf] }
 0x4f0   :  { %v15200_v8 = vld [vmem:[%s30893_s1 + $0x13d0] sm:$0xf0] }
 0x4f1   :  { %v19864_v13 = vld [vmem:[%s30893_s1 + $0x1b54] sm:$0xf]  ;;  %11411 = vmatpush.bf16.msra.mxu0 %v17635_v26  ;;  %11387 = vmatpush.bf16.msra.mxu3 %v15331_v38  ;;  %v15203_v16 = vor.u32 %v19608_v5, %v15200_v8  ;;  %v19241_v38 = vld [vmem:[%s30893_s1 + $0x7d4] sm:$0xf0] }
 0x4f2   :  { %v16224_v9 = vld [vmem:[%s30893_s1 + $0x1bd0] sm:$0xf0] }
 0x4f3   :  { %v20440_v62 = vld [vmem:[%s30893_s1 + $0x2d54] sm:$0xf]  ;;  %11400 = vmatpush.bf16.msra.mxu1 %v16355_v24  ;;  %v16227_v6 = vor.u32 %v19864_v13, %v16224_v9  ;;  %11424 = vmatpush.bf16.msrb.mxu2 %v18659_v61  ;;  %v11109_v13 = vpop.f32.mrf.mxu3 }
 0x4f4   :  { %v18528_v14 = vld [vmem:[%s30893_s1 + $0x2dd0] sm:$0xf0]  ;;  %v14310_v13 = vld [vmem:[%s30893_s1 + $0xc58] sm:$0xf] }
 0x4f5   :  { %v20152_v17 = vld [vmem:[%s30893_s1 + $0x2454] sm:$0xf]  ;;  %v18531_v19 = vor.u32 %v20440_v62, %v18528_v14  ;;  %11412 = vmatpush.bf16.msra.mxu0 %v17507_v10  ;;  %11388 = vmatpush.bf16.msra.mxu3 %v15203_v16  ;;  %v13671_v14 = vor.u32 %v19241_v38, %v13670_v43  ;;  %v11146_v43 = vpop.f32.mrf.mxu1 }
 0x4f6   :  { %v17376_v15 = vld [vmem:[%s30893_s1 + $0x24d0] sm:$0xf0] }
 0x4f7   :  { %v19576_v25 = vld [vmem:[%s30893_s1 + $0x1254] sm:$0xf]  ;;  %v17379_v48 = vor.u32 %v20152_v17, %v17376_v15  ;;  %11401 = vmatpush.bf16.msra.mxu1 %v16227_v6  ;;  %11425 = vmatpush.bf16.msrb.mxu2 %v18531_v19  ;;  %v14694_v17 = vld [vmem:[%s30893_s1 + $0xf58] sm:$0xf] }
 0x4f8   :  { %v15072_v60 = vld [vmem:[%s30893_s1 + $0x12d0] sm:$0xf0]  ;;  %v19497_v15 = vld [vmem:[%s30893_s1 + $0xfd4] sm:$0xf0] }
 0x4f9   :  { %v19832_v27 = vld [vmem:[%s30893_s1 + $0x1a54] sm:$0xf]  ;;  %v15075_v2 = vor.u32 %v19576_v25, %v15072_v60  ;;  %11413 = vmatpush.bf16.msra.mxu0 %v17379_v48  ;;  %v13542_v60 = vld [vmem:[%s30893_s1 + $0x658] sm:$0xf] }
 0x4fa   :  { %v16096_v28 = vld [vmem:[%s30893_s1 + $0x1ad0] sm:$0xf0] }
 0x4fb   :  { %v20408_v37 = vld [vmem:[%s30893_s1 + $0x2c54] sm:$0xf]  ;;  %v16099_v42 = vor.u32 %v19832_v27, %v16096_v28  ;;  %11389 = vmatpush.bf16.msra.mxu3 %v15075_v2  ;;  %v19209_v27 = vld [vmem:[%s30893_s1 + $0x6d4] sm:$0xf0] }
 0x4fc   :  { %v18400_v50 = vld [vmem:[%s30893_s1 + $0x2cd0] sm:$0xf0]  ;;  %v14566_v2 = vld [vmem:[%s30893_s1 + $0xe58] sm:$0xf] }
 0x4fd   :  { %v20120_v29 = vld [vmem:[%s30893_s1 + $0x2354] sm:$0xf]  ;;  %v18403_v0 = vor.u32 %v20408_v37, %v18400_v50  ;;  %11402 = vmatpush.bf16.msra.mxu1 %v16099_v42  ;;  %v14695_v37 = vor.u32 %v19497_v15, %v14694_v17  ;;  %v15718_v50 = vld [vmem:[%s30893_s1 + $0x1758] sm:$0xf] }
 0x4fe   :  { %v17248_v40 = vld [vmem:[%s30893_s1 + $0x23d0] sm:$0xf0]  ;;  %v19465_v42 = vld [vmem:[%s30893_s1 + $0xed4] sm:$0xf0] }
 0x4ff   :  { %v19544_v44 = vld [vmem:[%s30893_s1 + $0x1154] sm:$0xf]  ;;  %v17251_v53 = vor.u32 %v20120_v29, %v17248_v40  ;;  %11426 = vmatpush.bf16.msrb.mxu2 %v18403_v0  ;;  %v13543_v40 = vor.u32 %v19209_v27, %v13542_v60  ;;  %v27599_v0 = vpop.f32.mrf.mxu0  ;;  %v13158_v17 = vld [vmem:[%s30893_s1 + $0x358] sm:$0xf] }
 0x500   :  { %v14944_v41 = vld [vmem:[%s30893_s1 + $0x11d0] sm:$0xf0]  ;;  %v19113_v15 = vld [vmem:[%s30893_s1 + $0x3d4] sm:$0xf0] }
 0x501   :  { %v19800_v56 = vld [vmem:[%s30893_s1 + $0x1954] sm:$0xf]  ;;  %v14947_v11 = vor.u32 %v19544_v44, %v14944_v41  ;;  %11414 = vmatpush.bf16.msra.mxu0 %v17251_v53  ;;  %v11135_v41 = vpop.f32.mrf.mxu2  ;;  %v13414_v53 = vld [vmem:[%s30893_s1 + $0x558] sm:$0xf]  ;;  %v13159_v27 = vor.u32 %v19113_v15, %v13158_v17 }
 0x502   :  { %v15968_v59 = vld [vmem:[%s30893_s1 + $0x19d0] sm:$0xf0]  ;;  %v19657_v60 = vld [vmem:[%s30893_s1 + $0x14d4] sm:$0xf0] }
 0x503   :  { %v20376_v63 = vld [vmem:[%s30893_s1 + $0x2b54] sm:$0xf]  ;;  %v15971_v46 = vor.u32 %v19800_v56, %v15968_v59  ;;  %11390 = vmatpush.bf16.msra.mxu3 %v14947_v11  ;;  %v14567_v11 = vor.u32 %v19465_v42, %v14566_v2  ;;  %v16358_v2 = vld [vmem:[%s30893_s1 + $0x1c58] sm:$0xf]  ;;  %v11148_v42 = vpop.f32.mrf.mxu1 }
 0x504   :  { %v18272_v33 = vld [vmem:[%s30893_s1 + $0x2bd0] sm:$0xf0]  ;;  %v19561_v17 = vld [vmem:[%s30893_s1 + $0x11d4] sm:$0xf0] }
 0x505   :  { %v20088_v7 = vld [vmem:[%s30893_s1 + $0x2254] sm:$0xf]  ;;  %v18275_v26 = vor.u32 %v20376_v63, %v18272_v33  ;;  %11403 = vmatpush.bf16.msra.mxu1 %v15971_v46  ;;  %v19177_v63 = vld [vmem:[%s30893_s1 + $0x5d4] sm:$0xf0]  ;;  %v15719_v33 = vor.u32 %v19753_v18, %v15718_v50 }
 0x506   :  { %v17120_v20 = vld [vmem:[%s30893_s1 + $0x22d0] sm:$0xf0]  ;;  %v15590_v46 = vld [vmem:[%s30893_s1 + $0x1658] sm:$0xf] }
 0x507   :  { %v19512_v54 = vld [vmem:[%s30893_s1 + $0x1054] sm:$0xf]  ;;  %v17123_v12 = vor.u32 %v20088_v7, %v17120_v20  ;;  %11427 = vmatpush.bf16.msrb.mxu2 %v18275_v26  ;;  %v16742_v7 = vld [vmem:[%s30893_s1 + $0x1f58] sm:$0xf] }
 0x508   :  { %v14816_v32 = vld [vmem:[%s30893_s1 + $0x10d0] sm:$0xf0]  ;;  %v20009_v20 = vld [vmem:[%s30893_s1 + $0x1fd4] sm:$0xf0] }
 0x509   :  { %v19768_v22 = vld [vmem:[%s30893_s1 + $0x1854] sm:$0xf]  ;;  %v14819_v9 = vor.u32 %v19512_v54, %v14816_v32  ;;  %11415 = vmatpush.bf16.msra.mxu0 %v17123_v12  ;;  %v19721_v54 = vld [vmem:[%s30893_s1 + $0x16d4] sm:$0xf0] }
 0x50a   :  { %v15840_v1 = vld [vmem:[%s30893_s1 + $0x18d0] sm:$0xf0]  ;;  %v19433_v26 = vld [vmem:[%s30893_s1 + $0xdd4] sm:$0xf0]  ;;  %v15591_v38 = vor.u32 %v19721_v54, %v15590_v46 }
 0x50b   :  { %v20344_v47 = vld [vmem:[%s30893_s1 + $0x2a54] sm:$0xf]  ;;  %v15843_v10 = vor.u32 %v19768_v22, %v15840_v1  ;;  %11391 = vmatpush.bf16.msra.mxu3 %v14819_v9  ;;  %v13415_v22 = vor.u32 %v19177_v63, %v13414_v53  ;;  %v11108_v1 = vadd.f32 %v27490_v36, %v27436_v34  ;;  %v19145_v12 = vld [vmem:[%s30893_s1 + $0x4d4] sm:$0xf0]  ;;  %v14439_v36 = vor.u32 %v19433_v26, %v14438_v21  ;;  %v11159_v53 = vpop.f32.mrf.mxu3 }
 0x50c   :  { %v18144_v49 = vld [vmem:[%s30893_s1 + $0x2ad0] sm:$0xf0]  ;;  %v19977_v34 = vld [vmem:[%s30893_s1 + $0x1ed4] sm:$0xf0] }
 0x50d   :  { %v20056_v24 = vld [vmem:[%s30893_s1 + $0x2154] sm:$0xf]  ;;  %v18147_v62 = vor.u32 %v20344_v47, %v18144_v49  ;;  %11404 = vmatpush.bf16.msra.mxu1 %v15843_v10  ;;  %v16743_v47 = vor.u32 %v20009_v20, %v16742_v7  ;;  %v13286_v49 = vld [vmem:[%s30893_s1 + $0x458] sm:$0xf]  ;;  %v11174_v10 = vpop.f32.mrf.mxu0 }
 0x50e   :  { %v16992_v5 = vld [vmem:[%s30893_s1 + $0x21d0] sm:$0xf0]  ;;  %11392 = vmatmul.bf16.vlgmr.msra.gmra.mxu3 %v20859_v51  ;;  %v19401_v9 = vld [vmem:[%s30893_s1 + $0xcd4] sm:$0xf0] }
 0x50f   :  { %v20536_v61 = vld [vmem:[%s30893_s1 + $0x3054] sm:$0xf]  ;;  %v16995_v6 = vor.u32 %v20056_v24, %v16992_v5  ;;  %11428 = vmatpush.bf16.msrb.mxu2 %v18147_v62  ;;  %v16614_v24 = vld [vmem:[%s30893_s1 + $0x1e58] sm:$0xf]  ;;  %v11121_v62 = vadd.f32 %v27473_v3, %v11108_v1 }
 0x510   :  { %v18912_v8 = vld [vmem:[%s30893_s1 + $0x30d0] sm:$0xf0]  ;;  %11405 = vmatmul.bf16.vlgmr.msra.gmra.mxu1 %v20872_v57  ;;  %v15462_v5 = vld [vmem:[%s30893_s1 + $0x1558] sm:$0xf] }
 0x511   :  { %v20312_v16 = vld [vmem:[%s30893_s1 + $0x2954] sm:$0xf]  ;;  %v18915_v25 = vor.u32 %v20536_v61, %v18912_v8  ;;  %11449 = vmatpush.bf16.msrb.mxu1 %v13671_v14  ;;  %11416 = vmatpush.bf16.msra.mxu0 %v16995_v6  ;;  %v19689_v61 = vld [vmem:[%s30893_s1 + $0x15d4] sm:$0xf0]  ;;  %v13287_v8 = vor.u32 %v19145_v12, %v13286_v49  ;;  %v16615_v14 = vor.u32 %v19977_v34, %v16614_v24 }
 0x512   :  { %v18016_v19 = vld [vmem:[%s30893_s1 + $0x29d0] sm:$0xf0]  ;;  %v16486_v6 = vld [vmem:[%s30893_s1 + $0x1d58] sm:$0xf] }
 0x513   :  { %v20024_v28 = vld [vmem:[%s30893_s1 + $0x2054] sm:$0xf]  ;;  %v18019_v29 = vor.u32 %v20312_v16, %v18016_v19  ;;  %11443 = vmatpush.bf16.msrb.mxu3 %v18915_v25  ;;  %v15463_v16 = vor.u32 %v19689_v61, %v15462_v5  ;;  %v19945_v3 = vld [vmem:[%s30893_s1 + $0x1dd4] sm:$0xf0]  ;;  %v14311_v25 = vor.u32 %v19401_v9, %v14310_v13  ;;  %v27747_v61 = vpop.f32.mrf.mxu2 }
 0x514   :  { %v16864_v48 = vld [vmem:[%s30893_s1 + $0x20d0] sm:$0xf0]  ;;  %v15334_v19 = vld [vmem:[%s30893_s1 + $0x1458] sm:$0xf]  ;;  %v16487_v50 = vor.u32 %v19945_v3, %v16486_v6  ;;  %v11161_v3 = vpop.f32.mrf.mxu3 }
 0x515   :  { %v20280_v44 = vld [vmem:[%s30893_s1 + $0x2854] sm:$0xf]  ;;  %v16867_v56 = vor.u32 %v20024_v28, %v16864_v48  ;;  %11429 = vmatpush.bf16.msrb.mxu2 %v18019_v29  ;;  %11450 = vmatpush.bf16.msrb.mxu1 %v13543_v40  ;;  %v14182_v28 = vld [vmem:[%s30893_s1 + $0xb58] sm:$0xf]  ;;  %v15335_v40 = vor.u32 %v19657_v60, %v15334_v19  ;;  %v27708_v20 = vpop.f32.mrf.mxu0 }
 0x516   :  { %v17888_v59 = vld [vmem:[%s30893_s1 + $0x28d0] sm:$0xf0]  ;;  %v19369_v48 = vld [vmem:[%s30893_s1 + $0xbd4] sm:$0xf0] }
 0x517   :  { %11462 = vmatpush.bf16.msra.mxu3 %v14695_v37  ;;  %v17891_v32 = vor.u32 %v20280_v44, %v17888_v59  ;;  %11417 = vmatpush.bf16.msra.mxu0 %v16867_v56  ;;  %v11134_v37 = vadd.f32 %v27531_v39, %v11121_v62  ;;  %v13030_v18 = vld [vmem:[%s30893_s1 + $0x258] sm:$0xf]  ;;  %v14183_v41 = vor.u32 %v19369_v48, %v14182_v28 }
 0x518   :  { %v19081_v29 = vld [vmem:[%s30893_s1 + $0x2d4] sm:$0xf0] }
 0x519   :  { %11430 = vmatpush.bf16.msrb.mxu2 %v17891_v32  ;;  %11451 = vmatpush.bf16.msrb.mxu1 %v13415_v22  ;;  %v19913_v39 = vld [vmem:[%s30893_s1 + $0x1cd4] sm:$0xf0]  ;;  %v11147_v44 = vadd.f32 %v11146_v43, %v11134_v37  ;;  %v13031_v63 = vor.u32 %v19081_v29, %v13030_v18 }
 0x51a   :  { %11418 = vmatmul.bf16.vlgmr.msra.gmra.mxu0 %v21073_v30  ;;  %v15206_v56 = vld [vmem:[%s30893_s1 + $0x1358] sm:$0xf]  ;;  %v16359_v46 = vor.u32 %v19913_v39, %v16358_v2 }
 0x51b   :  { %11475 = vmatpush.bf16.msrb.mxu0 %v15719_v33  ;;  %11463 = vmatpush.bf16.msra.mxu3 %v14567_v11  ;;  %v19625_v59 = vld [vmem:[%s30893_s1 + $0x13d4] sm:$0xf0]  ;;  %v11160_v11 = vadd.f32 %v11159_v53, %v11147_v44 }
 0x51c   :  { %11431 = vmatmul.bf16.vlgmr.msrb.gmra.mxu2 %v21084_v35  ;;  %v14054_v33 = vld [vmem:[%s30893_s1 + $0xa58] sm:$0xf]  ;;  %v15207_v22 = vor.u32 %v19625_v59, %v15206_v56 }
 0x51d   :  { %11488 = vmatpush.bf16.msra.mxu2 %v16743_v47  ;;  %11452 = vmatpush.bf16.msrb.mxu1 %v13287_v8  ;;  %v19337_v7 = vld [vmem:[%s30893_s1 + $0xad4] sm:$0xf0]  ;;  %v11173_v1 = vadd.f32 %v27599_v0, %v11160_v11 }
 0x51e   :  { %v12902_v54 = vld [vmem:[%s30893_s1 + $0x158] sm:$0xf]  ;;  %18977 = vmatmul.msk.bf16.vlgmr.msrb.gmra.mxu3 %vm9443_vm0, %v20982_v45  ;;  %v14055_v47 = vor.u32 %v19337_v7, %v14054_v33  ;;  %v11187_v7 = vpop.f32.mrf.mxu2 }
 0x51f   :  { %11476 = vmatpush.bf16.msrb.mxu0 %v15591_v38  ;;  %11464 = vmatpush.bf16.msra.mxu3 %v14439_v36  ;;  %v19049_v32 = vld [vmem:[%s30893_s1 + $0x1d4] sm:$0xf0] }
 0x520   :  { %v16230_v21 = vld [vmem:[%s30893_s1 + $0x1b58] sm:$0xf]  ;;  %v12903_v43 = vor.u32 %v19049_v32, %v12902_v54  ;;  %12484 = vrot.lane.b32.xlu1 %v11173_v1, %s20582_s11 }
 0x521   :  { %11489 = vmatpush.bf16.msra.mxu2 %v16615_v14  ;;  %11453 = vmatpush.bf16.msrb.mxu1 %v13159_v27  ;;  %v19881_v26 = vld [vmem:[%s30893_s1 + $0x1bd4] sm:$0xf0] }
 0x522   :  { %v15078_v49 = vld [vmem:[%s30893_s1 + $0x1258] sm:$0xf]  ;;  %v16231_v24 = vor.u32 %v19881_v26, %v16230_v21  ;;  %v19225_v21 = vld [vmem:[%s30893_s1 + $0x75c] sm:$0xf] }
 0x523   :  { %11477 = vmatpush.bf16.msrb.mxu0 %v15463_v16  ;;  %11465 = vmatpush.bf16.msra.mxu3 %v14311_v25  ;;  %v19593_v12 = vld [vmem:[%s30893_s1 + $0x12d4] sm:$0xf0]  ;;  %v11200_v25 = vpop.f32.mrf.mxu0  ;;  %v13672_v26 = vld [vmem:[%s30893_s1 + $0x7d8] sm:$0xf0]  ;;  %v11224_v7 = vpop.f32.mrf.mxu3 }
 0x524   :  { %v13926_v38 = vld [vmem:[%s30893_s1 + $0x958] sm:$0xf]  ;;  %v15079_v8 = vor.u32 %v19593_v12, %v15078_v49  ;;  %v14696_v49 = vld [vmem:[%s30893_s1 + $0xfd8] sm:$0xf0] }
 0x525   :  { %11490 = vmatpush.bf16.msra.mxu2 %v16487_v50  ;;  %11454 = vmatpush.bf16.msrb.mxu1 %v13031_v63  ;;  %v19305_v0 = vld [vmem:[%s30893_s1 + $0x9d4] sm:$0xf0] }
 0x526   :  { %v12774_v34 = vld [vmem:[%s30893_s1 + $0x58] sm:$0xf]  ;;  %v13927_v62 = vor.u32 %v19305_v0, %v13926_v38 }
 0x527   :  { %11478 = vmatpush.bf16.msrb.mxu0 %v15335_v40  ;;  %11466 = vmatpush.bf16.msra.mxu3 %v14183_v41  ;;  %v19017_v36 = vld [vmem:[%s30893_s1 + $0xd4] sm:$0xf0] }
 0x528   :  { %v16102_v5 = vld [vmem:[%s30893_s1 + $0x1a58] sm:$0xf]  ;;  %v12775_v15 = vor.u32 %v19017_v36, %v12774_v34 }
 0x529   :  { %11491 = vmatpush.bf16.msra.mxu2 %v16359_v46  ;;  %v19849_v13 = vld [vmem:[%s30893_s1 + $0x1ad4] sm:$0xf0]  ;;  %11455 = vmatpush.bf16.msrb.mxu1 %v12903_v43 }
 0x52a   :  { %v17766_v9 = vld [vmem:[%s30893_s1 + $0x2758] sm:$0xf]  ;;  %v16103_v19 = vor.u32 %v19849_v13, %v16102_v5  ;;  %v13544_v13 = vld [vmem:[%s30893_s1 + $0x6d8] sm:$0xf0] }
 0x52b   :  { %11479 = vmatpush.bf16.msrb.mxu0 %v15207_v22  ;;  %v20265_v10 = vld [vmem:[%s30893_s1 + $0x27d4] sm:$0xf0]  ;;  %11467 = vmatpush.bf16.msra.mxu3 %v14055_v47  ;;  %v19481_v47 = vld [vmem:[%s30893_s1 + $0xf5c] sm:$0xf] }
 0x52c   :  { %v14950_v14 = vld [vmem:[%s30893_s1 + $0x1158] sm:$0xf]  ;;  %v17767_v60 = vor.u32 %v20265_v10, %v17766_v9  ;;  %v14699_v5 = vor.u32 %v19481_v47, %v14696_v49  ;;  %v11211_v9 = vpop.f32.mrf.mxu1 }
 0x52d   :  { %v13798_v16 = vld [vmem:[%s30893_s1 + $0x858] sm:$0xf]  ;;  %11492 = vmatpush.bf16.msra.mxu2 %v16231_v24  ;;  %v14951_v37 = vor.u32 %v19561_v17, %v14950_v14  ;;  %11456 = vmatpush.bf16.msrb.mxu1 %v12775_v15  ;;  %v13675_v24 = vor.u32 %v19225_v21, %v13672_v26  ;;  %v14568_v14 = vld [vmem:[%s30893_s1 + $0xed8] sm:$0xf0] }
 0x52e   :  { %v19273_v6 = vld [vmem:[%s30893_s1 + $0x8d4] sm:$0xf0]  ;;  %v19097_v26 = vld [vmem:[%s30893_s1 + $0x35c] sm:$0xf] }
 0x52f   :  { %v18790_v27 = vld [vmem:[%s30893_s1 + $0x2f58] sm:$0xf]  ;;  %11480 = vmatpush.bf16.msrb.mxu0 %v15079_v8  ;;  %11468 = vmatpush.bf16.msra.mxu3 %v13927_v62  ;;  %v13799_v40 = vor.u32 %v19273_v6, %v13798_v16  ;;  %v19193_v8 = vld [vmem:[%s30893_s1 + $0x65c] sm:$0xf] }
 0x530   :  { %v20521_v28 = vld [vmem:[%s30893_s1 + $0x2fd4] sm:$0xf0]  ;;  %11457 = vmatmul.bf16.vlgmr.msrb.gmra.mxu1 %v20870_v55  ;;  %v19449_v62 = vld [vmem:[%s30893_s1 + $0xe5c] sm:$0xf]  ;;  %v13547_v6 = vor.u32 %v19193_v8, %v13544_v13 }
 0x531   :  { %v15974_v48 = vld [vmem:[%s30893_s1 + $0x1958] sm:$0xf]  ;;  %v18791_v42 = vor.u32 %v20521_v28, %v18790_v27  ;;  %11493 = vmatpush.bf16.msra.mxu2 %v16103_v19  ;;  %11501 = vmatpush.bf16.msra.mxu1 %v17767_v60  ;;  %v14571_v19 = vor.u32 %v19449_v62, %v14568_v14  ;;  %v19161_v60 = vld [vmem:[%s30893_s1 + $0x55c] sm:$0xf] }
 0x532   :  { %v19817_v50 = vld [vmem:[%s30893_s1 + $0x19d4] sm:$0xf0]  ;;  %v13416_v27 = vld [vmem:[%s30893_s1 + $0x5d8] sm:$0xf0] }
 0x533   :  { %v17638_v18 = vld [vmem:[%s30893_s1 + $0x2658] sm:$0xf]  ;;  %v15975_v56 = vor.u32 %v19817_v50, %v15974_v48  ;;  %11481 = vmatpush.bf16.msrb.mxu0 %v14951_v37  ;;  %11469 = vmatpush.bf16.msra.mxu3 %v13799_v40  ;;  %v19417_v48 = vld [vmem:[%s30893_s1 + $0xd5c] sm:$0xf]  ;;  %v13419_v40 = vor.u32 %v19161_v60, %v13416_v27  ;;  %v11226_v27 = vpop.f32.mrf.mxu3 }
 0x534   :  { %v20233_v29 = vld [vmem:[%s30893_s1 + $0x26d4] sm:$0xf0]  ;;  %v14440_v37 = vld [vmem:[%s30893_s1 + $0xdd8] sm:$0xf0] }
 0x535   :  { %v14822_v2 = vld [vmem:[%s30893_s1 + $0x1058] sm:$0xf]  ;;  %v17639_v59 = vor.u32 %v20233_v29, %v17638_v18  ;;  %11494 = vmatpush.bf16.msra.mxu2 %v15975_v56  ;;  %v11199_v56 = vadd.f32 %v27708_v20, %v27747_v61  ;;  %v19065_v13 = vld [vmem:[%s30893_s1 + $0x25c] sm:$0xf] }
 0x536   :  { %v19529_v39 = vld [vmem:[%s30893_s1 + $0x10d4] sm:$0xf0]  ;;  %11470 = vmatmul.bf16.vlgmr.msra.gmra.mxu3 %v20894_v4  ;;  %v13032_v62 = vld [vmem:[%s30893_s1 + $0x2d8] sm:$0xf0] }
 0x537   :  { %v18918_v44 = vld [vmem:[%s30893_s1 + $0x3058] sm:$0xf]  ;;  %v14823_v11 = vor.u32 %v19529_v39, %v14822_v2  ;;  %11514 = vmatpush.bf16.msrb.mxu3 %v18791_v42  ;;  %11502 = vmatpush.bf16.msra.mxu1 %v17639_v59  ;;  %v14443_v42 = vor.u32 %v19417_v48, %v14440_v37  ;;  %v11213_v59 = vpop.f32.mrf.mxu1  ;;  %v11212_v47 = vadd.f32 %v11211_v9, %v11199_v56  ;;  %v11237_v9 = vpop.f32.mrf.mxu2  ;;  %v19737_v14 = vld [vmem:[%s30893_s1 + $0x175c] sm:$0xf] }
 0x538   :  { %v20553_v41 = vld [vmem:[%s30893_s1 + $0x30d4] sm:$0xf0]  ;;  %v13035_v48 = vor.u32 %v19065_v13, %v13032_v62  ;;  %v13928_v56 = vld [vmem:[%s30893_s1 + $0x9d8] sm:$0xf0] }
 0x539   :  { %v18662_v53 = vld [vmem:[%s30893_s1 + $0x2e58] sm:$0xf]  ;;  %v18919_v22 = vor.u32 %v20553_v41, %v18918_v44  ;;  %11482 = vmatpush.bf16.msrb.mxu0 %v14823_v11  ;;  %v19129_v44 = vld [vmem:[%s30893_s1 + $0x45c] sm:$0xf] }
 0x53a   :  { %v20489_v63 = vld [vmem:[%s30893_s1 + $0x2ed4] sm:$0xf0]  ;;  %v13288_v41 = vld [vmem:[%s30893_s1 + $0x4d8] sm:$0xf0] }
 0x53b   :  { %v15846_v33 = vld [vmem:[%s30893_s1 + $0x1858] sm:$0xf]  ;;  %v18663_v1 = vor.u32 %v20489_v63, %v18662_v53  ;;  %v19385_v63 = vld [vmem:[%s30893_s1 + $0xc5c] sm:$0xf]  ;;  %v13291_v61 = vor.u32 %v19129_v44, %v13288_v41 }
 0x53c   :  { %v19785_v46 = vld [vmem:[%s30893_s1 + $0x18d4] sm:$0xf0]  ;;  %11483 = vmatmul.bf16.vlgmr.msrb.gmra.mxu0 %v20859_v51  ;;  %v19289_v44 = vld [vmem:[%s30893_s1 + $0x95c] sm:$0xf] }
 0x53d   :  { %v17510_v54 = vld [vmem:[%s30893_s1 + $0x2558] sm:$0xf]  ;;  %v15847_v12 = vor.u32 %v19785_v46, %v15846_v33  ;;  %11534 = vmatpush.bf16.msra.mxu0 %v18919_v22  ;;  %11515 = vmatpush.bf16.msrb.mxu3 %v18663_v1  ;;  %v14312_v33 = vld [vmem:[%s30893_s1 + $0xcd8] sm:$0xf0]  ;;  %v11250_v22 = vpop.f32.mrf.mxu0 }
 0x53e   :  { %v20201_v32 = vld [vmem:[%s30893_s1 + $0x25d4] sm:$0xf0]  ;;  %v14315_v21 = vor.u32 %v19385_v63, %v14312_v33  ;;  %v13160_v1 = vld [vmem:[%s30893_s1 + $0x3d8] sm:$0xf0] }
 0x53f   :  { %v17511_v43 = vor.u32 %v20201_v32, %v17510_v54  ;;  %v18534_v38 = vld [vmem:[%s30893_s1 + $0x2d58] sm:$0xf]  ;;  %11495 = vmatpush.bf16.msra.mxu2 %v15847_v12  ;;  %v19353_v12 = vld [vmem:[%s30893_s1 + $0xb5c] sm:$0xf] }
 0x540   :  { %v20457_v0 = vld [vmem:[%s30893_s1 + $0x2dd4] sm:$0xf0]  ;;  %v19705_v59 = vld [vmem:[%s30893_s1 + $0x165c] sm:$0xf] }
 0x541   :  { %v17382_v34 = vld [vmem:[%s30893_s1 + $0x2458] sm:$0xf]  ;;  %v18535_v10 = vor.u32 %v20457_v0, %v18534_v38  ;;  %11503 = vmatpush.bf16.msra.mxu1 %v17511_v43  ;;  %11553 = vmatpush.bf16.msrb.mxu0 %v14699_v5  ;;  %v14184_v43 = vld [vmem:[%s30893_s1 + $0xbd8] sm:$0xf0] }
 0x542   :  { %v20169_v36 = vld [vmem:[%s30893_s1 + $0x24d4] sm:$0xf0]  ;;  %11496 = vmatmul.bf16.vlgmr.msra.gmra.mxu2 %v20872_v57  ;;  %v16488_v13 = vld [vmem:[%s30893_s1 + $0x1dd8] sm:$0xf0] }
 0x543   :  { %v17383_v17 = vor.u32 %v20169_v36, %v17382_v34  ;;  %v18406_v15 = vld [vmem:[%s30893_s1 + $0x2c58] sm:$0xf]  ;;  %11540 = vmatpush.bf16.msrb.mxu2 %v13675_v24  ;;  %11516 = vmatpush.bf16.msrb.mxu3 %v18535_v10  ;;  %v11225_v34 = vadd.f32 %v11224_v7, %v11212_v47  ;;  %v13163_v36 = vor.u32 %v19097_v26, %v13160_v1  ;;  %v13800_v26 = vld [vmem:[%s30893_s1 + $0x8d8] sm:$0xf0] }
 0x544   :  { %v20425_v16 = vld [vmem:[%s30893_s1 + $0x2cd4] sm:$0xf0]  ;;  %v14187_v10 = vor.u32 %v19353_v12, %v14184_v43  ;;  %v19673_v1 = vld [vmem:[%s30893_s1 + $0x155c] sm:$0xf] }
 0x545   :  { %v17254_v3 = vld [vmem:[%s30893_s1 + $0x2358] sm:$0xf]  ;;  %v18407_v28 = vor.u32 %v20425_v16, %v18406_v15  ;;  %11504 = vmatpush.bf16.msra.mxu1 %v17383_v17  ;;  %11554 = vmatpush.bf16.msrb.mxu0 %v14571_v19  ;;  %v15720_v17 = vld [vmem:[%s30893_s1 + $0x17d8] sm:$0xf0]  ;;  %v11238_v15 = vadd.f32 %v11237_v9, %v11225_v34  ;;  %v11263_v16 = vpop.f32.mrf.mxu1 }
 0x546   :  { %v20137_v25 = vld [vmem:[%s30893_s1 + $0x23d4] sm:$0xf0]  ;;  %v15723_v37 = vor.u32 %v19737_v14, %v15720_v17  ;;  %v15464_v47 = vld [vmem:[%s30893_s1 + $0x15d8] sm:$0xf0] }
 0x547   :  { %v17255_v50 = vor.u32 %v20137_v25, %v17254_v3  ;;  %v18278_v18 = vld [vmem:[%s30893_s1 + $0x2b58] sm:$0xf]  ;;  %11541 = vmatpush.bf16.msrb.mxu2 %v13547_v6  ;;  %11517 = vmatpush.bf16.msrb.mxu3 %v18407_v28  ;;  %v19321_v3 = vld [vmem:[%s30893_s1 + $0xa5c] sm:$0xf]  ;;  %v11251_v28 = vadd.f32 %v11250_v22, %v11238_v15 }
 0x548   :  { %v20393_v29 = vld [vmem:[%s30893_s1 + $0x2bd4] sm:$0xf0]  ;;  %v14056_v25 = vld [vmem:[%s30893_s1 + $0xad8] sm:$0xf0] }
 0x549   :  { %v17126_v2 = vld [vmem:[%s30893_s1 + $0x2258] sm:$0xf]  ;;  %v18279_v53 = vor.u32 %v20393_v29, %v18278_v18  ;;  %11505 = vmatpush.bf16.msra.mxu1 %v17255_v50  ;;  %11555 = vmatpush.bf16.msrb.mxu0 %v14443_v42  ;;  %v19993_v18 = vld [vmem:[%s30893_s1 + $0x1f5c] sm:$0xf]  ;;  %v11264_v41 = vadd.f32 %v11263_v16, %v11251_v28 }
 0x54a   :  { %v20105_v39 = vld [vmem:[%s30893_s1 + $0x22d4] sm:$0xf0]  ;;  %v16744_v29 = vld [vmem:[%s30893_s1 + $0x1fd8] sm:$0xf0] }
 0x54b   :  { %v17127_v11 = vor.u32 %v20105_v39, %v17126_v2  ;;  %v18150_v46 = vld [vmem:[%s30893_s1 + $0x2a58] sm:$0xf]  ;;  %11542 = vmatpush.bf16.msrb.mxu2 %v13419_v40  ;;  %11518 = vmatpush.bf16.msrb.mxu3 %v18279_v53  ;;  %v11252_v40 = vpop.f32.mrf.mxu0  ;;  %v14059_v2 = vor.u32 %v19321_v3, %v14056_v25  ;;  %v19033_v39 = vld [vmem:[%s30893_s1 + $0x15c] sm:$0xf]  ;;  %v16747_v33 = vor.u32 %v19993_v18, %v16744_v29 }
 0x54c   :  { %v20361_v20 = vld [vmem:[%s30893_s1 + $0x2ad4] sm:$0xf0]  ;;  %18978 = vmatmul.msk.bf16.vlgmr.msra.gmra.mxu0 %vm9443_vm0, %v20982_v45  ;;  %v12904_v42 = vld [vmem:[%s30893_s1 + $0x1d8] sm:$0xf0]  ;;  %12486 = vrot.lane.b32.xlu2 %v11264_v41, %s20582_s11 }
 0x54d   :  { %v16998_v54 = vld [vmem:[%s30893_s1 + $0x2158] sm:$0xf]  ;;  %v18151_v49 = vor.u32 %v20361_v20, %v18150_v46  ;;  %11506 = vmatpush.bf16.msra.mxu1 %v17127_v11  ;;  %11556 = vmatpush.bf16.msrb.mxu0 %v14315_v21  ;;  %v15592_v53 = vld [vmem:[%s30893_s1 + $0x16d8] sm:$0xf0]  ;;  %v12907_v7 = vor.u32 %v19033_v39, %v12904_v42  ;;  %v11265_v12 = vpop.f32.mrf.mxu1 }
 0x54e   :  { %v20073_v32 = vld [vmem:[%s30893_s1 + $0x21d4] sm:$0xf0]  ;;  %v19961_v11 = vld [vmem:[%s30893_s1 + $0x1e5c] sm:$0xf]  ;;  %12497 = vrot.lane.b32.xlu0 %v11264_v41, %s20583_s18 }
 0x54f   :  { %v16999_v38 = vor.u32 %v20073_v32, %v16998_v54  ;;  %v18022_v0 = vld [vmem:[%s30893_s1 + $0x2958] sm:$0xf]  ;;  %11543 = vmatpush.bf16.msrb.mxu2 %v13291_v61  ;;  %11519 = vmatpush.bf16.msrb.mxu3 %v18151_v49  ;;  %v16616_v46 = vld [vmem:[%s30893_s1 + $0x1ed8] sm:$0xf0]  ;;  %v13931_v61 = vor.u32 %v19289_v44, %v13928_v56  ;;  %v15595_v54 = vor.u32 %v19705_v59, %v15592_v53  ;;  %v11239_v32 = vpop.f32.mrf.mxu2 }
 0x550   :  { %v20329_v24 = vld [vmem:[%s30893_s1 + $0x29d4] sm:$0xf0]  ;;  %v19001_v20 = vld [vmem:[%s30893_s1 + $0x5c] sm:$0xf] }
 0x551   :  { %v16870_v5 = vld [vmem:[%s30893_s1 + $0x2058] sm:$0xf]  ;;  %v18023_v6 = vor.u32 %v20329_v24, %v18022_v0  ;;  %11507 = vmatpush.bf16.msra.mxu1 %v16999_v38  ;;  %11557 = vmatpush.bf16.msrb.mxu0 %v14187_v10  ;;  %v12776_v22 = vld [vmem:[%s30893_s1 + $0xd8] sm:$0xf0]  ;;  %v16619_v24 = vor.u32 %v19961_v11, %v16616_v46 }
 0x552   :  { %v20041_v8 = vld [vmem:[%s30893_s1 + $0x20d4] sm:$0xf0]  ;;  %v19257_v21 = vld [vmem:[%s30893_s1 + $0x85c] sm:$0xf]  ;;  %v12779_v34 = vor.u32 %v19001_v20, %v12776_v22 }
 0x553   :  { %v16871_v19 = vor.u32 %v20041_v8, %v16870_v5  ;;  %v17894_v60 = vld [vmem:[%s30893_s1 + $0x2858] sm:$0xf]  ;;  %11544 = vmatpush.bf16.msrb.mxu2 %v13163_v36  ;;  %11520 = vmatpush.bf16.msrb.mxu3 %v18023_v6  ;;  %v20249_v49 = vld [vmem:[%s30893_s1 + $0x275c] sm:$0xf]  ;;  %v13803_v36 = vor.u32 %v19257_v21, %v13800_v26  ;;  %v15467_v5 = vor.u32 %v19673_v1, %v15464_v47  ;;  %v28127_v12 = vpop.f32.mrf.mxu0 }
 0x554   :  { %v20297_v50 = vld [vmem:[%s30893_s1 + $0x28d4] sm:$0xf0]  ;;  %v17768_v43 = vld [vmem:[%s30893_s1 + $0x27d8] sm:$0xf0] }
 0x555   :  { %11508 = vmatpush.bf16.msra.mxu1 %v16871_v19  ;;  %v17895_v63 = vor.u32 %v20297_v50, %v17894_v60  ;;  %11558 = vmatpush.bf16.msrb.mxu0 %v14059_v2  ;;  %v20505_v38 = vld [vmem:[%s30893_s1 + $0x2f5c] sm:$0xf]  ;;  %v17771_v9 = vor.u32 %v20249_v49, %v17768_v43  ;;  %v28082_v2 = vpop.f32.mrf.mxu1 }
 0x556   :  { %v18792_v0 = vld [vmem:[%s30893_s1 + $0x2fd8] sm:$0xf0] }
 0x557   :  { %11545 = vmatpush.bf16.msrb.mxu2 %v13035_v48  ;;  %11521 = vmatpush.bf16.msrb.mxu3 %v17895_v63  ;;  %v19929_v8 = vld [vmem:[%s30893_s1 + $0x1d5c] sm:$0xf]  ;;  %v18795_v10 = vor.u32 %v20505_v38, %v18792_v0 }
 0x558   :  { %11509 = vmatmul.bf16.vlgmr.msra.gmra.mxu1 %v21073_v30  ;;  %v19641_v62 = vld [vmem:[%s30893_s1 + $0x145c] sm:$0xf]  ;;  %v16491_v3 = vor.u32 %v19929_v8, %v16488_v13  ;;  %v28144_v13 = vpop.f32.mrf.mxu2 }
 0x559   :  { %11566 = vmatpush.bf16.msrb.mxu1 %v15723_v37  ;;  %11559 = vmatpush.bf16.msrb.mxu0 %v13931_v61  ;;  %v15336_v14 = vld [vmem:[%s30893_s1 + $0x14d8] sm:$0xf0]  ;;  %v28110_v61 = vpop.f32.mrf.mxu3 }
 0x55a   :  { %11522 = vmatmul.bf16.vlgmr.msrb.gmra.mxu3 %v21084_v35  ;;  %v20217_v17 = vld [vmem:[%s30893_s1 + $0x265c] sm:$0xf]  ;;  %v15339_v25 = vor.u32 %v19641_v62, %v15336_v14 }
 0x55b   :  { %11579 = vmatpush.bf16.msra.mxu3 %v16747_v33  ;;  %11546 = vmatpush.bf16.msrb.mxu2 %v12907_v7  ;;  %v17640_v15 = vld [vmem:[%s30893_s1 + $0x26d8] sm:$0xf0] }
 0x55c   :  { %v20473_v16 = vld [vmem:[%s30893_s1 + $0x2e5c] sm:$0xf]  ;;  %v17643_v27 = vor.u32 %v20217_v17, %v17640_v15 }
 0x55d   :  { %11567 = vmatpush.bf16.msrb.mxu1 %v15595_v54  ;;  %v18664_v6 = vld [vmem:[%s30893_s1 + $0x2ed8] sm:$0xf0]  ;;  %11560 = vmatpush.bf16.msrb.mxu0 %v13803_v36 }
 0x55e   :  { %v19897_v19 = vld [vmem:[%s30893_s1 + $0x1c5c] sm:$0xf]  ;;  %v18667_v28 = vor.u32 %v20473_v16, %v18664_v6 }
 0x55f   :  { %11580 = vmatpush.bf16.msra.mxu3 %v16619_v24  ;;  %11547 = vmatpush.bf16.msrb.mxu2 %v12779_v34  ;;  %v16360_v60 = vld [vmem:[%s30893_s1 + $0x1cd8] sm:$0xf0]  ;;  %v11291_v24 = vpop.f32.mrf.mxu1 }
 0x560   :  { %v19609_v48 = vld [vmem:[%s30893_s1 + $0x135c] sm:$0xf]  ;;  %v16363_v39 = vor.u32 %v19897_v19, %v16360_v60  ;;  %11561 = vmatmul.bf16.vlgmr.msrb.gmra.mxu0 %v20894_v4  ;;  %v20010_v24 = vld [vmem:[%s30893_s1 + $0x1fdc] sm:$0xf0] }
 0x561   :  { %11568 = vmatpush.bf16.msrb.mxu1 %v15467_v5  ;;  %11605 = vmatpush.bf16.msra.mxu0 %v18795_v10  ;;  %v15208_v37 = vld [vmem:[%s30893_s1 + $0x13d8] sm:$0xf0] }
 0x562   :  { %v20185_v50 = vld [vmem:[%s30893_s1 + $0x255c] sm:$0xf]  ;;  %11548 = vmatmul.bf16.vlgmr.msrb.gmra.mxu2 %v20870_v55  ;;  %v15211_v42 = vor.u32 %v19609_v48, %v15208_v37  ;;  %v13678_v37 = vld [vmem:[%s30893_s1 + $0x760] sm:$0xf] }
 0x563   :  { %11592 = vmatpush.bf16.msra.mxu2 %v17771_v9  ;;  %v17512_v18 = vld [vmem:[%s30893_s1 + $0x25d8] sm:$0xf0]  ;;  %11581 = vmatpush.bf16.msra.mxu3 %v16491_v3 }
 0x564   :  { %v20441_v29 = vld [vmem:[%s30893_s1 + $0x2d5c] sm:$0xf]  ;;  %v17515_v56 = vor.u32 %v20185_v50, %v17512_v18  ;;  %v19242_v50 = vld [vmem:[%s30893_s1 + $0x7dc] sm:$0xf0] }
 0x565   :  { %v18536_v40 = vld [vmem:[%s30893_s1 + $0x2dd8] sm:$0xf0]  ;;  %11569 = vmatpush.bf16.msrb.mxu1 %v15339_v25  ;;  %11606 = vmatpush.bf16.msra.mxu0 %v18667_v28 }
 0x566   :  { %v19865_v44 = vld [vmem:[%s30893_s1 + $0x1b5c] sm:$0xf]  ;;  %v18539_v59 = vor.u32 %v20441_v29, %v18536_v40  ;;  %v14702_v40 = vld [vmem:[%s30893_s1 + $0xf60] sm:$0xf] }
 0x567   :  { %v16232_v41 = vld [vmem:[%s30893_s1 + $0x1bd8] sm:$0xf0]  ;;  %11593 = vmatpush.bf16.msra.mxu2 %v17643_v27  ;;  %11582 = vmatpush.bf16.msra.mxu3 %v16363_v39  ;;  %v11278_v27 = vpop.f32.mrf.mxu3  ;;  %v19498_v39 = vld [vmem:[%s30893_s1 + $0xfdc] sm:$0xf0] }
 0x568   :  { %v19577_v53 = vld [vmem:[%s30893_s1 + $0x125c] sm:$0xf]  ;;  %v16235_v20 = vor.u32 %v19865_v44, %v16232_v41  ;;  %v11317_v44 = vpop.f32.mrf.mxu0 }
 0x569   :  { %v15080_v63 = vld [vmem:[%s30893_s1 + $0x12d8] sm:$0xf0]  ;;  %11570 = vmatpush.bf16.msrb.mxu1 %v15211_v42  ;;  %11607 = vmatpush.bf16.msra.mxu0 %v18539_v59  ;;  %v19946_v44 = vld [vmem:[%s30893_s1 + $0x1ddc] sm:$0xf0] }
 0x56a   :  { %v20153_v33 = vld [vmem:[%s30893_s1 + $0x245c] sm:$0xf]  ;;  %v15083_v54 = vor.u32 %v19577_v53, %v15080_v63 }
 0x56b   :  { %v17384_v7 = vld [vmem:[%s30893_s1 + $0x24d8] sm:$0xf0]  ;;  %11594 = vmatpush.bf16.msra.mxu2 %v17515_v56  ;;  %11583 = vmatpush.bf16.msra.mxu3 %v16235_v20  ;;  %v14574_v20 = vld [vmem:[%s30893_s1 + $0xe60] sm:$0xf] }
 0x56c   :  { %v20409_v11 = vld [vmem:[%s30893_s1 + $0x2c5c] sm:$0xf]  ;;  %v17387_v21 = vor.u32 %v20153_v33, %v17384_v7  ;;  %v13679_v33 = vor.u32 %v19242_v50, %v13678_v37  ;;  %v14703_v7 = vor.u32 %v19498_v39, %v14702_v40  ;;  %v14318_v50 = vld [vmem:[%s30893_s1 + $0xc60] sm:$0xf] }
 0x56d   :  { %v18408_v46 = vld [vmem:[%s30893_s1 + $0x2cd8] sm:$0xf0]  ;;  %11571 = vmatpush.bf16.msrb.mxu1 %v15083_v54  ;;  %v11304_v54 = vpop.f32.mrf.mxu2  ;;  %v19690_v39 = vld [vmem:[%s30893_s1 + $0x15dc] sm:$0xf0] }
 0x56e   :  { %v19833_v32 = vld [vmem:[%s30893_s1 + $0x1a5c] sm:$0xf]  ;;  %v18411_v26 = vor.u32 %v20409_v11, %v18408_v46  ;;  %v13550_v11 = vld [vmem:[%s30893_s1 + $0x660] sm:$0xf] }
 0x56f   :  { %v16104_v22 = vld [vmem:[%s30893_s1 + $0x1ad8] sm:$0xf0]  ;;  %11595 = vmatpush.bf16.msra.mxu2 %v17387_v21  ;;  %v19210_v46 = vld [vmem:[%s30893_s1 + $0x6dc] sm:$0xf0] }
 0x570   :  { %v19545_v1 = vld [vmem:[%s30893_s1 + $0x115c] sm:$0xf]  ;;  %v16107_v34 = vor.u32 %v19833_v32, %v16104_v22  ;;  %11608 = vmatpush.bf16.msra.mxu0 %v18411_v26  ;;  %v19466_v21 = vld [vmem:[%s30893_s1 + $0xedc] sm:$0xf0] }
 0x571   :  { %v14952_v47 = vld [vmem:[%s30893_s1 + $0x11d8] sm:$0xf0]  ;;  %v19658_v54 = vld [vmem:[%s30893_s1 + $0x14dc] sm:$0xf0] }
 0x572   :  { %v20121_v49 = vld [vmem:[%s30893_s1 + $0x235c] sm:$0xf]  ;;  %v14955_v36 = vor.u32 %v19545_v1, %v14952_v47  ;;  %11584 = vmatpush.bf16.msra.mxu3 %v16107_v34  ;;  %v13551_v34 = vor.u32 %v19210_v46, %v13550_v11  ;;  %v19370_v11 = vld [vmem:[%s30893_s1 + $0xbdc] sm:$0xf0] }
 0x573   :  { %v17256_v43 = vld [vmem:[%s30893_s1 + $0x23d8] sm:$0xf0]  ;;  %v15342_v46 = vld [vmem:[%s30893_s1 + $0x1460] sm:$0xf] }
 0x574   :  { %v20377_v38 = vld [vmem:[%s30893_s1 + $0x2b5c] sm:$0xf]  ;;  %v17259_v9 = vor.u32 %v20121_v49, %v17256_v43  ;;  %11572 = vmatpush.bf16.msrb.mxu1 %v14955_v36  ;;  %v15726_v43 = vld [vmem:[%s30893_s1 + $0x1760] sm:$0xf]  ;;  %v14575_v36 = vor.u32 %v19466_v21, %v14574_v20  ;;  %v11328_v21 = vpop.f32.mrf.mxu3 }
 0x575   :  { %v18280_v0 = vld [vmem:[%s30893_s1 + $0x2bd8] sm:$0xf0] }
 0x576   :  { %v19801_v5 = vld [vmem:[%s30893_s1 + $0x195c] sm:$0xf]  ;;  %v18283_v10 = vor.u32 %v20377_v38, %v18280_v0  ;;  %11596 = vmatpush.bf16.msra.mxu2 %v17259_v9  ;;  %v19754_v38 = vld [vmem:[%s30893_s1 + $0x17dc] sm:$0xf0] }
 0x577   :  { %v15976_v8 = vld [vmem:[%s30893_s1 + $0x19d8] sm:$0xf0]  ;;  %v16750_v0 = vld [vmem:[%s30893_s1 + $0x1f60] sm:$0xf] }
 0x578   :  { %v19513_v62 = vld [vmem:[%s30893_s1 + $0x105c] sm:$0xf]  ;;  %v15979_v3 = vor.u32 %v19801_v5, %v15976_v8  ;;  %11609 = vmatpush.bf16.msra.mxu0 %v18283_v10  ;;  %v13422_v9 = vld [vmem:[%s30893_s1 + $0x560] sm:$0xf] }
 0x579   :  { %v14824_v14 = vld [vmem:[%s30893_s1 + $0x10d8] sm:$0xf0]  ;;  %v19178_v10 = vld [vmem:[%s30893_s1 + $0x5dc] sm:$0xf0] }
 0x57a   :  { %v20089_v17 = vld [vmem:[%s30893_s1 + $0x225c] sm:$0xf]  ;;  %v14827_v28 = vor.u32 %v19513_v62, %v14824_v14  ;;  %11585 = vmatpush.bf16.msra.mxu3 %v15979_v3  ;;  %v15727_v62 = vor.u32 %v19754_v38, %v15726_v43  ;;  %v16751_v14 = vor.u32 %v20010_v24, %v16750_v0  ;;  %v19722_v3 = vld [vmem:[%s30893_s1 + $0x16dc] sm:$0xf0]  ;;  %v15343_v38 = vor.u32 %v19658_v54, %v15342_v46 }
 0x57b   :  { %v17128_v15 = vld [vmem:[%s30893_s1 + $0x22d8] sm:$0xf0]  ;;  %v14062_v24 = vld [vmem:[%s30893_s1 + $0xa60] sm:$0xf] }
 0x57c   :  { %v20345_v16 = vld [vmem:[%s30893_s1 + $0x2a5c] sm:$0xf]  ;;  %v17131_v18 = vor.u32 %v20089_v17, %v17128_v15  ;;  %11573 = vmatpush.bf16.msrb.mxu1 %v14827_v28  ;;  %v14446_v17 = vld [vmem:[%s30893_s1 + $0xd60] sm:$0xf]  ;;  %v11354_v28 = vpop.f32.mrf.mxu2 }
 0x57d   :  { %v18152_v6 = vld [vmem:[%s30893_s1 + $0x2ad8] sm:$0xf0]  ;;  %v19434_v15 = vld [vmem:[%s30893_s1 + $0xddc] sm:$0xf0] }
 0x57e   :  { %v19769_v25 = vld [vmem:[%s30893_s1 + $0x185c] sm:$0xf]  ;;  %v18155_v29 = vor.u32 %v20345_v16, %v18152_v6  ;;  %11597 = vmatpush.bf16.msra.mxu2 %v17131_v18  ;;  %v15598_v16 = vld [vmem:[%s30893_s1 + $0x1660] sm:$0xf]  ;;  %v11290_v6 = vadd.f32 %v28082_v2, %v28110_v61  ;;  %v14447_v27 = vor.u32 %v19434_v15, %v14446_v17 }
 0x57f   :  { %v20537_v19 = vld [vmem:[%s30893_s1 + $0x305c] sm:$0xf]  ;;  %11574 = vmatmul.bf16.vlgmr.msrb.gmra.mxu1 %v20859_v51  ;;  %v13294_v2 = vld [vmem:[%s30893_s1 + $0x460] sm:$0xf] }
 0x580   :  { %v18920_v60 = vld [vmem:[%s30893_s1 + $0x30d8] sm:$0xf0]  ;;  %11610 = vmatpush.bf16.msra.mxu0 %v18155_v29  ;;  %v19146_v61 = vld [vmem:[%s30893_s1 + $0x4dc] sm:$0xf0]  ;;  %v11303_v40 = vadd.f32 %v28144_v13, %v11290_v6 }
 0x581   :  { %v15848_v48 = vld [vmem:[%s30893_s1 + $0x18d8] sm:$0xf0]  ;;  %v18923_v41 = vor.u32 %v20537_v19, %v18920_v60  ;;  %v19978_v19 = vld [vmem:[%s30893_s1 + $0x1edc] sm:$0xf0]  ;;  %v13423_v60 = vor.u32 %v19178_v10, %v13422_v9 }
 0x582   :  { %v20057_v42 = vld [vmem:[%s30893_s1 + $0x215c] sm:$0xf]  ;;  %v15851_v63 = vor.u32 %v19769_v25, %v15848_v48  ;;  %v16622_v25 = vld [vmem:[%s30893_s1 + $0x1e60] sm:$0xf]  ;;  %v15599_v48 = vor.u32 %v19722_v3, %v15598_v16  ;;  %v11316_v20 = vadd.f32 %v28127_v12, %v11303_v40 }
 0x583   :  { %v17000_v56 = vld [vmem:[%s30893_s1 + $0x21d8] sm:$0xf0]  ;;  %11625 = vmatpush.bf16.msra.mxu1 %v18923_v41  ;;  %v16623_v37 = vor.u32 %v19978_v19, %v16622_v25  ;;  %v19402_v18 = vld [vmem:[%s30893_s1 + $0xcdc] sm:$0xf0]  ;;  %v13295_v41 = vor.u32 %v19146_v61, %v13294_v2 }
 0x584   :  { %v20313_v59 = vld [vmem:[%s30893_s1 + $0x295c] sm:$0xf]  ;;  %v17003_v32 = vor.u32 %v20057_v42, %v17000_v56  ;;  %11586 = vmatpush.bf16.msra.mxu3 %v15851_v63  ;;  %v15470_v29 = vld [vmem:[%s30893_s1 + $0x1560] sm:$0xf]  ;;  %v11341_v56 = vpop.f32.mrf.mxu1  ;;  %v11356_v43 = vpop.f32.mrf.mxu2 }
 0x585   :  { %v18024_v53 = vld [vmem:[%s30893_s1 + $0x29d8] sm:$0xf0]  ;;  %v16494_v42 = vld [vmem:[%s30893_s1 + $0x1d60] sm:$0xf]  ;;  %v15471_v63 = vor.u32 %v19690_v39, %v15470_v29 }
 0x586   :  { %v18027_v22 = vor.u32 %v20313_v59, %v18024_v53  ;;  %v20025_v26 = vld [vmem:[%s30893_s1 + $0x205c] sm:$0xf]  ;;  %11598 = vmatpush.bf16.msra.mxu2 %v17003_v32  ;;  %v14319_v59 = vor.u32 %v19402_v18, %v14318_v50  ;;  %v13166_v13 = vld [vmem:[%s30893_s1 + $0x360] sm:$0xf]  ;;  %v11330_v18 = vpop.f32.mrf.mxu3 }
 0x587   :  { %v16872_v1 = vld [vmem:[%s30893_s1 + $0x20d8] sm:$0xf0]  ;;  %11644 = vmatpush.bf16.msrb.mxu1 %v14703_v7  ;;  %11587 = vmatmul.bf16.vlgmr.msra.gmra.mxu3 %v20872_v57  ;;  %v19114_v53 = vld [vmem:[%s30893_s1 + $0x3dc] sm:$0xf0] }
 0x588   :  { %v20281_v47 = vld [vmem:[%s30893_s1 + $0x285c] sm:$0xf]  ;;  %11631 = vmatpush.bf16.msrb.mxu3 %v13679_v33  ;;  %11611 = vmatpush.bf16.msra.mxu0 %v18027_v22  ;;  %v16875_v5 = vor.u32 %v20025_v26, %v16872_v1  ;;  %v16495_v33 = vor.u32 %v19946_v44, %v16494_v42  ;;  %v14190_v7 = vld [vmem:[%s30893_s1 + $0xb60] sm:$0xf]  ;;  %v13167_v26 = vor.u32 %v19114_v53, %v13166_v13 }
 0x589   :  { %v17896_v49 = vld [vmem:[%s30893_s1 + $0x28d8] sm:$0xf0]  ;;  %v16366_v32 = vld [vmem:[%s30893_s1 + $0x1c60] sm:$0xf]  ;;  %v11329_v1 = vadd.f32 %v11328_v21, %v11316_v20 }
 0x58a   :  { %v17899_v8 = vor.u32 %v20281_v47, %v17896_v49  ;;  %11599 = vmatpush.bf16.msra.mxu2 %v16875_v5  ;;  %v19914_v22 = vld [vmem:[%s30893_s1 + $0x1cdc] sm:$0xf0]  ;;  %v14191_v47 = vor.u32 %v19370_v11, %v14190_v7  ;;  %v28331_v5 = vpop.f32.mrf.mxu0 }
 0x58b   :  { %11645 = vmatpush.bf16.msrb.mxu1 %v14575_v36  ;;  %v13038_v12 = vld [vmem:[%s30893_s1 + $0x260] sm:$0xf]  ;;  %v16367_v0 = vor.u32 %v19914_v22, %v16366_v32 }
 0x58c   :  { %11632 = vmatpush.bf16.msrb.mxu3 %v13551_v34  ;;  %11612 = vmatpush.bf16.msra.mxu0 %v17899_v8  ;;  %v19082_v49 = vld [vmem:[%s30893_s1 + $0x2dc] sm:$0xf0]  ;;  %v11342_v8 = vadd.f32 %v11341_v56, %v11329_v1  ;;  %v11343_v17 = vpop.f32.mrf.mxu1  ;;  %v28381_v44 = vpop.f32.mrf.mxu2 }
 0x58d   :  { %11600 = vmatmul.bf16.vlgmr.msra.gmra.mxu2 %v21073_v30  ;;  %v19338_v34 = vld [vmem:[%s30893_s1 + $0xadc] sm:$0xf0] }
 0x58e   :  { %11657 = vmatpush.bf16.msrb.mxu2 %v15727_v62  ;;  %v15214_v36 = vld [vmem:[%s30893_s1 + $0x1360] sm:$0xf]  ;;  %v11355_v15 = vadd.f32 %v11354_v28, %v11342_v8  ;;  %v14063_v16 = vor.u32 %v19338_v34, %v14062_v24 }
 0x58f   :  { %11646 = vmatpush.bf16.msrb.mxu1 %v14447_v27  ;;  %11613 = vmatmul.bf16.vlgmr.msra.gmra.mxu0 %v21084_v35  ;;  %v19626_v9 = vld [vmem:[%s30893_s1 + $0x13dc] sm:$0xf0] }
 0x590   :  { %11670 = vmatpush.bf16.msrb.mxu0 %v16751_v14  ;;  %11633 = vmatpush.bf16.msrb.mxu3 %v13423_v60  ;;  %v16238_v10 = vld [vmem:[%s30893_s1 + $0x1b60] sm:$0xf]  ;;  %v13039_v14 = vor.u32 %v19082_v49, %v13038_v12  ;;  %v15215_v25 = vor.u32 %v19626_v9, %v15214_v36 }
 0x591   :  { %18979 = vmatmul.msk.bf16.vlgmr.msra.gmra.mxu1 %vm9443_vm0, %v20982_v45  ;;  %v19882_v62 = vld [vmem:[%s30893_s1 + $0x1bdc] sm:$0xf0]  ;;  %12499 = vrot.lane.b32.xlu1 %v11355_v15, %s20583_s18 }
 0x592   :  { %11658 = vmatpush.bf16.msrb.mxu2 %v15599_v48  ;;  %v12910_v6 = vld [vmem:[%s30893_s1 + $0x160] sm:$0xf]  ;;  %v16239_v19 = vor.u32 %v19882_v62, %v16238_v10  ;;  %v19226_v10 = vld [vmem:[%s30893_s1 + $0x764] sm:$0xf] }
 0x593   :  { %11647 = vmatpush.bf16.msrb.mxu1 %v14319_v59  ;;  %v19050_v3 = vld [vmem:[%s30893_s1 + $0x1dc] sm:$0xf0]  ;;  %v13680_v62 = vld [vmem:[%s30893_s1 + $0x7e0] sm:$0xf0] }
 0x594   :  { %11671 = vmatpush.bf16.msrb.mxu0 %v16623_v37  ;;  %11634 = vmatpush.bf16.msrb.mxu3 %v13295_v41  ;;  %v13934_v60 = vld [vmem:[%s30893_s1 + $0x960] sm:$0xf]  ;;  %v12911_v37 = vor.u32 %v19050_v3, %v12910_v6 }
 0x595   :  { %v19306_v27 = vld [vmem:[%s30893_s1 + $0x9dc] sm:$0xf0] }
 0x596   :  { %11659 = vmatpush.bf16.msrb.mxu2 %v15471_v63  ;;  %v15086_v2 = vld [vmem:[%s30893_s1 + $0x1260] sm:$0xf]  ;;  %v13935_v29 = vor.u32 %v19306_v27, %v13934_v60  ;;  %v11369_v63 = vpop.f32.mrf.mxu0  ;;  %v19482_v27 = vld [vmem:[%s30893_s1 + $0xf64] sm:$0xf] }
 0x597   :  { %11648 = vmatpush.bf16.msrb.mxu1 %v14191_v47  ;;  %v19594_v61 = vld [vmem:[%s30893_s1 + $0x12dc] sm:$0xf0]  ;;  %v19162_v63 = vld [vmem:[%s30893_s1 + $0x564] sm:$0xf] }
 0x598   :  { %11672 = vmatpush.bf16.msrb.mxu0 %v16495_v33  ;;  %11635 = vmatpush.bf16.msrb.mxu3 %v13167_v26  ;;  %v16110_v28 = vld [vmem:[%s30893_s1 + $0x1a60] sm:$0xf]  ;;  %v15087_v41 = vor.u32 %v19594_v61, %v15086_v2  ;;  %v14704_v2 = vld [vmem:[%s30893_s1 + $0xfe0] sm:$0xf0]  ;;  %v13683_v61 = vor.u32 %v19226_v10, %v13680_v62 }
 0x599   :  { %v19850_v48 = vld [vmem:[%s30893_s1 + $0x1adc] sm:$0xf0]  ;;  %v14707_v18 = vor.u32 %v19482_v27, %v14704_v2  ;;  %v19354_v2 = vld [vmem:[%s30893_s1 + $0xb64] sm:$0xf] }
 0x59a   :  { %11660 = vmatpush.bf16.msrb.mxu2 %v15343_v38  ;;  %v12782_v50 = vld [vmem:[%s30893_s1 + $0x60] sm:$0xf]  ;;  %v16111_v56 = vor.u32 %v19850_v48, %v16110_v28  ;;  %v19194_v48 = vld [vmem:[%s30893_s1 + $0x664] sm:$0xf] }
 0x59b   :  { %11649 = vmatpush.bf16.msrb.mxu1 %v14063_v16  ;;  %v19018_v40 = vld [vmem:[%s30893_s1 + $0xdc] sm:$0xf0] }
 0x59c   :  { %11673 = vmatpush.bf16.msrb.mxu0 %v16367_v0  ;;  %11636 = vmatpush.bf16.msrb.mxu3 %v13039_v14  ;;  %v13806_v39 = vld [vmem:[%s30893_s1 + $0x860] sm:$0xf]  ;;  %v12783_v46 = vor.u32 %v19018_v40, %v12782_v50  ;;  %v11382_v14 = vpop.f32.mrf.mxu2 }
 0x59d   :  { %v19274_v42 = vld [vmem:[%s30893_s1 + $0x8dc] sm:$0xf0] }
 0x59e   :  { %11661 = vmatpush.bf16.msrb.mxu2 %v15215_v25  ;;  %v17774_v59 = vld [vmem:[%s30893_s1 + $0x2760] sm:$0xf]  ;;  %v13807_v32 = vor.u32 %v19274_v42, %v13806_v39 }
 0x59f   :  { %v20266_v13 = vld [vmem:[%s30893_s1 + $0x27dc] sm:$0xf0]  ;;  %11650 = vmatpush.bf16.msrb.mxu1 %v13935_v29 }
 0x5a0   :  { %11674 = vmatpush.bf16.msrb.mxu0 %v16239_v19  ;;  %v18798_v53 = vld [vmem:[%s30893_s1 + $0x2f60] sm:$0xf]  ;;  %11637 = vmatpush.bf16.msrb.mxu3 %v12911_v37  ;;  %v17775_v22 = vor.u32 %v20266_v13, %v17774_v59  ;;  %v13552_v37 = vld [vmem:[%s30893_s1 + $0x6e0] sm:$0xf0]  ;;  %v11406_v13 = vpop.f32.mrf.mxu1 }
 0x5a1   :  { %v20522_v33 = vld [vmem:[%s30893_s1 + $0x2fdc] sm:$0xf0]  ;;  %v13555_v59 = vor.u32 %v19194_v48, %v13552_v37 }
 0x5a2   :  { %v14958_v7 = vld [vmem:[%s30893_s1 + $0x1160] sm:$0xf]  ;;  %11662 = vmatpush.bf16.msrb.mxu2 %v15087_v41  ;;  %v18799_v26 = vor.u32 %v20522_v33, %v18798_v53  ;;  %v19450_v41 = vld [vmem:[%s30893_s1 + $0xe64] sm:$0xf] }
 0x5a3   :  { %v19562_v11 = vld [vmem:[%s30893_s1 + $0x11dc] sm:$0xf0]  ;;  %11651 = vmatpush.bf16.msrb.mxu1 %v13807_v32  ;;  %v13424_v33 = vld [vmem:[%s30893_s1 + $0x5e0] sm:$0xf0] }
 0x5a4   :  { %v15982_v20 = vld [vmem:[%s30893_s1 + $0x1960] sm:$0xf]  ;;  %11675 = vmatpush.bf16.msrb.mxu0 %v16111_v56  ;;  %v14959_v1 = vor.u32 %v19562_v11, %v14958_v7  ;;  %11638 = vmatpush.bf16.msrb.mxu3 %v12783_v46  ;;  %v14576_v56 = vld [vmem:[%s30893_s1 + $0xee0] sm:$0xf0] }
 0x5a5   :  { %v19818_v54 = vld [vmem:[%s30893_s1 + $0x19dc] sm:$0xf0]  ;;  %v14579_v11 = vor.u32 %v19450_v41, %v14576_v56 }
 0x5a6   :  { %v17646_v21 = vld [vmem:[%s30893_s1 + $0x2660] sm:$0xf]  ;;  %v15983_v43 = vor.u32 %v19818_v54, %v15982_v20  ;;  %11663 = vmatpush.bf16.msrb.mxu2 %v14959_v1  ;;  %11652 = vmatmul.bf16.vlgmr.msrb.gmra.mxu1 %v20894_v4  ;;  %v11381_v1 = vadd.f32 %v28381_v44, %v28331_v5 }
 0x5a7   :  { %v20234_v47 = vld [vmem:[%s30893_s1 + $0x26dc] sm:$0xf0]  ;;  %11696 = vmatpush.bf16.msra.mxu1 %v18799_v26  ;;  %11639 = vmatmul.bf16.vlgmr.msrb.gmra.mxu3 %v20870_v55  ;;  %v13427_v26 = vor.u32 %v19162_v63, %v13424_v33  ;;  %v14064_v63 = vld [vmem:[%s30893_s1 + $0xae0] sm:$0xf0] }
 0x5a8   :  { %v18670_v12 = vld [vmem:[%s30893_s1 + $0x2e60] sm:$0xf]  ;;  %11683 = vmatpush.bf16.msra.mxu3 %v17775_v22  ;;  %v17647_v9 = vor.u32 %v20234_v47, %v17646_v21  ;;  %11676 = vmatpush.bf16.msrb.mxu0 %v15983_v43  ;;  %v19418_v22 = vld [vmem:[%s30893_s1 + $0xd64] sm:$0xf]  ;;  %v11393_v43 = vpop.f32.mrf.mxu3  ;;  %v11408_v62 = vpop.f32.mrf.mxu1 }
 0x5a9   :  { %v20490_v49 = vld [vmem:[%s30893_s1 + $0x2edc] sm:$0xf0]  ;;  %v14448_v21 = vld [vmem:[%s30893_s1 + $0xde0] sm:$0xf0]  ;;  %v11394_v14 = vadd.f32 %v11393_v43, %v11381_v1 }
 0x5aa   :  { %v14830_v38 = vld [vmem:[%s30893_s1 + $0x1060] sm:$0xf]  ;;  %v18671_v17 = vor.u32 %v20490_v49, %v18670_v12  ;;  %v19130_v12 = vld [vmem:[%s30893_s1 + $0x464] sm:$0xf] }
 0x5ab   :  { %v19530_v0 = vld [vmem:[%s30893_s1 + $0x10dc] sm:$0xf0]  ;;  %v13296_v49 = vld [vmem:[%s30893_s1 + $0x4e0] sm:$0xf0]  ;;  %v11407_v48 = vadd.f32 %v11406_v13, %v11394_v14  ;;  %v11432_v13 = vpop.f32.mrf.mxu2 }
 0x5ac   :  { %v15854_v24 = vld [vmem:[%s30893_s1 + $0x1860] sm:$0xf]  ;;  %v14831_v15 = vor.u32 %v19530_v0, %v14830_v38  ;;  %11684 = vmatpush.bf16.msra.mxu3 %v17647_v9  ;;  %11697 = vmatpush.bf16.msra.mxu1 %v18671_v17  ;;  %v14451_v0 = vor.u32 %v19418_v22, %v14448_v21  ;;  %v11419_v9 = vpop.f32.mrf.mxu0  ;;  %v13299_v10 = vor.u32 %v19130_v12, %v13296_v49  ;;  %v19738_v33 = vld [vmem:[%s30893_s1 + $0x1764] sm:$0xf] }
 0x5ad   :  { %v19786_v34 = vld [vmem:[%s30893_s1 + $0x18dc] sm:$0xf0]  ;;  %v19034_v21 = vld [vmem:[%s30893_s1 + $0x164] sm:$0xf] }
 0x5ae   :  { %v18926_v36 = vld [vmem:[%s30893_s1 + $0x3060] sm:$0xf]  ;;  %v15855_v25 = vor.u32 %v19786_v34, %v15854_v24  ;;  %11664 = vmatpush.bf16.msrb.mxu2 %v14831_v15  ;;  %v19098_v15 = vld [vmem:[%s30893_s1 + $0x364] sm:$0xf] }
 0x5af   :  { %v20554_v8 = vld [vmem:[%s30893_s1 + $0x30dc] sm:$0xf0]  ;;  %v19290_v43 = vld [vmem:[%s30893_s1 + $0x964] sm:$0xf] }
 0x5b0   :  { %v17518_v16 = vld [vmem:[%s30893_s1 + $0x2560] sm:$0xf]  ;;  %v18927_v60 = vor.u32 %v20554_v8, %v18926_v36  ;;  %11677 = vmatpush.bf16.msrb.mxu0 %v15855_v25  ;;  %v19386_v36 = vld [vmem:[%s30893_s1 + $0xc64] sm:$0xf] }
 0x5b1   :  { %v20202_v6 = vld [vmem:[%s30893_s1 + $0x25dc] sm:$0xf0]  ;;  %11665 = vmatmul.bf16.vlgmr.msrb.gmra.mxu2 %v20859_v51  ;;  %v14320_v8 = vld [vmem:[%s30893_s1 + $0xce0] sm:$0xf0] }
 0x5b2   :  { %v18542_v3 = vld [vmem:[%s30893_s1 + $0x2d60] sm:$0xf]  ;;  %v17519_v28 = vor.u32 %v20202_v6, %v17518_v16  ;;  %11716 = vmatpush.bf16.msra.mxu2 %v18927_v60  ;;  %v13168_v16 = vld [vmem:[%s30893_s1 + $0x3e0] sm:$0xf0] }
 0x5b3   :  { %v20458_v19 = vld [vmem:[%s30893_s1 + $0x2ddc] sm:$0xf0]  ;;  %11678 = vmatmul.bf16.vlgmr.msrb.gmra.mxu0 %v20872_v57  ;;  %v20250_v14 = vld [vmem:[%s30893_s1 + $0x2764] sm:$0xf] }
 0x5b4   :  { %v18543_v50 = vor.u32 %v20458_v19, %v18542_v3  ;;  %v17390_v29 = vld [vmem:[%s30893_s1 + $0x2460] sm:$0xf]  ;;  %11722 = vmatpush.bf16.msra.mxu0 %v13683_v61  ;;  %11685 = vmatpush.bf16.msra.mxu3 %v17519_v28  ;;  %v14323_v3 = vor.u32 %v19386_v36, %v14320_v8  ;;  %v14192_v61 = vld [vmem:[%s30893_s1 + $0xbe0] sm:$0xf0]  ;;  %v13171_v28 = vor.u32 %v19098_v15, %v13168_v16 }
 0x5b5   :  { %v20170_v40 = vld [vmem:[%s30893_s1 + $0x24dc] sm:$0xf0]  ;;  %v19002_v8 = vld [vmem:[%s30893_s1 + $0x64] sm:$0xf] }
 0x5b6   :  { %v18414_v39 = vld [vmem:[%s30893_s1 + $0x2c60] sm:$0xf]  ;;  %v17391_v53 = vor.u32 %v20170_v40, %v17390_v29  ;;  %11698 = vmatpush.bf16.msra.mxu1 %v18543_v50  ;;  %11735 = vmatpush.bf16.msrb.mxu2 %v14707_v18  ;;  %v19066_v50 = vld [vmem:[%s30893_s1 + $0x264] sm:$0xf]  ;;  %v11395_v40 = vpop.f32.mrf.mxu3 }
 0x5b7   :  { %v20426_v42 = vld [vmem:[%s30893_s1 + $0x2cdc] sm:$0xf0]  ;;  %v13040_v18 = vld [vmem:[%s30893_s1 + $0x2e0] sm:$0xf0] }
 0x5b8   :  { %v18415_v7 = vor.u32 %v20426_v42, %v18414_v39  ;;  %v17262_v46 = vld [vmem:[%s30893_s1 + $0x2360] sm:$0xf]  ;;  %11723 = vmatpush.bf16.msra.mxu0 %v13555_v59  ;;  %11686 = vmatpush.bf16.msra.mxu3 %v17391_v53  ;;  %v14195_v42 = vor.u32 %v19354_v2, %v14192_v61  ;;  %v19322_v53 = vld [vmem:[%s30893_s1 + $0xa64] sm:$0xf] }
 0x5b9   :  { %v20138_v20 = vld [vmem:[%s30893_s1 + $0x23dc] sm:$0xf0]  ;;  %v15472_v2 = vld [vmem:[%s30893_s1 + $0x15e0] sm:$0xf0] }
 0x5ba   :  { %v18286_v54 = vld [vmem:[%s30893_s1 + $0x2b60] sm:$0xf]  ;;  %v17263_v47 = vor.u32 %v20138_v20, %v17262_v46  ;;  %11699 = vmatpush.bf16.msra.mxu1 %v18415_v7  ;;  %11736 = vmatpush.bf16.msrb.mxu2 %v14579_v11  ;;  %v11421_v7 = vpop.f32.mrf.mxu0  ;;  %v13043_v11 = vor.u32 %v19066_v50, %v13040_v18  ;;  %v15728_v46 = vld [vmem:[%s30893_s1 + $0x17e0] sm:$0xf0] }
 0x5bb   :  { %v20394_v32 = vld [vmem:[%s30893_s1 + $0x2bdc] sm:$0xf0]  ;;  %v19994_v20 = vld [vmem:[%s30893_s1 + $0x1f64] sm:$0xf]  ;;  %v15731_v12 = vor.u32 %v19738_v33, %v15728_v46 }
 0x5bc   :  { %v18287_v38 = vor.u32 %v20394_v32, %v18286_v54  ;;  %v17134_v24 = vld [vmem:[%s30893_s1 + $0x2260] sm:$0xf]  ;;  %11724 = vmatpush.bf16.msra.mxu0 %v13427_v26  ;;  %11687 = vmatpush.bf16.msra.mxu3 %v17263_v47  ;;  %v16752_v54 = vld [vmem:[%s30893_s1 + $0x1fe0] sm:$0xf0]  ;;  %v11420_v32 = vadd.f32 %v11419_v9, %v11407_v48  ;;  %v14067_v47 = vor.u32 %v19322_v53, %v14064_v63 }
 0x5bd   :  { %v20106_v5 = vld [vmem:[%s30893_s1 + $0x22dc] sm:$0xf0]  ;;  %v12912_v26 = vld [vmem:[%s30893_s1 + $0x1e0] sm:$0xf0]  ;;  %v16755_v49 = vor.u32 %v19994_v20, %v16752_v54 }
 0x5be   :  { %v18158_v44 = vld [vmem:[%s30893_s1 + $0x2a60] sm:$0xf]  ;;  %v17135_v17 = vor.u32 %v20106_v5, %v17134_v24  ;;  %11700 = vmatpush.bf16.msra.mxu1 %v18287_v38  ;;  %11737 = vmatpush.bf16.msrb.mxu2 %v14451_v0  ;;  %v13936_v38 = vld [vmem:[%s30893_s1 + $0x9e0] sm:$0xf0]  ;;  %v12915_v24 = vor.u32 %v19034_v21, %v12912_v26  ;;  %v11433_v36 = vadd.f32 %v11432_v13, %v11420_v32 }
 0x5bf   :  { %v20362_v34 = vld [vmem:[%s30893_s1 + $0x2adc] sm:$0xf0]  ;;  %v19706_v0 = vld [vmem:[%s30893_s1 + $0x1664] sm:$0xf]  ;;  %v13939_v62 = vor.u32 %v19290_v43, %v13936_v38 }
 0x5c0   :  { %v18159_v6 = vor.u32 %v20362_v34, %v18158_v44  ;;  %v17006_v25 = vld [vmem:[%s30893_s1 + $0x2160] sm:$0xf]  ;;  %11725 = vmatpush.bf16.msra.mxu0 %v13299_v10  ;;  %11688 = vmatpush.bf16.msra.mxu3 %v17135_v17  ;;  %v15600_v5 = vld [vmem:[%s30893_s1 + $0x16e0] sm:$0xf0]  ;;  %v11445_v10 = vpop.f32.mrf.mxu3 }
 0x5c1   :  { %v20074_v19 = vld [vmem:[%s30893_s1 + $0x21dc] sm:$0xf0]  ;;  %18980 = vmatmul.msk.bf16.vlgmr.msra.gmra.mxu2 %vm9443_vm0, %v20982_v45  ;;  %v19962_v44 = vld [vmem:[%s30893_s1 + $0x1e64] sm:$0xf]  ;;  %v11446_v15 = vadd.f32 %v11445_v10, %v11433_v36  ;;  %v15603_v16 = vor.u32 %v19706_v0, %v15600_v5 }
 0x5c2   :  { %v18030_v60 = vld [vmem:[%s30893_s1 + $0x2960] sm:$0xf]  ;;  %v17007_v37 = vor.u32 %v20074_v19, %v17006_v25  ;;  %11701 = vmatpush.bf16.msra.mxu1 %v18159_v6  ;;  %11738 = vmatpush.bf16.msrb.mxu2 %v14323_v3  ;;  %v16624_v34 = vld [vmem:[%s30893_s1 + $0x1ee0] sm:$0xf0]  ;;  %v28726_v36 = vpop.f32.mrf.mxu0 }
 0x5c3   :  { %v20330_v27 = vld [vmem:[%s30893_s1 + $0x29dc] sm:$0xf0]  ;;  %v12784_v9 = vld [vmem:[%s30893_s1 + $0xe0] sm:$0xf0]  ;;  %v16627_v6 = vor.u32 %v19962_v44, %v16624_v34  ;;  %12501 = vrot.lane.b32.xlu2 %v11446_v15, %s20583_s18  ;;  %12512 = vrot.lane.b32.xlu0 %v11446_v15, %s20584_s22 }
 0x5c4   :  { %v16878_v29 = vld [vmem:[%s30893_s1 + $0x2060] sm:$0xf]  ;;  %v18031_v39 = vor.u32 %v20330_v27, %v18030_v60  ;;  %11726 = vmatpush.bf16.msra.mxu0 %v13171_v28  ;;  %11689 = vmatpush.bf16.msra.mxu3 %v17007_v37  ;;  %v17776_v17 = vld [vmem:[%s30893_s1 + $0x27e0] sm:$0xf0]  ;;  %v11434_v60 = vpop.f32.mrf.mxu2  ;;  %v12787_v27 = vor.u32 %v19002_v8, %v12784_v9 }
 0x5c5   :  { %v20042_v41 = vld [vmem:[%s30893_s1 + $0x20dc] sm:$0xf0]  ;;  %v19258_v3 = vld [vmem:[%s30893_s1 + $0x864] sm:$0xf]  ;;  %v17779_v48 = vor.u32 %v20250_v14, %v17776_v17 }
 0x5c6   :  { %v17902_v56 = vld [vmem:[%s30893_s1 + $0x2860] sm:$0xf]  ;;  %v16879_v22 = vor.u32 %v20042_v41, %v16878_v29  ;;  %11702 = vmatpush.bf16.msra.mxu1 %v18031_v39  ;;  %11739 = vmatpush.bf16.msrb.mxu2 %v14195_v42  ;;  %v13808_v25 = vld [vmem:[%s30893_s1 + $0x8e0] sm:$0xf0] }
 0x5c7   :  { %v20298_v59 = vld [vmem:[%s30893_s1 + $0x28dc] sm:$0xf0]  ;;  %v19674_v19 = vld [vmem:[%s30893_s1 + $0x1564] sm:$0xf]  ;;  %v13811_v18 = vor.u32 %v19258_v3, %v13808_v25 }
 0x5c8   :  { %v17903_v1 = vor.u32 %v20298_v59, %v17902_v56  ;;  %11727 = vmatpush.bf16.msra.mxu0 %v13043_v11  ;;  %11690 = vmatpush.bf16.msra.mxu3 %v16879_v22  ;;  %v19930_v61 = vld [vmem:[%s30893_s1 + $0x1d64] sm:$0xf]  ;;  %v15475_v39 = vor.u32 %v19674_v19, %v15472_v2  ;;  %v28689_v11 = vpop.f32.mrf.mxu1  ;;  %v11447_v46 = vpop.f32.mrf.mxu3 }
 0x5c9   :  { %v16496_v28 = vld [vmem:[%s30893_s1 + $0x1de0] sm:$0xf0] }
 0x5ca   :  { %11703 = vmatpush.bf16.msra.mxu1 %v17903_v1  ;;  %11740 = vmatpush.bf16.msrb.mxu2 %v14067_v47  ;;  %v20506_v37 = vld [vmem:[%s30893_s1 + $0x2f64] sm:$0xf]  ;;  %v16499_v42 = vor.u32 %v19930_v61, %v16496_v28 }
 0x5cb   :  { %11691 = vmatmul.bf16.vlgmr.msra.gmra.mxu3 %v21073_v30  ;;  %v18800_v50 = vld [vmem:[%s30893_s1 + $0x2fe0] sm:$0xf0] }
 0x5cc   :  { %11748 = vmatpush.bf16.msrb.mxu3 %v15731_v12  ;;  %11728 = vmatpush.bf16.msra.mxu0 %v12915_v24  ;;  %v20218_v29 = vld [vmem:[%s30893_s1 + $0x2664] sm:$0xf]  ;;  %v18803_v56 = vor.u32 %v20506_v37, %v18800_v50 }
 0x5cd   :  { %11704 = vmatmul.bf16.vlgmr.msra.gmra.mxu1 %v21084_v35  ;;  %v17648_v40 = vld [vmem:[%s30893_s1 + $0x26e0] sm:$0xf0] }
 0x5ce   :  { %11761 = vmatpush.bf16.msrb.mxu1 %v16755_v49  ;;  %11741 = vmatpush.bf16.msrb.mxu2 %v13939_v62  ;;  %v19642_v41 = vld [vmem:[%s30893_s1 + $0x1464] sm:$0xf]  ;;  %v17651_v63 = vor.u32 %v20218_v29, %v17648_v40 }
 0x5cf   :  { %v15344_v59 = vld [vmem:[%s30893_s1 + $0x14e0] sm:$0xf0] }
 0x5d0   :  { %11749 = vmatpush.bf16.msrb.mxu3 %v15603_v16  ;;  %11729 = vmatpush.bf16.msra.mxu0 %v12787_v27  ;;  %v19898_v13 = vld [vmem:[%s30893_s1 + $0x1c64] sm:$0xf]  ;;  %v15347_v32 = vor.u32 %v19642_v41, %v15344_v59  ;;  %v11460_v16 = vpop.f32.mrf.mxu1 }
 0x5d1   :  { %v16368_v53 = vld [vmem:[%s30893_s1 + $0x1ce0] sm:$0xf0]  ;;  %v19755_v16 = vld [vmem:[%s30893_s1 + $0x17e4] sm:$0xf0] }
 0x5d2   :  { %11762 = vmatpush.bf16.msrb.mxu1 %v16627_v6  ;;  %v20474_v33 = vld [vmem:[%s30893_s1 + $0x2e64] sm:$0xf]  ;;  %11742 = vmatpush.bf16.msrb.mxu2 %v13811_v18  ;;  %v16371_v22 = vor.u32 %v19898_v13, %v16368_v53  ;;  %v28743_v6 = vpop.f32.mrf.mxu3  ;;  %v11486_v13 = vpop.f32.mrf.mxu0 }
 0x5d3   :  { %v18672_v7 = vld [vmem:[%s30893_s1 + $0x2ee0] sm:$0xf0]  ;;  %11730 = vmatmul.bf16.vlgmr.msra.gmra.mxu0 %v20870_v55  ;;  %v28784_v53 = vpop.f32.mrf.mxu2  ;;  %v14454_v13 = vld [vmem:[%s30893_s1 + $0xd68] sm:$0xf] }
 0x5d4   :  { %11774 = vmatpush.bf16.msrb.mxu0 %v17779_v48  ;;  %v20186_v20 = vld [vmem:[%s30893_s1 + $0x2564] sm:$0xf]  ;;  %11750 = vmatpush.bf16.msrb.mxu3 %v15475_v39  ;;  %v18675_v26 = vor.u32 %v20474_v33, %v18672_v7 }
 0x5d5   :  { %v17520_v54 = vld [vmem:[%s30893_s1 + $0x25e0] sm:$0xf0]  ;;  %11743 = vmatmul.bf16.vlgmr.msrb.gmra.mxu2 %v20894_v4 }
 0x5d6   :  { %11763 = vmatpush.bf16.msrb.mxu1 %v16499_v42  ;;  %v19610_v21 = vld [vmem:[%s30893_s1 + $0x1364] sm:$0xf]  ;;  %11787 = vmatpush.bf16.msra.mxu2 %v18803_v56  ;;  %v17523_v49 = vor.u32 %v20186_v20, %v17520_v54  ;;  %v13686_v54 = vld [vmem:[%s30893_s1 + $0x768] sm:$0xf] }
 0x5d7   :  { %v15216_v1 = vld [vmem:[%s30893_s1 + $0x13e0] sm:$0xf0] }
 0x5d8   :  { %v19866_v47 = vld [vmem:[%s30893_s1 + $0x1b64] sm:$0xf]  ;;  %11775 = vmatpush.bf16.msrb.mxu0 %v17651_v63  ;;  %11751 = vmatpush.bf16.msrb.mxu3 %v15347_v32  ;;  %v15219_v5 = vor.u32 %v19610_v21, %v15216_v1  ;;  %v19243_v32 = vld [vmem:[%s30893_s1 + $0x7e4] sm:$0xf0] }
 0x5d9   :  { %v16240_v12 = vld [vmem:[%s30893_s1 + $0x1be0] sm:$0xf0] }
 0x5da   :  { %v20442_v43 = vld [vmem:[%s30893_s1 + $0x2d64] sm:$0xf]  ;;  %11764 = vmatpush.bf16.msrb.mxu1 %v16371_v22  ;;  %v16243_v44 = vor.u32 %v19866_v47, %v16240_v12  ;;  %11788 = vmatpush.bf16.msra.mxu2 %v18675_v26  ;;  %v11473_v47 = vpop.f32.mrf.mxu3 }
 0x5db   :  { %v18544_v38 = vld [vmem:[%s30893_s1 + $0x2de0] sm:$0xf0]  ;;  %v14326_v47 = vld [vmem:[%s30893_s1 + $0xc68] sm:$0xf] }
 0x5dc   :  { %v20154_v0 = vld [vmem:[%s30893_s1 + $0x2464] sm:$0xf]  ;;  %v18547_v8 = vor.u32 %v20442_v43, %v18544_v38  ;;  %11776 = vmatpush.bf16.msrb.mxu0 %v17523_v49  ;;  %11752 = vmatpush.bf16.msrb.mxu3 %v15219_v5  ;;  %v13687_v38 = vor.u32 %v19243_v32, %v13686_v54  ;;  %v11510_v54 = vpop.f32.mrf.mxu1 }
 0x5dd   :  { %v17392_v24 = vld [vmem:[%s30893_s1 + $0x24e0] sm:$0xf0] }
 0x5de   :  { %v19578_v34 = vld [vmem:[%s30893_s1 + $0x1264] sm:$0xf]  ;;  %v17395_v14 = vor.u32 %v20154_v0, %v17392_v24  ;;  %11765 = vmatpush.bf16.msrb.mxu1 %v16243_v44  ;;  %11789 = vmatpush.bf16.msra.mxu2 %v18547_v8  ;;  %v14710_v0 = vld [vmem:[%s30893_s1 + $0xf68] sm:$0xf] }
 0x5df   :  { %v15088_v9 = vld [vmem:[%s30893_s1 + $0x12e0] sm:$0xf0]  ;;  %v19499_v24 = vld [vmem:[%s30893_s1 + $0xfe4] sm:$0xf0] }
 0x5e0   :  { %v19834_v10 = vld [vmem:[%s30893_s1 + $0x1a64] sm:$0xf]  ;;  %v15091_v19 = vor.u32 %v19578_v34, %v15088_v9  ;;  %11777 = vmatpush.bf16.msrb.mxu0 %v17395_v14  ;;  %v13558_v9 = vld [vmem:[%s30893_s1 + $0x668] sm:$0xf] }
 0x5e1   :  { %v16112_v62 = vld [vmem:[%s30893_s1 + $0x1ae0] sm:$0xf0] }
 0x5e2   :  { %v20410_v17 = vld [vmem:[%s30893_s1 + $0x2c64] sm:$0xf]  ;;  %v16115_v60 = vor.u32 %v19834_v10, %v16112_v62  ;;  %11753 = vmatpush.bf16.msrb.mxu3 %v15091_v19  ;;  %v19211_v10 = vld [vmem:[%s30893_s1 + $0x6e4] sm:$0xf0] }
 0x5e3   :  { %v18416_v15 = vld [vmem:[%s30893_s1 + $0x2ce0] sm:$0xf0]  ;;  %v14582_v19 = vld [vmem:[%s30893_s1 + $0xe68] sm:$0xf] }
 0x5e4   :  { %v20122_v3 = vld [vmem:[%s30893_s1 + $0x2364] sm:$0xf]  ;;  %v18419_v2 = vor.u32 %v20410_v17, %v18416_v15  ;;  %11766 = vmatpush.bf16.msrb.mxu1 %v16115_v60  ;;  %v14711_v17 = vor.u32 %v19499_v24, %v14710_v0  ;;  %v15734_v15 = vld [vmem:[%s30893_s1 + $0x1768] sm:$0xf] }
 0x5e5   :  { %v17264_v25 = vld [vmem:[%s30893_s1 + $0x23e0] sm:$0xf0]  ;;  %v19467_v60 = vld [vmem:[%s30893_s1 + $0xee4] sm:$0xf0] }
 0x5e6   :  { %v19546_v27 = vld [vmem:[%s30893_s1 + $0x1164] sm:$0xf]  ;;  %v17267_v37 = vor.u32 %v20122_v3, %v17264_v25  ;;  %11790 = vmatpush.bf16.msra.mxu2 %v18419_v2  ;;  %v13559_v25 = vor.u32 %v19211_v10, %v13558_v9  ;;  %v28852_v2 = vpop.f32.mrf.mxu0  ;;  %v13174_v0 = vld [vmem:[%s30893_s1 + $0x368] sm:$0xf] }
 0x5e7   :  { %v14960_v61 = vld [vmem:[%s30893_s1 + $0x11e0] sm:$0xf0]  ;;  %v19115_v24 = vld [vmem:[%s30893_s1 + $0x3e4] sm:$0xf0] }
 0x5e8   :  { %v19802_v28 = vld [vmem:[%s30893_s1 + $0x1964] sm:$0xf]  ;;  %v14963_v39 = vor.u32 %v19546_v27, %v14960_v61  ;;  %11778 = vmatpush.bf16.msrb.mxu0 %v17267_v37  ;;  %v11499_v61 = vpop.f32.mrf.mxu2  ;;  %v13430_v37 = vld [vmem:[%s30893_s1 + $0x568] sm:$0xf]  ;;  %v13175_v10 = vor.u32 %v19115_v24, %v13174_v0 }
 0x5e9   :  { %v15984_v48 = vld [vmem:[%s30893_s1 + $0x19e0] sm:$0xf0]  ;;  %v19659_v9 = vld [vmem:[%s30893_s1 + $0x14e4] sm:$0xf0] }
 0x5ea   :  { %v20378_v50 = vld [vmem:[%s30893_s1 + $0x2b64] sm:$0xf]  ;;  %v15987_v42 = vor.u32 %v19802_v28, %v15984_v48  ;;  %11754 = vmatpush.bf16.msrb.mxu3 %v14963_v39  ;;  %v14583_v39 = vor.u32 %v19467_v60, %v14582_v19  ;;  %v16374_v19 = vld [vmem:[%s30893_s1 + $0x1c68] sm:$0xf]  ;;  %v11512_v60 = vpop.f32.mrf.mxu1 }
 0x5eb   :  { %v18288_v18 = vld [vmem:[%s30893_s1 + $0x2be0] sm:$0xf0]  ;;  %v19563_v0 = vld [vmem:[%s30893_s1 + $0x11e4] sm:$0xf0] }
 0x5ec   :  { %v20090_v29 = vld [vmem:[%s30893_s1 + $0x2264] sm:$0xf]  ;;  %v18291_v63 = vor.u32 %v20378_v50, %v18288_v18  ;;  %11767 = vmatpush.bf16.msrb.mxu1 %v15987_v42  ;;  %v19179_v50 = vld [vmem:[%s30893_s1 + $0x5e4] sm:$0xf0]  ;;  %v15735_v18 = vor.u32 %v19755_v16, %v15734_v15 }
 0x5ed   :  { %v17136_v40 = vld [vmem:[%s30893_s1 + $0x22e0] sm:$0xf0]  ;;  %v15606_v42 = vld [vmem:[%s30893_s1 + $0x1668] sm:$0xf] }
 0x5ee   :  { %v19514_v41 = vld [vmem:[%s30893_s1 + $0x1064] sm:$0xf]  ;;  %v17139_v20 = vor.u32 %v20090_v29, %v17136_v40  ;;  %11791 = vmatpush.bf16.msra.mxu2 %v18291_v63  ;;  %v16758_v29 = vld [vmem:[%s30893_s1 + $0x1f68] sm:$0xf] }
 0x5ef   :  { %v14832_v56 = vld [vmem:[%s30893_s1 + $0x10e0] sm:$0xf0]  ;;  %v20011_v40 = vld [vmem:[%s30893_s1 + $0x1fe4] sm:$0xf0] }
 0x5f0   :  { %v19770_v59 = vld [vmem:[%s30893_s1 + $0x1864] sm:$0xf]  ;;  %v14835_v12 = vor.u32 %v19514_v41, %v14832_v56  ;;  %11779 = vmatpush.bf16.msrb.mxu0 %v17139_v20  ;;  %v19723_v41 = vld [vmem:[%s30893_s1 + $0x16e4] sm:$0xf0] }
 0x5f1   :  { %v15856_v33 = vld [vmem:[%s30893_s1 + $0x18e0] sm:$0xf0]  ;;  %v19435_v63 = vld [vmem:[%s30893_s1 + $0xde4] sm:$0xf0]  ;;  %v15607_v32 = vor.u32 %v19723_v41, %v15606_v42 }
 0x5f2   :  { %v20346_v7 = vld [vmem:[%s30893_s1 + $0x2a64] sm:$0xf]  ;;  %v15859_v49 = vor.u32 %v19770_v59, %v15856_v33  ;;  %11755 = vmatpush.bf16.msrb.mxu3 %v14835_v12  ;;  %v13431_v59 = vor.u32 %v19179_v50, %v13430_v37  ;;  %v11472_v33 = vadd.f32 %v28743_v6, %v28689_v11  ;;  %v19147_v20 = vld [vmem:[%s30893_s1 + $0x4e4] sm:$0xf0]  ;;  %v14455_v6 = vor.u32 %v19435_v63, %v14454_v13  ;;  %v11523_v37 = vpop.f32.mrf.mxu3 }
 0x5f3   :  { %v18160_v46 = vld [vmem:[%s30893_s1 + $0x2ae0] sm:$0xf0]  ;;  %v19979_v11 = vld [vmem:[%s30893_s1 + $0x1ee4] sm:$0xf0] }
 0x5f4   :  { %v20058_v22 = vld [vmem:[%s30893_s1 + $0x2164] sm:$0xf]  ;;  %v18163_v43 = vor.u32 %v20346_v7, %v18160_v46  ;;  %11768 = vmatpush.bf16.msrb.mxu1 %v15859_v49  ;;  %v16759_v7 = vor.u32 %v20011_v40, %v16758_v29  ;;  %v13302_v46 = vld [vmem:[%s30893_s1 + $0x468] sm:$0xf]  ;;  %v11538_v49 = vpop.f32.mrf.mxu0 }
 0x5f5   :  { %v17008_v21 = vld [vmem:[%s30893_s1 + $0x21e0] sm:$0xf0]  ;;  %11756 = vmatmul.bf16.vlgmr.msrb.gmra.mxu3 %v20859_v51  ;;  %v19403_v12 = vld [vmem:[%s30893_s1 + $0xce4] sm:$0xf0] }
 0x5f6   :  { %v20538_v26 = vld [vmem:[%s30893_s1 + $0x3064] sm:$0xf]  ;;  %v17011_v44 = vor.u32 %v20058_v22, %v17008_v21  ;;  %11792 = vmatpush.bf16.msra.mxu2 %v18163_v43  ;;  %v16630_v22 = vld [vmem:[%s30893_s1 + $0x1e68] sm:$0xf]  ;;  %v11485_v43 = vadd.f32 %v28726_v36, %v11472_v33 }
 0x5f7   :  { %v18928_v1 = vld [vmem:[%s30893_s1 + $0x30e0] sm:$0xf0]  ;;  %11769 = vmatmul.bf16.vlgmr.msrb.gmra.mxu1 %v20872_v57  ;;  %v15478_v21 = vld [vmem:[%s30893_s1 + $0x1568] sm:$0xf] }
 0x5f8   :  { %v20314_v5 = vld [vmem:[%s30893_s1 + $0x2964] sm:$0xf]  ;;  %v18931_v34 = vor.u32 %v20538_v26, %v18928_v1  ;;  %11813 = vmatpush.bf16.msra.mxu1 %v13687_v38  ;;  %11780 = vmatpush.bf16.msrb.mxu0 %v17011_v44  ;;  %v19691_v26 = vld [vmem:[%s30893_s1 + $0x15e4] sm:$0xf0]  ;;  %v13303_v1 = vor.u32 %v19147_v20, %v13302_v46  ;;  %v16631_v38 = vor.u32 %v19979_v11, %v16630_v22 }
 0x5f9   :  { %v18032_v8 = vld [vmem:[%s30893_s1 + $0x29e0] sm:$0xf0]  ;;  %v16502_v44 = vld [vmem:[%s30893_s1 + $0x1d68] sm:$0xf] }
 0x5fa   :  { %v20026_v62 = vld [vmem:[%s30893_s1 + $0x2064] sm:$0xf]  ;;  %v18035_v3 = vor.u32 %v20314_v5, %v18032_v8  ;;  %11807 = vmatpush.bf16.msra.mxu3 %v18931_v34  ;;  %v15479_v5 = vor.u32 %v19691_v26, %v15478_v21  ;;  %v19947_v36 = vld [vmem:[%s30893_s1 + $0x1de4] sm:$0xf0]  ;;  %v14327_v34 = vor.u32 %v19403_v12, %v14326_v47  ;;  %v29000_v26 = vpop.f32.mrf.mxu2 }
 0x5fb   :  { %v16880_v14 = vld [vmem:[%s30893_s1 + $0x20e0] sm:$0xf0]  ;;  %v15350_v8 = vld [vmem:[%s30893_s1 + $0x1468] sm:$0xf]  ;;  %v16503_v15 = vor.u32 %v19947_v36, %v16502_v44  ;;  %v11525_v36 = vpop.f32.mrf.mxu3 }
 0x5fc   :  { %v20282_v27 = vld [vmem:[%s30893_s1 + $0x2864] sm:$0xf]  ;;  %v16883_v28 = vor.u32 %v20026_v62, %v16880_v14  ;;  %11793 = vmatpush.bf16.msra.mxu2 %v18035_v3  ;;  %11814 = vmatpush.bf16.msra.mxu1 %v13559_v25  ;;  %v14198_v62 = vld [vmem:[%s30893_s1 + $0xb68] sm:$0xf]  ;;  %v15351_v25 = vor.u32 %v19659_v9, %v15350_v8  ;;  %v28961_v40 = vpop.f32.mrf.mxu0 }
 0x5fd   :  { %v17904_v48 = vld [vmem:[%s30893_s1 + $0x28e0] sm:$0xf0]  ;;  %v19371_v14 = vld [vmem:[%s30893_s1 + $0xbe4] sm:$0xf0] }
 0x5fe   :  { %11826 = vmatpush.bf16.msrb.mxu3 %v14711_v17  ;;  %v17907_v56 = vor.u32 %v20282_v27, %v17904_v48  ;;  %11781 = vmatpush.bf16.msrb.mxu0 %v16883_v28  ;;  %v11498_v17 = vadd.f32 %v28784_v53, %v11485_v43  ;;  %v13046_v16 = vld [vmem:[%s30893_s1 + $0x268] sm:$0xf]  ;;  %v14199_v61 = vor.u32 %v19371_v14, %v14198_v62 }
 0x5ff   :  { %v19083_v3 = vld [vmem:[%s30893_s1 + $0x2e4] sm:$0xf0] }
 0x600   :  { %11794 = vmatpush.bf16.msra.mxu2 %v17907_v56  ;;  %11815 = vmatpush.bf16.msra.mxu1 %v13431_v59  ;;  %v19915_v53 = vld [vmem:[%s30893_s1 + $0x1ce4] sm:$0xf0]  ;;  %v11511_v27 = vadd.f32 %v11510_v54, %v11498_v17  ;;  %v13047_v50 = vor.u32 %v19083_v3, %v13046_v16 }
 0x601   :  { %11782 = vmatmul.bf16.vlgmr.msrb.gmra.mxu0 %v21073_v30  ;;  %v15222_v28 = vld [vmem:[%s30893_s1 + $0x1368] sm:$0xf]  ;;  %v16375_v42 = vor.u32 %v19915_v53, %v16374_v19 }
 0x602   :  { %11839 = vmatpush.bf16.msra.mxu0 %v15735_v18  ;;  %11827 = vmatpush.bf16.msrb.mxu3 %v14583_v39  ;;  %v19627_v48 = vld [vmem:[%s30893_s1 + $0x13e4] sm:$0xf0]  ;;  %v11524_v39 = vadd.f32 %v11523_v37, %v11511_v27 }
 0x603   :  { %11795 = vmatmul.bf16.vlgmr.msra.gmra.mxu2 %v21084_v35  ;;  %v14070_v18 = vld [vmem:[%s30893_s1 + $0xa68] sm:$0xf]  ;;  %v15223_v59 = vor.u32 %v19627_v48, %v15222_v28 }
 0x604   :  { %11852 = vmatpush.bf16.msrb.mxu2 %v16759_v7  ;;  %11816 = vmatpush.bf16.msra.mxu1 %v13303_v1  ;;  %v19339_v29 = vld [vmem:[%s30893_s1 + $0xae4] sm:$0xf0]  ;;  %v11537_v33 = vadd.f32 %v28852_v2, %v11524_v39 }
 0x605   :  { %v12918_v41 = vld [vmem:[%s30893_s1 + $0x168] sm:$0xf]  ;;  %18981 = vmatmul.msk.bf16.vlgmr.msra.gmra.mxu3 %vm9443_vm0, %v20982_v45  ;;  %v14071_v7 = vor.u32 %v19339_v29, %v14070_v18  ;;  %v11551_v29 = vpop.f32.mrf.mxu2 }
 0x606   :  { %11840 = vmatpush.bf16.msra.mxu0 %v15607_v32  ;;  %11828 = vmatpush.bf16.msrb.mxu3 %v14455_v6  ;;  %v19051_v56 = vld [vmem:[%s30893_s1 + $0x1e4] sm:$0xf0] }
 0x607   :  { %v16246_v13 = vld [vmem:[%s30893_s1 + $0x1b68] sm:$0xf]  ;;  %v12919_v54 = vor.u32 %v19051_v56, %v12918_v41  ;;  %12514 = vrot.lane.b32.xlu1 %v11537_v33, %s20584_s22 }
 0x608   :  { %11853 = vmatpush.bf16.msrb.mxu2 %v16631_v38  ;;  %11817 = vmatpush.bf16.msra.mxu1 %v13175_v10  ;;  %v19883_v63 = vld [vmem:[%s30893_s1 + $0x1be4] sm:$0xf0] }
 0x609   :  { %v15094_v46 = vld [vmem:[%s30893_s1 + $0x1268] sm:$0xf]  ;;  %v16247_v22 = vor.u32 %v19883_v63, %v16246_v13  ;;  %v19227_v13 = vld [vmem:[%s30893_s1 + $0x76c] sm:$0xf] }
 0x60a   :  { %11841 = vmatpush.bf16.msra.mxu0 %v15479_v5  ;;  %11829 = vmatpush.bf16.msrb.mxu3 %v14327_v34  ;;  %v19595_v20 = vld [vmem:[%s30893_s1 + $0x12e4] sm:$0xf0]  ;;  %v11564_v34 = vpop.f32.mrf.mxu0  ;;  %v13688_v63 = vld [vmem:[%s30893_s1 + $0x7e8] sm:$0xf0]  ;;  %v11588_v29 = vpop.f32.mrf.mxu3 }
 0x60b   :  { %v13942_v32 = vld [vmem:[%s30893_s1 + $0x968] sm:$0xf]  ;;  %v15095_v1 = vor.u32 %v19595_v20, %v15094_v46  ;;  %v14712_v46 = vld [vmem:[%s30893_s1 + $0xfe8] sm:$0xf0] }
 0x60c   :  { %11854 = vmatpush.bf16.msrb.mxu2 %v16503_v15  ;;  %11818 = vmatpush.bf16.msra.mxu1 %v13047_v50  ;;  %v19307_v2 = vld [vmem:[%s30893_s1 + $0x9e4] sm:$0xf0] }
 0x60d   :  { %v12790_v11 = vld [vmem:[%s30893_s1 + $0x68] sm:$0xf]  ;;  %v13943_v43 = vor.u32 %v19307_v2, %v13942_v32 }
 0x60e   :  { %11842 = vmatpush.bf16.msra.mxu0 %v15351_v25  ;;  %11830 = vmatpush.bf16.msrb.mxu3 %v14199_v61  ;;  %v19019_v6 = vld [vmem:[%s30893_s1 + $0xe4] sm:$0xf0] }
 0x60f   :  { %v16118_v21 = vld [vmem:[%s30893_s1 + $0x1a68] sm:$0xf]  ;;  %v12791_v24 = vor.u32 %v19019_v6, %v12790_v11 }
 0x610   :  { %11855 = vmatpush.bf16.msrb.mxu2 %v16375_v42  ;;  %v19851_v47 = vld [vmem:[%s30893_s1 + $0x1ae4] sm:$0xf0]  ;;  %11819 = vmatpush.bf16.msra.mxu1 %v12919_v54 }
 0x611   :  { %v17782_v12 = vld [vmem:[%s30893_s1 + $0x2768] sm:$0xf]  ;;  %v16119_v8 = vor.u32 %v19851_v47, %v16118_v21  ;;  %v13560_v47 = vld [vmem:[%s30893_s1 + $0x6e8] sm:$0xf0] }
 0x612   :  { %11843 = vmatpush.bf16.msra.mxu0 %v15223_v59  ;;  %v20267_v49 = vld [vmem:[%s30893_s1 + $0x27e4] sm:$0xf0]  ;;  %11831 = vmatpush.bf16.msrb.mxu3 %v14071_v7  ;;  %v19483_v7 = vld [vmem:[%s30893_s1 + $0xf6c] sm:$0xf] }
 0x613   :  { %v14966_v38 = vld [vmem:[%s30893_s1 + $0x1168] sm:$0xf]  ;;  %v17783_v9 = vor.u32 %v20267_v49, %v17782_v12  ;;  %v14715_v21 = vor.u32 %v19483_v7, %v14712_v46  ;;  %v11575_v12 = vpop.f32.mrf.mxu1 }
 0x614   :  { %v13814_v5 = vld [vmem:[%s30893_s1 + $0x868] sm:$0xf]  ;;  %11856 = vmatpush.bf16.msrb.mxu2 %v16247_v22  ;;  %v14967_v17 = vor.u32 %v19563_v0, %v14966_v38  ;;  %11820 = vmatpush.bf16.msra.mxu1 %v12791_v24  ;;  %v13691_v22 = vor.u32 %v19227_v13, %v13688_v63  ;;  %v14584_v38 = vld [vmem:[%s30893_s1 + $0xee8] sm:$0xf0] }
 0x615   :  { %v19275_v44 = vld [vmem:[%s30893_s1 + $0x8e4] sm:$0xf0]  ;;  %v19099_v63 = vld [vmem:[%s30893_s1 + $0x36c] sm:$0xf] }
 0x616   :  { %v18806_v10 = vld [vmem:[%s30893_s1 + $0x2f68] sm:$0xf]  ;;  %11844 = vmatpush.bf16.msra.mxu0 %v15095_v1  ;;  %11832 = vmatpush.bf16.msrb.mxu3 %v13943_v43  ;;  %v13815_v25 = vor.u32 %v19275_v44, %v13814_v5  ;;  %v19195_v1 = vld [vmem:[%s30893_s1 + $0x66c] sm:$0xf] }
 0x617   :  { %v20523_v62 = vld [vmem:[%s30893_s1 + $0x2fe4] sm:$0xf0]  ;;  %11821 = vmatmul.bf16.vlgmr.msra.gmra.mxu1 %v20870_v55  ;;  %v19451_v43 = vld [vmem:[%s30893_s1 + $0xe6c] sm:$0xf]  ;;  %v13563_v44 = vor.u32 %v19195_v1, %v13560_v47 }
 0x618   :  { %v15990_v14 = vld [vmem:[%s30893_s1 + $0x1968] sm:$0xf]  ;;  %v18807_v60 = vor.u32 %v20523_v62, %v18806_v10  ;;  %11857 = vmatpush.bf16.msrb.mxu2 %v16119_v8  ;;  %11865 = vmatpush.bf16.msrb.mxu1 %v17783_v9  ;;  %v14587_v8 = vor.u32 %v19451_v43, %v14584_v38  ;;  %v19163_v9 = vld [vmem:[%s30893_s1 + $0x56c] sm:$0xf] }
 0x619   :  { %v19819_v15 = vld [vmem:[%s30893_s1 + $0x19e4] sm:$0xf0]  ;;  %v13432_v10 = vld [vmem:[%s30893_s1 + $0x5e8] sm:$0xf0] }
 0x61a   :  { %v17654_v16 = vld [vmem:[%s30893_s1 + $0x2668] sm:$0xf]  ;;  %v15991_v28 = vor.u32 %v19819_v15, %v15990_v14  ;;  %11845 = vmatpush.bf16.msra.mxu0 %v14967_v17  ;;  %11833 = vmatpush.bf16.msrb.mxu3 %v13815_v25  ;;  %v19419_v14 = vld [vmem:[%s30893_s1 + $0xd6c] sm:$0xf]  ;;  %v13435_v25 = vor.u32 %v19163_v9, %v13432_v10  ;;  %v11590_v10 = vpop.f32.mrf.mxu3 }
 0x61b   :  { %v20235_v3 = vld [vmem:[%s30893_s1 + $0x26e4] sm:$0xf0]  ;;  %v14456_v17 = vld [vmem:[%s30893_s1 + $0xde8] sm:$0xf0] }
 0x61c   :  { %v14838_v19 = vld [vmem:[%s30893_s1 + $0x1068] sm:$0xf]  ;;  %v17655_v48 = vor.u32 %v20235_v3, %v17654_v16  ;;  %11858 = vmatpush.bf16.msrb.mxu2 %v15991_v28  ;;  %v11563_v28 = vadd.f32 %v28961_v40, %v29000_v26  ;;  %v19067_v47 = vld [vmem:[%s30893_s1 + $0x26c] sm:$0xf] }
 0x61d   :  { %v19531_v53 = vld [vmem:[%s30893_s1 + $0x10e4] sm:$0xf0]  ;;  %11834 = vmatmul.bf16.vlgmr.msrb.gmra.mxu3 %v20894_v4  ;;  %v13048_v43 = vld [vmem:[%s30893_s1 + $0x2e8] sm:$0xf0] }
 0x61e   :  { %v18934_v27 = vld [vmem:[%s30893_s1 + $0x3068] sm:$0xf]  ;;  %v14839_v39 = vor.u32 %v19531_v53, %v14838_v19  ;;  %11878 = vmatpush.bf16.msra.mxu3 %v18807_v60  ;;  %11866 = vmatpush.bf16.msrb.mxu1 %v17655_v48  ;;  %v14459_v60 = vor.u32 %v19419_v14, %v14456_v17  ;;  %v11577_v48 = vpop.f32.mrf.mxu1  ;;  %v11576_v7 = vadd.f32 %v11575_v12, %v11563_v28  ;;  %v11601_v12 = vpop.f32.mrf.mxu2  ;;  %v19739_v38 = vld [vmem:[%s30893_s1 + $0x176c] sm:$0xf] }
 0x61f   :  { %v20555_v61 = vld [vmem:[%s30893_s1 + $0x30e4] sm:$0xf0]  ;;  %v13051_v14 = vor.u32 %v19067_v47, %v13048_v43  ;;  %v13944_v28 = vld [vmem:[%s30893_s1 + $0x9e8] sm:$0xf0] }
 0x620   :  { %v18678_v37 = vld [vmem:[%s30893_s1 + $0x2e68] sm:$0xf]  ;;  %v18935_v59 = vor.u32 %v20555_v61, %v18934_v27  ;;  %11846 = vmatpush.bf16.msra.mxu0 %v14839_v39  ;;  %v19131_v27 = vld [vmem:[%s30893_s1 + $0x46c] sm:$0xf] }
 0x621   :  { %v20491_v50 = vld [vmem:[%s30893_s1 + $0x2ee4] sm:$0xf0]  ;;  %v13304_v61 = vld [vmem:[%s30893_s1 + $0x4e8] sm:$0xf0] }
 0x622   :  { %v15862_v18 = vld [vmem:[%s30893_s1 + $0x1868] sm:$0xf]  ;;  %v18679_v33 = vor.u32 %v20491_v50, %v18678_v37  ;;  %v19387_v50 = vld [vmem:[%s30893_s1 + $0xc6c] sm:$0xf]  ;;  %v13307_v26 = vor.u32 %v19131_v27, %v13304_v61 }
 0x623   :  { %v19787_v42 = vld [vmem:[%s30893_s1 + $0x18e4] sm:$0xf0]  ;;  %11847 = vmatmul.bf16.vlgmr.msra.gmra.mxu0 %v20859_v51  ;;  %v19291_v27 = vld [vmem:[%s30893_s1 + $0x96c] sm:$0xf] }
 0x624   :  { %v17526_v41 = vld [vmem:[%s30893_s1 + $0x2568] sm:$0xf]  ;;  %v15863_v20 = vor.u32 %v19787_v42, %v15862_v18  ;;  %11898 = vmatpush.bf16.msrb.mxu0 %v18935_v59  ;;  %11879 = vmatpush.bf16.msra.mxu3 %v18679_v33  ;;  %v14328_v18 = vld [vmem:[%s30893_s1 + $0xce8] sm:$0xf0]  ;;  %v11614_v59 = vpop.f32.mrf.mxu0 }
 0x625   :  { %v20203_v56 = vld [vmem:[%s30893_s1 + $0x25e4] sm:$0xf0]  ;;  %v14331_v13 = vor.u32 %v19387_v50, %v14328_v18  ;;  %v13176_v33 = vld [vmem:[%s30893_s1 + $0x3e8] sm:$0xf0] }
 0x626   :  { %v17527_v54 = vor.u32 %v20203_v56, %v17526_v41  ;;  %v18550_v32 = vld [vmem:[%s30893_s1 + $0x2d68] sm:$0xf]  ;;  %11859 = vmatpush.bf16.msrb.mxu2 %v15863_v20  ;;  %v19355_v20 = vld [vmem:[%s30893_s1 + $0xb6c] sm:$0xf] }
 0x627   :  { %v20459_v2 = vld [vmem:[%s30893_s1 + $0x2de4] sm:$0xf0]  ;;  %v19707_v48 = vld [vmem:[%s30893_s1 + $0x166c] sm:$0xf] }
 0x628   :  { %v17398_v11 = vld [vmem:[%s30893_s1 + $0x2468] sm:$0xf]  ;;  %v18551_v49 = vor.u32 %v20459_v2, %v18550_v32  ;;  %11867 = vmatpush.bf16.msrb.mxu1 %v17527_v54  ;;  %11917 = vmatpush.bf16.msra.mxu0 %v14715_v21  ;;  %v14200_v54 = vld [vmem:[%s30893_s1 + $0xbe8] sm:$0xf0] }
 0x629   :  { %v20171_v6 = vld [vmem:[%s30893_s1 + $0x24e4] sm:$0xf0]  ;;  %11860 = vmatmul.bf16.vlgmr.msrb.gmra.mxu2 %v20872_v57  ;;  %v16504_v47 = vld [vmem:[%s30893_s1 + $0x1de8] sm:$0xf0] }
 0x62a   :  { %v17399_v0 = vor.u32 %v20171_v6, %v17398_v11  ;;  %v18422_v24 = vld [vmem:[%s30893_s1 + $0x2c68] sm:$0xf]  ;;  %11904 = vmatpush.bf16.msra.mxu2 %v13691_v22  ;;  %11880 = vmatpush.bf16.msra.mxu3 %v18551_v49  ;;  %v11589_v11 = vadd.f32 %v11588_v29, %v11576_v7  ;;  %v13179_v6 = vor.u32 %v19099_v63, %v13176_v33  ;;  %v13816_v63 = vld [vmem:[%s30893_s1 + $0x8e8] sm:$0xf0] }
 0x62b   :  { %v20427_v5 = vld [vmem:[%s30893_s1 + $0x2ce4] sm:$0xf0]  ;;  %v14203_v49 = vor.u32 %v19355_v20, %v14200_v54  ;;  %v19675_v33 = vld [vmem:[%s30893_s1 + $0x156c] sm:$0xf] }
 0x62c   :  { %v17270_v36 = vld [vmem:[%s30893_s1 + $0x2368] sm:$0xf]  ;;  %v18423_v62 = vor.u32 %v20427_v5, %v18422_v24  ;;  %11868 = vmatpush.bf16.msrb.mxu1 %v17399_v0  ;;  %11918 = vmatpush.bf16.msra.mxu0 %v14587_v8  ;;  %v15736_v0 = vld [vmem:[%s30893_s1 + $0x17e8] sm:$0xf0]  ;;  %v11602_v24 = vadd.f32 %v11601_v12, %v11589_v11  ;;  %v11627_v5 = vpop.f32.mrf.mxu1 }
 0x62d   :  { %v20139_v34 = vld [vmem:[%s30893_s1 + $0x23e4] sm:$0xf0]  ;;  %v15739_v17 = vor.u32 %v19739_v38, %v15736_v0  ;;  %v15480_v7 = vld [vmem:[%s30893_s1 + $0x15e8] sm:$0xf0] }
 0x62e   :  { %v17271_v15 = vor.u32 %v20139_v34, %v17270_v36  ;;  %v18294_v16 = vld [vmem:[%s30893_s1 + $0x2b68] sm:$0xf]  ;;  %11905 = vmatpush.bf16.msra.mxu2 %v13563_v44  ;;  %11881 = vmatpush.bf16.msra.mxu3 %v18423_v62  ;;  %v19323_v36 = vld [vmem:[%s30893_s1 + $0xa6c] sm:$0xf]  ;;  %v11615_v62 = vadd.f32 %v11614_v59, %v11602_v24 }
 0x62f   :  { %v20395_v3 = vld [vmem:[%s30893_s1 + $0x2be4] sm:$0xf0]  ;;  %v14072_v34 = vld [vmem:[%s30893_s1 + $0xae8] sm:$0xf0] }
 0x630   :  { %v17142_v19 = vld [vmem:[%s30893_s1 + $0x2268] sm:$0xf]  ;;  %v18295_v37 = vor.u32 %v20395_v3, %v18294_v16  ;;  %11869 = vmatpush.bf16.msrb.mxu1 %v17271_v15  ;;  %11919 = vmatpush.bf16.msra.mxu0 %v14459_v60  ;;  %v19995_v16 = vld [vmem:[%s30893_s1 + $0x1f6c] sm:$0xf]  ;;  %v11628_v61 = vadd.f32 %v11627_v5, %v11615_v62 }
 0x631   :  { %v20107_v53 = vld [vmem:[%s30893_s1 + $0x22e4] sm:$0xf0]  ;;  %v16760_v3 = vld [vmem:[%s30893_s1 + $0x1fe8] sm:$0xf0] }
 0x632   :  { %v17143_v39 = vor.u32 %v20107_v53, %v17142_v19  ;;  %v18166_v42 = vld [vmem:[%s30893_s1 + $0x2a68] sm:$0xf]  ;;  %11906 = vmatpush.bf16.msra.mxu2 %v13435_v25  ;;  %11882 = vmatpush.bf16.msra.mxu3 %v18295_v37  ;;  %v11616_v25 = vpop.f32.mrf.mxu0  ;;  %v14075_v19 = vor.u32 %v19323_v36, %v14072_v34  ;;  %v19035_v53 = vld [vmem:[%s30893_s1 + $0x16c] sm:$0xf]  ;;  %v16763_v18 = vor.u32 %v19995_v16, %v16760_v3 }
 0x633   :  { %v20363_v40 = vld [vmem:[%s30893_s1 + $0x2ae4] sm:$0xf0]  ;;  %18982 = vmatmul.msk.bf16.vlgmr.msrb.gmra.mxu0 %vm9443_vm0, %v20982_v45  ;;  %v12920_v60 = vld [vmem:[%s30893_s1 + $0x1e8] sm:$0xf0]  ;;  %12516 = vrot.lane.b32.xlu2 %v11628_v61, %s20584_s22 }
 0x634   :  { %v17014_v41 = vld [vmem:[%s30893_s1 + $0x2168] sm:$0xf]  ;;  %v18167_v46 = vor.u32 %v20363_v40, %v18166_v42  ;;  %11870 = vmatpush.bf16.msrb.mxu1 %v17143_v39  ;;  %11920 = vmatpush.bf16.msra.mxu0 %v14331_v13  ;;  %v15608_v37 = vld [vmem:[%s30893_s1 + $0x16e8] sm:$0xf0]  ;;  %v12923_v29 = vor.u32 %v19035_v53, %v12920_v60  ;;  %v11629_v20 = vpop.f32.mrf.mxu1 }
 0x635   :  { %v20075_v56 = vld [vmem:[%s30893_s1 + $0x21e4] sm:$0xf0]  ;;  %v19963_v39 = vld [vmem:[%s30893_s1 + $0x1e6c] sm:$0xf]  ;;  %12527 = vrot.lane.b32.xlu0 %v11628_v61, %s20585_s27 }
 0x636   :  { %v17015_v32 = vor.u32 %v20075_v56, %v17014_v41  ;;  %v18038_v2 = vld [vmem:[%s30893_s1 + $0x2968] sm:$0xf]  ;;  %11907 = vmatpush.bf16.msra.mxu2 %v13307_v26  ;;  %11883 = vmatpush.bf16.msra.mxu3 %v18167_v46  ;;  %v16632_v42 = vld [vmem:[%s30893_s1 + $0x1ee8] sm:$0xf0]  ;;  %v13947_v26 = vor.u32 %v19291_v27, %v13944_v28  ;;  %v15611_v41 = vor.u32 %v19707_v48, %v15608_v37  ;;  %v11603_v56 = vpop.f32.mrf.mxu2 }
 0x637   :  { %v20331_v22 = vld [vmem:[%s30893_s1 + $0x29e4] sm:$0xf0]  ;;  %v19003_v40 = vld [vmem:[%s30893_s1 + $0x6c] sm:$0xf] }
 0x638   :  { %v16886_v21 = vld [vmem:[%s30893_s1 + $0x2068] sm:$0xf]  ;;  %v18039_v44 = vor.u32 %v20331_v22, %v18038_v2  ;;  %11871 = vmatpush.bf16.msrb.mxu1 %v17015_v32  ;;  %11921 = vmatpush.bf16.msra.mxu0 %v14203_v49  ;;  %v12792_v59 = vld [vmem:[%s30893_s1 + $0xe8] sm:$0xf0]  ;;  %v16635_v22 = vor.u32 %v19963_v39, %v16632_v42 }
 0x639   :  { %v20043_v1 = vld [vmem:[%s30893_s1 + $0x20e4] sm:$0xf0]  ;;  %v19259_v13 = vld [vmem:[%s30893_s1 + $0x86c] sm:$0xf]  ;;  %v12795_v11 = vor.u32 %v19003_v40, %v12792_v59 }
 0x63a   :  { %v16887_v8 = vor.u32 %v20043_v1, %v16886_v21  ;;  %v17910_v9 = vld [vmem:[%s30893_s1 + $0x2868] sm:$0xf]  ;;  %11908 = vmatpush.bf16.msra.mxu2 %v13179_v6  ;;  %11884 = vmatpush.bf16.msra.mxu3 %v18039_v44  ;;  %v20251_v46 = vld [vmem:[%s30893_s1 + $0x276c] sm:$0xf]  ;;  %v13819_v6 = vor.u32 %v19259_v13, %v13816_v63  ;;  %v15483_v21 = vor.u32 %v19675_v33, %v15480_v7  ;;  %v29380_v20 = vpop.f32.mrf.mxu0 }
 0x63b   :  { %v20299_v15 = vld [vmem:[%s30893_s1 + $0x28e4] sm:$0xf0]  ;;  %v17784_v54 = vld [vmem:[%s30893_s1 + $0x27e8] sm:$0xf0] }
 0x63c   :  { %11872 = vmatpush.bf16.msrb.mxu1 %v16887_v8  ;;  %v17911_v50 = vor.u32 %v20299_v15, %v17910_v9  ;;  %11922 = vmatpush.bf16.msra.mxu0 %v14075_v19  ;;  %v20507_v32 = vld [vmem:[%s30893_s1 + $0x2f6c] sm:$0xf]  ;;  %v17787_v12 = vor.u32 %v20251_v46, %v17784_v54  ;;  %v29335_v19 = vpop.f32.mrf.mxu1 }
 0x63d   :  { %v18808_v2 = vld [vmem:[%s30893_s1 + $0x2fe8] sm:$0xf0] }
 0x63e   :  { %11909 = vmatpush.bf16.msra.mxu2 %v13051_v14  ;;  %11885 = vmatpush.bf16.msra.mxu3 %v17911_v50  ;;  %v19931_v1 = vld [vmem:[%s30893_s1 + $0x1d6c] sm:$0xf]  ;;  %v18811_v49 = vor.u32 %v20507_v32, %v18808_v2 }
 0x63f   :  { %11873 = vmatmul.bf16.vlgmr.msrb.gmra.mxu1 %v21073_v30  ;;  %v19643_v43 = vld [vmem:[%s30893_s1 + $0x146c] sm:$0xf]  ;;  %v16507_v36 = vor.u32 %v19931_v1, %v16504_v47  ;;  %v29397_v47 = vpop.f32.mrf.mxu2 }
 0x640   :  { %11930 = vmatpush.bf16.msra.mxu1 %v15739_v17  ;;  %11923 = vmatpush.bf16.msra.mxu0 %v13947_v26  ;;  %v15352_v38 = vld [vmem:[%s30893_s1 + $0x14e8] sm:$0xf0]  ;;  %v29363_v26 = vpop.f32.mrf.mxu3 }
 0x641   :  { %11886 = vmatmul.bf16.vlgmr.msra.gmra.mxu3 %v21084_v35  ;;  %v20219_v0 = vld [vmem:[%s30893_s1 + $0x266c] sm:$0xf]  ;;  %v15355_v34 = vor.u32 %v19643_v43, %v15352_v38 }
 0x642   :  { %11943 = vmatpush.bf16.msrb.mxu3 %v16763_v18  ;;  %11910 = vmatpush.bf16.msra.mxu2 %v12923_v29  ;;  %v17656_v24 = vld [vmem:[%s30893_s1 + $0x26e8] sm:$0xf0] }
 0x643   :  { %v20475_v5 = vld [vmem:[%s30893_s1 + $0x2e6c] sm:$0xf]  ;;  %v17659_v10 = vor.u32 %v20219_v0, %v17656_v24 }
 0x644   :  { %11931 = vmatpush.bf16.msra.mxu1 %v15611_v41  ;;  %v18680_v44 = vld [vmem:[%s30893_s1 + $0x2ee8] sm:$0xf0]  ;;  %11924 = vmatpush.bf16.msra.mxu0 %v13819_v6 }
 0x645   :  { %v19899_v8 = vld [vmem:[%s30893_s1 + $0x1c6c] sm:$0xf]  ;;  %v18683_v62 = vor.u32 %v20475_v5, %v18680_v44 }
 0x646   :  { %11944 = vmatpush.bf16.msrb.mxu3 %v16635_v22  ;;  %11911 = vmatpush.bf16.msra.mxu2 %v12795_v11  ;;  %v16376_v9 = vld [vmem:[%s30893_s1 + $0x1ce8] sm:$0xf0]  ;;  %v11655_v22 = vpop.f32.mrf.mxu1 }
 0x647   :  { %v19611_v14 = vld [vmem:[%s30893_s1 + $0x136c] sm:$0xf]  ;;  %v16379_v53 = vor.u32 %v19899_v8, %v16376_v9  ;;  %11925 = vmatmul.bf16.vlgmr.msra.gmra.mxu0 %v20894_v4  ;;  %v20012_v22 = vld [vmem:[%s30893_s1 + $0x1fec] sm:$0xf0] }
 0x648   :  { %11932 = vmatpush.bf16.msra.mxu1 %v15483_v21  ;;  %11969 = vmatpush.bf16.msrb.mxu0 %v18811_v49  ;;  %v15224_v17 = vld [vmem:[%s30893_s1 + $0x13e8] sm:$0xf0] }
 0x649   :  { %v20187_v15 = vld [vmem:[%s30893_s1 + $0x256c] sm:$0xf]  ;;  %11912 = vmatmul.bf16.vlgmr.msra.gmra.mxu2 %v20870_v55  ;;  %v15227_v60 = vor.u32 %v19611_v14, %v15224_v17  ;;  %v13694_v17 = vld [vmem:[%s30893_s1 + $0x770] sm:$0xf] }
 0x64a   :  { %11956 = vmatpush.bf16.msrb.mxu2 %v17787_v12  ;;  %v17528_v16 = vld [vmem:[%s30893_s1 + $0x25e8] sm:$0xf0]  ;;  %11945 = vmatpush.bf16.msrb.mxu3 %v16507_v36 }
 0x64b   :  { %v20443_v3 = vld [vmem:[%s30893_s1 + $0x2d6c] sm:$0xf]  ;;  %v17531_v28 = vor.u32 %v20187_v15, %v17528_v16  ;;  %v19244_v15 = vld [vmem:[%s30893_s1 + $0x7ec] sm:$0xf0] }
 0x64c   :  { %v18552_v25 = vld [vmem:[%s30893_s1 + $0x2de8] sm:$0xf0]  ;;  %11933 = vmatpush.bf16.msra.mxu1 %v15355_v34  ;;  %11970 = vmatpush.bf16.msrb.mxu0 %v18683_v62 }
 0x64d   :  { %v19867_v27 = vld [vmem:[%s30893_s1 + $0x1b6c] sm:$0xf]  ;;  %v18555_v48 = vor.u32 %v20443_v3, %v18552_v25  ;;  %v14718_v25 = vld [vmem:[%s30893_s1 + $0xf70] sm:$0xf] }
 0x64e   :  { %v16248_v61 = vld [vmem:[%s30893_s1 + $0x1be8] sm:$0xf0]  ;;  %11957 = vmatpush.bf16.msrb.mxu2 %v17659_v10  ;;  %11946 = vmatpush.bf16.msrb.mxu3 %v16379_v53  ;;  %v11642_v10 = vpop.f32.mrf.mxu3  ;;  %v19500_v53 = vld [vmem:[%s30893_s1 + $0xfec] sm:$0xf0] }
 0x64f   :  { %v19579_v37 = vld [vmem:[%s30893_s1 + $0x126c] sm:$0xf]  ;;  %v16251_v40 = vor.u32 %v19867_v27, %v16248_v61  ;;  %v11681_v27 = vpop.f32.mrf.mxu0 }
 0x650   :  { %v15096_v50 = vld [vmem:[%s30893_s1 + $0x12e8] sm:$0xf0]  ;;  %11934 = vmatpush.bf16.msra.mxu1 %v15227_v60  ;;  %11971 = vmatpush.bf16.msrb.mxu0 %v18555_v48  ;;  %v19948_v27 = vld [vmem:[%s30893_s1 + $0x1dec] sm:$0xf0] }
 0x651   :  { %v20155_v18 = vld [vmem:[%s30893_s1 + $0x246c] sm:$0xf]  ;;  %v15099_v41 = vor.u32 %v19579_v37, %v15096_v50 }
 0x652   :  { %v17400_v29 = vld [vmem:[%s30893_s1 + $0x24e8] sm:$0xf0]  ;;  %11958 = vmatpush.bf16.msrb.mxu2 %v17531_v28  ;;  %11947 = vmatpush.bf16.msrb.mxu3 %v16251_v40  ;;  %v14590_v40 = vld [vmem:[%s30893_s1 + $0xe70] sm:$0xf] }
 0x653   :  { %v20411_v39 = vld [vmem:[%s30893_s1 + $0x2c6c] sm:$0xf]  ;;  %v17403_v13 = vor.u32 %v20155_v18, %v17400_v29  ;;  %v13695_v18 = vor.u32 %v19244_v15, %v13694_v17  ;;  %v14719_v29 = vor.u32 %v19500_v53, %v14718_v25  ;;  %v14334_v15 = vld [vmem:[%s30893_s1 + $0xc70] sm:$0xf] }
 0x654   :  { %v18424_v42 = vld [vmem:[%s30893_s1 + $0x2ce8] sm:$0xf0]  ;;  %11935 = vmatpush.bf16.msra.mxu1 %v15099_v41  ;;  %v11668_v41 = vpop.f32.mrf.mxu2  ;;  %v19692_v53 = vld [vmem:[%s30893_s1 + $0x15ec] sm:$0xf0] }
 0x655   :  { %v19835_v56 = vld [vmem:[%s30893_s1 + $0x1a6c] sm:$0xf]  ;;  %v18427_v63 = vor.u32 %v20411_v39, %v18424_v42  ;;  %v13566_v39 = vld [vmem:[%s30893_s1 + $0x670] sm:$0xf] }
 0x656   :  { %v16120_v59 = vld [vmem:[%s30893_s1 + $0x1ae8] sm:$0xf0]  ;;  %11959 = vmatpush.bf16.msrb.mxu2 %v17403_v13  ;;  %v19212_v42 = vld [vmem:[%s30893_s1 + $0x6ec] sm:$0xf0] }
 0x657   :  { %v19547_v33 = vld [vmem:[%s30893_s1 + $0x116c] sm:$0xf]  ;;  %v16123_v11 = vor.u32 %v19835_v56, %v16120_v59  ;;  %11972 = vmatpush.bf16.msrb.mxu0 %v18427_v63  ;;  %v19468_v13 = vld [vmem:[%s30893_s1 + $0xeec] sm:$0xf0] }
 0x658   :  { %v14968_v7 = vld [vmem:[%s30893_s1 + $0x11e8] sm:$0xf0]  ;;  %v19660_v41 = vld [vmem:[%s30893_s1 + $0x14ec] sm:$0xf0] }
 0x659   :  { %v20123_v46 = vld [vmem:[%s30893_s1 + $0x236c] sm:$0xf]  ;;  %v14971_v6 = vor.u32 %v19547_v33, %v14968_v7  ;;  %11948 = vmatpush.bf16.msrb.mxu3 %v16123_v11  ;;  %v13567_v11 = vor.u32 %v19212_v42, %v13566_v39  ;;  %v19372_v39 = vld [vmem:[%s30893_s1 + $0xbec] sm:$0xf0] }
 0x65a   :  { %v17272_v54 = vld [vmem:[%s30893_s1 + $0x23e8] sm:$0xf0]  ;;  %v15358_v42 = vld [vmem:[%s30893_s1 + $0x1470] sm:$0xf] }
 0x65b   :  { %v20379_v32 = vld [vmem:[%s30893_s1 + $0x2b6c] sm:$0xf]  ;;  %v17275_v12 = vor.u32 %v20123_v46, %v17272_v54  ;;  %11936 = vmatpush.bf16.msra.mxu1 %v14971_v6  ;;  %v15742_v54 = vld [vmem:[%s30893_s1 + $0x1770] sm:$0xf]  ;;  %v14591_v6 = vor.u32 %v19468_v13, %v14590_v40  ;;  %v11692_v13 = vpop.f32.mrf.mxu3 }
 0x65c   :  { %v18296_v2 = vld [vmem:[%s30893_s1 + $0x2be8] sm:$0xf0] }
 0x65d   :  { %v19803_v21 = vld [vmem:[%s30893_s1 + $0x196c] sm:$0xf]  ;;  %v18299_v49 = vor.u32 %v20379_v32, %v18296_v2  ;;  %11960 = vmatpush.bf16.msrb.mxu2 %v17275_v12  ;;  %v19756_v32 = vld [vmem:[%s30893_s1 + $0x17ec] sm:$0xf0] }
 0x65e   :  { %v15992_v1 = vld [vmem:[%s30893_s1 + $0x19e8] sm:$0xf0]  ;;  %v16766_v2 = vld [vmem:[%s30893_s1 + $0x1f70] sm:$0xf] }
 0x65f   :  { %v19515_v43 = vld [vmem:[%s30893_s1 + $0x106c] sm:$0xf]  ;;  %v15995_v36 = vor.u32 %v19803_v21, %v15992_v1  ;;  %11973 = vmatpush.bf16.msrb.mxu0 %v18299_v49  ;;  %v13438_v12 = vld [vmem:[%s30893_s1 + $0x570] sm:$0xf] }
 0x660   :  { %v14840_v38 = vld [vmem:[%s30893_s1 + $0x10e8] sm:$0xf0]  ;;  %v19180_v49 = vld [vmem:[%s30893_s1 + $0x5ec] sm:$0xf0] }
 0x661   :  { %v20091_v0 = vld [vmem:[%s30893_s1 + $0x226c] sm:$0xf]  ;;  %v14843_v62 = vor.u32 %v19515_v43, %v14840_v38  ;;  %11949 = vmatpush.bf16.msrb.mxu3 %v15995_v36  ;;  %v15743_v43 = vor.u32 %v19756_v32, %v15742_v54  ;;  %v16767_v38 = vor.u32 %v20012_v22, %v16766_v2  ;;  %v19724_v36 = vld [vmem:[%s30893_s1 + $0x16ec] sm:$0xf0]  ;;  %v15359_v32 = vor.u32 %v19660_v41, %v15358_v42 }
 0x662   :  { %v17144_v24 = vld [vmem:[%s30893_s1 + $0x22e8] sm:$0xf0]  ;;  %v14078_v22 = vld [vmem:[%s30893_s1 + $0xa70] sm:$0xf] }
 0x663   :  { %v20347_v5 = vld [vmem:[%s30893_s1 + $0x2a6c] sm:$0xf]  ;;  %v17147_v16 = vor.u32 %v20091_v0, %v17144_v24  ;;  %11937 = vmatpush.bf16.msra.mxu1 %v14843_v62  ;;  %v14462_v0 = vld [vmem:[%s30893_s1 + $0xd70] sm:$0xf]  ;;  %v11718_v62 = vpop.f32.mrf.mxu2 }
 0x664   :  { %v18168_v44 = vld [vmem:[%s30893_s1 + $0x2ae8] sm:$0xf0]  ;;  %v19436_v24 = vld [vmem:[%s30893_s1 + $0xdec] sm:$0xf0] }
 0x665   :  { %v19771_v34 = vld [vmem:[%s30893_s1 + $0x186c] sm:$0xf]  ;;  %v18171_v3 = vor.u32 %v20347_v5, %v18168_v44  ;;  %11961 = vmatpush.bf16.msrb.mxu2 %v17147_v16  ;;  %v15614_v5 = vld [vmem:[%s30893_s1 + $0x1670] sm:$0xf]  ;;  %v11654_v44 = vadd.f32 %v29335_v19, %v29363_v26  ;;  %v14463_v10 = vor.u32 %v19436_v24, %v14462_v0 }
 0x666   :  { %v20539_v8 = vld [vmem:[%s30893_s1 + $0x306c] sm:$0xf]  ;;  %11938 = vmatmul.bf16.vlgmr.msra.gmra.mxu1 %v20859_v51  ;;  %v13310_v19 = vld [vmem:[%s30893_s1 + $0x470] sm:$0xf] }
 0x667   :  { %v18936_v9 = vld [vmem:[%s30893_s1 + $0x30e8] sm:$0xf0]  ;;  %11974 = vmatpush.bf16.msrb.mxu0 %v18171_v3  ;;  %v19148_v26 = vld [vmem:[%s30893_s1 + $0x4ec] sm:$0xf0]  ;;  %v11667_v25 = vadd.f32 %v29397_v47, %v11654_v44 }
 0x668   :  { %v15864_v14 = vld [vmem:[%s30893_s1 + $0x18e8] sm:$0xf0]  ;;  %v18939_v61 = vor.u32 %v20539_v8, %v18936_v9  ;;  %v19980_v8 = vld [vmem:[%s30893_s1 + $0x1eec] sm:$0xf0]  ;;  %v13439_v9 = vor.u32 %v19180_v49, %v13438_v12 }
 0x669   :  { %v20059_v60 = vld [vmem:[%s30893_s1 + $0x216c] sm:$0xf]  ;;  %v15867_v50 = vor.u32 %v19771_v34, %v15864_v14  ;;  %v16638_v34 = vld [vmem:[%s30893_s1 + $0x1e70] sm:$0xf]  ;;  %v15615_v14 = vor.u32 %v19724_v36, %v15614_v5  ;;  %v11680_v40 = vadd.f32 %v29380_v20, %v11667_v25 }
 0x66a   :  { %v17016_v28 = vld [vmem:[%s30893_s1 + $0x21e8] sm:$0xf0]  ;;  %11989 = vmatpush.bf16.msrb.mxu1 %v18939_v61  ;;  %v16639_v17 = vor.u32 %v19980_v8, %v16638_v34  ;;  %v19404_v16 = vld [vmem:[%s30893_s1 + $0xcec] sm:$0xf0]  ;;  %v13311_v61 = vor.u32 %v19148_v26, %v13310_v19 }
 0x66b   :  { %v20315_v48 = vld [vmem:[%s30893_s1 + $0x296c] sm:$0xf]  ;;  %v17019_v56 = vor.u32 %v20059_v60, %v17016_v28  ;;  %11950 = vmatpush.bf16.msrb.mxu3 %v15867_v50  ;;  %v15486_v3 = vld [vmem:[%s30893_s1 + $0x1570] sm:$0xf]  ;;  %v11705_v28 = vpop.f32.mrf.mxu1  ;;  %v11720_v54 = vpop.f32.mrf.mxu2 }
 0x66c   :  { %v18040_v37 = vld [vmem:[%s30893_s1 + $0x29e8] sm:$0xf0]  ;;  %v16510_v60 = vld [vmem:[%s30893_s1 + $0x1d70] sm:$0xf]  ;;  %v15487_v50 = vor.u32 %v19692_v53, %v15486_v3 }
 0x66d   :  { %v18043_v59 = vor.u32 %v20315_v48, %v18040_v37  ;;  %v20027_v63 = vld [vmem:[%s30893_s1 + $0x206c] sm:$0xf]  ;;  %11962 = vmatpush.bf16.msrb.mxu2 %v17019_v56  ;;  %v14335_v48 = vor.u32 %v19404_v16, %v14334_v15  ;;  %v13182_v47 = vld [vmem:[%s30893_s1 + $0x370] sm:$0xf]  ;;  %v11694_v16 = vpop.f32.mrf.mxu3 }
 0x66e   :  { %v16888_v33 = vld [vmem:[%s30893_s1 + $0x20e8] sm:$0xf0]  ;;  %12008 = vmatpush.bf16.msra.mxu1 %v14719_v29  ;;  %11951 = vmatmul.bf16.vlgmr.msrb.gmra.mxu3 %v20872_v57  ;;  %v19116_v37 = vld [vmem:[%s30893_s1 + $0x3ec] sm:$0xf0] }
 0x66f   :  { %v20283_v7 = vld [vmem:[%s30893_s1 + $0x286c] sm:$0xf]  ;;  %11995 = vmatpush.bf16.msra.mxu3 %v13695_v18  ;;  %11975 = vmatpush.bf16.msrb.mxu0 %v18043_v59  ;;  %v16891_v21 = vor.u32 %v20027_v63, %v16888_v33  ;;  %v16511_v18 = vor.u32 %v19948_v27, %v16510_v60  ;;  %v14206_v29 = vld [vmem:[%s30893_s1 + $0xb70] sm:$0xf]  ;;  %v13183_v63 = vor.u32 %v19116_v37, %v13182_v47 }
 0x670   :  { %v17912_v46 = vld [vmem:[%s30893_s1 + $0x28e8] sm:$0xf0]  ;;  %v16382_v56 = vld [vmem:[%s30893_s1 + $0x1c70] sm:$0xf]  ;;  %v11693_v33 = vadd.f32 %v11692_v13, %v11680_v40 }
 0x671   :  { %v17915_v1 = vor.u32 %v20283_v7, %v17912_v46  ;;  %11963 = vmatpush.bf16.msrb.mxu2 %v16891_v21  ;;  %v19916_v59 = vld [vmem:[%s30893_s1 + $0x1cec] sm:$0xf0]  ;;  %v14207_v7 = vor.u32 %v19372_v39, %v14206_v29  ;;  %v29584_v21 = vpop.f32.mrf.mxu0 }
 0x672   :  { %12009 = vmatpush.bf16.msra.mxu1 %v14591_v6  ;;  %v13054_v20 = vld [vmem:[%s30893_s1 + $0x270] sm:$0xf]  ;;  %v16383_v2 = vor.u32 %v19916_v59, %v16382_v56 }
 0x673   :  { %11996 = vmatpush.bf16.msra.mxu3 %v13567_v11  ;;  %11976 = vmatpush.bf16.msrb.mxu0 %v17915_v1  ;;  %v19084_v46 = vld [vmem:[%s30893_s1 + $0x2ec] sm:$0xf0]  ;;  %v11706_v1 = vadd.f32 %v11705_v28, %v11693_v33  ;;  %v11707_v0 = vpop.f32.mrf.mxu1  ;;  %v29634_v27 = vpop.f32.mrf.mxu2 }
 0x674   :  { %11964 = vmatmul.bf16.vlgmr.msrb.gmra.mxu2 %v21073_v30  ;;  %v19340_v11 = vld [vmem:[%s30893_s1 + $0xaec] sm:$0xf0] }
 0x675   :  { %12021 = vmatpush.bf16.msra.mxu2 %v15743_v43  ;;  %v15230_v6 = vld [vmem:[%s30893_s1 + $0x1370] sm:$0xf]  ;;  %v11719_v24 = vadd.f32 %v11718_v62, %v11706_v1  ;;  %v14079_v5 = vor.u32 %v19340_v11, %v14078_v22 }
 0x676   :  { %12010 = vmatpush.bf16.msra.mxu1 %v14463_v10  ;;  %11977 = vmatmul.bf16.vlgmr.msrb.gmra.mxu0 %v21084_v35  ;;  %v19628_v12 = vld [vmem:[%s30893_s1 + $0x13ec] sm:$0xf0] }
 0x677   :  { %12034 = vmatpush.bf16.msra.mxu0 %v16767_v38  ;;  %11997 = vmatpush.bf16.msra.mxu3 %v13439_v9  ;;  %v16254_v49 = vld [vmem:[%s30893_s1 + $0x1b70] sm:$0xf]  ;;  %v13055_v38 = vor.u32 %v19084_v46, %v13054_v20  ;;  %v15231_v34 = vor.u32 %v19628_v12, %v15230_v6 }
 0x678   :  { %18983 = vmatmul.msk.bf16.vlgmr.msrb.gmra.mxu1 %vm9443_vm0, %v20982_v45  ;;  %v19884_v43 = vld [vmem:[%s30893_s1 + $0x1bec] sm:$0xf0]  ;;  %12529 = vrot.lane.b32.xlu1 %v11719_v24, %s20585_s27 }
 0x679   :  { %12022 = vmatpush.bf16.msra.mxu2 %v15615_v14  ;;  %v12926_v44 = vld [vmem:[%s30893_s1 + $0x170] sm:$0xf]  ;;  %v16255_v8 = vor.u32 %v19884_v43, %v16254_v49  ;;  %v19228_v49 = vld [vmem:[%s30893_s1 + $0x774] sm:$0xf] }
 0x67a   :  { %12011 = vmatpush.bf16.msra.mxu1 %v14335_v48  ;;  %v19052_v36 = vld [vmem:[%s30893_s1 + $0x1ec] sm:$0xf0]  ;;  %v13696_v43 = vld [vmem:[%s30893_s1 + $0x7f0] sm:$0xf0] }
 0x67b   :  { %12035 = vmatpush.bf16.msra.mxu0 %v16639_v17  ;;  %11998 = vmatpush.bf16.msra.mxu3 %v13311_v61  ;;  %v13950_v9 = vld [vmem:[%s30893_s1 + $0x970] sm:$0xf]  ;;  %v12927_v17 = vor.u32 %v19052_v36, %v12926_v44 }
 0x67c   :  { %v19308_v10 = vld [vmem:[%s30893_s1 + $0x9ec] sm:$0xf0] }
 0x67d   :  { %12023 = vmatpush.bf16.msra.mxu2 %v15487_v50  ;;  %v15102_v19 = vld [vmem:[%s30893_s1 + $0x1270] sm:$0xf]  ;;  %v13951_v3 = vor.u32 %v19308_v10, %v13950_v9  ;;  %v11733_v50 = vpop.f32.mrf.mxu0  ;;  %v19484_v10 = vld [vmem:[%s30893_s1 + $0xf74] sm:$0xf] }
 0x67e   :  { %12012 = vmatpush.bf16.msra.mxu1 %v14207_v7  ;;  %v19596_v26 = vld [vmem:[%s30893_s1 + $0x12ec] sm:$0xf0]  ;;  %v19164_v50 = vld [vmem:[%s30893_s1 + $0x574] sm:$0xf] }
 0x67f   :  { %12036 = vmatpush.bf16.msra.mxu0 %v16511_v18  ;;  %11999 = vmatpush.bf16.msra.mxu3 %v13183_v63  ;;  %v16126_v62 = vld [vmem:[%s30893_s1 + $0x1a70] sm:$0xf]  ;;  %v15103_v61 = vor.u32 %v19596_v26, %v15102_v19  ;;  %v14720_v19 = vld [vmem:[%s30893_s1 + $0xff0] sm:$0xf0]  ;;  %v13699_v26 = vor.u32 %v19228_v49, %v13696_v43 }
 0x680   :  { %v19852_v14 = vld [vmem:[%s30893_s1 + $0x1aec] sm:$0xf0]  ;;  %v14723_v16 = vor.u32 %v19484_v10, %v14720_v19  ;;  %v19356_v19 = vld [vmem:[%s30893_s1 + $0xb74] sm:$0xf] }
 0x681   :  { %12024 = vmatpush.bf16.msra.mxu2 %v15359_v32  ;;  %v12798_v15 = vld [vmem:[%s30893_s1 + $0x70] sm:$0xf]  ;;  %v16127_v28 = vor.u32 %v19852_v14, %v16126_v62  ;;  %v19196_v14 = vld [vmem:[%s30893_s1 + $0x674] sm:$0xf] }
 0x682   :  { %12013 = vmatpush.bf16.msra.mxu1 %v14079_v5  ;;  %v19020_v25 = vld [vmem:[%s30893_s1 + $0xec] sm:$0xf0] }
 0x683   :  { %12037 = vmatpush.bf16.msra.mxu0 %v16383_v2  ;;  %12000 = vmatpush.bf16.msra.mxu3 %v13055_v38  ;;  %v13822_v53 = vld [vmem:[%s30893_s1 + $0x870] sm:$0xf]  ;;  %v12799_v42 = vor.u32 %v19020_v25, %v12798_v15  ;;  %v11746_v38 = vpop.f32.mrf.mxu2 }
 0x684   :  { %v19276_v60 = vld [vmem:[%s30893_s1 + $0x8ec] sm:$0xf0] }
 0x685   :  { %12025 = vmatpush.bf16.msra.mxu2 %v15231_v34  ;;  %v17790_v48 = vld [vmem:[%s30893_s1 + $0x2770] sm:$0xf]  ;;  %v13823_v56 = vor.u32 %v19276_v60, %v13822_v53 }
 0x686   :  { %v20268_v47 = vld [vmem:[%s30893_s1 + $0x27ec] sm:$0xf0]  ;;  %12014 = vmatpush.bf16.msra.mxu1 %v13951_v3 }
 0x687   :  { %12038 = vmatpush.bf16.msra.mxu0 %v16255_v8  ;;  %v18814_v37 = vld [vmem:[%s30893_s1 + $0x2f70] sm:$0xf]  ;;  %12001 = vmatpush.bf16.msra.mxu3 %v12927_v17  ;;  %v17791_v59 = vor.u32 %v20268_v47, %v17790_v48  ;;  %v13568_v17 = vld [vmem:[%s30893_s1 + $0x6f0] sm:$0xf0]  ;;  %v11770_v47 = vpop.f32.mrf.mxu1 }
 0x688   :  { %v20524_v18 = vld [vmem:[%s30893_s1 + $0x2fec] sm:$0xf0]  ;;  %v13571_v48 = vor.u32 %v19196_v14, %v13568_v17 }
 0x689   :  { %v14974_v29 = vld [vmem:[%s30893_s1 + $0x1170] sm:$0xf]  ;;  %12026 = vmatpush.bf16.msra.mxu2 %v15103_v61  ;;  %v18815_v63 = vor.u32 %v20524_v18, %v18814_v37  ;;  %v19452_v61 = vld [vmem:[%s30893_s1 + $0xe74] sm:$0xf] }
 0x68a   :  { %v19564_v39 = vld [vmem:[%s30893_s1 + $0x11ec] sm:$0xf0]  ;;  %12015 = vmatpush.bf16.msra.mxu1 %v13823_v56  ;;  %v13440_v18 = vld [vmem:[%s30893_s1 + $0x5f0] sm:$0xf0] }
 0x68b   :  { %v15998_v40 = vld [vmem:[%s30893_s1 + $0x1970] sm:$0xf]  ;;  %12039 = vmatpush.bf16.msra.mxu0 %v16127_v28  ;;  %v14975_v33 = vor.u32 %v19564_v39, %v14974_v29  ;;  %12002 = vmatpush.bf16.msra.mxu3 %v12799_v42  ;;  %v14592_v28 = vld [vmem:[%s30893_s1 + $0xef0] sm:$0xf0] }
 0x68c   :  { %v19820_v41 = vld [vmem:[%s30893_s1 + $0x19ec] sm:$0xf0]  ;;  %v14595_v39 = vor.u32 %v19452_v61, %v14592_v28 }
 0x68d   :  { %v17662_v13 = vld [vmem:[%s30893_s1 + $0x2670] sm:$0xf]  ;;  %v15999_v54 = vor.u32 %v19820_v41, %v15998_v40  ;;  %12027 = vmatpush.bf16.msra.mxu2 %v14975_v33  ;;  %12016 = vmatmul.bf16.vlgmr.msra.gmra.mxu1 %v20894_v4  ;;  %v11745_v33 = vadd.f32 %v29634_v27, %v29584_v21 }
 0x68e   :  { %v20236_v7 = vld [vmem:[%s30893_s1 + $0x26ec] sm:$0xf0]  ;;  %12060 = vmatpush.bf16.msrb.mxu1 %v18815_v63  ;;  %12003 = vmatmul.bf16.vlgmr.msra.gmra.mxu3 %v20870_v55  ;;  %v13443_v63 = vor.u32 %v19164_v50, %v13440_v18  ;;  %v14080_v50 = vld [vmem:[%s30893_s1 + $0xaf0] sm:$0xf0] }
 0x68f   :  { %v18686_v20 = vld [vmem:[%s30893_s1 + $0x2e70] sm:$0xf]  ;;  %12047 = vmatpush.bf16.msrb.mxu3 %v17791_v59  ;;  %v17663_v12 = vor.u32 %v20236_v7, %v17662_v13  ;;  %12040 = vmatpush.bf16.msra.mxu0 %v15999_v54  ;;  %v19420_v59 = vld [vmem:[%s30893_s1 + $0xd74] sm:$0xf]  ;;  %v11757_v54 = vpop.f32.mrf.mxu3  ;;  %v11772_v43 = vpop.f32.mrf.mxu1 }
 0x690   :  { %v20492_v46 = vld [vmem:[%s30893_s1 + $0x2eec] sm:$0xf0]  ;;  %v14464_v13 = vld [vmem:[%s30893_s1 + $0xdf0] sm:$0xf0]  ;;  %v11758_v38 = vadd.f32 %v11757_v54, %v11745_v33 }
 0x691   :  { %v14846_v32 = vld [vmem:[%s30893_s1 + $0x1070] sm:$0xf]  ;;  %v18687_v0 = vor.u32 %v20492_v46, %v18686_v20  ;;  %v19132_v20 = vld [vmem:[%s30893_s1 + $0x474] sm:$0xf] }
 0x692   :  { %v19532_v2 = vld [vmem:[%s30893_s1 + $0x10ec] sm:$0xf0]  ;;  %v13312_v46 = vld [vmem:[%s30893_s1 + $0x4f0] sm:$0xf0]  ;;  %v11771_v14 = vadd.f32 %v11770_v47, %v11758_v38  ;;  %v11796_v47 = vpop.f32.mrf.mxu2 }
 0x693   :  { %v15870_v22 = vld [vmem:[%s30893_s1 + $0x1870] sm:$0xf]  ;;  %v14847_v24 = vor.u32 %v19532_v2, %v14846_v32  ;;  %12048 = vmatpush.bf16.msrb.mxu3 %v17663_v12  ;;  %12061 = vmatpush.bf16.msrb.mxu1 %v18687_v0  ;;  %v14467_v2 = vor.u32 %v19420_v59, %v14464_v13  ;;  %v11783_v12 = vpop.f32.mrf.mxu0  ;;  %v13315_v49 = vor.u32 %v19132_v20, %v13312_v46  ;;  %v19740_v18 = vld [vmem:[%s30893_s1 + $0x1774] sm:$0xf] }
 0x694   :  { %v19788_v11 = vld [vmem:[%s30893_s1 + $0x18ec] sm:$0xf0]  ;;  %v19036_v13 = vld [vmem:[%s30893_s1 + $0x174] sm:$0xf] }
 0x695   :  { %v18942_v6 = vld [vmem:[%s30893_s1 + $0x3070] sm:$0xf]  ;;  %v15871_v34 = vor.u32 %v19788_v11, %v15870_v22  ;;  %12028 = vmatpush.bf16.msra.mxu2 %v14847_v24  ;;  %v19100_v24 = vld [vmem:[%s30893_s1 + $0x374] sm:$0xf] }
 0x696   :  { %v20556_v1 = vld [vmem:[%s30893_s1 + $0x30ec] sm:$0xf0]  ;;  %v19292_v54 = vld [vmem:[%s30893_s1 + $0x974] sm:$0xf] }
 0x697   :  { %v17534_v5 = vld [vmem:[%s30893_s1 + $0x2570] sm:$0xf]  ;;  %v18943_v9 = vor.u32 %v20556_v1, %v18942_v6  ;;  %12041 = vmatpush.bf16.msra.mxu0 %v15871_v34  ;;  %v19388_v6 = vld [vmem:[%s30893_s1 + $0xc74] sm:$0xf] }
 0x698   :  { %v20204_v44 = vld [vmem:[%s30893_s1 + $0x25ec] sm:$0xf0]  ;;  %12029 = vmatmul.bf16.vlgmr.msra.gmra.mxu2 %v20859_v51  ;;  %v14336_v1 = vld [vmem:[%s30893_s1 + $0xcf0] sm:$0xf0] }
 0x699   :  { %v18558_v36 = vld [vmem:[%s30893_s1 + $0x2d70] sm:$0xf]  ;;  %v17535_v62 = vor.u32 %v20204_v44, %v17534_v5  ;;  %12080 = vmatpush.bf16.msrb.mxu2 %v18943_v9  ;;  %v13184_v5 = vld [vmem:[%s30893_s1 + $0x3f0] sm:$0xf0] }
 0x69a   :  { %v20460_v8 = vld [vmem:[%s30893_s1 + $0x2dec] sm:$0xf0]  ;;  %12042 = vmatmul.bf16.vlgmr.msra.gmra.mxu0 %v20872_v57  ;;  %v20252_v38 = vld [vmem:[%s30893_s1 + $0x2774] sm:$0xf] }
 0x69b   :  { %v18559_v15 = vor.u32 %v20460_v8, %v18558_v36  ;;  %v17406_v3 = vld [vmem:[%s30893_s1 + $0x2470] sm:$0xf]  ;;  %12086 = vmatpush.bf16.msrb.mxu0 %v13699_v26  ;;  %12049 = vmatpush.bf16.msrb.mxu3 %v17535_v62  ;;  %v14339_v36 = vor.u32 %v19388_v6, %v14336_v1  ;;  %v14208_v26 = vld [vmem:[%s30893_s1 + $0xbf0] sm:$0xf0]  ;;  %v13187_v62 = vor.u32 %v19100_v24, %v13184_v5 }
 0x69c   :  { %v20172_v25 = vld [vmem:[%s30893_s1 + $0x24ec] sm:$0xf0]  ;;  %v19004_v1 = vld [vmem:[%s30893_s1 + $0x74] sm:$0xf] }
 0x69d   :  { %v18430_v53 = vld [vmem:[%s30893_s1 + $0x2c70] sm:$0xf]  ;;  %v17407_v37 = vor.u32 %v20172_v25, %v17406_v3  ;;  %12062 = vmatpush.bf16.msrb.mxu1 %v18559_v15  ;;  %12099 = vmatpush.bf16.msra.mxu2 %v14723_v16  ;;  %v19068_v15 = vld [vmem:[%s30893_s1 + $0x274] sm:$0xf]  ;;  %v11759_v25 = vpop.f32.mrf.mxu3 }
 0x69e   :  { %v20428_v60 = vld [vmem:[%s30893_s1 + $0x2cec] sm:$0xf0]  ;;  %v13056_v16 = vld [vmem:[%s30893_s1 + $0x2f0] sm:$0xf0] }
 0x69f   :  { %v18431_v29 = vor.u32 %v20428_v60, %v18430_v53  ;;  %v17278_v42 = vld [vmem:[%s30893_s1 + $0x2370] sm:$0xf]  ;;  %12087 = vmatpush.bf16.msrb.mxu0 %v13571_v48  ;;  %12050 = vmatpush.bf16.msrb.mxu3 %v17407_v37  ;;  %v14211_v60 = vor.u32 %v19356_v19, %v14208_v26  ;;  %v19324_v37 = vld [vmem:[%s30893_s1 + $0xa74] sm:$0xf] }
 0x6a0   :  { %v20140_v40 = vld [vmem:[%s30893_s1 + $0x23ec] sm:$0xf0]  ;;  %v15488_v19 = vld [vmem:[%s30893_s1 + $0x15f0] sm:$0xf0] }
 0x6a1   :  { %v18302_v41 = vld [vmem:[%s30893_s1 + $0x2b70] sm:$0xf]  ;;  %v17279_v7 = vor.u32 %v20140_v40, %v17278_v42  ;;  %12063 = vmatpush.bf16.msrb.mxu1 %v18431_v29  ;;  %12100 = vmatpush.bf16.msra.mxu2 %v14595_v39  ;;  %v11785_v29 = vpop.f32.mrf.mxu0  ;;  %v13059_v39 = vor.u32 %v19068_v15, %v13056_v16  ;;  %v15744_v42 = vld [vmem:[%s30893_s1 + $0x17f0] sm:$0xf0] }
 0x6a2   :  { %v20396_v56 = vld [vmem:[%s30893_s1 + $0x2bec] sm:$0xf0]  ;;  %v19996_v40 = vld [vmem:[%s30893_s1 + $0x1f74] sm:$0xf]  ;;  %v15747_v20 = vor.u32 %v19740_v18, %v15744_v42 }
 0x6a3   :  { %v18303_v32 = vor.u32 %v20396_v56, %v18302_v41  ;;  %v17150_v22 = vld [vmem:[%s30893_s1 + $0x2270] sm:$0xf]  ;;  %12088 = vmatpush.bf16.msrb.mxu0 %v13443_v63  ;;  %12051 = vmatpush.bf16.msrb.mxu3 %v17279_v7  ;;  %v16768_v41 = vld [vmem:[%s30893_s1 + $0x1ff0] sm:$0xf0]  ;;  %v11784_v56 = vadd.f32 %v11783_v12, %v11771_v14  ;;  %v14083_v7 = vor.u32 %v19324_v37, %v14080_v50 }
 0x6a4   :  { %v20108_v21 = vld [vmem:[%s30893_s1 + $0x22ec] sm:$0xf0]  ;;  %v12928_v63 = vld [vmem:[%s30893_s1 + $0x1f0] sm:$0xf0]  ;;  %v16771_v46 = vor.u32 %v19996_v40, %v16768_v41 }
 0x6a5   :  { %v18174_v27 = vld [vmem:[%s30893_s1 + $0x2a70] sm:$0xf]  ;;  %v17151_v0 = vor.u32 %v20108_v21, %v17150_v22  ;;  %12064 = vmatpush.bf16.msrb.mxu1 %v18303_v32  ;;  %12101 = vmatpush.bf16.msra.mxu2 %v14467_v2  ;;  %v13952_v32 = vld [vmem:[%s30893_s1 + $0x9f0] sm:$0xf0]  ;;  %v12931_v22 = vor.u32 %v19036_v13, %v12928_v63  ;;  %v11797_v6 = vadd.f32 %v11796_v47, %v11784_v56 }
 0x6a6   :  { %v20364_v11 = vld [vmem:[%s30893_s1 + $0x2aec] sm:$0xf0]  ;;  %v19708_v2 = vld [vmem:[%s30893_s1 + $0x1674] sm:$0xf]  ;;  %v13955_v43 = vor.u32 %v19292_v54, %v13952_v32 }
 0x6a7   :  { %v18175_v44 = vor.u32 %v20364_v11, %v18174_v27  ;;  %v17022_v34 = vld [vmem:[%s30893_s1 + $0x2170] sm:$0xf]  ;;  %12089 = vmatpush.bf16.msrb.mxu0 %v13315_v49  ;;  %12052 = vmatpush.bf16.msrb.mxu3 %v17151_v0  ;;  %v15616_v21 = vld [vmem:[%s30893_s1 + $0x16f0] sm:$0xf0]  ;;  %v11809_v49 = vpop.f32.mrf.mxu3 }
 0x6a8   :  { %v20076_v8 = vld [vmem:[%s30893_s1 + $0x21ec] sm:$0xf0]  ;;  %18984 = vmatmul.msk.bf16.vlgmr.msrb.gmra.mxu2 %vm9443_vm0, %v20982_v45  ;;  %v19964_v27 = vld [vmem:[%s30893_s1 + $0x1e74] sm:$0xf]  ;;  %v11810_v24 = vadd.f32 %v11809_v49, %v11797_v6  ;;  %v15619_v5 = vor.u32 %v19708_v2, %v15616_v21 }
 0x6a9   :  { %v18046_v9 = vld [vmem:[%s30893_s1 + $0x2970] sm:$0xf]  ;;  %v17023_v17 = vor.u32 %v20076_v8, %v17022_v34  ;;  %12065 = vmatpush.bf16.msrb.mxu1 %v18175_v44  ;;  %12102 = vmatpush.bf16.msra.mxu2 %v14339_v36  ;;  %v16640_v11 = vld [vmem:[%s30893_s1 + $0x1ef0] sm:$0xf0]  ;;  %v29979_v6 = vpop.f32.mrf.mxu0 }
 0x6aa   :  { %v20332_v10 = vld [vmem:[%s30893_s1 + $0x29ec] sm:$0xf0]  ;;  %v12800_v12 = vld [vmem:[%s30893_s1 + $0xf0] sm:$0xf0]  ;;  %v16643_v44 = vor.u32 %v19964_v27, %v16640_v11  ;;  %12531 = vrot.lane.b32.xlu2 %v11810_v24, %s20585_s27  ;;  %12542 = vrot.lane.b32.xlu0 %v11810_v24, %s20586_s30 }
 0x6ab   :  { %v16894_v3 = vld [vmem:[%s30893_s1 + $0x2070] sm:$0xf]  ;;  %v18047_v53 = vor.u32 %v20332_v10, %v18046_v9  ;;  %12090 = vmatpush.bf16.msrb.mxu0 %v13187_v62  ;;  %12053 = vmatpush.bf16.msrb.mxu3 %v17023_v17  ;;  %v17792_v0 = vld [vmem:[%s30893_s1 + $0x27f0] sm:$0xf0]  ;;  %v11798_v9 = vpop.f32.mrf.mxu2  ;;  %v12803_v10 = vor.u32 %v19004_v1, %v12800_v12 }
 0x6ac   :  { %v20044_v61 = vld [vmem:[%s30893_s1 + $0x20ec] sm:$0xf0]  ;;  %v19260_v36 = vld [vmem:[%s30893_s1 + $0x874] sm:$0xf]  ;;  %v17795_v14 = vor.u32 %v20252_v38, %v17792_v0 }
 0x6ad   :  { %v17918_v28 = vld [vmem:[%s30893_s1 + $0x2870] sm:$0xf]  ;;  %v16895_v59 = vor.u32 %v20044_v61, %v16894_v3  ;;  %12066 = vmatpush.bf16.msrb.mxu1 %v18047_v53  ;;  %12103 = vmatpush.bf16.msra.mxu2 %v14211_v60  ;;  %v13824_v34 = vld [vmem:[%s30893_s1 + $0x8f0] sm:$0xf0] }
 0x6ae   :  { %v20300_v48 = vld [vmem:[%s30893_s1 + $0x28ec] sm:$0xf0]  ;;  %v19676_v8 = vld [vmem:[%s30893_s1 + $0x1574] sm:$0xf]  ;;  %v13827_v16 = vor.u32 %v19260_v36, %v13824_v34 }
 0x6af   :  { %v17919_v33 = vor.u32 %v20300_v48, %v17918_v28  ;;  %12091 = vmatpush.bf16.msrb.mxu0 %v13059_v39  ;;  %12054 = vmatpush.bf16.msrb.mxu3 %v16895_v59  ;;  %v19932_v26 = vld [vmem:[%s30893_s1 + $0x1d74] sm:$0xf]  ;;  %v15491_v53 = vor.u32 %v19676_v8, %v15488_v19  ;;  %v29942_v39 = vpop.f32.mrf.mxu1  ;;  %v11811_v42 = vpop.f32.mrf.mxu3 }
 0x6b0   :  { %v16512_v62 = vld [vmem:[%s30893_s1 + $0x1df0] sm:$0xf0] }
 0x6b1   :  { %12067 = vmatpush.bf16.msrb.mxu1 %v17919_v33  ;;  %12104 = vmatpush.bf16.msra.mxu2 %v14083_v7  ;;  %v20508_v17 = vld [vmem:[%s30893_s1 + $0x2f74] sm:$0xf]  ;;  %v16515_v60 = vor.u32 %v19932_v26, %v16512_v62 }
 0x6b2   :  { %12055 = vmatmul.bf16.vlgmr.msrb.gmra.mxu3 %v21073_v30  ;;  %v18816_v15 = vld [vmem:[%s30893_s1 + $0x2ff0] sm:$0xf0] }
 0x6b3   :  { %12112 = vmatpush.bf16.msra.mxu3 %v15747_v20  ;;  %12092 = vmatpush.bf16.msrb.mxu0 %v12931_v22  ;;  %v20220_v3 = vld [vmem:[%s30893_s1 + $0x2674] sm:$0xf]  ;;  %v18819_v28 = vor.u32 %v20508_v17, %v18816_v15 }
 0x6b4   :  { %12068 = vmatmul.bf16.vlgmr.msrb.gmra.mxu1 %v21084_v35  ;;  %v17664_v25 = vld [vmem:[%s30893_s1 + $0x26f0] sm:$0xf0] }
 0x6b5   :  { %12125 = vmatpush.bf16.msra.mxu1 %v16771_v46  ;;  %12105 = vmatpush.bf16.msra.mxu2 %v13955_v43  ;;  %v19644_v61 = vld [vmem:[%s30893_s1 + $0x1474] sm:$0xf]  ;;  %v17667_v50 = vor.u32 %v20220_v3, %v17664_v25 }
 0x6b6   :  { %v15360_v48 = vld [vmem:[%s30893_s1 + $0x14f0] sm:$0xf0] }
 0x6b7   :  { %12113 = vmatpush.bf16.msra.mxu3 %v15619_v5  ;;  %12093 = vmatpush.bf16.msrb.mxu0 %v12803_v10  ;;  %v19900_v47 = vld [vmem:[%s30893_s1 + $0x1c74] sm:$0xf]  ;;  %v15363_v56 = vor.u32 %v19644_v61, %v15360_v48  ;;  %v11824_v5 = vpop.f32.mrf.mxu1 }
 0x6b8   :  { %v16384_v37 = vld [vmem:[%s30893_s1 + $0x1cf0] sm:$0xf0]  ;;  %v19757_v5 = vld [vmem:[%s30893_s1 + $0x17f4] sm:$0xf0] }
 0x6b9   :  { %12126 = vmatpush.bf16.msra.mxu1 %v16643_v44  ;;  %v20476_v18 = vld [vmem:[%s30893_s1 + $0x2e74] sm:$0xf]  ;;  %12106 = vmatpush.bf16.msra.mxu2 %v13827_v16  ;;  %v16387_v59 = vor.u32 %v19900_v47, %v16384_v37  ;;  %v29996_v44 = vpop.f32.mrf.mxu3  ;;  %v11850_v47 = vpop.f32.mrf.mxu0 }
 0x6ba   :  { %v18688_v29 = vld [vmem:[%s30893_s1 + $0x2ef0] sm:$0xf0]  ;;  %12094 = vmatmul.bf16.vlgmr.msrb.gmra.mxu0 %v20870_v55  ;;  %v30037_v37 = vpop.f32.mrf.mxu2  ;;  %v14470_v47 = vld [vmem:[%s30893_s1 + $0xd78] sm:$0xf] }
 0x6bb   :  { %12138 = vmatpush.bf16.msra.mxu0 %v17795_v14  ;;  %v20188_v40 = vld [vmem:[%s30893_s1 + $0x2574] sm:$0xf]  ;;  %12114 = vmatpush.bf16.msra.mxu3 %v15491_v53  ;;  %v18691_v63 = vor.u32 %v20476_v18, %v18688_v29 }
 0x6bc   :  { %v17536_v41 = vld [vmem:[%s30893_s1 + $0x25f0] sm:$0xf0]  ;;  %12107 = vmatmul.bf16.vlgmr.msra.gmra.mxu2 %v20894_v4 }
 0x6bd   :  { %12127 = vmatpush.bf16.msra.mxu1 %v16515_v60  ;;  %v19612_v13 = vld [vmem:[%s30893_s1 + $0x1374] sm:$0xf]  ;;  %12151 = vmatpush.bf16.msrb.mxu2 %v18819_v28  ;;  %v17539_v46 = vor.u32 %v20188_v40, %v17536_v41  ;;  %v13702_v41 = vld [vmem:[%s30893_s1 + $0x778] sm:$0xf] }
 0x6be   :  { %v15232_v33 = vld [vmem:[%s30893_s1 + $0x13f0] sm:$0xf0] }
 0x6bf   :  { %v19868_v7 = vld [vmem:[%s30893_s1 + $0x1b74] sm:$0xf]  ;;  %12139 = vmatpush.bf16.msra.mxu0 %v17667_v50  ;;  %12115 = vmatpush.bf16.msra.mxu3 %v15363_v56  ;;  %v15235_v21 = vor.u32 %v19612_v13, %v15232_v33  ;;  %v19245_v56 = vld [vmem:[%s30893_s1 + $0x7f4] sm:$0xf0] }
 0x6c0   :  { %v16256_v20 = vld [vmem:[%s30893_s1 + $0x1bf0] sm:$0xf0] }
 0x6c1   :  { %v20444_v54 = vld [vmem:[%s30893_s1 + $0x2d74] sm:$0xf]  ;;  %12128 = vmatpush.bf16.msra.mxu1 %v16387_v59  ;;  %v16259_v27 = vor.u32 %v19868_v7, %v16256_v20  ;;  %12152 = vmatpush.bf16.msrb.mxu2 %v18691_v63  ;;  %v11837_v7 = vpop.f32.mrf.mxu3 }
 0x6c2   :  { %v18560_v32 = vld [vmem:[%s30893_s1 + $0x2df0] sm:$0xf0]  ;;  %v14342_v7 = vld [vmem:[%s30893_s1 + $0xc78] sm:$0xf] }
 0x6c3   :  { %v20156_v2 = vld [vmem:[%s30893_s1 + $0x2474] sm:$0xf]  ;;  %v18563_v1 = vor.u32 %v20444_v54, %v18560_v32  ;;  %12140 = vmatpush.bf16.msra.mxu0 %v17539_v46  ;;  %12116 = vmatpush.bf16.msra.mxu3 %v15235_v21  ;;  %v13703_v32 = vor.u32 %v19245_v56, %v13702_v41  ;;  %v11874_v41 = vpop.f32.mrf.mxu1 }
 0x6c4   :  { %v17408_v22 = vld [vmem:[%s30893_s1 + $0x24f0] sm:$0xf0] }
 0x6c5   :  { %v19580_v11 = vld [vmem:[%s30893_s1 + $0x1274] sm:$0xf]  ;;  %v17411_v38 = vor.u32 %v20156_v2, %v17408_v22  ;;  %12129 = vmatpush.bf16.msra.mxu1 %v16259_v27  ;;  %12153 = vmatpush.bf16.msrb.mxu2 %v18563_v1  ;;  %v14726_v2 = vld [vmem:[%s30893_s1 + $0xf78] sm:$0xf] }
 0x6c6   :  { %v15104_v12 = vld [vmem:[%s30893_s1 + $0x12f0] sm:$0xf0]  ;;  %v19501_v22 = vld [vmem:[%s30893_s1 + $0xff4] sm:$0xf0] }
 0x6c7   :  { %v19836_v49 = vld [vmem:[%s30893_s1 + $0x1a74] sm:$0xf]  ;;  %v15107_v8 = vor.u32 %v19580_v11, %v15104_v12  ;;  %12141 = vmatpush.bf16.msra.mxu0 %v17411_v38  ;;  %v13574_v12 = vld [vmem:[%s30893_s1 + $0x678] sm:$0xf] }
 0x6c8   :  { %v16128_v43 = vld [vmem:[%s30893_s1 + $0x1af0] sm:$0xf0] }
 0x6c9   :  { %v20412_v0 = vld [vmem:[%s30893_s1 + $0x2c74] sm:$0xf]  ;;  %v16131_v9 = vor.u32 %v19836_v49, %v16128_v43  ;;  %12117 = vmatpush.bf16.msra.mxu3 %v15107_v8  ;;  %v19213_v49 = vld [vmem:[%s30893_s1 + $0x6f4] sm:$0xf0] }
 0x6ca   :  { %v18432_v24 = vld [vmem:[%s30893_s1 + $0x2cf0] sm:$0xf0]  ;;  %v14598_v8 = vld [vmem:[%s30893_s1 + $0xe78] sm:$0xf] }
 0x6cb   :  { %v20124_v36 = vld [vmem:[%s30893_s1 + $0x2374] sm:$0xf]  ;;  %v18435_v19 = vor.u32 %v20412_v0, %v18432_v24  ;;  %12130 = vmatpush.bf16.msra.mxu1 %v16131_v9  ;;  %v14727_v0 = vor.u32 %v19501_v22, %v14726_v2  ;;  %v15750_v24 = vld [vmem:[%s30893_s1 + $0x1778] sm:$0xf] }
 0x6cc   :  { %v17280_v34 = vld [vmem:[%s30893_s1 + $0x23f0] sm:$0xf0]  ;;  %v19469_v9 = vld [vmem:[%s30893_s1 + $0xef4] sm:$0xf0] }
 0x6cd   :  { %v19548_v10 = vld [vmem:[%s30893_s1 + $0x1174] sm:$0xf]  ;;  %v17283_v17 = vor.u32 %v20124_v36, %v17280_v34  ;;  %12154 = vmatpush.bf16.msrb.mxu2 %v18435_v19  ;;  %v13575_v34 = vor.u32 %v19213_v49, %v13574_v12  ;;  %v30105_v19 = vpop.f32.mrf.mxu0  ;;  %v13190_v2 = vld [vmem:[%s30893_s1 + $0x378] sm:$0xf] }
 0x6ce   :  { %v14976_v26 = vld [vmem:[%s30893_s1 + $0x11f0] sm:$0xf0]  ;;  %v19117_v22 = vld [vmem:[%s30893_s1 + $0x3f4] sm:$0xf0] }
 0x6cf   :  { %v19804_v62 = vld [vmem:[%s30893_s1 + $0x1974] sm:$0xf]  ;;  %v14979_v53 = vor.u32 %v19548_v10, %v14976_v26  ;;  %12142 = vmatpush.bf16.msra.mxu0 %v17283_v17  ;;  %v11863_v26 = vpop.f32.mrf.mxu2  ;;  %v13446_v17 = vld [vmem:[%s30893_s1 + $0x578] sm:$0xf]  ;;  %v13191_v49 = vor.u32 %v19117_v22, %v13190_v2 }
 0x6d0   :  { %v16000_v14 = vld [vmem:[%s30893_s1 + $0x19f0] sm:$0xf0]  ;;  %v19661_v12 = vld [vmem:[%s30893_s1 + $0x14f4] sm:$0xf0] }
 0x6d1   :  { %v20380_v15 = vld [vmem:[%s30893_s1 + $0x2b74] sm:$0xf]  ;;  %v16003_v60 = vor.u32 %v19804_v62, %v16000_v14  ;;  %12118 = vmatpush.bf16.msra.mxu3 %v14979_v53  ;;  %v14599_v53 = vor.u32 %v19469_v9, %v14598_v8  ;;  %v16390_v8 = vld [vmem:[%s30893_s1 + $0x1c78] sm:$0xf]  ;;  %v11876_v9 = vpop.f32.mrf.mxu1 }
 0x6d2   :  { %v18304_v16 = vld [vmem:[%s30893_s1 + $0x2bf0] sm:$0xf0]  ;;  %v19565_v2 = vld [vmem:[%s30893_s1 + $0x11f4] sm:$0xf0] }
 0x6d3   :  { %v20092_v3 = vld [vmem:[%s30893_s1 + $0x2274] sm:$0xf]  ;;  %v18307_v50 = vor.u32 %v20380_v15, %v18304_v16  ;;  %12131 = vmatpush.bf16.msra.mxu1 %v16003_v60  ;;  %v19181_v15 = vld [vmem:[%s30893_s1 + $0x5f4] sm:$0xf0]  ;;  %v15751_v16 = vor.u32 %v19757_v5, %v15750_v24 }
 0x6d4   :  { %v17152_v25 = vld [vmem:[%s30893_s1 + $0x22f0] sm:$0xf0]  ;;  %v15622_v60 = vld [vmem:[%s30893_s1 + $0x1678] sm:$0xf] }
 0x6d5   :  { %v19516_v61 = vld [vmem:[%s30893_s1 + $0x1074] sm:$0xf]  ;;  %v17155_v40 = vor.u32 %v20092_v3, %v17152_v25  ;;  %12155 = vmatpush.bf16.msrb.mxu2 %v18307_v50  ;;  %v16774_v3 = vld [vmem:[%s30893_s1 + $0x1f78] sm:$0xf] }
 0x6d6   :  { %v14848_v28 = vld [vmem:[%s30893_s1 + $0x10f0] sm:$0xf0]  ;;  %v20013_v25 = vld [vmem:[%s30893_s1 + $0x1ff4] sm:$0xf0] }
 0x6d7   :  { %v19772_v48 = vld [vmem:[%s30893_s1 + $0x1874] sm:$0xf]  ;;  %v14851_v20 = vor.u32 %v19516_v61, %v14848_v28  ;;  %12143 = vmatpush.bf16.msra.mxu0 %v17155_v40  ;;  %v19725_v61 = vld [vmem:[%s30893_s1 + $0x16f4] sm:$0xf0] }
 0x6d8   :  { %v15872_v18 = vld [vmem:[%s30893_s1 + $0x18f0] sm:$0xf0]  ;;  %v19437_v50 = vld [vmem:[%s30893_s1 + $0xdf4] sm:$0xf0]  ;;  %v15623_v56 = vor.u32 %v19725_v61, %v15622_v60 }
 0x6d9   :  { %v20348_v29 = vld [vmem:[%s30893_s1 + $0x2a74] sm:$0xf]  ;;  %v15875_v46 = vor.u32 %v19772_v48, %v15872_v18  ;;  %12119 = vmatpush.bf16.msra.mxu3 %v14851_v20  ;;  %v13447_v48 = vor.u32 %v19181_v15, %v13446_v17  ;;  %v11836_v18 = vadd.f32 %v29996_v44, %v29942_v39  ;;  %v19149_v40 = vld [vmem:[%s30893_s1 + $0x4f4] sm:$0xf0]  ;;  %v14471_v44 = vor.u32 %v19437_v50, %v14470_v47  ;;  %v11887_v17 = vpop.f32.mrf.mxu3 }
 0x6da   :  { %v18176_v42 = vld [vmem:[%s30893_s1 + $0x2af0] sm:$0xf0]  ;;  %v19981_v39 = vld [vmem:[%s30893_s1 + $0x1ef4] sm:$0xf0] }
 0x6db   :  { %v20060_v59 = vld [vmem:[%s30893_s1 + $0x2174] sm:$0xf]  ;;  %v18179_v54 = vor.u32 %v20348_v29, %v18176_v42  ;;  %12132 = vmatpush.bf16.msra.mxu1 %v15875_v46  ;;  %v16775_v29 = vor.u32 %v20013_v25, %v16774_v3  ;;  %v13318_v42 = vld [vmem:[%s30893_s1 + $0x478] sm:$0xf]  ;;  %v11902_v46 = vpop.f32.mrf.mxu0 }
 0x6dc   :  { %v17024_v13 = vld [vmem:[%s30893_s1 + $0x21f0] sm:$0xf0]  ;;  %12120 = vmatmul.bf16.vlgmr.msra.gmra.mxu3 %v20859_v51  ;;  %v19405_v20 = vld [vmem:[%s30893_s1 + $0xcf4] sm:$0xf0] }
 0x6dd   :  { %v20540_v63 = vld [vmem:[%s30893_s1 + $0x3074] sm:$0xf]  ;;  %v17027_v27 = vor.u32 %v20060_v59, %v17024_v13  ;;  %12156 = vmatpush.bf16.msrb.mxu2 %v18179_v54  ;;  %v16646_v59 = vld [vmem:[%s30893_s1 + $0x1e78] sm:$0xf]  ;;  %v11849_v54 = vadd.f32 %v29979_v6, %v11836_v18 }
 0x6de   :  { %v18944_v33 = vld [vmem:[%s30893_s1 + $0x30f0] sm:$0xf0]  ;;  %12133 = vmatmul.bf16.vlgmr.msra.gmra.mxu1 %v20872_v57  ;;  %v15494_v13 = vld [vmem:[%s30893_s1 + $0x1578] sm:$0xf] }
 0x6df   :  { %v20316_v21 = vld [vmem:[%s30893_s1 + $0x2974] sm:$0xf]  ;;  %v18947_v11 = vor.u32 %v20540_v63, %v18944_v33  ;;  %12177 = vmatpush.bf16.msrb.mxu1 %v13703_v32  ;;  %12144 = vmatpush.bf16.msra.mxu0 %v17027_v27  ;;  %v19693_v63 = vld [vmem:[%s30893_s1 + $0x15f4] sm:$0xf0]  ;;  %v13319_v33 = vor.u32 %v19149_v40, %v13318_v42  ;;  %v16647_v32 = vor.u32 %v19981_v39, %v16646_v59 }
 0x6e0   :  { %v18048_v1 = vld [vmem:[%s30893_s1 + $0x29f0] sm:$0xf0]  ;;  %v16518_v27 = vld [vmem:[%s30893_s1 + $0x1d78] sm:$0xf] }
 0x6e1   :  { %v20028_v43 = vld [vmem:[%s30893_s1 + $0x2074] sm:$0xf]  ;;  %v18051_v36 = vor.u32 %v20316_v21, %v18048_v1  ;;  %12171 = vmatpush.bf16.msrb.mxu3 %v18947_v11  ;;  %v15495_v21 = vor.u32 %v19693_v63, %v15494_v13  ;;  %v19949_v6 = vld [vmem:[%s30893_s1 + $0x1df4] sm:$0xf0]  ;;  %v14343_v11 = vor.u32 %v19405_v20, %v14342_v7  ;;  %v30253_v63 = vpop.f32.mrf.mxu2 }
 0x6e2   :  { %v16896_v38 = vld [vmem:[%s30893_s1 + $0x20f0] sm:$0xf0]  ;;  %v15366_v1 = vld [vmem:[%s30893_s1 + $0x1478] sm:$0xf]  ;;  %v16519_v24 = vor.u32 %v19949_v6, %v16518_v27  ;;  %v11889_v6 = vpop.f32.mrf.mxu3 }
 0x6e3   :  { %v20284_v10 = vld [vmem:[%s30893_s1 + $0x2874] sm:$0xf]  ;;  %v16899_v62 = vor.u32 %v20028_v43, %v16896_v38  ;;  %12157 = vmatpush.bf16.msrb.mxu2 %v18051_v36  ;;  %12178 = vmatpush.bf16.msrb.mxu1 %v13575_v34  ;;  %v14214_v43 = vld [vmem:[%s30893_s1 + $0xb78] sm:$0xf]  ;;  %v15367_v34 = vor.u32 %v19661_v12, %v15366_v1  ;;  %v30214_v25 = vpop.f32.mrf.mxu0 }
 0x6e4   :  { %v17920_v14 = vld [vmem:[%s30893_s1 + $0x28f0] sm:$0xf0]  ;;  %v19373_v38 = vld [vmem:[%s30893_s1 + $0xbf4] sm:$0xf0] }
 0x6e5   :  { %12190 = vmatpush.bf16.msra.mxu3 %v14727_v0  ;;  %v17923_v28 = vor.u32 %v20284_v10, %v17920_v14  ;;  %12145 = vmatpush.bf16.msra.mxu0 %v16899_v62  ;;  %v11862_v0 = vadd.f32 %v30037_v37, %v11849_v54  ;;  %v13062_v5 = vld [vmem:[%s30893_s1 + $0x278] sm:$0xf]  ;;  %v14215_v26 = vor.u32 %v19373_v38, %v14214_v43 }
 0x6e6   :  { %v19085_v36 = vld [vmem:[%s30893_s1 + $0x2f4] sm:$0xf0] }
 0x6e7   :  { %12158 = vmatpush.bf16.msrb.mxu2 %v17923_v28  ;;  %12179 = vmatpush.bf16.msrb.mxu1 %v13447_v48  ;;  %v19917_v37 = vld [vmem:[%s30893_s1 + $0x1cf4] sm:$0xf0]  ;;  %v11875_v10 = vadd.f32 %v11874_v41, %v11862_v0  ;;  %v13063_v15 = vor.u32 %v19085_v36, %v13062_v5 }
 0x6e8   :  { %12146 = vmatmul.bf16.vlgmr.msra.gmra.mxu0 %v21073_v30  ;;  %v15238_v62 = vld [vmem:[%s30893_s1 + $0x1378] sm:$0xf]  ;;  %v16391_v60 = vor.u32 %v19917_v37, %v16390_v8 }
 0x6e9   :  { %12203 = vmatpush.bf16.msrb.mxu0 %v15751_v16  ;;  %12191 = vmatpush.bf16.msra.mxu3 %v14599_v53  ;;  %v19629_v14 = vld [vmem:[%s30893_s1 + $0x13f4] sm:$0xf0]  ;;  %v11888_v53 = vadd.f32 %v11887_v17, %v11875_v10 }
 0x6ea   :  { %12159 = vmatmul.bf16.vlgmr.msrb.gmra.mxu2 %v21084_v35  ;;  %v14086_v16 = vld [vmem:[%s30893_s1 + $0xa78] sm:$0xf]  ;;  %v15239_v48 = vor.u32 %v19629_v14, %v15238_v62 }
 0x6eb   :  { %12216 = vmatpush.bf16.msra.mxu2 %v16775_v29  ;;  %12180 = vmatpush.bf16.msrb.mxu1 %v13319_v33  ;;  %v19341_v3 = vld [vmem:[%s30893_s1 + $0xaf4] sm:$0xf0]  ;;  %v11901_v18 = vadd.f32 %v30105_v19, %v11888_v53 }
 0x6ec   :  { %v12934_v61 = vld [vmem:[%s30893_s1 + $0x178] sm:$0xf]  ;;  %18985 = vmatmul.msk.bf16.vlgmr.msrb.gmra.mxu3 %vm9443_vm0, %v20982_v45  ;;  %v14087_v29 = vor.u32 %v19341_v3, %v14086_v16  ;;  %v11915_v3 = vpop.f32.mrf.mxu2 }
 0x6ed   :  { %12204 = vmatpush.bf16.msrb.mxu0 %v15623_v56  ;;  %12192 = vmatpush.bf16.msra.mxu3 %v14471_v44  ;;  %v19053_v28 = vld [vmem:[%s30893_s1 + $0x1f4] sm:$0xf0] }
 0x6ee   :  { %v16262_v47 = vld [vmem:[%s30893_s1 + $0x1b78] sm:$0xf]  ;;  %v12935_v41 = vor.u32 %v19053_v28, %v12934_v61  ;;  %12544 = vrot.lane.b32.xlu1 %v11901_v18, %s20586_s30 }
 0x6ef   :  { %12217 = vmatpush.bf16.msra.mxu2 %v16647_v32  ;;  %12181 = vmatpush.bf16.msrb.mxu1 %v13191_v49  ;;  %v19885_v50 = vld [vmem:[%s30893_s1 + $0x1bf4] sm:$0xf0] }
 0x6f0   :  { %v15110_v42 = vld [vmem:[%s30893_s1 + $0x1278] sm:$0xf]  ;;  %v16263_v59 = vor.u32 %v19885_v50, %v16262_v47  ;;  %v19229_v47 = vld [vmem:[%s30893_s1 + $0x77c] sm:$0xf] }
 0x6f1   :  { %12205 = vmatpush.bf16.msrb.mxu0 %v15495_v21  ;;  %12193 = vmatpush.bf16.msra.mxu3 %v14343_v11  ;;  %v19597_v40 = vld [vmem:[%s30893_s1 + $0x12f4] sm:$0xf0]  ;;  %v11928_v11 = vpop.f32.mrf.mxu0  ;;  %v13704_v50 = vld [vmem:[%s30893_s1 + $0x7f8] sm:$0xf0]  ;;  %v11952_v3 = vpop.f32.mrf.mxu3 }
 0x6f2   :  { %v13958_v56 = vld [vmem:[%s30893_s1 + $0x978] sm:$0xf]  ;;  %v15111_v33 = vor.u32 %v19597_v40, %v15110_v42  ;;  %v14728_v42 = vld [vmem:[%s30893_s1 + $0xff8] sm:$0xf0] }
 0x6f3   :  { %12218 = vmatpush.bf16.msra.mxu2 %v16519_v24  ;;  %12182 = vmatpush.bf16.msrb.mxu1 %v13063_v15  ;;  %v19309_v19 = vld [vmem:[%s30893_s1 + $0x9f4] sm:$0xf0] }
 0x6f4   :  { %v12806_v39 = vld [vmem:[%s30893_s1 + $0x78] sm:$0xf]  ;;  %v13959_v54 = vor.u32 %v19309_v19, %v13958_v56 }
 0x6f5   :  { %12206 = vmatpush.bf16.msrb.mxu0 %v15367_v34  ;;  %12194 = vmatpush.bf16.msra.mxu3 %v14215_v26  ;;  %v19021_v44 = vld [vmem:[%s30893_s1 + $0xf4] sm:$0xf0] }
 0x6f6   :  { %v16134_v13 = vld [vmem:[%s30893_s1 + $0x1a78] sm:$0xf]  ;;  %v12807_v22 = vor.u32 %v19021_v44, %v12806_v39 }
 0x6f7   :  { %12219 = vmatpush.bf16.msra.mxu2 %v16391_v60  ;;  %v19853_v7 = vld [vmem:[%s30893_s1 + $0x1af4] sm:$0xf0]  ;;  %12183 = vmatpush.bf16.msrb.mxu1 %v12935_v41 }
 0x6f8   :  { %v17798_v20 = vld [vmem:[%s30893_s1 + $0x2778] sm:$0xf]  ;;  %v16135_v1 = vor.u32 %v19853_v7, %v16134_v13  ;;  %v13576_v7 = vld [vmem:[%s30893_s1 + $0x6f8] sm:$0xf0] }
 0x6f9   :  { %12207 = vmatpush.bf16.msrb.mxu0 %v15239_v48  ;;  %v20269_v46 = vld [vmem:[%s30893_s1 + $0x27f4] sm:$0xf0]  ;;  %12195 = vmatpush.bf16.msra.mxu3 %v14087_v29  ;;  %v19485_v29 = vld [vmem:[%s30893_s1 + $0xf7c] sm:$0xf] }
 0x6fa   :  { %v14982_v32 = vld [vmem:[%s30893_s1 + $0x1178] sm:$0xf]  ;;  %v17799_v12 = vor.u32 %v20269_v46, %v17798_v20  ;;  %v14731_v13 = vor.u32 %v19485_v29, %v14728_v42  ;;  %v11939_v20 = vpop.f32.mrf.mxu1 }
 0x6fb   :  { %v13830_v21 = vld [vmem:[%s30893_s1 + $0x878] sm:$0xf]  ;;  %12220 = vmatpush.bf16.msra.mxu2 %v16263_v59  ;;  %v14983_v0 = vor.u32 %v19565_v2, %v14982_v32  ;;  %12184 = vmatpush.bf16.msrb.mxu1 %v12807_v22  ;;  %v13707_v59 = vor.u32 %v19229_v47, %v13704_v50  ;;  %v14600_v32 = vld [vmem:[%s30893_s1 + $0xef8] sm:$0xf0] }
 0x6fc   :  { %v19277_v27 = vld [vmem:[%s30893_s1 + $0x8f4] sm:$0xf0]  ;;  %v19101_v50 = vld [vmem:[%s30893_s1 + $0x37c] sm:$0xf] }
 0x6fd   :  { %v18822_v49 = vld [vmem:[%s30893_s1 + $0x2f78] sm:$0xf]  ;;  %12208 = vmatpush.bf16.msrb.mxu0 %v15111_v33  ;;  %12196 = vmatpush.bf16.msra.mxu3 %v13959_v54  ;;  %v13831_v34 = vor.u32 %v19277_v27, %v13830_v21  ;;  %v19197_v33 = vld [vmem:[%s30893_s1 + $0x67c] sm:$0xf] }
 0x6fe   :  { %v20525_v43 = vld [vmem:[%s30893_s1 + $0x2ff4] sm:$0xf0]  ;;  %12185 = vmatmul.bf16.vlgmr.msrb.gmra.mxu1 %v20870_v55  ;;  %v19453_v54 = vld [vmem:[%s30893_s1 + $0xe7c] sm:$0xf]  ;;  %v13579_v27 = vor.u32 %v19197_v33, %v13576_v7 }
 0x6ff   :  { %v16006_v38 = vld [vmem:[%s30893_s1 + $0x1978] sm:$0xf]  ;;  %v18823_v9 = vor.u32 %v20525_v43, %v18822_v49  ;;  %12221 = vmatpush.bf16.msra.mxu2 %v16135_v1  ;;  %12229 = vmatpush.bf16.msra.mxu1 %v17799_v12  ;;  %v14603_v1 = vor.u32 %v19453_v54, %v14600_v32  ;;  %v19165_v12 = vld [vmem:[%s30893_s1 + $0x57c] sm:$0xf] }
 0x700   :  { %v19821_v24 = vld [vmem:[%s30893_s1 + $0x19f4] sm:$0xf0]  ;;  %v13448_v49 = vld [vmem:[%s30893_s1 + $0x5f8] sm:$0xf0] }
 0x701   :  { %v17670_v5 = vld [vmem:[%s30893_s1 + $0x2678] sm:$0xf]  ;;  %v16007_v62 = vor.u32 %v19821_v24, %v16006_v38  ;;  %12209 = vmatpush.bf16.msrb.mxu0 %v14983_v0  ;;  %12197 = vmatpush.bf16.msra.mxu3 %v13831_v34  ;;  %v19421_v38 = vld [vmem:[%s30893_s1 + $0xd7c] sm:$0xf]  ;;  %v13451_v34 = vor.u32 %v19165_v12, %v13448_v49 }
 0x702   :  { %v20237_v36 = vld [vmem:[%s30893_s1 + $0x26f4] sm:$0xf0]  ;;  %v14472_v0 = vld [vmem:[%s30893_s1 + $0xdf8] sm:$0xf0] }
 0x703   :  { %v14854_v8 = vld [vmem:[%s30893_s1 + $0x1078] sm:$0xf]  ;;  %v17671_v14 = vor.u32 %v20237_v36, %v17670_v5  ;;  %12222 = vmatpush.bf16.msra.mxu2 %v16007_v62  ;;  %v11927_v62 = vadd.f32 %v30214_v25, %v30253_v63  ;;  %v19069_v7 = vld [vmem:[%s30893_s1 + $0x27c] sm:$0xf] }
 0x704   :  { %v19533_v37 = vld [vmem:[%s30893_s1 + $0x10f4] sm:$0xf0]  ;;  %12198 = vmatmul.bf16.vlgmr.msra.gmra.mxu3 %v20894_v4  ;;  %v13064_v54 = vld [vmem:[%s30893_s1 + $0x2f8] sm:$0xf0] }
 0x705   :  { %v18950_v10 = vld [vmem:[%s30893_s1 + $0x3078] sm:$0xf]  ;;  %v14855_v53 = vor.u32 %v19533_v37, %v14854_v8  ;;  %12242 = vmatpush.bf16.msrb.mxu3 %v18823_v9  ;;  %12230 = vmatpush.bf16.msra.mxu1 %v17671_v14  ;;  %v14475_v9 = vor.u32 %v19421_v38, %v14472_v0  ;;  %v11941_v14 = vpop.f32.mrf.mxu1  ;;  %v11940_v29 = vadd.f32 %v11939_v20, %v11927_v62  ;;  %v11965_v20 = vpop.f32.mrf.mxu2  ;;  %v19741_v32 = vld [vmem:[%s30893_s1 + $0x177c] sm:$0xf] }
 0x706   :  { %v20557_v26 = vld [vmem:[%s30893_s1 + $0x30f4] sm:$0xf0]  ;;  %v13067_v0 = vor.u32 %v19069_v7, %v13064_v54  ;;  %v15368_v54 = vld [vmem:[%s30893_s1 + $0x14f8] sm:$0xf0] }
 0x707   :  { %v18694_v17 = vld [vmem:[%s30893_s1 + $0x2e78] sm:$0xf]  ;;  %v18951_v48 = vor.u32 %v20557_v26, %v18950_v10  ;;  %12210 = vmatpush.bf16.msrb.mxu0 %v14855_v53  ;;  %v19133_v10 = vld [vmem:[%s30893_s1 + $0x47c] sm:$0xf] }
 0x708   :  { %v20493_v15 = vld [vmem:[%s30893_s1 + $0x2ef4] sm:$0xf0]  ;;  %v13320_v26 = vld [vmem:[%s30893_s1 + $0x4f8] sm:$0xf0] }
 0x709   :  { %v15878_v16 = vld [vmem:[%s30893_s1 + $0x1878] sm:$0xf]  ;;  %v18695_v18 = vor.u32 %v20493_v15, %v18694_v17  ;;  %v19389_v15 = vld [vmem:[%s30893_s1 + $0xc7c] sm:$0xf]  ;;  %v13323_v63 = vor.u32 %v19133_v10, %v13320_v26 }
 0x70a   :  { %v19789_v60 = vld [vmem:[%s30893_s1 + $0x18f4] sm:$0xf0]  ;;  %12211 = vmatmul.bf16.vlgmr.msrb.gmra.mxu0 %v20859_v51  ;;  %v19709_v10 = vld [vmem:[%s30893_s1 + $0x167c] sm:$0xf] }
 0x70b   :  { %v17542_v61 = vld [vmem:[%s30893_s1 + $0x2578] sm:$0xf]  ;;  %v15879_v40 = vor.u32 %v19789_v60, %v15878_v16  ;;  %12262 = vmatpush.bf16.msra.mxu0 %v18951_v48  ;;  %12243 = vmatpush.bf16.msrb.mxu3 %v18695_v18  ;;  %v14344_v16 = vld [vmem:[%s30893_s1 + $0xcf8] sm:$0xf0]  ;;  %v11978_v48 = vpop.f32.mrf.mxu0 }
 0x70c   :  { %v20205_v28 = vld [vmem:[%s30893_s1 + $0x25f4] sm:$0xf0]  ;;  %v14347_v47 = vor.u32 %v19389_v15, %v14344_v16  ;;  %v13192_v18 = vld [vmem:[%s30893_s1 + $0x3f8] sm:$0xf0] }
 0x70d   :  { %v17543_v41 = vor.u32 %v20205_v28, %v17542_v61  ;;  %v18566_v56 = vld [vmem:[%s30893_s1 + $0x2d78] sm:$0xf]  ;;  %12223 = vmatpush.bf16.msra.mxu2 %v15879_v40  ;;  %v19357_v40 = vld [vmem:[%s30893_s1 + $0xb7c] sm:$0xf] }
 0x70e   :  { %v20461_v19 = vld [vmem:[%s30893_s1 + $0x2df4] sm:$0xf0]  ;;  %v15624_v26 = vld [vmem:[%s30893_s1 + $0x16f8] sm:$0xf0] }
 0x70f   :  { %v17414_v39 = vld [vmem:[%s30893_s1 + $0x2478] sm:$0xf]  ;;  %v18567_v46 = vor.u32 %v20461_v19, %v18566_v56  ;;  %12231 = vmatpush.bf16.msra.mxu1 %v17543_v41  ;;  %12281 = vmatpush.bf16.msrb.mxu0 %v14731_v13  ;;  %v14216_v41 = vld [vmem:[%s30893_s1 + $0xbf8] sm:$0xf0] }
 0x710   :  { %v20173_v44 = vld [vmem:[%s30893_s1 + $0x24f4] sm:$0xf0]  ;;  %12224 = vmatmul.bf16.vlgmr.msra.gmra.mxu2 %v20872_v57  ;;  %v13960_v15 = vld [vmem:[%s30893_s1 + $0x9f8] sm:$0xf0] }
 0x711   :  { %v17415_v2 = vor.u32 %v20173_v44, %v17414_v39  ;;  %v18438_v22 = vld [vmem:[%s30893_s1 + $0x2c78] sm:$0xf]  ;;  %12268 = vmatpush.bf16.msrb.mxu2 %v13707_v59  ;;  %12244 = vmatpush.bf16.msrb.mxu3 %v18567_v46  ;;  %v11953_v39 = vadd.f32 %v11952_v3, %v11940_v29  ;;  %v13195_v44 = vor.u32 %v19101_v50, %v13192_v18  ;;  %v19965_v3 = vld [vmem:[%s30893_s1 + $0x1e7c] sm:$0xf] }
 0x712   :  { %v20429_v21 = vld [vmem:[%s30893_s1 + $0x2cf4] sm:$0xf0]  ;;  %v14219_v46 = vor.u32 %v19357_v40, %v14216_v41  ;;  %v19677_v50 = vld [vmem:[%s30893_s1 + $0x157c] sm:$0xf] }
 0x713   :  { %v17286_v6 = vld [vmem:[%s30893_s1 + $0x2378] sm:$0xf]  ;;  %v18439_v43 = vor.u32 %v20429_v21, %v18438_v22  ;;  %12232 = vmatpush.bf16.msra.mxu1 %v17415_v2  ;;  %12282 = vmatpush.bf16.msrb.mxu0 %v14603_v1  ;;  %v15752_v2 = vld [vmem:[%s30893_s1 + $0x17f8] sm:$0xf0]  ;;  %v11966_v22 = vadd.f32 %v11965_v20, %v11953_v39  ;;  %v11991_v21 = vpop.f32.mrf.mxu1 }
 0x714   :  { %v20141_v11 = vld [vmem:[%s30893_s1 + $0x23f4] sm:$0xf0]  ;;  %v15496_v18 = vld [vmem:[%s30893_s1 + $0x15f8] sm:$0xf0] }
 0x715   :  { %v17287_v24 = vor.u32 %v20141_v11, %v17286_v6  ;;  %v18310_v5 = vld [vmem:[%s30893_s1 + $0x2b78] sm:$0xf]  ;;  %12269 = vmatpush.bf16.msrb.mxu2 %v13579_v27  ;;  %12245 = vmatpush.bf16.msrb.mxu3 %v18439_v43  ;;  %v19325_v6 = vld [vmem:[%s30893_s1 + $0xa7c] sm:$0xf]  ;;  %v11954_v43 = vpop.f32.mrf.mxu3  ;;  %v11979_v38 = vadd.f32 %v11978_v48, %v11966_v22  ;;  %v11967_v48 = vpop.f32.mrf.mxu2 }
 0x716   :  { %v20397_v36 = vld [vmem:[%s30893_s1 + $0x2bf4] sm:$0xf0]  ;;  %v14088_v11 = vld [vmem:[%s30893_s1 + $0xaf8] sm:$0xf0] }
 0x717   :  { %v17158_v8 = vld [vmem:[%s30893_s1 + $0x2278] sm:$0xf]  ;;  %v18311_v17 = vor.u32 %v20397_v36, %v18310_v5  ;;  %12233 = vmatpush.bf16.msra.mxu1 %v17287_v24  ;;  %12283 = vmatpush.bf16.msrb.mxu0 %v14475_v9  ;;  %v15755_v24 = vor.u32 %v19741_v32, %v15752_v2  ;;  %v19997_v5 = vld [vmem:[%s30893_s1 + $0x1f7c] sm:$0xf]  ;;  %v30494_v62 = vadd.f32 %v11991_v21, %v11979_v38 }
 0x718   :  { %v20109_v37 = vld [vmem:[%s30893_s1 + $0x22f4] sm:$0xf0]  ;;  %v16776_v36 = vld [vmem:[%s30893_s1 + $0x1ff8] sm:$0xf0] }
 0x719   :  { %v17159_v53 = vor.u32 %v20109_v37, %v17158_v8  ;;  %v18182_v60 = vld [vmem:[%s30893_s1 + $0x2a78] sm:$0xf]  ;;  %12270 = vmatpush.bf16.msrb.mxu2 %v13451_v34  ;;  %12246 = vmatpush.bf16.msrb.mxu3 %v18311_v17  ;;  %v19037_v34 = vld [vmem:[%s30893_s1 + $0x17c] sm:$0xf]  ;;  %v11980_v8 = vpop.f32.mrf.mxu0  ;;  %v14091_v37 = vor.u32 %v19325_v6, %v14088_v11  ;;  %v16779_v16 = vor.u32 %v19997_v5, %v16776_v36 }
 0x71a   :  { %v20365_v25 = vld [vmem:[%s30893_s1 + $0x2af4] sm:$0xf0]  ;;  %18986 = vmatmul.msk.bf16.vlgmr.msra.gmra.mxu0 %vm9443_vm0, %v20982_v45  ;;  %v12936_v9 = vld [vmem:[%s30893_s1 + $0x1f8] sm:$0xf0]  ;;  %12557 = vrot.lane.b32.xlu0 %v30494_v62, %s20587_s7 }
 0x71b   :  { %v17030_v61 = vld [vmem:[%s30893_s1 + $0x2178] sm:$0xf]  ;;  %v18183_v42 = vor.u32 %v20365_v25, %v18182_v60  ;;  %12234 = vmatpush.bf16.msra.mxu1 %v17159_v53  ;;  %12284 = vmatpush.bf16.msrb.mxu0 %v14347_v47  ;;  %v19293_v17 = vld [vmem:[%s30893_s1 + $0x97c] sm:$0xf]  ;;  %v12939_v53 = vor.u32 %v19037_v34, %v12936_v9  ;;  %v15627_v60 = vor.u32 %v19709_v10, %v15624_v26  ;;  %v11993_v41 = vpop.f32.mrf.mxu1 }
 0x71c   :  { %v20077_v28 = vld [vmem:[%s30893_s1 + $0x21f4] sm:$0xf0]  ;;  %v16648_v25 = vld [vmem:[%s30893_s1 + $0x1ef8] sm:$0xf0] }
 0x71d   :  { %v17031_v56 = vor.u32 %v20077_v28, %v17030_v61  ;;  %v18054_v19 = vld [vmem:[%s30893_s1 + $0x2978] sm:$0xf]  ;;  %12271 = vmatpush.bf16.msrb.mxu2 %v13323_v63  ;;  %12247 = vmatpush.bf16.msrb.mxu3 %v18183_v42  ;;  %v19005_v63 = vld [vmem:[%s30893_s1 + $0x7c] sm:$0xf]  ;;  %v13963_v28 = vor.u32 %v19293_v17, %v13960_v15 }
 0x71e   :  { %v20333_v59 = vld [vmem:[%s30893_s1 + $0x29f4] sm:$0xf0]  ;;  %v12808_v61 = vld [vmem:[%s30893_s1 + $0xf8] sm:$0xf0] }
 0x71f   :  { %v16902_v13 = vld [vmem:[%s30893_s1 + $0x2078] sm:$0xf]  ;;  %v18055_v27 = vor.u32 %v20333_v59, %v18054_v19  ;;  %12235 = vmatpush.bf16.msra.mxu1 %v17031_v56  ;;  %12285 = vmatpush.bf16.msrb.mxu0 %v14219_v46  ;;  %v19261_v47 = vld [vmem:[%s30893_s1 + $0x87c] sm:$0xf]  ;;  %v16651_v56 = vor.u32 %v19965_v3, %v16648_v25  ;;  %v12811_v39 = vor.u32 %v19005_v63, %v12808_v61  ;;  %v30618_v63 = vpop.f32.mrf.mxu3 }
 0x720   :  { %v20045_v33 = vld [vmem:[%s30893_s1 + $0x20f4] sm:$0xf0]  ;;  %v13832_v29 = vld [vmem:[%s30893_s1 + $0x8f8] sm:$0xf0] }
 0x721   :  { %v16903_v1 = vor.u32 %v20045_v33, %v16902_v13  ;;  %v17926_v12 = vld [vmem:[%s30893_s1 + $0x2878] sm:$0xf]  ;;  %12272 = vmatpush.bf16.msrb.mxu2 %v13195_v44  ;;  %12248 = vmatpush.bf16.msrb.mxu3 %v18055_v27  ;;  %v20253_v42 = vld [vmem:[%s30893_s1 + $0x277c] sm:$0xf]  ;;  %v15499_v44 = vor.u32 %v19677_v50, %v15496_v18  ;;  %v13835_v7 = vor.u32 %v19261_v47, %v13832_v29 }
 0x722   :  { %v20301_v49 = vld [vmem:[%s30893_s1 + $0x28f4] sm:$0xf0]  ;;  %v17800_v40 = vld [vmem:[%s30893_s1 + $0x27f8] sm:$0xf0] }
 0x723   :  { %v17927_v14 = vor.u32 %v20301_v49, %v17926_v12  ;;  %12236 = vmatpush.bf16.msra.mxu1 %v16903_v1  ;;  %12286 = vmatpush.bf16.msrb.mxu0 %v14091_v37  ;;  %v20509_v19 = vld [vmem:[%s30893_s1 + $0x2f7c] sm:$0xf]  ;;  %v17803_v20 = vor.u32 %v20253_v42, %v17800_v40  ;;  %v30591_v37 = vpop.f32.mrf.mxu1  ;;  %v30638_v40 = vpop.f32.mrf.mxu0 }
 0x724   :  { %v18824_v59 = vld [vmem:[%s30893_s1 + $0x2ff8] sm:$0xf0] }
 0x725   :  { %12273 = vmatpush.bf16.msrb.mxu2 %v13067_v0  ;;  %12249 = vmatpush.bf16.msrb.mxu3 %v17927_v14  ;;  %v19933_v13 = vld [vmem:[%s30893_s1 + $0x1d7c] sm:$0xf]  ;;  %v18827_v32 = vor.u32 %v20509_v19, %v18824_v59 }
 0x726   :  { %12237 = vmatmul.bf16.vlgmr.msra.gmra.mxu1 %v21073_v30  ;;  %v16520_v33 = vld [vmem:[%s30893_s1 + $0x1df8] sm:$0xf0] }
 0x727   :  { %12294 = vmatpush.bf16.msrb.mxu1 %v15755_v24  ;;  %12287 = vmatpush.bf16.msrb.mxu0 %v13963_v28  ;;  %v19645_v46 = vld [vmem:[%s30893_s1 + $0x147c] sm:$0xf]  ;;  %v16523_v21 = vor.u32 %v19933_v13, %v16520_v33 }
 0x728   :  { %12250 = vmatmul.bf16.vlgmr.msrb.gmra.mxu3 %v21084_v35  ;;  %v20221_v2 = vld [vmem:[%s30893_s1 + $0x267c] sm:$0xf]  ;;  %v15371_v11 = vor.u32 %v19645_v46, %v15368_v54  ;;  %v12030_v54 = vpop.f32.mrf.mxu2 }
 0x729   :  { %12307 = vmatpush.bf16.msra.mxu3 %v16779_v16  ;;  %12274 = vmatpush.bf16.msrb.mxu2 %v12939_v53  ;;  %v17672_v22 = vld [vmem:[%s30893_s1 + $0x26f8] sm:$0xf0] }
 0x72a   :  { %v20477_v27 = vld [vmem:[%s30893_s1 + $0x2e7c] sm:$0xf]  ;;  %v17675_v49 = vor.u32 %v20221_v2, %v17672_v22 }
 0x72b   :  { %12295 = vmatpush.bf16.msrb.mxu1 %v15627_v60  ;;  %v18696_v6 = vld [vmem:[%s30893_s1 + $0x2ef8] sm:$0xf0]  ;;  %12288 = vmatpush.bf16.msrb.mxu0 %v13835_v7  ;;  %v12019_v59 = vpop.f32.mrf.mxu1 }
 0x72c   :  { %v19901_v1 = vld [vmem:[%s30893_s1 + $0x1c7c] sm:$0xf]  ;;  %v18699_v0 = vor.u32 %v20477_v27, %v18696_v6 }
 0x72d   :  { %12308 = vmatpush.bf16.msra.mxu3 %v16651_v56  ;;  %12275 = vmatpush.bf16.msrb.mxu2 %v12811_v39  ;;  %v16392_v12 = vld [vmem:[%s30893_s1 + $0x1cf8] sm:$0xf0] }
 0x72e   :  { %v19613_v43 = vld [vmem:[%s30893_s1 + $0x137c] sm:$0xf]  ;;  %v16395_v36 = vor.u32 %v19901_v1, %v16392_v12  ;;  %12289 = vmatmul.bf16.vlgmr.msrb.gmra.mxu0 %v20894_v4 }
 0x72f   :  { %12296 = vmatpush.bf16.msrb.mxu1 %v15499_v44  ;;  %v15240_v38 = vld [vmem:[%s30893_s1 + $0x13f8] sm:$0xf0]  ;;  %12333 = vmatpush.bf16.msra.mxu0 %v18827_v32 }
 0x730   :  { %v20189_v24 = vld [vmem:[%s30893_s1 + $0x257c] sm:$0xf]  ;;  %12276 = vmatmul.bf16.vlgmr.msrb.gmra.mxu2 %v20870_v55  ;;  %v15243_v9 = vor.u32 %v19613_v43, %v15240_v38  ;;  %v12006_v43 = vpop.f32.mrf.mxu3 }
 0x731   :  { %12320 = vmatpush.bf16.msra.mxu2 %v17803_v20  ;;  %v17544_v5 = vld [vmem:[%s30893_s1 + $0x25f8] sm:$0xf0]  ;;  %12309 = vmatpush.bf16.msra.mxu3 %v16523_v21 }
 0x732   :  { %v20445_v34 = vld [vmem:[%s30893_s1 + $0x2d7c] sm:$0xf]  ;;  %v17547_v26 = vor.u32 %v20189_v24, %v17544_v5 }
 0x733   :  { %v18568_v8 = vld [vmem:[%s30893_s1 + $0x2df8] sm:$0xf0]  ;;  %12297 = vmatpush.bf16.msrb.mxu1 %v15371_v11  ;;  %12334 = vmatpush.bf16.msra.mxu0 %v18699_v0 }
 0x734   :  { %v19869_v10 = vld [vmem:[%s30893_s1 + $0x1b7c] sm:$0xf]  ;;  %v18571_v15 = vor.u32 %v20445_v34, %v18568_v8  ;;  %v12045_v34 = vpop.f32.mrf.mxu0 }
 0x735   :  { %v16264_v55 = vld [vmem:[%s30893_s1 + $0x1bf8] sm:$0xf0]  ;;  %12321 = vmatpush.bf16.msra.mxu2 %v17675_v49  ;;  %12310 = vmatpush.bf16.msra.mxu3 %v16395_v36 }
 0x736   :  { %v19581_v14 = vld [vmem:[%s30893_s1 + $0x127c] sm:$0xf]  ;;  %v16267_v3 = vor.u32 %v19869_v10, %v16264_v55 }
 0x737   :  { %v15112_v17 = vld [vmem:[%s30893_s1 + $0x12f8] sm:$0xf0]  ;;  %12298 = vmatpush.bf16.msrb.mxu1 %v15243_v9  ;;  %12335 = vmatpush.bf16.msra.mxu0 %v18571_v15 }
 0x738   :  { %v20157_v16 = vld [vmem:[%s30893_s1 + $0x247c] sm:$0xf]  ;;  %v15115_v25 = vor.u32 %v19581_v14, %v15112_v17 }
 0x739   :  { %v17416_v4 = vld [vmem:[%s30893_s1 + $0x24f8] sm:$0xf0]  ;;  %12322 = vmatpush.bf16.msra.mxu2 %v17547_v26  ;;  %12311 = vmatpush.bf16.msra.mxu3 %v16267_v3  ;;  %v12032_v26 = vpop.f32.mrf.mxu2 }
 0x73a   :  { %v20413_v53 = vld [vmem:[%s30893_s1 + $0x2c7c] sm:$0xf]  ;;  %v17419_v48 = vor.u32 %v20157_v16, %v17416_v4 }
 0x73b   :  { %v18440_v60 = vld [vmem:[%s30893_s1 + $0x2cf8] sm:$0xf0]  ;;  %12299 = vmatpush.bf16.msrb.mxu1 %v15115_v25 }
 0x73c   :  { %v19837_v61 = vld [vmem:[%s30893_s1 + $0x1a7c] sm:$0xf]  ;;  %v18443_v18 = vor.u32 %v20413_v53, %v18440_v60  ;;  %v12018_v60 = vadd.f32 %v30591_v37, %v30618_v63 }
 0x73d   :  { %v16136_v28 = vld [vmem:[%s30893_s1 + $0x1af8] sm:$0xf0]  ;;  %12323 = vmatpush.bf16.msra.mxu2 %v17419_v48  ;;  %v12056_v48 = vpop.f32.mrf.mxu3 }
 0x73e   :  { %v19549_v47 = vld [vmem:[%s30893_s1 + $0x117c] sm:$0xf]  ;;  %v16139_v41 = vor.u32 %v19837_v61, %v16136_v28  ;;  %12336 = vmatpush.bf16.msra.mxu0 %v18443_v18  ;;  %v12031_v25 = vadd.f32 %v12030_v54, %v12018_v60  ;;  %v12069_v61 = vpop.f32.mrf.mxu1 }
 0x73f   :  { %v14984_v50 = vld [vmem:[%s30893_s1 + $0x11f8] sm:$0xf0] }
 0x740   :  { %v20125_v29 = vld [vmem:[%s30893_s1 + $0x237c] sm:$0xf]  ;;  %v14987_v39 = vor.u32 %v19549_v47, %v14984_v50  ;;  %12312 = vmatpush.bf16.msra.mxu3 %v16139_v41  ;;  %v12044_v28 = vadd.f32 %v30638_v40, %v12031_v25  ;;  %v30721_v25 = vpop.permute.xlu0 %12422 }
 0x741   :  { %v17288_v42 = vld [vmem:[%s30893_s1 + $0x23f8] sm:$0xf0] }
 0x742   :  { %v20381_v56 = vld [vmem:[%s30893_s1 + $0x2b7c] sm:$0xf]  ;;  %v17291_v33 = vor.u32 %v20125_v29, %v17288_v42  ;;  %12300 = vmatpush.bf16.msrb.mxu1 %v14987_v39  ;;  %v12057_v47 = vadd.f32 %v12056_v48, %v12044_v28 }
 0x743   :  { %v18312_v19 = vld [vmem:[%s30893_s1 + $0x2bf8] sm:$0xf0] }
 0x744   :  { %v19805_v44 = vld [vmem:[%s30893_s1 + $0x197c] sm:$0xf]  ;;  %v18315_v32 = vor.u32 %v20381_v56, %v18312_v19  ;;  %12324 = vmatpush.bf16.msra.mxu2 %v17291_v33  ;;  %v12070_v18 = vadd.f32 %v12069_v61, %v12057_v47 }
 0x745   :  { %v16008_v13 = vld [vmem:[%s30893_s1 + $0x19f8] sm:$0xf0]  ;;  %v12058_v29 = vpop.f32.mrf.mxu3 }
 0x746   :  { %v19517_v7 = vld [vmem:[%s30893_s1 + $0x107c] sm:$0xf]  ;;  %v16011_v27 = vor.u32 %v19805_v44, %v16008_v13  ;;  %12337 = vmatpush.bf16.msra.mxu0 %v18315_v32  ;;  %v12071_v37 = vpop.f32.mrf.mxu1 }
 0x747   :  { %v14856_v20 = vld [vmem:[%s30893_s1 + $0x10f8] sm:$0xf0] }
 0x748   :  { %v20093_v46 = vld [vmem:[%s30893_s1 + $0x227c] sm:$0xf]  ;;  %v14859_v1 = vor.u32 %v19517_v7, %v14856_v20  ;;  %12313 = vmatpush.bf16.msra.mxu3 %v16011_v27 }
 0x749   :  { %v17160_v2 = vld [vmem:[%s30893_s1 + $0x22f8] sm:$0xf0] }
 0x74a   :  { %v20541_v22 = vld [vmem:[%s30893_s1 + $0x307c] sm:$0xf]  ;;  %v17163_v38 = vor.u32 %v20093_v46, %v17160_v2  ;;  %12301 = vmatpush.bf16.msrb.mxu1 %v14859_v1 }
 0x74b   :  { %v18952_v21 = vld [vmem:[%s30893_s1 + $0x30f8] sm:$0xf0] }
 0x74c   :  { %v20349_v6 = vld [vmem:[%s30893_s1 + $0x2a7c] sm:$0xf]  ;;  %v18955_v0 = vor.u32 %v20541_v22, %v18952_v21  ;;  %12325 = vmatpush.bf16.msra.mxu2 %v17163_v38 }
 0x74d   :  { %v18184_v11 = vld [vmem:[%s30893_s1 + $0x2af8] sm:$0xf0]  ;;  %12302 = vmatmul.bf16.vlgmr.msrb.gmra.mxu1 %v20859_v51  ;;  %v12082_v51 = vpop.f32.mrf.mxu2 }
 0x74e   :  { %v19773_v12 = vld [vmem:[%s30893_s1 + $0x187c] sm:$0xf]  ;;  %v18187_v24 = vor.u32 %v20349_v6, %v18184_v11  ;;  %12353 = vmatpush.bf16.msra.mxu1 %v18955_v0  ;;  %v12083_v63 = vadd.f32 %v12082_v51, %v12070_v18 }
 0x74f   :  { %v15880_v49 = vld [vmem:[%s30893_s1 + $0x18f8] sm:$0xf0] }
 0x750   :  { %v20061_v5 = vld [vmem:[%s30893_s1 + $0x217c] sm:$0xf]  ;;  %v15883_v8 = vor.u32 %v19773_v12, %v15880_v49  ;;  %12338 = vmatpush.bf16.msra.mxu0 %v18187_v24  ;;  %12559 = vrot.lane.b32.xlu1 %v12083_v63, %s20587_s7  ;;  %v30723_v63 = vpop.permute.xlu0 %12437 }
 0x751   :  { %v17032_v36 = vld [vmem:[%s30893_s1 + $0x21f8] sm:$0xf0] }
 0x752   :  { %v20317_v9 = vld [vmem:[%s30893_s1 + $0x297c] sm:$0xf]  ;;  %v17035_v55 = vor.u32 %v20061_v5, %v17032_v36  ;;  %12314 = vmatpush.bf16.msra.mxu3 %v15883_v8 }
 0x753   :  { %v18056_v10 = vld [vmem:[%s30893_s1 + $0x29f8] sm:$0xf0] }
 0x754   :  { %v18059_v14 = vor.u32 %v20317_v9, %v18056_v10  ;;  %v20029_v17 = vld [vmem:[%s30893_s1 + $0x207c] sm:$0xf]  ;;  %12326 = vmatpush.bf16.msra.mxu2 %v17035_v55 }
 0x755   :  { %v16904_v15 = vld [vmem:[%s30893_s1 + $0x20f8] sm:$0xf0]  ;;  %12315 = vmatmul.bf16.vlgmr.msra.gmra.mxu3 %v20872_v57  ;;  %v12084_v50 = vpop.f32.mrf.mxu2  ;;  %v12095_v57 = vpop.f32.mrf.mxu0 }
 0x756   :  { %v20285_v16 = vld [vmem:[%s30893_s1 + $0x287c] sm:$0xf]  ;;  %v16907_v3 = vor.u32 %v20029_v17, %v16904_v15  ;;  %12339 = vmatpush.bf16.msra.mxu0 %v18059_v14 }
 0x757   :  { %v17928_v4 = vld [vmem:[%s30893_s1 + $0x28f8] sm:$0xf0]  ;;  %s20588_s1 = smov 90  }
 0x758   :  { %v17931_v53 = vor.u32 %v20285_v16, %v17928_v4  ;;  %12327 = vmatpush.bf16.msra.mxu2 %v16907_v3 }
 0x75a   :  { %12340 = vmatpush.bf16.msra.mxu0 %v17931_v53 }
 0x75b   :  { %12328 = vmatmul.bf16.vlgmr.msra.gmra.mxu2 %v21073_v30 }
 0x75d   :  { %12341 = vmatmul.bf16.vlgmr.msra.gmra.mxu0 %v21084_v35  ;;  %18987 = vmatmul.msk.bf16.vlgmr.msra.gmra.mxu1 %vm9443_vm0, %v20982_v45  ;;  %v12108_v42 = vpop.f32.mrf.mxu2  ;;  %v12097_v30 = vpop.f32.mrf.mxu0  ;;  %vm12578_vm0 = vcmask 736256  }
 0x75e   :  { %v12134_v35 = vpop.f32.mrf.mxu1  ;;  %v12109_v56 = vadd.f32 %v12108_v42, %v12095_v57  ;;  %v30726_v30 = vpop.permute.xlu0 %12452 }
 0x75f   :  { %v12121_v19 = vpop.f32.mrf.mxu3 }
 0x760   :  { %v12122_v39 = vadd.f32 %v12121_v19, %v12109_v56  ;;  %v12608_v56 = vld [vmem:[%s30896_s3 + $0x68] sm:$0xff]  ;;  %v12626_v19 = vld [vmem:[%s30896_s3 + $0xf8] sm:$0x3] }
 0x761   :  { %18988 = vmatpush.msk.msrb.mxu1 %vm12635_vm7, %v12626_v19 }
 0x762   :  { %v12135_v44 = vadd.f32 %v12134_v35, %v12122_v39  ;;  %v12609_v35 = vld [vmem:[%s30896_s3 + $0x70] sm:$0xff]  ;;  %v12624_v39 = vld [vmem:[%s30896_s3 + $0xe8] sm:$0xff] }
 0x765   :  { %v12110_v41 = vpop.f32.mrf.mxu2  ;;  %v12147_v40 = vpop.f32.mrf.mxu0 }
 0x766   :  { %v12136_v59 = vpop.f32.mrf.mxu1  ;;  %v12148_v7 = vadd.f32 %v12147_v40, %v12135_v44  ;;  %v12610_v41 = vld [vmem:[%s30896_s3 + $0x78] sm:$0xff]  ;;  %v12625_v40 = vld [vmem:[%s30896_s3 + $0xf0] sm:$0xff]  ;;  %v30749_v44 = vpop.permute.xlu1 %12454 }
 0x767   :  { %v12123_v13 = vpop.f32.mrf.mxu3  ;;  %12639 = vmatpush.msrb.mxu3 %v12610_v41  ;;  %v12607_v59 = vld [vmem:[%s30896_s3 + $0x60] sm:$0xff]  ;;  %12660 = vmatpush.msrb.mxu1 %v12625_v40 }
 0x768   :  { %v12606_v13 = vld [vmem:[%s30896_s3 + $0x58] sm:$0xff] }
 0x769   :  { %12640 = vmatpush.msrb.mxu3 %v12609_v35  ;;  %12661 = vmatpush.msrb.mxu1 %v12624_v39 }
 0x76b   :  { %12641 = vmatpush.msrb.mxu3 %v12608_v56 }
 0x76d   :  { %v12160_v33 = vpop.f32.mrf.mxu2  ;;  %v12149_v45 = vpop.f32.mrf.mxu0  ;;  %12642 = vmatpush.msrb.mxu3 %v12607_v59 }
 0x76e   :  { %v12161_v20 = vadd.f32 %v12160_v33, %v12148_v7  ;;  %v12623_v33 = vld [vmem:[%s30896_s3 + $0xe0] sm:$0xff]  ;;  %v30757_v45 = vpop.permute.xlu0 %12467  ;;  %v12605_v7 = vld [vmem:[%s30896_s3 + $0x50] sm:$0xff] }
 0x76f   :  { %v12173_v46 = vpop.f32.mrf.mxu3  ;;  %12643 = vmatpush.msrb.mxu3 %v12606_v13  ;;  %12662 = vmatpush.msrb.mxu1 %v12623_v33 }
 0x770   :  { %v12174_v54 = vadd.f32 %v12173_v46, %v12161_v20  ;;  %v12622_v20 = vld [vmem:[%s30896_s3 + $0xd8] sm:$0xff]  ;;  %v12604_v46 = vld [vmem:[%s30896_s3 + $0x48] sm:$0xff] }
 0x771   :  { %12644 = vmatpush.msrb.mxu3 %v12605_v7  ;;  %12663 = vmatpush.msrb.mxu1 %v12622_v20 }
 0x772   :  { %12572 = vrot.lane.b32.xlu0 %v12174_v54, %s20588_s1 }
 0x773   :  { %12645 = vmatpush.msrb.mxu3 %v12604_v46 }
 0x775   :  { %v12162_v32 = vpop.f32.mrf.mxu2 }
 0x776   :  { %v12603_v32 = vld [vmem:[%s30896_s3 + $0x40] sm:$0xff] }
 0x777   :  { %v12175_v22 = vpop.f32.mrf.mxu3  ;;  %12646 = vmatpush.msrb.mxu3 %v12603_v32 }
 0x778   :  { %v12602_v22 = vld [vmem:[%s30896_s3 + $0x38] sm:$0xff] }
 0x779   :  { %12647 = vmatpush.msrb.mxu3 %v12602_v22 }
 0x77a   :  { %12546 = vrot.lane.b32.xlu0 %v30494_v62, %s20586_s30 }
 0x77b   :  { %v12186_v2 = vpop.f32.mrf.mxu1 }
 0x783   :  { %v12188_v27 = vpop.f32.mrf.mxu1 }
 0x784   :  { %v12601_v27 = vld [vmem:[%s30896_s3 + $0x30] sm:$0xff] }
 0x785   :  { %12648 = vmatpush.msrb.mxu3 %v12601_v27 }
 0x787   :  { %v12212_v21 = vpop.f32.mrf.mxu0  ;;  %v12199_v6 = vpop.f32.mrf.mxu3 }
 0x788   :  { %v12200_v38 = vadd.f32 %v12199_v6, %v12186_v2  ;;  %v30774_v2 = vpop.permute.xlu1 %12469  ;;  %v12600_v6 = vld [vmem:[%s30896_s3 + $0x28] sm:$0xff] }
 0x789   :  { %12649 = vmatpush.msrb.mxu3 %v12600_v6 }
 0x78a   :  { %v12213_v24 = vadd.f32 %v12212_v21, %v12200_v38  ;;  %v12483_v21 = vpop.permute.xlu0 %12482 }
 0x78f   :  { %v12214_v11 = vpop.f32.mrf.mxu0  ;;  %v12201_v12 = vpop.f32.mrf.mxu3 }
 0x790   :  { %v12599_v11 = vld [vmem:[%s30896_s3 + $0x20] sm:$0xff] }
 0x791   :  { %12650 = vmatpush.msrb.mxu3 %v12599_v11 }
 0x792   :  { %v12498_v12 = vpop.permute.xlu0 %12497 }
 0x793   :  { %v12225_v1 = vpop.f32.mrf.mxu2 }
 0x794   :  { %v12226_v36 = vadd.f32 %v12225_v1, %v12213_v24  ;;  %v30788_v1 = vpop.permute.xlu1 %12484  ;;  %v12598_v24 = vld [vmem:[%s30896_s3 + $0x18] sm:$0xff] }
 0x795   :  { %12651 = vmatpush.msrb.mxu3 %v12598_v24 }
 0x797   :  { %v12264_v49 = vpop.f32.mrf.mxu0 }
 0x79a   :  { %v12513_v38 = vpop.permute.xlu0 %12512 }
 0x79b   :  { %v12227_v43 = vpop.f32.mrf.mxu2 }
 0x79c   :  { %v30792_v43 = vpop.permute.xlu2 %12456 }
 0x79d   :  { %v12460_v39 = vsel %vm12458_vm8, %v30749_v44, %v30792_v43 }
 0x79e   :  { %v12464_v46 = vmax.f32 %v26794_v52, %v12460_v39 }
 0x79f   :  { %v12266_v5 = vpop.f32.mrf.mxu0 }
 0x7a0   :  { %v12620_v5 = vld [vmem:[%s30896_s3 + $0xc8] sm:$0xff] }
 0x7a3   :  { %v12238_v0 = vpop.f32.mrf.mxu1 }
 0x7a4   :  { %v12239_v34 = vadd.f32 %v12238_v0, %v12226_v36  ;;  %v30802_v36 = vpop.permute.xlu2 %12471 }
 0x7a5   :  { %v12475_v7 = vsel %vm12473_vm9, %v30774_v2, %v30802_v36 }
 0x7ab   :  { %v12240_v8 = vpop.f32.mrf.mxu1  ;;  %v12251_v9 = vpop.f32.mrf.mxu3 }
 0x7ac   :  { %v12252_v10 = vadd.f32 %v12251_v9, %v12239_v34  ;;  %v12290_v55 = vpop.f32.mrf.mxu0  ;;  %v12528_v34 = vpop.permute.xlu0 %12527  ;;  %v12597_v8 = vld [vmem:[%s30896_s3 + $0x10] sm:$0xff]  ;;  %v12619_v9 = vld [vmem:[%s30896_s3 + $0xc0] sm:$0xff] }
 0x7ad   :  { %12652 = vmatpush.msrb.mxu3 %v12597_v8 }
 0x7ae   :  { %v12265_v26 = vadd.f32 %v12264_v49, %v12252_v10  ;;  %v30790_v49 = vpop.permute.xlu1 %12499  ;;  %v12596_v10 = vld [vmem:[%s30896_s3 + $0x8] sm:$0xff] }
 0x7af   :  { %12653 = vmatpush.msrb.mxu3 %v12596_v10 }
 0x7b0   :  { %12574 = vrot.lane.b32.xlu1 %v12265_v26, %s20588_s1  ;;  %v12595_v26 = vld [vmem:[%s30896_s3] sm:$0xff] }
 0x7b1   :  { %12654 = vmatpush.msrb.mxu3 %v12595_v26 }
 0x7b3   :  { %v12277_v62 = vpop.f32.mrf.mxu2  ;;  %v12253_v14 = vpop.f32.mrf.mxu3 }
 0x7b4   :  { %v12292_v17 = vpop.f32.mrf.mxu0  ;;  %v12291_v4 = vadd.f32 %v12290_v55, %v12277_v62  ;;  %v12618_v55 = vld [vmem:[%s30896_s3 + $0xb8] sm:$0xff]  ;;  %v12617_v62 = vld [vmem:[%s30896_s3 + $0xb0] sm:$0xff] }
 0x7b5   :  { %v12616_v17 = vld [vmem:[%s30896_s3 + $0xa8] sm:$0xff] }
 0x7b6   :  { %v30794_v0 = vpop.permute.xlu1 %12514 }
 0x7b8   :  { %12561 = vrot.lane.b32.xlu1 %v12174_v54, %s20587_s7  ;;  %v12621_v54 = vld [vmem:[%s30896_s3 + $0xd0] sm:$0xff] }
 0x7b9   :  { %12664 = vmatpush.msrb.mxu1 %v12621_v54 }
 0x7bb   :  { %v12279_v15 = vpop.f32.mrf.mxu2  ;;  %12665 = vmatpush.msrb.mxu1 %v12620_v5 }
 0x7bc   :  { %v12615_v15 = vld [vmem:[%s30896_s3 + $0xa0] sm:$0xff] }
 0x7bd   :  { %12666 = vmatpush.msrb.mxu1 %v12619_v9 }
 0x7be   :  { %v30822_v14 = vpop.permute.xlu1 %12529 }
 0x7bf   :  { %12667 = vmatpush.msrb.mxu1 %v12618_v55  ;;  %v12534_v35 = vsel %vm12533_vm13, %v12528_v34, %v30822_v14 }
 0x7c1   :  { %12668 = vmatpush.msrb.mxu1 %v12617_v62 }
 0x7c3   :  { %12669 = vmatpush.msrb.mxu1 %v12616_v17 }
 0x7c5   :  { %12670 = vmatpush.msrb.mxu1 %v12615_v15 }
 0x7ca   :  { %v12303_v16 = vpop.f32.mrf.mxu1 }
 0x7cb   :  { %v12304_v51 = vadd.f32 %v12303_v16, %v12291_v4  ;;  %v12429_v16 = vsel %vm12428_vm5, %v30721_v25, %v26708_v31  ;;  %v12487_v4 = vpop.permute.xlu2 %12486  ;;  %v12459_v31 = vsel %vm12458_vm8, %v30726_v30, %v30749_v44 }
 0x7cc   :  { %v12490_v54 = vsel %vm12488_vm10, %v30788_v1, %v12487_v4 }
 0x7d2   :  { %v12305_v3 = vpop.f32.mrf.mxu1 }
 0x7d3   :  { %v12543_v3 = vpop.permute.xlu0 %12542 }
 0x7d8   :  { %v12316_v53 = vpop.f32.mrf.mxu3 }
 0x7d9   :  { %v12317_v61 = vadd.f32 %v12316_v53, %v12304_v51  ;;  %v12444_v53 = vsel %vm12443_vm6, %v30723_v63, %v26774_v23  ;;  %v12614_v51 = vld [vmem:[%s30896_s3 + $0x98] sm:$0xff]  ;;  %v12613_v23 = vld [vmem:[%s30896_s3 + $0x90] sm:$0xff]  ;;  %v12504_v63 = vsel %vm12503_vm11, %v12498_v12, %v30790_v49 }
 0x7da   :  { %v12342_v60 = vpop.f32.mrf.mxu0  ;;  %v12355_v47 = vpop.f32.mrf.mxu1  ;;  %12671 = vmatpush.msrb.mxu1 %v12614_v51 }
 0x7dc   :  { %12672 = vmatpush.msrb.mxu1 %v12613_v23 }
 0x7de   :  { %v12329_v28 = vpop.f32.mrf.mxu2 }
 0x7df   :  { %v12330_v48 = vadd.f32 %v12329_v28, %v12317_v61  ;;  %v12545_v61 = vpop.permute.xlu1 %12544 }
 0x7e0   :  { %v12318_v50 = vpop.f32.mrf.mxu3  ;;  %v12549_v40 = vsel %vm12548_vm14, %v12543_v3, %v12545_v61 }
 0x7e1   :  { %v12343_v57 = vadd.f32 %v12342_v60, %v12330_v48  ;;  %v12433_v60 = vmax.f32 %v25397_v58, %v12429_v16  ;;  %v12474_v58 = vsel %vm12473_vm9, %v30757_v45, %v30774_v2  ;;  %v12612_v48 = vld [vmem:[%s30896_s3 + $0x88] sm:$0xff]  ;;  %v12502_v50 = vpop.permute.xlu2 %12501  ;;  %v12585_v45 = vld [vmem:[%s30897_s2] sm:$0x3] }
 0x7e2   :  { %v12344_v18 = vpop.f32.mrf.mxu0  ;;  %v12357_v42 = vpop.f32.mrf.mxu1  ;;  %12673 = vmatpush.msrb.mxu1 %v12612_v48  ;;  %v12587_v44 = vperm.slane %v12585_v45, 0  ;;  %v12505_v6 = vsel %vm12503_vm11, %v30790_v49, %v12502_v50  ;;  %v12588_v26 = vperm.slane %v12585_v45, 1 }
 0x7e3   :  { %v12356_v37 = vadd.f32 %v12355_v47, %v12343_v57  ;;  %v12448_v25 = vmax.f32 %v12433_v60, %v12444_v53  ;;  %v12489_v47 = vsel %vm12488_vm10, %v12483_v21, %v30788_v1  ;;  %v12558_v57 = vpop.permute.xlu0 %12557  ;;  %v12611_v18 = vld [vmem:[%s30896_s3 + $0x80] sm:$0xff]  ;;  %v12519_v42 = vsel %vm12518_vm12, %v12513_v38, %v30794_v0 }
 0x7e4   :  { %12674 = vmatpush.msrb.mxu1 %v12611_v18  ;;  %v12479_v21 = vmax.f32 %v12464_v46, %v12475_v7 }
 0x7e5   :  { %12576 = vrot.lane.b32.xlu2 %v12356_v37, %s20588_s1  ;;  %v12463_v28 = vmax.f32 %v12448_v25, %v12459_v31 }
 0x7e6   :  { %v12331_v29 = vpop.f32.mrf.mxu2  ;;  %v12494_v12 = vmax.f32 %v12479_v21, %v12490_v54 }
 0x7e7   :  { %v12478_v37 = vmax.f32 %v12463_v28, %v12474_v58  ;;  %v12560_v41 = vpop.permute.xlu1 %12559 }
 0x7e8   :  { %v12564_v33 = vsel %vm12563_vm15, %v12558_v57, %v12560_v41  ;;  %v12509_v52 = vmax.f32 %v12494_v12, %v12505_v6 }
 0x7e9   :  { %v12493_v29 = vmax.f32 %v12478_v37, %v12489_v47  ;;  %v12517_v19 = vpop.permute.xlu2 %12516 }
 0x7ea   :  { %v12520_v2 = vsel %vm12518_vm12, %v30794_v0, %v12517_v19 }
 0x7eb   :  { %v12508_v30 = vmax.f32 %v12493_v29, %v12504_v63  ;;  %v12573_v59 = vpop.permute.xlu0 %12572  ;;  %v12524_v36 = vmax.f32 %v12509_v52, %v12520_v2 }
 0x7ed   :  { %v12523_v56 = vmax.f32 %v12508_v30, %v12519_v42 }
 0x7ef   :  { %v12538_v13 = vmax.f32 %v12523_v56, %v12534_v35 }
 0x7f1   :  { %v12553_v20 = vmax.f32 %v12538_v13, %v12549_v40  ;;  %v12532_v43 = vpop.permute.xlu2 %12531 }
 0x7f2   :  { %v12535_v1 = vsel %vm12533_vm13, %v30822_v14, %v12532_v43  ;;  %v20573_v14 = vld [vmem:[%s30895_s4] ss:$0 sm:$0xff] }
 0x7f3   :  { %v12568_v32 = vmax.f32 %v12553_v20, %v12564_v33  ;;  %v12547_v24 = vpop.permute.xlu0 %12546  ;;  %v12539_v9 = vmax.f32 %v12524_v36, %v12535_v1 }
 0x7f4   :  { %v12550_v34 = vsel %vm12548_vm14, %v12545_v61, %v12547_v24 }
 0x7f5   :  { %v12554_v10 = vmax.f32 %v12539_v9, %v12550_v34 }
 0x822   :  { %v12575_v22 = vpop.permute.xlu1 %12574 }
 0x823   :  { %v12579_v27 = vsel %vm12578_vm0, %v12573_v59, %v12575_v22 }
 0x824   :  { %v12583_v11 = vmax.f32 %v12568_v32, %v12579_v27 }
 0x826   :  { %v12591_v38 = vadd.f32 %v12587_v44, %v12583_v11 }
 0x828   :  { %v12593_v5 = vmax.f32 %v12591_v38, 0.0 }
 0x82a   :  { %v12562_v8 = vpop.permute.xlu1 %12561  ;;  %12655 = vmatmul.f32.vlgmr.msrb.gmra.mxu3 %v12593_v5 }
 0x82b   :  { %v12565_v49 = vsel %vm12563_vm15, %v12560_v41, %v12562_v8 }
 0x82c   :  { %v12569_v55 = vmax.f32 %v12554_v10, %v12565_v49 }
 0x83f   :  { %v12577_v62 = vpop.permute.xlu2 %12576 }
 0x840   :  { %v12580_v0 = vsel %vm12578_vm0, %v12575_v22, %v12577_v62 }
 0x841   :  { %v12584_v17 = vmax.f32 %v12569_v55, %v12580_v0 }
 0x843   :  { %v12592_v15 = vadd.f32 %v12588_v26, %v12584_v17 }
 0x845   :  { %v12594_v16 = vmax.f32 %v12592_v15, 0.0 }
 0x847   :  { %18989 = vmatmul.msk.f32.vlgmr.msrb.gmra.mxu1 %vm12631_vm1, %v12594_v16 }
 0x8ad   :  { %v12656_v4 = vpop.f32.mrf.mxu3 }
 0x8ae   :  { %v12657_v3 = vadd.f32 %v20573_v14, %v12656_v4 }
 0x8c4   :  { %v12676_v53 = vpop.f32.mrf.mxu1 }
 0x8c5   :  { %v12677_v60 = vadd.f32 %v12676_v53, %v12657_v3 }
 0x8c7   :  { %12679 = vst [vmem:[%s30898_s5] sm:$0xff] %v12677_v60 }

</bundles_post_ra>
